<compile_context>
chip_gen: v6e
topology: v6e:2x2x1
jax: 0.10.0
libtpu: 0.0.40
codegen_flags: <defaults>
</compile_context>

<pallas_src>
import jax
import jax.numpy as jnp
from jax import lax
from jax.experimental import pallas as pl
from jax.experimental.pallas import tpu as pltpu

EPS = 1e-5                      # nn.BatchNorm1d default eps
KSIZE = 5                       # conv kernel size
PAD = (KSIZE - 1) // 2          # 'same' padding for odd kernel
POOL = 4                        # MaxPool1d window / stride
LATENT = 30                     # latent_dim
L_IN = LATENT * POOL * POOL     # 480 (input length fixed by the module)
FEAT = 64 * LATENT              # 1920 classifier features


# ---------------------------------------------------------------------------
# In-kernel helpers (traced inside the encoder kernel)
# ---------------------------------------------------------------------------
def _shifted_tap(x, s, seg_len):
    """x: (C, B*seg_len) with lane index g = b*seg_len + l.

    Returns t with t[:, b*seg_len + l] = x[:, b*seg_len + (l+s)] when
    0 <= l+s < seg_len and 0 otherwise (Conv1d 'same' zero padding applied
    independently inside every batch segment)."""
    C, N = x.shape
    if s == 0:
        return x
    zpad = jnp.zeros((C, abs(s)), jnp.float32)
    if s > 0:
        t = jnp.concatenate([x[:, s:], zpad], axis=1)
    else:
        t = jnp.concatenate([zpad, x[:, :N + s]], axis=1)
    lane = jax.lax.broadcasted_iota(jnp.int32, (1, N), 1) % seg_len
    valid = jnp.logical_and(lane + s >= 0, lane + s < seg_len)
    return jnp.where(valid, t, 0.0)


def _conv_bn_relu(x, w, gamma, beta, seg_len):
    """Conv1d(K=5, 'same', no bias) -> BatchNorm1d(batch stats) -> ReLU.

    x: (Ci, B*seg_len); w: (Co, K*Ci) with column index k*Ci + ci.
    Returns (Co, B*seg_len)."""
    Ci, N = x.shape
    taps = [_shifted_tap(x, k - PAD, seg_len) for k in range(KSIZE)]
    if Ci == 1:
        # Rank-1 taps: (Co,1) * (1,N) outer products stay on the VPU.
        y = w[:, 0:1] * taps[0]
        for k in range(1, KSIZE):
            y = y + w[:, k:k + 1] * taps[k]
    else:
        slab = jnp.concatenate(taps, axis=0)                         # (K*Ci, N)
        y = jnp.dot(w, slab, preferred_element_type=jnp.float32)     # (Co, N)

    # One-pass batch statistics over (B, L) per channel (biased variance,
    # PyTorch training-mode normalization).  Conv bias is omitted because it
    # would be exactly cancelled by the mean subtraction here.
    inv_n = 1.0 / float(N)
    mean = jnp.sum(y, axis=1, keepdims=True) * inv_n
    var = jnp.maximum(jnp.sum(y * y, axis=1, keepdims=True) * inv_n
                      - mean * mean, 0.0)
    scale = lax.rsqrt(var + EPS) * gamma
    return jnp.maximum((y - mean) * scale + beta, 0.0)


def _maxpool4(y):
    """MaxPool1d(4) along lanes.  y: (C, N), N = B*seg_len, seg_len % 4 == 0.

    Window max via shifted copies, downsample via a 0/1 selection matmul
    (selected windows never cross batch segments since seg_len % 4 == 0)."""
    C, N = y.shape
    m = y
    for j in range(1, POOL):
        sh = jnp.concatenate([y[:, j:], jnp.zeros((C, j), jnp.float32)], axis=1)
        m = jnp.maximum(m, sh)
    Np = N // POOL
    rows = jax.lax.broadcasted_iota(jnp.int32, (N, Np), 0)
    cols = jax.lax.broadcasted_iota(jnp.int32, (N, Np), 1)
    sel = (rows == POOL * cols).astype(jnp.float32)                  # (N, N//4)
    return jnp.dot(m, sel, preferred_element_type=jnp.float32)       # (C, N//4)


# ---------------------------------------------------------------------------
# Kernels
# ---------------------------------------------------------------------------
def encoder_kernel(x_ref, w1_ref, g1_ref, b1_ref, w2_ref, g2_ref, b2_ref,
                   w3_ref, g3_ref, b3_ref, out_ref):
    """Fused encoder.  x_ref: (1, B*480).  out_ref: (B*30, 64), transposed so
    the host-side reshape to (B, 1920) is a free contiguous reshape."""
    h = _conv_bn_relu(x_ref[...], w1_ref[...], g1_ref[...], b1_ref[...], L_IN)
    h = _maxpool4(h)                                                    # (16, B*120)
    h = _conv_bn_relu(h, w2_ref[...], g2_ref[...], b2_ref[...], LATENT * POOL)
    h = _maxpool4(h)                                                    # (32, B*30)
    h = _conv_bn_relu(h, w3_ref[...], g3_ref[...], b3_ref[...], LATENT)  # (64, B*30)
    out_ref[...] = jnp.transpose(h, (1, 0))                             # (B*30, 64)


def classifier_kernel(x_ref, g_ref, b_ref, w1_ref, b1_ref, w2_ref, b2_ref,
                      w3_ref, b3_ref, o_ref):
    """BatchNorm1d(1920, batch stats) -> Linear(1920,64)+ReLU ->
    Linear(64,32)+ReLU -> Linear(32,2) -> Softmax(dim=1)."""
    x = x_ref[...]                                                      # (B, 1920)
    B = x.shape[0]
    inv_b = 1.0 / float(B)
    mean = jnp.sum(x, axis=0, keepdims=True) * inv_b
    var = jnp.maximum(jnp.sum(x * x, axis=0, keepdims=True) * inv_b
                      - mean * mean, 0.0)
    h = (x - mean) * (lax.rsqrt(var + EPS) * g_ref[...]) + b_ref[...]

    h = jnp.maximum(jnp.dot(h, w1_ref[...],
                            preferred_element_type=jnp.float32) + b1_ref[...], 0.0)
    h = jnp.maximum(jnp.dot(h, w2_ref[...],
                            preferred_element_type=jnp.float32) + b2_ref[...], 0.0)
    z = jnp.dot(h, w3_ref[...], preferred_element_type=jnp.float32) + b3_ref[...]

    # Softmax over the class axis (nn.Softmax() on 2-D input -> dim=1).  The
    # reduction is 2-wide, so exact division costs nothing.
    z = z - jnp.max(z, axis=-1, keepdims=True)
    e = jnp.exp(z)
    o_ref[...] = e / jnp.sum(e, axis=-1, keepdims=True)


# ---------------------------------------------------------------------------
# Wrappers (pallas_call glue)
# ---------------------------------------------------------------------------
_VMEM = pl.BlockSpec(memory_space=pltpu.MemorySpace.VMEM)


def encoder_call(x2d, params):
    B = x2d.shape[1] // L_IN
    return pl.pallas_call(
        encoder_kernel,
        out_shape=jax.ShapeDtypeStruct((B * LATENT, 64), jnp.float32),
        in_specs=[_VMEM] * 10,
        out_specs=_VMEM,
    )(x2d,
      params['conv1']['w'], params['conv1']['gamma'], params['conv1']['beta'],
      params['conv2']['w'], params['conv2']['gamma'], params['conv2']['beta'],
      params['conv3']['w'], params['conv3']['gamma'], params['conv3']['beta'])


def classifier_call(flat, p):
    B = flat.shape[0]
    return pl.pallas_call(
        classifier_kernel,
        out_shape=jax.ShapeDtypeStruct((B, 2), jnp.float32),
        in_specs=[_VMEM] * 9,
        out_specs=_VMEM,
    )(flat, p['bn_g'], p['bn_b'], p['w1'], p['b1'], p['w2'], p['b2'],
      p['w3'], p['b3'])


def asynch_forward(x, params):
    """x: (B, 1, 480) float32 (PyTorch NCL).  Returns softmax(...)[:, 1], shape (B,)."""
    B = x.shape[0]
    # Fold batch into lanes: (B, 1, 480) -> (1, B*480) is a free contiguous reshape.
    x2d = x.reshape(1, B * L_IN)
    hT = encoder_call(x2d, params)                 # (B*30, 64)
    flat = hT.reshape(B, FEAT)                     # free reshape; feature j = l*64 + c
    probs = classifier_call(flat, params['cls'])   # (B, 2)
    return probs[:, 1]


# ---------------------------------------------------------------------------
# Deterministic parameter initialization (PyTorch-like shapes / default init)
# ---------------------------------------------------------------------------
def _uniform(key, shape, fan_in):
    bound = 1.0 / (fan_in ** 0.5)
    return jax.random.uniform(key, shape, jnp.float32, -bound, bound)


def init_params(key):
    ks = jax.random.split(key, 9)

    def conv_block(kw, ci, co):
        w = _uniform(kw, (co, ci, KSIZE), ci * KSIZE)   # torch Conv1d weight (Co,Ci,K)
        # Conv bias omitted: with batch-statistics BatchNorm right after the
        # conv, a per-channel constant is exactly cancelled by the mean
        # subtraction and never affects the output.
        return dict(
            w=jnp.transpose(w, (0, 2, 1)).reshape(co, KSIZE * ci),  # (Co, K*Ci), col k*Ci+ci
            gamma=jnp.ones((co, 1), jnp.float32),
            beta=jnp.zeros((co, 1), jnp.float32))

    params = {
        'conv1': conv_block(ks[0], 1, 16),
        'conv2': conv_block(ks[1], 16, 32),
        'conv3': conv_block(ks[2], 32, 64),
    }

    # Classifier params in PyTorch layout first.
    w1_t = _uniform(ks[3], (64, FEAT), FEAT)            # Linear(1920,64).weight
    b1 = _uniform(ks[4], (64,), FEAT)
    w2_t = _uniform(ks[5], (32, 64), 64)
    b2 = _uniform(ks[6], (32,), 64)
    w3_t = _uniform(ks[7], (2, 32), 32)
    b3 = _uniform(ks[8], (2,), 32)
    bn_g = jnp.ones((FEAT,), jnp.float32)
    bn_b = jnp.zeros((FEAT,), jnp.float32)

    # The encoder kernel emits features in order j = l*64 + c, while PyTorch's
    # Flatten uses f = c*30 + l.  Permute the classifier BN params and the
    # first Linear's input rows once, host-side, so the fused layout needs no
    # runtime data movement (per-feature BN stats are permutation-consistent).
    j = jnp.arange(FEAT)
    f = (j % 64) * LATENT + (j // 64)
    params['cls'] = dict(
        bn_g=bn_g[f].reshape(1, FEAT),
        bn_b=bn_b[f].reshape(1, FEAT),
        w1=jnp.transpose(w1_t)[f, :],                   # (1920, 64), rows permuted
        b1=b1.reshape(1, 64),
        w2=jnp.transpose(w2_t),                         # (64, 32)
        b2=b2.reshape(1, 32),
        w3=jnp.transpose(w3_t),                         # (32, 2)
        b3=b3.reshape(1, 2),
    )
    return params


# ---------------------------------------------------------------------------
if __name__ == "__main__":
    key = jax.random.PRNGKey(0)
    kx, kp = jax.random.split(key)

    B = 2                                # input length fixed by the module: 480
    x = jax.random.normal(kx, (B, 1, L_IN), jnp.float32)
    params = init_params(kp)

    fwd = jax.jit(asynch_forward)
    out = jax.block_until_ready(fwd(x, params))

    assert out.shape == (B,), out.shape
    assert bool(jnp.all(jnp.isfinite(out)))
    assert bool(jnp.all((out >= 0.0) & (out <= 1.0)))
    print("KERNEL_OK")
</pallas_src>

<mosaic_0001>
module attributes {stable_mosaic.version = 11 : i64} {
  func.func @encoder_kernel(%arg0: memref<1x960xf32, #tpu.memory_space<vmem>>, %arg1: memref<16x5xf32, #tpu.memory_space<vmem>>, %arg2: memref<16x1xf32, #tpu.memory_space<vmem>>, %arg3: memref<16x1xf32, #tpu.memory_space<vmem>>, %arg4: memref<32x80xf32, #tpu.memory_space<vmem>>, %arg5: memref<32x1xf32, #tpu.memory_space<vmem>>, %arg6: memref<32x1xf32, #tpu.memory_space<vmem>>, %arg7: memref<64x160xf32, #tpu.memory_space<vmem>>, %arg8: memref<64x1xf32, #tpu.memory_space<vmem>>, %arg9: memref<64x1xf32, #tpu.memory_space<vmem>>, %arg10: memref<60x64xf32, #tpu.memory_space<vmem>>) attributes {dimension_semantics = [], scalar_prefetch = 0 : i64, scratch_operands = 0 : i64, tpu.core_type = #tpu.core_type<tc>} {
    %c0 = arith.constant 0 : index
    %c0_0 = arith.constant 0 : index
    %0 = vector.load %arg0[%c0, %c0_0] : memref<1x960xf32, #tpu.memory_space<vmem>>, vector<1x960xf32>
    %c0_1 = arith.constant 0 : index
    %c0_2 = arith.constant 0 : index
    %1 = vector.load %arg1[%c0_1, %c0_2] : memref<16x5xf32, #tpu.memory_space<vmem>>, vector<16x5xf32>
    %c0_3 = arith.constant 0 : index
    %c0_4 = arith.constant 0 : index
    %2 = vector.load %arg2[%c0_3, %c0_4] : memref<16x1xf32, #tpu.memory_space<vmem>>, vector<16x1xf32>
    %c0_5 = arith.constant 0 : index
    %c0_6 = arith.constant 0 : index
    %3 = vector.load %arg3[%c0_5, %c0_6] : memref<16x1xf32, #tpu.memory_space<vmem>>, vector<16x1xf32>
    %cst = arith.constant 0.000000e+00 : f32
    %4 = vector.broadcast %cst : f32 to vector<1x2xf32>
    %5 = vector.extract_strided_slice %0 {offsets = [0, 0], sizes = [1, 958], strides = [1, 1]} : vector<1x960xf32> to vector<1x958xf32>
    %6 = tpu.concatenate %4, %5 in 1 : vector<1x2xf32>, vector<1x958xf32> -> vector<1x960xf32>
    %7 = tpu.iota {dimensions = array<i32: 1>} : vector<1x960xi32>
    %c480_i32 = arith.constant 480 : i32
    %c0_i32 = arith.constant 0 : i32
    %8 = arith.cmpi eq, %c480_i32, %c0_i32 : i32
    %c1_i32 = arith.constant 1 : i32
    %9 = arith.select %8, %c1_i32, %c480_i32 : i32
    %10 = vector.broadcast %9 : i32 to vector<1x960xi32>
    %11 = arith.remsi %7, %10 : vector<1x960xi32>
    %c0_i32_7 = arith.constant 0 : i32
    %12 = vector.broadcast %c0_i32_7 : i32 to vector<1x960xi32>
    %13 = arith.cmpi ne, %11, %12 : vector<1x960xi32>
    %c0_i32_8 = arith.constant 0 : i32
    %14 = vector.broadcast %c0_i32_8 : i32 to vector<1x960xi32>
    %15 = arith.cmpi slt, %11, %14 : vector<1x960xi32>
    %c0_i32_9 = arith.constant 0 : i32
    %16 = arith.cmpi slt, %9, %c0_i32_9 : i32
    %17 = vector.broadcast %16 : i1 to vector<1x960xi1>
    %18 = vector.broadcast %17 : vector<1x960xi1> to vector<1x960xi1>
    %19 = arith.xori %15, %18 : vector<1x960xi1>
    %20 = arith.andi %19, %13 : vector<1x960xi1>
    %21 = vector.broadcast %9 : i32 to vector<1x960xi32>
    %22 = arith.addi %11, %21 : vector<1x960xi32>
    %23 = arith.select %20, %22, %11 : vector<1x960xi1>, vector<1x960xi32>
    %c-2_i32 = arith.constant -2 : i32
    %24 = vector.broadcast %c-2_i32 : i32 to vector<1x960xi32>
    %25 = arith.addi %23, %24 : vector<1x960xi32>
    %c0_i32_10 = arith.constant 0 : i32
    %26 = vector.broadcast %c0_i32_10 : i32 to vector<1x960xi32>
    %27 = arith.cmpi sge, %25, %26 : vector<1x960xi32>
    %c-2_i32_11 = arith.constant -2 : i32
    %28 = vector.broadcast %c-2_i32_11 : i32 to vector<1x960xi32>
    %29 = arith.addi %23, %28 : vector<1x960xi32>
    %c480_i32_12 = arith.constant 480 : i32
    %30 = vector.broadcast %c480_i32_12 : i32 to vector<1x960xi32>
    %31 = arith.cmpi slt, %29, %30 : vector<1x960xi32>
    %32 = arith.andi %27, %31 : vector<1x960xi1>
    %cst_13 = arith.constant 0.000000e+00 : f32
    %33 = vector.broadcast %cst_13 : f32 to vector<1x960xf32>
    %34 = arith.select %32, %6, %33 : vector<1x960xi1>, vector<1x960xf32>
    %cst_14 = arith.constant 0.000000e+00 : f32
    %35 = vector.broadcast %cst_14 : f32 to vector<1x1xf32>
    %36 = vector.extract_strided_slice %0 {offsets = [0, 0], sizes = [1, 959], strides = [1, 1]} : vector<1x960xf32> to vector<1x959xf32>
    %37 = tpu.concatenate %35, %36 in 1 : vector<1x1xf32>, vector<1x959xf32> -> vector<1x960xf32>
    %38 = tpu.iota {dimensions = array<i32: 1>} : vector<1x960xi32>
    %c480_i32_15 = arith.constant 480 : i32
    %c0_i32_16 = arith.constant 0 : i32
    %39 = arith.cmpi eq, %c480_i32_15, %c0_i32_16 : i32
    %c1_i32_17 = arith.constant 1 : i32
    %40 = arith.select %39, %c1_i32_17, %c480_i32_15 : i32
    %41 = vector.broadcast %40 : i32 to vector<1x960xi32>
    %42 = arith.remsi %38, %41 : vector<1x960xi32>
    %c0_i32_18 = arith.constant 0 : i32
    %43 = vector.broadcast %c0_i32_18 : i32 to vector<1x960xi32>
    %44 = arith.cmpi ne, %42, %43 : vector<1x960xi32>
    %c0_i32_19 = arith.constant 0 : i32
    %45 = vector.broadcast %c0_i32_19 : i32 to vector<1x960xi32>
    %46 = arith.cmpi slt, %42, %45 : vector<1x960xi32>
    %c0_i32_20 = arith.constant 0 : i32
    %47 = arith.cmpi slt, %40, %c0_i32_20 : i32
    %48 = vector.broadcast %47 : i1 to vector<1x960xi1>
    %49 = vector.broadcast %48 : vector<1x960xi1> to vector<1x960xi1>
    %50 = arith.xori %46, %49 : vector<1x960xi1>
    %51 = arith.andi %50, %44 : vector<1x960xi1>
    %52 = vector.broadcast %40 : i32 to vector<1x960xi32>
    %53 = arith.addi %42, %52 : vector<1x960xi32>
    %54 = arith.select %51, %53, %42 : vector<1x960xi1>, vector<1x960xi32>
    %c-1_i32 = arith.constant -1 : i32
    %55 = vector.broadcast %c-1_i32 : i32 to vector<1x960xi32>
    %56 = arith.addi %54, %55 : vector<1x960xi32>
    %c0_i32_21 = arith.constant 0 : i32
    %57 = vector.broadcast %c0_i32_21 : i32 to vector<1x960xi32>
    %58 = arith.cmpi sge, %56, %57 : vector<1x960xi32>
    %c-1_i32_22 = arith.constant -1 : i32
    %59 = vector.broadcast %c-1_i32_22 : i32 to vector<1x960xi32>
    %60 = arith.addi %54, %59 : vector<1x960xi32>
    %c480_i32_23 = arith.constant 480 : i32
    %61 = vector.broadcast %c480_i32_23 : i32 to vector<1x960xi32>
    %62 = arith.cmpi slt, %60, %61 : vector<1x960xi32>
    %63 = arith.andi %58, %62 : vector<1x960xi1>
    %cst_24 = arith.constant 0.000000e+00 : f32
    %64 = vector.broadcast %cst_24 : f32 to vector<1x960xf32>
    %65 = arith.select %63, %37, %64 : vector<1x960xi1>, vector<1x960xf32>
    %cst_25 = arith.constant 0.000000e+00 : f32
    %66 = vector.broadcast %cst_25 : f32 to vector<1x1xf32>
    %67 = vector.extract_strided_slice %0 {offsets = [0, 1], sizes = [1, 959], strides = [1, 1]} : vector<1x960xf32> to vector<1x959xf32>
    %68 = tpu.concatenate %67, %66 in 1 : vector<1x959xf32>, vector<1x1xf32> -> vector<1x960xf32>
    %69 = tpu.iota {dimensions = array<i32: 1>} : vector<1x960xi32>
    %c480_i32_26 = arith.constant 480 : i32
    %c0_i32_27 = arith.constant 0 : i32
    %70 = arith.cmpi eq, %c480_i32_26, %c0_i32_27 : i32
    %c1_i32_28 = arith.constant 1 : i32
    %71 = arith.select %70, %c1_i32_28, %c480_i32_26 : i32
    %72 = vector.broadcast %71 : i32 to vector<1x960xi32>
    %73 = arith.remsi %69, %72 : vector<1x960xi32>
    %c0_i32_29 = arith.constant 0 : i32
    %74 = vector.broadcast %c0_i32_29 : i32 to vector<1x960xi32>
    %75 = arith.cmpi ne, %73, %74 : vector<1x960xi32>
    %c0_i32_30 = arith.constant 0 : i32
    %76 = vector.broadcast %c0_i32_30 : i32 to vector<1x960xi32>
    %77 = arith.cmpi slt, %73, %76 : vector<1x960xi32>
    %c0_i32_31 = arith.constant 0 : i32
    %78 = arith.cmpi slt, %71, %c0_i32_31 : i32
    %79 = vector.broadcast %78 : i1 to vector<1x960xi1>
    %80 = vector.broadcast %79 : vector<1x960xi1> to vector<1x960xi1>
    %81 = arith.xori %77, %80 : vector<1x960xi1>
    %82 = arith.andi %81, %75 : vector<1x960xi1>
    %83 = vector.broadcast %71 : i32 to vector<1x960xi32>
    %84 = arith.addi %73, %83 : vector<1x960xi32>
    %85 = arith.select %82, %84, %73 : vector<1x960xi1>, vector<1x960xi32>
    %c1_i32_32 = arith.constant 1 : i32
    %86 = vector.broadcast %c1_i32_32 : i32 to vector<1x960xi32>
    %87 = arith.addi %85, %86 : vector<1x960xi32>
    %c0_i32_33 = arith.constant 0 : i32
    %88 = vector.broadcast %c0_i32_33 : i32 to vector<1x960xi32>
    %89 = arith.cmpi sge, %87, %88 : vector<1x960xi32>
    %c1_i32_34 = arith.constant 1 : i32
    %90 = vector.broadcast %c1_i32_34 : i32 to vector<1x960xi32>
    %91 = arith.addi %85, %90 : vector<1x960xi32>
    %c480_i32_35 = arith.constant 480 : i32
    %92 = vector.broadcast %c480_i32_35 : i32 to vector<1x960xi32>
    %93 = arith.cmpi slt, %91, %92 : vector<1x960xi32>
    %94 = arith.andi %89, %93 : vector<1x960xi1>
    %cst_36 = arith.constant 0.000000e+00 : f32
    %95 = vector.broadcast %cst_36 : f32 to vector<1x960xf32>
    %96 = arith.select %94, %68, %95 : vector<1x960xi1>, vector<1x960xf32>
    %cst_37 = arith.constant 0.000000e+00 : f32
    %97 = vector.broadcast %cst_37 : f32 to vector<1x2xf32>
    %98 = vector.extract_strided_slice %0 {offsets = [0, 2], sizes = [1, 958], strides = [1, 1]} : vector<1x960xf32> to vector<1x958xf32>
    %99 = tpu.concatenate %98, %97 in 1 : vector<1x958xf32>, vector<1x2xf32> -> vector<1x960xf32>
    %100 = tpu.iota {dimensions = array<i32: 1>} : vector<1x960xi32>
    %c480_i32_38 = arith.constant 480 : i32
    %c0_i32_39 = arith.constant 0 : i32
    %101 = arith.cmpi eq, %c480_i32_38, %c0_i32_39 : i32
    %c1_i32_40 = arith.constant 1 : i32
    %102 = arith.select %101, %c1_i32_40, %c480_i32_38 : i32
    %103 = vector.broadcast %102 : i32 to vector<1x960xi32>
    %104 = arith.remsi %100, %103 : vector<1x960xi32>
    %c0_i32_41 = arith.constant 0 : i32
    %105 = vector.broadcast %c0_i32_41 : i32 to vector<1x960xi32>
    %106 = arith.cmpi ne, %104, %105 : vector<1x960xi32>
    %c0_i32_42 = arith.constant 0 : i32
    %107 = vector.broadcast %c0_i32_42 : i32 to vector<1x960xi32>
    %108 = arith.cmpi slt, %104, %107 : vector<1x960xi32>
    %c0_i32_43 = arith.constant 0 : i32
    %109 = arith.cmpi slt, %102, %c0_i32_43 : i32
    %110 = vector.broadcast %109 : i1 to vector<1x960xi1>
    %111 = vector.broadcast %110 : vector<1x960xi1> to vector<1x960xi1>
    %112 = arith.xori %108, %111 : vector<1x960xi1>
    %113 = arith.andi %112, %106 : vector<1x960xi1>
    %114 = vector.broadcast %102 : i32 to vector<1x960xi32>
    %115 = arith.addi %104, %114 : vector<1x960xi32>
    %116 = arith.select %113, %115, %104 : vector<1x960xi1>, vector<1x960xi32>
    %c2_i32 = arith.constant 2 : i32
    %117 = vector.broadcast %c2_i32 : i32 to vector<1x960xi32>
    %118 = arith.addi %116, %117 : vector<1x960xi32>
    %c0_i32_44 = arith.constant 0 : i32
    %119 = vector.broadcast %c0_i32_44 : i32 to vector<1x960xi32>
    %120 = arith.cmpi sge, %118, %119 : vector<1x960xi32>
    %c2_i32_45 = arith.constant 2 : i32
    %121 = vector.broadcast %c2_i32_45 : i32 to vector<1x960xi32>
    %122 = arith.addi %116, %121 : vector<1x960xi32>
    %c480_i32_46 = arith.constant 480 : i32
    %123 = vector.broadcast %c480_i32_46 : i32 to vector<1x960xi32>
    %124 = arith.cmpi slt, %122, %123 : vector<1x960xi32>
    %125 = arith.andi %120, %124 : vector<1x960xi1>
    %cst_47 = arith.constant 0.000000e+00 : f32
    %126 = vector.broadcast %cst_47 : f32 to vector<1x960xf32>
    %127 = arith.select %125, %99, %126 : vector<1x960xi1>, vector<1x960xf32>
    %128 = vector.extract_strided_slice %1 {offsets = [0, 0], sizes = [16, 1], strides = [1, 1]} : vector<16x5xf32> to vector<16x1xf32>
    %129 = vector.broadcast %128 : vector<16x1xf32> to vector<16x960xf32>
    %130 = vector.broadcast %34 : vector<1x960xf32> to vector<16x960xf32>
    %131 = arith.mulf %129, %130 : vector<16x960xf32>
    %132 = vector.extract_strided_slice %1 {offsets = [0, 1], sizes = [16, 1], strides = [1, 1]} : vector<16x5xf32> to vector<16x1xf32>
    %133 = vector.broadcast %132 : vector<16x1xf32> to vector<16x960xf32>
    %134 = vector.broadcast %65 : vector<1x960xf32> to vector<16x960xf32>
    %135 = arith.mulf %133, %134 : vector<16x960xf32>
    %136 = arith.addf %131, %135 : vector<16x960xf32>
    %137 = vector.extract_strided_slice %1 {offsets = [0, 2], sizes = [16, 1], strides = [1, 1]} : vector<16x5xf32> to vector<16x1xf32>
    %138 = vector.broadcast %137 : vector<16x1xf32> to vector<16x960xf32>
    %139 = vector.broadcast %0 : vector<1x960xf32> to vector<16x960xf32>
    %140 = arith.mulf %138, %139 : vector<16x960xf32>
    %141 = arith.addf %136, %140 : vector<16x960xf32>
    %142 = vector.extract_strided_slice %1 {offsets = [0, 3], sizes = [16, 1], strides = [1, 1]} : vector<16x5xf32> to vector<16x1xf32>
    %143 = vector.broadcast %142 : vector<16x1xf32> to vector<16x960xf32>
    %144 = vector.broadcast %96 : vector<1x960xf32> to vector<16x960xf32>
    %145 = arith.mulf %143, %144 : vector<16x960xf32>
    %146 = arith.addf %141, %145 : vector<16x960xf32>
    %147 = vector.extract_strided_slice %1 {offsets = [0, 4], sizes = [16, 1], strides = [1, 1]} : vector<16x5xf32> to vector<16x1xf32>
    %148 = vector.broadcast %147 : vector<16x1xf32> to vector<16x960xf32>
    %149 = vector.broadcast %127 : vector<1x960xf32> to vector<16x960xf32>
    %150 = arith.mulf %148, %149 : vector<16x960xf32>
    %151 = arith.addf %146, %150 : vector<16x960xf32>
    %cst_48 = arith.constant dense<0.000000e+00> : vector<16xf32>
    %152 = vector.multi_reduction <add>, %151, %cst_48 [1] : vector<16x960xf32> to vector<16xf32>
    %153 = vector.shape_cast %152 : vector<16xf32> to vector<16x1xf32>
    %cst_49 = arith.constant 0.00104166672 : f32
    %154 = vector.broadcast %cst_49 : f32 to vector<16x1xf32>
    %155 = arith.mulf %153, %154 : vector<16x1xf32>
    %156 = arith.mulf %151, %151 : vector<16x960xf32>
    %cst_50 = arith.constant dense<0.000000e+00> : vector<16xf32>
    %157 = vector.multi_reduction <add>, %156, %cst_50 [1] : vector<16x960xf32> to vector<16xf32>
    %158 = vector.shape_cast %157 : vector<16xf32> to vector<16x1xf32>
    %cst_51 = arith.constant 0.00104166672 : f32
    %159 = vector.broadcast %cst_51 : f32 to vector<16x1xf32>
    %160 = arith.mulf %158, %159 : vector<16x1xf32>
    %161 = arith.mulf %155, %155 : vector<16x1xf32>
    %162 = arith.subf %160, %161 : vector<16x1xf32>
    %cst_52 = arith.constant 0.000000e+00 : f32
    %163 = vector.broadcast %cst_52 : f32 to vector<16x1xf32>
    %164 = arith.maximumf %162, %163 : vector<16x1xf32>
    %cst_53 = arith.constant 9.99999974E-6 : f32
    %165 = vector.broadcast %cst_53 : f32 to vector<16x1xf32>
    %166 = arith.addf %164, %165 : vector<16x1xf32>
    %167 = math.rsqrt %166 : vector<16x1xf32>
    %168 = arith.mulf %167, %2 : vector<16x1xf32>
    %169 = vector.broadcast %155 : vector<16x1xf32> to vector<16x960xf32>
    %170 = arith.subf %151, %169 : vector<16x960xf32>
    %171 = vector.broadcast %168 : vector<16x1xf32> to vector<16x960xf32>
    %172 = arith.mulf %170, %171 : vector<16x960xf32>
    %173 = vector.broadcast %3 : vector<16x1xf32> to vector<16x960xf32>
    %174 = arith.addf %172, %173 : vector<16x960xf32>
    %cst_54 = arith.constant 0.000000e+00 : f32
    %175 = vector.broadcast %cst_54 : f32 to vector<16x960xf32>
    %176 = arith.maximumf %174, %175 : vector<16x960xf32>
    %177 = vector.extract_strided_slice %176 {offsets = [0, 1], sizes = [16, 959], strides = [1, 1]} : vector<16x960xf32> to vector<16x959xf32>
    %cst_55 = arith.constant 0.000000e+00 : f32
    %178 = vector.broadcast %cst_55 : f32 to vector<16x1xf32>
    %179 = tpu.concatenate %177, %178 in 1 : vector<16x959xf32>, vector<16x1xf32> -> vector<16x960xf32>
    %180 = arith.maximumf %176, %179 : vector<16x960xf32>
    %181 = vector.extract_strided_slice %176 {offsets = [0, 2], sizes = [16, 958], strides = [1, 1]} : vector<16x960xf32> to vector<16x958xf32>
    %cst_56 = arith.constant 0.000000e+00 : f32
    %182 = vector.broadcast %cst_56 : f32 to vector<16x2xf32>
    %183 = tpu.concatenate %181, %182 in 1 : vector<16x958xf32>, vector<16x2xf32> -> vector<16x960xf32>
    %184 = arith.maximumf %180, %183 : vector<16x960xf32>
    %185 = vector.extract_strided_slice %176 {offsets = [0, 3], sizes = [16, 957], strides = [1, 1]} : vector<16x960xf32> to vector<16x957xf32>
    %cst_57 = arith.constant 0.000000e+00 : f32
    %186 = vector.broadcast %cst_57 : f32 to vector<16x3xf32>
    %187 = tpu.concatenate %185, %186 in 1 : vector<16x957xf32>, vector<16x3xf32> -> vector<16x960xf32>
    %188 = arith.maximumf %184, %187 : vector<16x960xf32>
    %189 = tpu.iota {dimensions = array<i32: 0>} : vector<960x240xi32>
    %190 = tpu.iota {dimensions = array<i32: 1>} : vector<960x240xi32>
    %c4_i32 = arith.constant 4 : i32
    %191 = vector.broadcast %c4_i32 : i32 to vector<960x240xi32>
    %192 = arith.muli %191, %190 : vector<960x240xi32>
    %193 = arith.cmpi eq, %189, %192 : vector<960x240xi32>
    %194 = arith.extui %193 : vector<960x240xi1> to vector<960x240xi32>
    %195 = arith.sitofp %194 : vector<960x240xi32> to vector<960x240xf32>
    %cst_58 = arith.constant dense<0.000000e+00> : vector<16x240xf32>
    %196 = tpu.matmul %188, %195, %cst_58 {dimension_numbers = #tpu.dot_dimension_numbers<[1], [0], [0], [1], [0, 0, 1, 1], [], []>} : vector<16x960xf32>, vector<960x240xf32>, vector<16x240xf32> -> vector<16x240xf32>
    %c0_59 = arith.constant 0 : index
    %c0_60 = arith.constant 0 : index
    %197 = vector.load %arg4[%c0_59, %c0_60] : memref<32x80xf32, #tpu.memory_space<vmem>>, vector<32x80xf32>
    %c0_61 = arith.constant 0 : index
    %c0_62 = arith.constant 0 : index
    %198 = vector.load %arg5[%c0_61, %c0_62] : memref<32x1xf32, #tpu.memory_space<vmem>>, vector<32x1xf32>
    %c0_63 = arith.constant 0 : index
    %c0_64 = arith.constant 0 : index
    %199 = vector.load %arg6[%c0_63, %c0_64] : memref<32x1xf32, #tpu.memory_space<vmem>>, vector<32x1xf32>
    %cst_65 = arith.constant 0.000000e+00 : f32
    %200 = vector.broadcast %cst_65 : f32 to vector<16x2xf32>
    %201 = vector.extract_strided_slice %196 {offsets = [0, 0], sizes = [16, 238], strides = [1, 1]} : vector<16x240xf32> to vector<16x238xf32>
    %202 = tpu.concatenate %200, %201 in 1 : vector<16x2xf32>, vector<16x238xf32> -> vector<16x240xf32>
    %203 = tpu.iota {dimensions = array<i32: 1>} : vector<1x240xi32>
    %c120_i32 = arith.constant 120 : i32
    %c0_i32_66 = arith.constant 0 : i32
    %204 = arith.cmpi eq, %c120_i32, %c0_i32_66 : i32
    %c1_i32_67 = arith.constant 1 : i32
    %205 = arith.select %204, %c1_i32_67, %c120_i32 : i32
    %206 = vector.broadcast %205 : i32 to vector<1x240xi32>
    %207 = arith.remsi %203, %206 : vector<1x240xi32>
    %c0_i32_68 = arith.constant 0 : i32
    %208 = vector.broadcast %c0_i32_68 : i32 to vector<1x240xi32>
    %209 = arith.cmpi ne, %207, %208 : vector<1x240xi32>
    %c0_i32_69 = arith.constant 0 : i32
    %210 = vector.broadcast %c0_i32_69 : i32 to vector<1x240xi32>
    %211 = arith.cmpi slt, %207, %210 : vector<1x240xi32>
    %c0_i32_70 = arith.constant 0 : i32
    %212 = arith.cmpi slt, %205, %c0_i32_70 : i32
    %213 = vector.broadcast %212 : i1 to vector<1x240xi1>
    %214 = vector.broadcast %213 : vector<1x240xi1> to vector<1x240xi1>
    %215 = arith.xori %211, %214 : vector<1x240xi1>
    %216 = arith.andi %215, %209 : vector<1x240xi1>
    %217 = vector.broadcast %205 : i32 to vector<1x240xi32>
    %218 = arith.addi %207, %217 : vector<1x240xi32>
    %219 = arith.select %216, %218, %207 : vector<1x240xi1>, vector<1x240xi32>
    %c-2_i32_71 = arith.constant -2 : i32
    %220 = vector.broadcast %c-2_i32_71 : i32 to vector<1x240xi32>
    %221 = arith.addi %219, %220 : vector<1x240xi32>
    %c0_i32_72 = arith.constant 0 : i32
    %222 = vector.broadcast %c0_i32_72 : i32 to vector<1x240xi32>
    %223 = arith.cmpi sge, %221, %222 : vector<1x240xi32>
    %c-2_i32_73 = arith.constant -2 : i32
    %224 = vector.broadcast %c-2_i32_73 : i32 to vector<1x240xi32>
    %225 = arith.addi %219, %224 : vector<1x240xi32>
    %c120_i32_74 = arith.constant 120 : i32
    %226 = vector.broadcast %c120_i32_74 : i32 to vector<1x240xi32>
    %227 = arith.cmpi slt, %225, %226 : vector<1x240xi32>
    %228 = arith.andi %223, %227 : vector<1x240xi1>
    %cst_75 = arith.constant 0.000000e+00 : f32
    %229 = vector.shape_cast %228 : vector<1x240xi1> to vector<1x240xi1>
    %230 = vector.broadcast %229 : vector<1x240xi1> to vector<16x240xi1>
    %231 = vector.broadcast %cst_75 : f32 to vector<16x240xf32>
    %232 = arith.select %230, %202, %231 : vector<16x240xi1>, vector<16x240xf32>
    %cst_76 = arith.constant 0.000000e+00 : f32
    %233 = vector.broadcast %cst_76 : f32 to vector<16x1xf32>
    %234 = vector.extract_strided_slice %196 {offsets = [0, 0], sizes = [16, 239], strides = [1, 1]} : vector<16x240xf32> to vector<16x239xf32>
    %235 = tpu.concatenate %233, %234 in 1 : vector<16x1xf32>, vector<16x239xf32> -> vector<16x240xf32>
    %236 = tpu.iota {dimensions = array<i32: 1>} : vector<1x240xi32>
    %c120_i32_77 = arith.constant 120 : i32
    %c0_i32_78 = arith.constant 0 : i32
    %237 = arith.cmpi eq, %c120_i32_77, %c0_i32_78 : i32
    %c1_i32_79 = arith.constant 1 : i32
    %238 = arith.select %237, %c1_i32_79, %c120_i32_77 : i32
    %239 = vector.broadcast %238 : i32 to vector<1x240xi32>
    %240 = arith.remsi %236, %239 : vector<1x240xi32>
    %c0_i32_80 = arith.constant 0 : i32
    %241 = vector.broadcast %c0_i32_80 : i32 to vector<1x240xi32>
    %242 = arith.cmpi ne, %240, %241 : vector<1x240xi32>
    %c0_i32_81 = arith.constant 0 : i32
    %243 = vector.broadcast %c0_i32_81 : i32 to vector<1x240xi32>
    %244 = arith.cmpi slt, %240, %243 : vector<1x240xi32>
    %c0_i32_82 = arith.constant 0 : i32
    %245 = arith.cmpi slt, %238, %c0_i32_82 : i32
    %246 = vector.broadcast %245 : i1 to vector<1x240xi1>
    %247 = vector.broadcast %246 : vector<1x240xi1> to vector<1x240xi1>
    %248 = arith.xori %244, %247 : vector<1x240xi1>
    %249 = arith.andi %248, %242 : vector<1x240xi1>
    %250 = vector.broadcast %238 : i32 to vector<1x240xi32>
    %251 = arith.addi %240, %250 : vector<1x240xi32>
    %252 = arith.select %249, %251, %240 : vector<1x240xi1>, vector<1x240xi32>
    %c-1_i32_83 = arith.constant -1 : i32
    %253 = vector.broadcast %c-1_i32_83 : i32 to vector<1x240xi32>
    %254 = arith.addi %252, %253 : vector<1x240xi32>
    %c0_i32_84 = arith.constant 0 : i32
    %255 = vector.broadcast %c0_i32_84 : i32 to vector<1x240xi32>
    %256 = arith.cmpi sge, %254, %255 : vector<1x240xi32>
    %c-1_i32_85 = arith.constant -1 : i32
    %257 = vector.broadcast %c-1_i32_85 : i32 to vector<1x240xi32>
    %258 = arith.addi %252, %257 : vector<1x240xi32>
    %c120_i32_86 = arith.constant 120 : i32
    %259 = vector.broadcast %c120_i32_86 : i32 to vector<1x240xi32>
    %260 = arith.cmpi slt, %258, %259 : vector<1x240xi32>
    %261 = arith.andi %256, %260 : vector<1x240xi1>
    %cst_87 = arith.constant 0.000000e+00 : f32
    %262 = vector.shape_cast %261 : vector<1x240xi1> to vector<1x240xi1>
    %263 = vector.broadcast %262 : vector<1x240xi1> to vector<16x240xi1>
    %264 = vector.broadcast %cst_87 : f32 to vector<16x240xf32>
    %265 = arith.select %263, %235, %264 : vector<16x240xi1>, vector<16x240xf32>
    %cst_88 = arith.constant 0.000000e+00 : f32
    %266 = vector.broadcast %cst_88 : f32 to vector<16x1xf32>
    %267 = vector.extract_strided_slice %196 {offsets = [0, 1], sizes = [16, 239], strides = [1, 1]} : vector<16x240xf32> to vector<16x239xf32>
    %268 = tpu.concatenate %267, %266 in 1 : vector<16x239xf32>, vector<16x1xf32> -> vector<16x240xf32>
    %269 = tpu.iota {dimensions = array<i32: 1>} : vector<1x240xi32>
    %c120_i32_89 = arith.constant 120 : i32
    %c0_i32_90 = arith.constant 0 : i32
    %270 = arith.cmpi eq, %c120_i32_89, %c0_i32_90 : i32
    %c1_i32_91 = arith.constant 1 : i32
    %271 = arith.select %270, %c1_i32_91, %c120_i32_89 : i32
    %272 = vector.broadcast %271 : i32 to vector<1x240xi32>
    %273 = arith.remsi %269, %272 : vector<1x240xi32>
    %c0_i32_92 = arith.constant 0 : i32
    %274 = vector.broadcast %c0_i32_92 : i32 to vector<1x240xi32>
    %275 = arith.cmpi ne, %273, %274 : vector<1x240xi32>
    %c0_i32_93 = arith.constant 0 : i32
    %276 = vector.broadcast %c0_i32_93 : i32 to vector<1x240xi32>
    %277 = arith.cmpi slt, %273, %276 : vector<1x240xi32>
    %c0_i32_94 = arith.constant 0 : i32
    %278 = arith.cmpi slt, %271, %c0_i32_94 : i32
    %279 = vector.broadcast %278 : i1 to vector<1x240xi1>
    %280 = vector.broadcast %279 : vector<1x240xi1> to vector<1x240xi1>
    %281 = arith.xori %277, %280 : vector<1x240xi1>
    %282 = arith.andi %281, %275 : vector<1x240xi1>
    %283 = vector.broadcast %271 : i32 to vector<1x240xi32>
    %284 = arith.addi %273, %283 : vector<1x240xi32>
    %285 = arith.select %282, %284, %273 : vector<1x240xi1>, vector<1x240xi32>
    %c1_i32_95 = arith.constant 1 : i32
    %286 = vector.broadcast %c1_i32_95 : i32 to vector<1x240xi32>
    %287 = arith.addi %285, %286 : vector<1x240xi32>
    %c0_i32_96 = arith.constant 0 : i32
    %288 = vector.broadcast %c0_i32_96 : i32 to vector<1x240xi32>
    %289 = arith.cmpi sge, %287, %288 : vector<1x240xi32>
    %c1_i32_97 = arith.constant 1 : i32
    %290 = vector.broadcast %c1_i32_97 : i32 to vector<1x240xi32>
    %291 = arith.addi %285, %290 : vector<1x240xi32>
    %c120_i32_98 = arith.constant 120 : i32
    %292 = vector.broadcast %c120_i32_98 : i32 to vector<1x240xi32>
    %293 = arith.cmpi slt, %291, %292 : vector<1x240xi32>
    %294 = arith.andi %289, %293 : vector<1x240xi1>
    %cst_99 = arith.constant 0.000000e+00 : f32
    %295 = vector.shape_cast %294 : vector<1x240xi1> to vector<1x240xi1>
    %296 = vector.broadcast %295 : vector<1x240xi1> to vector<16x240xi1>
    %297 = vector.broadcast %cst_99 : f32 to vector<16x240xf32>
    %298 = arith.select %296, %268, %297 : vector<16x240xi1>, vector<16x240xf32>
    %cst_100 = arith.constant 0.000000e+00 : f32
    %299 = vector.broadcast %cst_100 : f32 to vector<16x2xf32>
    %300 = vector.extract_strided_slice %196 {offsets = [0, 2], sizes = [16, 238], strides = [1, 1]} : vector<16x240xf32> to vector<16x238xf32>
    %301 = tpu.concatenate %300, %299 in 1 : vector<16x238xf32>, vector<16x2xf32> -> vector<16x240xf32>
    %302 = tpu.iota {dimensions = array<i32: 1>} : vector<1x240xi32>
    %c120_i32_101 = arith.constant 120 : i32
    %c0_i32_102 = arith.constant 0 : i32
    %303 = arith.cmpi eq, %c120_i32_101, %c0_i32_102 : i32
    %c1_i32_103 = arith.constant 1 : i32
    %304 = arith.select %303, %c1_i32_103, %c120_i32_101 : i32
    %305 = vector.broadcast %304 : i32 to vector<1x240xi32>
    %306 = arith.remsi %302, %305 : vector<1x240xi32>
    %c0_i32_104 = arith.constant 0 : i32
    %307 = vector.broadcast %c0_i32_104 : i32 to vector<1x240xi32>
    %308 = arith.cmpi ne, %306, %307 : vector<1x240xi32>
    %c0_i32_105 = arith.constant 0 : i32
    %309 = vector.broadcast %c0_i32_105 : i32 to vector<1x240xi32>
    %310 = arith.cmpi slt, %306, %309 : vector<1x240xi32>
    %c0_i32_106 = arith.constant 0 : i32
    %311 = arith.cmpi slt, %304, %c0_i32_106 : i32
    %312 = vector.broadcast %311 : i1 to vector<1x240xi1>
    %313 = vector.broadcast %312 : vector<1x240xi1> to vector<1x240xi1>
    %314 = arith.xori %310, %313 : vector<1x240xi1>
    %315 = arith.andi %314, %308 : vector<1x240xi1>
    %316 = vector.broadcast %304 : i32 to vector<1x240xi32>
    %317 = arith.addi %306, %316 : vector<1x240xi32>
    %318 = arith.select %315, %317, %306 : vector<1x240xi1>, vector<1x240xi32>
    %c2_i32_107 = arith.constant 2 : i32
    %319 = vector.broadcast %c2_i32_107 : i32 to vector<1x240xi32>
    %320 = arith.addi %318, %319 : vector<1x240xi32>
    %c0_i32_108 = arith.constant 0 : i32
    %321 = vector.broadcast %c0_i32_108 : i32 to vector<1x240xi32>
    %322 = arith.cmpi sge, %320, %321 : vector<1x240xi32>
    %c2_i32_109 = arith.constant 2 : i32
    %323 = vector.broadcast %c2_i32_109 : i32 to vector<1x240xi32>
    %324 = arith.addi %318, %323 : vector<1x240xi32>
    %c120_i32_110 = arith.constant 120 : i32
    %325 = vector.broadcast %c120_i32_110 : i32 to vector<1x240xi32>
    %326 = arith.cmpi slt, %324, %325 : vector<1x240xi32>
    %327 = arith.andi %322, %326 : vector<1x240xi1>
    %cst_111 = arith.constant 0.000000e+00 : f32
    %328 = vector.shape_cast %327 : vector<1x240xi1> to vector<1x240xi1>
    %329 = vector.broadcast %328 : vector<1x240xi1> to vector<16x240xi1>
    %330 = vector.broadcast %cst_111 : f32 to vector<16x240xf32>
    %331 = arith.select %329, %301, %330 : vector<16x240xi1>, vector<16x240xf32>
    %332 = tpu.concatenate %232, %265, %196, %298, %331 in 0 : vector<16x240xf32>, vector<16x240xf32>, vector<16x240xf32>, vector<16x240xf32>, vector<16x240xf32> -> vector<80x240xf32>
    %cst_112 = arith.constant dense<0.000000e+00> : vector<32x240xf32>
    %333 = tpu.matmul %197, %332, %cst_112 {dimension_numbers = #tpu.dot_dimension_numbers<[1], [0], [0], [1], [0, 0, 1, 1], [], []>} : vector<32x80xf32>, vector<80x240xf32>, vector<32x240xf32> -> vector<32x240xf32>
    %cst_113 = arith.constant dense<0.000000e+00> : vector<32xf32>
    %334 = vector.multi_reduction <add>, %333, %cst_113 [1] : vector<32x240xf32> to vector<32xf32>
    %335 = vector.shape_cast %334 : vector<32xf32> to vector<32x1xf32>
    %cst_114 = arith.constant 0.00416666688 : f32
    %336 = vector.broadcast %cst_114 : f32 to vector<32x1xf32>
    %337 = arith.mulf %335, %336 : vector<32x1xf32>
    %338 = arith.mulf %333, %333 : vector<32x240xf32>
    %cst_115 = arith.constant dense<0.000000e+00> : vector<32xf32>
    %339 = vector.multi_reduction <add>, %338, %cst_115 [1] : vector<32x240xf32> to vector<32xf32>
    %340 = vector.shape_cast %339 : vector<32xf32> to vector<32x1xf32>
    %cst_116 = arith.constant 0.00416666688 : f32
    %341 = vector.broadcast %cst_116 : f32 to vector<32x1xf32>
    %342 = arith.mulf %340, %341 : vector<32x1xf32>
    %343 = arith.mulf %337, %337 : vector<32x1xf32>
    %344 = arith.subf %342, %343 : vector<32x1xf32>
    %cst_117 = arith.constant 0.000000e+00 : f32
    %345 = vector.broadcast %cst_117 : f32 to vector<32x1xf32>
    %346 = arith.maximumf %344, %345 : vector<32x1xf32>
    %cst_118 = arith.constant 9.99999974E-6 : f32
    %347 = vector.broadcast %cst_118 : f32 to vector<32x1xf32>
    %348 = arith.addf %346, %347 : vector<32x1xf32>
    %349 = math.rsqrt %348 : vector<32x1xf32>
    %350 = arith.mulf %349, %198 : vector<32x1xf32>
    %351 = vector.broadcast %337 : vector<32x1xf32> to vector<32x240xf32>
    %352 = arith.subf %333, %351 : vector<32x240xf32>
    %353 = vector.broadcast %350 : vector<32x1xf32> to vector<32x240xf32>
    %354 = arith.mulf %352, %353 : vector<32x240xf32>
    %355 = vector.broadcast %199 : vector<32x1xf32> to vector<32x240xf32>
    %356 = arith.addf %354, %355 : vector<32x240xf32>
    %cst_119 = arith.constant 0.000000e+00 : f32
    %357 = vector.broadcast %cst_119 : f32 to vector<32x240xf32>
    %358 = arith.maximumf %356, %357 : vector<32x240xf32>
    %359 = vector.extract_strided_slice %358 {offsets = [0, 1], sizes = [32, 239], strides = [1, 1]} : vector<32x240xf32> to vector<32x239xf32>
    %cst_120 = arith.constant 0.000000e+00 : f32
    %360 = vector.broadcast %cst_120 : f32 to vector<32x1xf32>
    %361 = tpu.concatenate %359, %360 in 1 : vector<32x239xf32>, vector<32x1xf32> -> vector<32x240xf32>
    %362 = arith.maximumf %358, %361 : vector<32x240xf32>
    %363 = vector.extract_strided_slice %358 {offsets = [0, 2], sizes = [32, 238], strides = [1, 1]} : vector<32x240xf32> to vector<32x238xf32>
    %cst_121 = arith.constant 0.000000e+00 : f32
    %364 = vector.broadcast %cst_121 : f32 to vector<32x2xf32>
    %365 = tpu.concatenate %363, %364 in 1 : vector<32x238xf32>, vector<32x2xf32> -> vector<32x240xf32>
    %366 = arith.maximumf %362, %365 : vector<32x240xf32>
    %367 = vector.extract_strided_slice %358 {offsets = [0, 3], sizes = [32, 237], strides = [1, 1]} : vector<32x240xf32> to vector<32x237xf32>
    %cst_122 = arith.constant 0.000000e+00 : f32
    %368 = vector.broadcast %cst_122 : f32 to vector<32x3xf32>
    %369 = tpu.concatenate %367, %368 in 1 : vector<32x237xf32>, vector<32x3xf32> -> vector<32x240xf32>
    %370 = arith.maximumf %366, %369 : vector<32x240xf32>
    %371 = tpu.iota {dimensions = array<i32: 0>} : vector<240x60xi32>
    %372 = tpu.iota {dimensions = array<i32: 1>} : vector<240x60xi32>
    %c4_i32_123 = arith.constant 4 : i32
    %373 = vector.broadcast %c4_i32_123 : i32 to vector<240x60xi32>
    %374 = arith.muli %373, %372 : vector<240x60xi32>
    %375 = arith.cmpi eq, %371, %374 : vector<240x60xi32>
    %376 = arith.extui %375 : vector<240x60xi1> to vector<240x60xi32>
    %377 = arith.sitofp %376 : vector<240x60xi32> to vector<240x60xf32>
    %cst_124 = arith.constant dense<0.000000e+00> : vector<32x60xf32>
    %378 = tpu.matmul %370, %377, %cst_124 {dimension_numbers = #tpu.dot_dimension_numbers<[1], [0], [0], [1], [0, 0, 1, 1], [], []>} : vector<32x240xf32>, vector<240x60xf32>, vector<32x60xf32> -> vector<32x60xf32>
    %c0_125 = arith.constant 0 : index
    %c0_126 = arith.constant 0 : index
    %379 = vector.load %arg7[%c0_125, %c0_126] : memref<64x160xf32, #tpu.memory_space<vmem>>, vector<64x160xf32>
    %c0_127 = arith.constant 0 : index
    %c0_128 = arith.constant 0 : index
    %380 = vector.load %arg8[%c0_127, %c0_128] : memref<64x1xf32, #tpu.memory_space<vmem>>, vector<64x1xf32>
    %c0_129 = arith.constant 0 : index
    %c0_130 = arith.constant 0 : index
    %381 = vector.load %arg9[%c0_129, %c0_130] : memref<64x1xf32, #tpu.memory_space<vmem>>, vector<64x1xf32>
    %cst_131 = arith.constant 0.000000e+00 : f32
    %382 = vector.broadcast %cst_131 : f32 to vector<32x2xf32>
    %383 = vector.extract_strided_slice %378 {offsets = [0, 0], sizes = [32, 58], strides = [1, 1]} : vector<32x60xf32> to vector<32x58xf32>
    %384 = tpu.concatenate %382, %383 in 1 : vector<32x2xf32>, vector<32x58xf32> -> vector<32x60xf32>
    %385 = tpu.iota {dimensions = array<i32: 1>} : vector<1x60xi32>
    %c30_i32 = arith.constant 30 : i32
    %c0_i32_132 = arith.constant 0 : i32
    %386 = arith.cmpi eq, %c30_i32, %c0_i32_132 : i32
    %c1_i32_133 = arith.constant 1 : i32
    %387 = arith.select %386, %c1_i32_133, %c30_i32 : i32
    %388 = vector.broadcast %387 : i32 to vector<1x60xi32>
    %389 = arith.remsi %385, %388 : vector<1x60xi32>
    %c0_i32_134 = arith.constant 0 : i32
    %390 = vector.broadcast %c0_i32_134 : i32 to vector<1x60xi32>
    %391 = arith.cmpi ne, %389, %390 : vector<1x60xi32>
    %c0_i32_135 = arith.constant 0 : i32
    %392 = vector.broadcast %c0_i32_135 : i32 to vector<1x60xi32>
    %393 = arith.cmpi slt, %389, %392 : vector<1x60xi32>
    %c0_i32_136 = arith.constant 0 : i32
    %394 = arith.cmpi slt, %387, %c0_i32_136 : i32
    %395 = vector.broadcast %394 : i1 to vector<1x60xi1>
    %396 = vector.broadcast %395 : vector<1x60xi1> to vector<1x60xi1>
    %397 = arith.xori %393, %396 : vector<1x60xi1>
    %398 = arith.andi %397, %391 : vector<1x60xi1>
    %399 = vector.broadcast %387 : i32 to vector<1x60xi32>
    %400 = arith.addi %389, %399 : vector<1x60xi32>
    %401 = arith.select %398, %400, %389 : vector<1x60xi1>, vector<1x60xi32>
    %c-2_i32_137 = arith.constant -2 : i32
    %402 = vector.broadcast %c-2_i32_137 : i32 to vector<1x60xi32>
    %403 = arith.addi %401, %402 : vector<1x60xi32>
    %c0_i32_138 = arith.constant 0 : i32
    %404 = vector.broadcast %c0_i32_138 : i32 to vector<1x60xi32>
    %405 = arith.cmpi sge, %403, %404 : vector<1x60xi32>
    %c-2_i32_139 = arith.constant -2 : i32
    %406 = vector.broadcast %c-2_i32_139 : i32 to vector<1x60xi32>
    %407 = arith.addi %401, %406 : vector<1x60xi32>
    %c30_i32_140 = arith.constant 30 : i32
    %408 = vector.broadcast %c30_i32_140 : i32 to vector<1x60xi32>
    %409 = arith.cmpi slt, %407, %408 : vector<1x60xi32>
    %410 = arith.andi %405, %409 : vector<1x60xi1>
    %cst_141 = arith.constant 0.000000e+00 : f32
    %411 = vector.shape_cast %410 : vector<1x60xi1> to vector<1x60xi1>
    %412 = vector.broadcast %411 : vector<1x60xi1> to vector<32x60xi1>
    %413 = vector.broadcast %cst_141 : f32 to vector<32x60xf32>
    %414 = arith.select %412, %384, %413 : vector<32x60xi1>, vector<32x60xf32>
    %cst_142 = arith.constant 0.000000e+00 : f32
    %415 = vector.broadcast %cst_142 : f32 to vector<32x1xf32>
    %416 = vector.extract_strided_slice %378 {offsets = [0, 0], sizes = [32, 59], strides = [1, 1]} : vector<32x60xf32> to vector<32x59xf32>
    %417 = tpu.concatenate %415, %416 in 1 : vector<32x1xf32>, vector<32x59xf32> -> vector<32x60xf32>
    %418 = tpu.iota {dimensions = array<i32: 1>} : vector<1x60xi32>
    %c30_i32_143 = arith.constant 30 : i32
    %c0_i32_144 = arith.constant 0 : i32
    %419 = arith.cmpi eq, %c30_i32_143, %c0_i32_144 : i32
    %c1_i32_145 = arith.constant 1 : i32
    %420 = arith.select %419, %c1_i32_145, %c30_i32_143 : i32
    %421 = vector.broadcast %420 : i32 to vector<1x60xi32>
    %422 = arith.remsi %418, %421 : vector<1x60xi32>
    %c0_i32_146 = arith.constant 0 : i32
    %423 = vector.broadcast %c0_i32_146 : i32 to vector<1x60xi32>
    %424 = arith.cmpi ne, %422, %423 : vector<1x60xi32>
    %c0_i32_147 = arith.constant 0 : i32
    %425 = vector.broadcast %c0_i32_147 : i32 to vector<1x60xi32>
    %426 = arith.cmpi slt, %422, %425 : vector<1x60xi32>
    %c0_i32_148 = arith.constant 0 : i32
    %427 = arith.cmpi slt, %420, %c0_i32_148 : i32
    %428 = vector.broadcast %427 : i1 to vector<1x60xi1>
    %429 = vector.broadcast %428 : vector<1x60xi1> to vector<1x60xi1>
    %430 = arith.xori %426, %429 : vector<1x60xi1>
    %431 = arith.andi %430, %424 : vector<1x60xi1>
    %432 = vector.broadcast %420 : i32 to vector<1x60xi32>
    %433 = arith.addi %422, %432 : vector<1x60xi32>
    %434 = arith.select %431, %433, %422 : vector<1x60xi1>, vector<1x60xi32>
    %c-1_i32_149 = arith.constant -1 : i32
    %435 = vector.broadcast %c-1_i32_149 : i32 to vector<1x60xi32>
    %436 = arith.addi %434, %435 : vector<1x60xi32>
    %c0_i32_150 = arith.constant 0 : i32
    %437 = vector.broadcast %c0_i32_150 : i32 to vector<1x60xi32>
    %438 = arith.cmpi sge, %436, %437 : vector<1x60xi32>
    %c-1_i32_151 = arith.constant -1 : i32
    %439 = vector.broadcast %c-1_i32_151 : i32 to vector<1x60xi32>
    %440 = arith.addi %434, %439 : vector<1x60xi32>
    %c30_i32_152 = arith.constant 30 : i32
    %441 = vector.broadcast %c30_i32_152 : i32 to vector<1x60xi32>
    %442 = arith.cmpi slt, %440, %441 : vector<1x60xi32>
    %443 = arith.andi %438, %442 : vector<1x60xi1>
    %cst_153 = arith.constant 0.000000e+00 : f32
    %444 = vector.shape_cast %443 : vector<1x60xi1> to vector<1x60xi1>
    %445 = vector.broadcast %444 : vector<1x60xi1> to vector<32x60xi1>
    %446 = vector.broadcast %cst_153 : f32 to vector<32x60xf32>
    %447 = arith.select %445, %417, %446 : vector<32x60xi1>, vector<32x60xf32>
    %cst_154 = arith.constant 0.000000e+00 : f32
    %448 = vector.broadcast %cst_154 : f32 to vector<32x1xf32>
    %449 = vector.extract_strided_slice %378 {offsets = [0, 1], sizes = [32, 59], strides = [1, 1]} : vector<32x60xf32> to vector<32x59xf32>
    %450 = tpu.concatenate %449, %448 in 1 : vector<32x59xf32>, vector<32x1xf32> -> vector<32x60xf32>
    %451 = tpu.iota {dimensions = array<i32: 1>} : vector<1x60xi32>
    %c30_i32_155 = arith.constant 30 : i32
    %c0_i32_156 = arith.constant 0 : i32
    %452 = arith.cmpi eq, %c30_i32_155, %c0_i32_156 : i32
    %c1_i32_157 = arith.constant 1 : i32
    %453 = arith.select %452, %c1_i32_157, %c30_i32_155 : i32
    %454 = vector.broadcast %453 : i32 to vector<1x60xi32>
    %455 = arith.remsi %451, %454 : vector<1x60xi32>
    %c0_i32_158 = arith.constant 0 : i32
    %456 = vector.broadcast %c0_i32_158 : i32 to vector<1x60xi32>
    %457 = arith.cmpi ne, %455, %456 : vector<1x60xi32>
    %c0_i32_159 = arith.constant 0 : i32
    %458 = vector.broadcast %c0_i32_159 : i32 to vector<1x60xi32>
    %459 = arith.cmpi slt, %455, %458 : vector<1x60xi32>
    %c0_i32_160 = arith.constant 0 : i32
    %460 = arith.cmpi slt, %453, %c0_i32_160 : i32
    %461 = vector.broadcast %460 : i1 to vector<1x60xi1>
    %462 = vector.broadcast %461 : vector<1x60xi1> to vector<1x60xi1>
    %463 = arith.xori %459, %462 : vector<1x60xi1>
    %464 = arith.andi %463, %457 : vector<1x60xi1>
    %465 = vector.broadcast %453 : i32 to vector<1x60xi32>
    %466 = arith.addi %455, %465 : vector<1x60xi32>
    %467 = arith.select %464, %466, %455 : vector<1x60xi1>, vector<1x60xi32>
    %c1_i32_161 = arith.constant 1 : i32
    %468 = vector.broadcast %c1_i32_161 : i32 to vector<1x60xi32>
    %469 = arith.addi %467, %468 : vector<1x60xi32>
    %c0_i32_162 = arith.constant 0 : i32
    %470 = vector.broadcast %c0_i32_162 : i32 to vector<1x60xi32>
    %471 = arith.cmpi sge, %469, %470 : vector<1x60xi32>
    %c1_i32_163 = arith.constant 1 : i32
    %472 = vector.broadcast %c1_i32_163 : i32 to vector<1x60xi32>
    %473 = arith.addi %467, %472 : vector<1x60xi32>
    %c30_i32_164 = arith.constant 30 : i32
    %474 = vector.broadcast %c30_i32_164 : i32 to vector<1x60xi32>
    %475 = arith.cmpi slt, %473, %474 : vector<1x60xi32>
    %476 = arith.andi %471, %475 : vector<1x60xi1>
    %cst_165 = arith.constant 0.000000e+00 : f32
    %477 = vector.shape_cast %476 : vector<1x60xi1> to vector<1x60xi1>
    %478 = vector.broadcast %477 : vector<1x60xi1> to vector<32x60xi1>
    %479 = vector.broadcast %cst_165 : f32 to vector<32x60xf32>
    %480 = arith.select %478, %450, %479 : vector<32x60xi1>, vector<32x60xf32>
    %cst_166 = arith.constant 0.000000e+00 : f32
    %481 = vector.broadcast %cst_166 : f32 to vector<32x2xf32>
    %482 = vector.extract_strided_slice %378 {offsets = [0, 2], sizes = [32, 58], strides = [1, 1]} : vector<32x60xf32> to vector<32x58xf32>
    %483 = tpu.concatenate %482, %481 in 1 : vector<32x58xf32>, vector<32x2xf32> -> vector<32x60xf32>
    %484 = tpu.iota {dimensions = array<i32: 1>} : vector<1x60xi32>
    %c30_i32_167 = arith.constant 30 : i32
    %c0_i32_168 = arith.constant 0 : i32
    %485 = arith.cmpi eq, %c30_i32_167, %c0_i32_168 : i32
    %c1_i32_169 = arith.constant 1 : i32
    %486 = arith.select %485, %c1_i32_169, %c30_i32_167 : i32
    %487 = vector.broadcast %486 : i32 to vector<1x60xi32>
    %488 = arith.remsi %484, %487 : vector<1x60xi32>
    %c0_i32_170 = arith.constant 0 : i32
    %489 = vector.broadcast %c0_i32_170 : i32 to vector<1x60xi32>
    %490 = arith.cmpi ne, %488, %489 : vector<1x60xi32>
    %c0_i32_171 = arith.constant 0 : i32
    %491 = vector.broadcast %c0_i32_171 : i32 to vector<1x60xi32>
    %492 = arith.cmpi slt, %488, %491 : vector<1x60xi32>
    %c0_i32_172 = arith.constant 0 : i32
    %493 = arith.cmpi slt, %486, %c0_i32_172 : i32
    %494 = vector.broadcast %493 : i1 to vector<1x60xi1>
    %495 = vector.broadcast %494 : vector<1x60xi1> to vector<1x60xi1>
    %496 = arith.xori %492, %495 : vector<1x60xi1>
    %497 = arith.andi %496, %490 : vector<1x60xi1>
    %498 = vector.broadcast %486 : i32 to vector<1x60xi32>
    %499 = arith.addi %488, %498 : vector<1x60xi32>
    %500 = arith.select %497, %499, %488 : vector<1x60xi1>, vector<1x60xi32>
    %c2_i32_173 = arith.constant 2 : i32
    %501 = vector.broadcast %c2_i32_173 : i32 to vector<1x60xi32>
    %502 = arith.addi %500, %501 : vector<1x60xi32>
    %c0_i32_174 = arith.constant 0 : i32
    %503 = vector.broadcast %c0_i32_174 : i32 to vector<1x60xi32>
    %504 = arith.cmpi sge, %502, %503 : vector<1x60xi32>
    %c2_i32_175 = arith.constant 2 : i32
    %505 = vector.broadcast %c2_i32_175 : i32 to vector<1x60xi32>
    %506 = arith.addi %500, %505 : vector<1x60xi32>
    %c30_i32_176 = arith.constant 30 : i32
    %507 = vector.broadcast %c30_i32_176 : i32 to vector<1x60xi32>
    %508 = arith.cmpi slt, %506, %507 : vector<1x60xi32>
    %509 = arith.andi %504, %508 : vector<1x60xi1>
    %cst_177 = arith.constant 0.000000e+00 : f32
    %510 = vector.shape_cast %509 : vector<1x60xi1> to vector<1x60xi1>
    %511 = vector.broadcast %510 : vector<1x60xi1> to vector<32x60xi1>
    %512 = vector.broadcast %cst_177 : f32 to vector<32x60xf32>
    %513 = arith.select %511, %483, %512 : vector<32x60xi1>, vector<32x60xf32>
    %514 = tpu.concatenate %414, %447, %378, %480, %513 in 0 : vector<32x60xf32>, vector<32x60xf32>, vector<32x60xf32>, vector<32x60xf32>, vector<32x60xf32> -> vector<160x60xf32>
    %cst_178 = arith.constant dense<0.000000e+00> : vector<64x60xf32>
    %515 = tpu.matmul %379, %514, %cst_178 {dimension_numbers = #tpu.dot_dimension_numbers<[1], [0], [0], [1], [0, 0, 1, 1], [], []>} : vector<64x160xf32>, vector<160x60xf32>, vector<64x60xf32> -> vector<64x60xf32>
    %cst_179 = arith.constant dense<0.000000e+00> : vector<64xf32>
    %516 = vector.multi_reduction <add>, %515, %cst_179 [1] : vector<64x60xf32> to vector<64xf32>
    %517 = vector.shape_cast %516 : vector<64xf32> to vector<64x1xf32>
    %cst_180 = arith.constant 0.0166666675 : f32
    %518 = vector.broadcast %cst_180 : f32 to vector<64x1xf32>
    %519 = arith.mulf %517, %518 : vector<64x1xf32>
    %520 = arith.mulf %515, %515 : vector<64x60xf32>
    %cst_181 = arith.constant dense<0.000000e+00> : vector<64xf32>
    %521 = vector.multi_reduction <add>, %520, %cst_181 [1] : vector<64x60xf32> to vector<64xf32>
    %522 = vector.shape_cast %521 : vector<64xf32> to vector<64x1xf32>
    %cst_182 = arith.constant 0.0166666675 : f32
    %523 = vector.broadcast %cst_182 : f32 to vector<64x1xf32>
    %524 = arith.mulf %522, %523 : vector<64x1xf32>
    %525 = arith.mulf %519, %519 : vector<64x1xf32>
    %526 = arith.subf %524, %525 : vector<64x1xf32>
    %cst_183 = arith.constant 0.000000e+00 : f32
    %527 = vector.broadcast %cst_183 : f32 to vector<64x1xf32>
    %528 = arith.maximumf %526, %527 : vector<64x1xf32>
    %cst_184 = arith.constant 9.99999974E-6 : f32
    %529 = vector.broadcast %cst_184 : f32 to vector<64x1xf32>
    %530 = arith.addf %528, %529 : vector<64x1xf32>
    %531 = math.rsqrt %530 : vector<64x1xf32>
    %532 = arith.mulf %531, %380 : vector<64x1xf32>
    %533 = vector.broadcast %519 : vector<64x1xf32> to vector<64x60xf32>
    %534 = arith.subf %515, %533 : vector<64x60xf32>
    %535 = vector.broadcast %532 : vector<64x1xf32> to vector<64x60xf32>
    %536 = arith.mulf %534, %535 : vector<64x60xf32>
    %537 = vector.broadcast %381 : vector<64x1xf32> to vector<64x60xf32>
    %538 = arith.addf %536, %537 : vector<64x60xf32>
    %cst_185 = arith.constant 0.000000e+00 : f32
    %539 = vector.broadcast %cst_185 : f32 to vector<64x60xf32>
    %540 = arith.maximumf %538, %539 : vector<64x60xf32>
    %541 = tpu.transpose %540, [1, 0] : vector<64x60xf32> -> vector<60x64xf32>
    %c0_186 = arith.constant 0 : index
    %c0_187 = arith.constant 0 : index
    %542 = vector.load %arg10[%c0_186, %c0_187] : memref<60x64xf32, #tpu.memory_space<vmem>>, vector<60x64xf32>
    tpu.vector_store %arg10[%c0_186, %c0_187], %541 {strides = array<i32>} : memref<60x64xf32, #tpu.memory_space<vmem>>, vector<60x64xf32>,
    return
  }
}

module attributes {stable_mosaic.version = 11 : i64} {
  func.func @classifier_kernel(%arg0: memref<2x1920xf32, #tpu.memory_space<vmem>>, %arg1: memref<1x1920xf32, #tpu.memory_space<vmem>>, %arg2: memref<1x1920xf32, #tpu.memory_space<vmem>>, %arg3: memref<1920x64xf32, #tpu.memory_space<vmem>>, %arg4: memref<1x64xf32, #tpu.memory_space<vmem>>, %arg5: memref<64x32xf32, #tpu.memory_space<vmem>>, %arg6: memref<1x32xf32, #tpu.memory_space<vmem>>, %arg7: memref<32x2xf32, #tpu.memory_space<vmem>>, %arg8: memref<1x2xf32, #tpu.memory_space<vmem>>, %arg9: memref<2x2xf32, #tpu.memory_space<vmem>>) attributes {dimension_semantics = [], scalar_prefetch = 0 : i64, scratch_operands = 0 : i64, tpu.core_type = #tpu.core_type<tc>} {
    %c0 = arith.constant 0 : index
    %c0_0 = arith.constant 0 : index
    %0 = vector.load %arg0[%c0, %c0_0] : memref<2x1920xf32, #tpu.memory_space<vmem>>, vector<2x1920xf32>
    %cst = arith.constant dense<0.000000e+00> : vector<1920xf32>
    %1 = vector.multi_reduction <add>, %0, %cst [0] : vector<2x1920xf32> to vector<1920xf32>
    %2 = vector.shape_cast %1 : vector<1920xf32> to vector<1x1920xf32>
    %cst_1 = arith.constant 5.000000e-01 : f32
    %3 = vector.broadcast %cst_1 : f32 to vector<1x1920xf32>
    %4 = arith.mulf %2, %3 : vector<1x1920xf32>
    %5 = arith.mulf %0, %0 : vector<2x1920xf32>
    %cst_2 = arith.constant dense<0.000000e+00> : vector<1920xf32>
    %6 = vector.multi_reduction <add>, %5, %cst_2 [0] : vector<2x1920xf32> to vector<1920xf32>
    %7 = vector.shape_cast %6 : vector<1920xf32> to vector<1x1920xf32>
    %cst_3 = arith.constant 5.000000e-01 : f32
    %8 = vector.broadcast %cst_3 : f32 to vector<1x1920xf32>
    %9 = arith.mulf %7, %8 : vector<1x1920xf32>
    %10 = arith.mulf %4, %4 : vector<1x1920xf32>
    %11 = arith.subf %9, %10 : vector<1x1920xf32>
    %cst_4 = arith.constant 0.000000e+00 : f32
    %12 = vector.broadcast %cst_4 : f32 to vector<1x1920xf32>
    %13 = arith.maximumf %11, %12 : vector<1x1920xf32>
    %14 = vector.broadcast %4 : vector<1x1920xf32> to vector<2x1920xf32>
    %15 = arith.subf %0, %14 : vector<2x1920xf32>
    %cst_5 = arith.constant 9.99999974E-6 : f32
    %16 = vector.broadcast %cst_5 : f32 to vector<1x1920xf32>
    %17 = arith.addf %13, %16 : vector<1x1920xf32>
    %18 = math.rsqrt %17 : vector<1x1920xf32>
    %c0_6 = arith.constant 0 : index
    %c0_7 = arith.constant 0 : index
    %19 = vector.load %arg1[%c0_6, %c0_7] : memref<1x1920xf32, #tpu.memory_space<vmem>>, vector<1x1920xf32>
    %20 = arith.mulf %18, %19 : vector<1x1920xf32>
    %21 = vector.broadcast %20 : vector<1x1920xf32> to vector<2x1920xf32>
    %22 = arith.mulf %15, %21 : vector<2x1920xf32>
    %c0_8 = arith.constant 0 : index
    %c0_9 = arith.constant 0 : index
    %23 = vector.load %arg2[%c0_8, %c0_9] : memref<1x1920xf32, #tpu.memory_space<vmem>>, vector<1x1920xf32>
    %24 = vector.broadcast %23 : vector<1x1920xf32> to vector<2x1920xf32>
    %25 = arith.addf %22, %24 : vector<2x1920xf32>
    %c0_10 = arith.constant 0 : index
    %c0_11 = arith.constant 0 : index
    %26 = vector.load %arg3[%c0_10, %c0_11] : memref<1920x64xf32, #tpu.memory_space<vmem>>, vector<1920x64xf32>
    %cst_12 = arith.constant dense<0.000000e+00> : vector<2x64xf32>
    %27 = tpu.matmul %25, %26, %cst_12 {dimension_numbers = #tpu.dot_dimension_numbers<[1], [0], [0], [1], [0, 0, 1, 1], [], []>} : vector<2x1920xf32>, vector<1920x64xf32>, vector<2x64xf32> -> vector<2x64xf32>
    %c0_13 = arith.constant 0 : index
    %c0_14 = arith.constant 0 : index
    %28 = vector.load %arg4[%c0_13, %c0_14] : memref<1x64xf32, #tpu.memory_space<vmem>>, vector<1x64xf32>
    %29 = vector.broadcast %28 : vector<1x64xf32> to vector<2x64xf32>
    %30 = arith.addf %27, %29 : vector<2x64xf32>
    %cst_15 = arith.constant 0.000000e+00 : f32
    %31 = vector.broadcast %cst_15 : f32 to vector<2x64xf32>
    %32 = arith.maximumf %30, %31 : vector<2x64xf32>
    %c0_16 = arith.constant 0 : index
    %c0_17 = arith.constant 0 : index
    %33 = vector.load %arg5[%c0_16, %c0_17] : memref<64x32xf32, #tpu.memory_space<vmem>>, vector<64x32xf32>
    %cst_18 = arith.constant dense<0.000000e+00> : vector<2x32xf32>
    %34 = tpu.matmul %32, %33, %cst_18 {dimension_numbers = #tpu.dot_dimension_numbers<[1], [0], [0], [1], [0, 0, 1, 1], [], []>} : vector<2x64xf32>, vector<64x32xf32>, vector<2x32xf32> -> vector<2x32xf32>
    %c0_19 = arith.constant 0 : index
    %c0_20 = arith.constant 0 : index
    %35 = vector.load %arg6[%c0_19, %c0_20] : memref<1x32xf32, #tpu.memory_space<vmem>>, vector<1x32xf32>
    %36 = vector.broadcast %35 : vector<1x32xf32> to vector<2x32xf32>
    %37 = arith.addf %34, %36 : vector<2x32xf32>
    %cst_21 = arith.constant 0.000000e+00 : f32
    %38 = vector.broadcast %cst_21 : f32 to vector<2x32xf32>
    %39 = arith.maximumf %37, %38 : vector<2x32xf32>
    %c0_22 = arith.constant 0 : index
    %c0_23 = arith.constant 0 : index
    %40 = vector.load %arg7[%c0_22, %c0_23] : memref<32x2xf32, #tpu.memory_space<vmem>>, vector<32x2xf32>
    %cst_24 = arith.constant dense<0.000000e+00> : vector<2x2xf32>
    %41 = tpu.matmul %39, %40, %cst_24 {dimension_numbers = #tpu.dot_dimension_numbers<[1], [0], [0], [1], [0, 0, 1, 1], [], []>} : vector<2x32xf32>, vector<32x2xf32>, vector<2x2xf32> -> vector<2x2xf32>
    %c0_25 = arith.constant 0 : index
    %c0_26 = arith.constant 0 : index
    %42 = vector.load %arg8[%c0_25, %c0_26] : memref<1x2xf32, #tpu.memory_space<vmem>>, vector<1x2xf32>
    %43 = vector.broadcast %42 : vector<1x2xf32> to vector<2x2xf32>
    %44 = arith.addf %41, %43 : vector<2x2xf32>
    %cst_27 = arith.constant dense<0xFF800000> : vector<2xf32>
    %45 = vector.multi_reduction <maximumf>, %44, %cst_27 [1] : vector<2x2xf32> to vector<2xf32>
    %46 = vector.shape_cast %45 : vector<2xf32> to vector<2x1xf32>
    %47 = vector.broadcast %46 : vector<2x1xf32> to vector<2x2xf32>
    %48 = arith.subf %44, %47 : vector<2x2xf32>
    %49 = math.exp %48 : vector<2x2xf32>
    %cst_28 = arith.constant dense<0.000000e+00> : vector<2xf32>
    %50 = vector.multi_reduction <add>, %49, %cst_28 [1] : vector<2x2xf32> to vector<2xf32>
    %51 = vector.shape_cast %50 : vector<2xf32> to vector<2x1xf32>
    %52 = vector.broadcast %51 : vector<2x1xf32> to vector<2x2xf32>
    %53 = arith.divf %49, %52 : vector<2x2xf32>
    %c0_29 = arith.constant 0 : index
    %c0_30 = arith.constant 0 : index
    %54 = vector.load %arg9[%c0_29, %c0_30] : memref<2x2xf32, #tpu.memory_space<vmem>>, vector<2x2xf32>
    tpu.vector_store %arg9[%c0_29, %c0_30], %53 {strides = array<i32>} : memref<2x2xf32, #tpu.memory_space<vmem>>, vector<2x2xf32>,
    return
  }
}

</mosaic_0001>

<bundles_post_ra>
// kernel: asynch_forward.3
= control target key start
LH: loop header
LB: loop body
LE: loop exit
PB: predicated region body
PF: predicated region fallthrough
CT: control target
= control target key end

     0   :  { %v2474_v23 = vmov 1983009808   ;;  %v44_v25 = vlaneseq  ;;  %vm122_vm0 = vcmask 1041408   ;;  %vm2476_vm1 = vmmov 0   ;;  %s3733_s3 = inlined_call_operand.vmem [shape: f32[1920,64], index: 3, kind: input, shape index: {}]   ;;  %s3734_s0 = inlined_call_operand.vmem [shape: f32[2,1920], index: 0, kind: input, shape index: {}]   ;;  %s3735_s1 = inlined_call_operand.vmem [shape: f32[1,1920], index: 1, kind: input, shape index: {}]   ;;  %s3736_s2 = inlined_call_operand.vmem [shape: f32[1,1920], index: 2, kind: input, shape index: {}]   ;;  %s3737_s5 = inlined_call_operand.vmem [shape: f32[64,32], index: 5, kind: input, shape index: {}]   ;;  %s3738_s7 = inlined_call_operand.vmem [shape: f32[32,2], index: 7, kind: input, shape index: {}]   ;;  %s3739_s4 = inlined_call_operand.vmem [shape: f32[1,64], index: 4, kind: input, shape index: {}]   ;;  %s3740_s6 = inlined_call_operand.vmem [shape: f32[1,32], index: 6, kind: input, shape index: {}]   ;;  %s3741_s8 = inlined_call_operand.vmem [shape: f32[1,2], index: 8, kind: input, shape index: {}]   ;;  %s3742_s9 = inlined_call_operand.vmem [shape: f32[2,2], index: 9, kind: output, shape index: {}]  }
   0x1   :  { %v1032_v0 = vld [vmem:[%s3733_s3 + $0xf8] sm:$0xff]  ;;  %v1031_v2 = vld [vmem:[%s3733_s3 + $0xf0] sm:$0xff]  ;;  %v1030_v6 = vld [vmem:[%s3733_s3 + $0xe8] sm:$0xff]  ;;  %v42_v24 = vunpack.c.l.s4 %v2474_v23  ;;  %vm1910_vm2 = vcmask 523264   ;;  %vm1996_vm3 = vcmask 261120   ;;  %vm2070_vm4 = vcmask 9216  }
   0x2   :  { %v1016_v1 = vld [vmem:[%s3733_s3 + $0x78] sm:$0xff]  ;;  %2092 = vmatprep.subr.mxu0 %v1032_v0  ;;  %v1015_v4 = vld [vmem:[%s3733_s3 + $0x70] sm:$0xff]  ;;  %v1014_v8 = vld [vmem:[%s3733_s3 + $0x68] sm:$0xff]  ;;  %v2620_v35 = vshrl.u32 %v44_v25, 7 }
   0x3   :  { %v1064_v3 = vld [vmem:[%s3733_s3 + $0x1f8] sm:$0xff]  ;;  %2093 = vmatpush3.msra.mxu0 %v1016_v1  ;;  %v1063_v7 = vld [vmem:[%s3733_s3 + $0x1f0] sm:$0xff]  ;;  %v1062_v10 = vld [vmem:[%s3733_s3 + $0x1e8] sm:$0xff]  ;;  %v43_v34 = vunpack.c.0.s8 %v42_v24 }
   0x4   :  { %v1048_v5 = vld [vmem:[%s3733_s3 + $0x178] sm:$0xff]  ;;  %2127 = vmatprep.subr.mxu1 %v1064_v3  ;;  %2094 = vmatprep.subr.mxu0 %v1031_v2  ;;  %v1047_v9 = vld [vmem:[%s3733_s3 + $0x170] sm:$0xff]  ;;  %v1029_v11 = vld [vmem:[%s3733_s3 + $0xe0] sm:$0xff]  ;;  %v2673_v52 = vsub.s32 0, %v2620_v35  ;;  %v2699_v61 = vsub.s32 1, %v2620_v35  ;;  %v2702_v62 = vsub.s32 2, %v2620_v35 }
   0x5   :  { %2128 = vmatpush3.msra.mxu1 %v1048_v5  ;;  %2095 = vmatpush3.msra.mxu0 %v1015_v4  ;;  %v1046_v12 = vld [vmem:[%s3733_s3 + $0x168] sm:$0xff]  ;;  %v1013_v13 = vld [vmem:[%s3733_s3 + $0x60] sm:$0xff]  ;;  %v1028_v15 = vld [vmem:[%s3733_s3 + $0xd8] sm:$0xff]  ;;  %v2647_v44 = vsub.s32 %v43_v34, %v2620_v35  ;;  %v2705_v63 = vsub.s32 3, %v2620_v35  ;;  %v2708_v0 = vsub.s32 4, %v2620_v35 }
   0x6   :  { %2129 = vmatprep.subr.mxu1 %v1063_v7  ;;  %2096 = vmatprep.subr.mxu0 %v1030_v6  ;;  %v1061_v14 = vld [vmem:[%s3733_s3 + $0x1e0] sm:$0xff]  ;;  %v1012_v17 = vld [vmem:[%s3733_s3 + $0x58] sm:$0xff]  ;;  %v1027_v19 = vld [vmem:[%s3733_s3 + $0xd0] sm:$0xff] }
   0x7   :  { %2130 = vmatpush3.msra.mxu1 %v1047_v9  ;;  %2097 = vmatpush3.msra.mxu0 %v1014_v8  ;;  %v1045_v16 = vld [vmem:[%s3733_s3 + $0x160] sm:$0xff]  ;;  %v1060_v18 = vld [vmem:[%s3733_s3 + $0x1d8] sm:$0xff]  ;;  %v1011_v21 = vld [vmem:[%s3733_s3 + $0x50] sm:$0xff] }
   0x8   :  { %2131 = vmatprep.subr.mxu1 %v1062_v10  ;;  %2098 = vmatprep.subr.mxu0 %v1029_v11  ;;  %v1044_v20 = vld [vmem:[%s3733_s3 + $0x158] sm:$0xff]  ;;  %v1059_v22 = vld [vmem:[%s3733_s3 + $0x1d0] sm:$0xff]  ;;  %v1026_v26 = vld [vmem:[%s3733_s3 + $0xc8] sm:$0xff] }
   0x9   :  { %2132 = vmatpush3.msra.mxu1 %v1046_v12  ;;  %2099 = vmatpush3.msra.mxu0 %v1013_v13  ;;  %v1043_v27 = vld [vmem:[%s3733_s3 + $0x150] sm:$0xff]  ;;  %v1010_v28 = vld [vmem:[%s3733_s3 + $0x48] sm:$0xff]  ;;  %v1025_v30 = vld [vmem:[%s3733_s3 + $0xc0] sm:$0xff]  ;;  %v2728_v12 = vsub.s32 5, %v2620_v35 }
   0xa   :  { %2133 = vmatprep.subr.mxu1 %v1061_v14  ;;  %2100 = vmatprep.subr.mxu0 %v1028_v15  ;;  %v1058_v29 = vld [vmem:[%s3733_s3 + $0x1c8] sm:$0xff]  ;;  %v1009_v32 = vld [vmem:[%s3733_s3 + $0x40] sm:$0xff]  ;;  %v1024_v36 = vld [vmem:[%s3733_s3 + $0xb8] sm:$0xff] }
   0xb   :  { %2134 = vmatpush3.msra.mxu1 %v1045_v16  ;;  %2101 = vmatpush3.msra.mxu0 %v1012_v17  ;;  %v1042_v31 = vld [vmem:[%s3733_s3 + $0x148] sm:$0xff]  ;;  %v1057_v33 = vld [vmem:[%s3733_s3 + $0x1c0] sm:$0xff]  ;;  %v1008_v38 = vld [vmem:[%s3733_s3 + $0x38] sm:$0xff] }
   0xc   :  { %2135 = vmatprep.subr.mxu1 %v1060_v18  ;;  %2102 = vmatprep.subr.mxu0 %v1027_v19  ;;  %v1041_v37 = vld [vmem:[%s3733_s3 + $0x140] sm:$0xff]  ;;  %v1056_v39 = vld [vmem:[%s3733_s3 + $0x1b8] sm:$0xff]  ;;  %v1023_v40 = vld [vmem:[%s3733_s3 + $0xb0] sm:$0xff] }
   0xd   :  { %2136 = vmatpush3.msra.mxu1 %v1044_v20  ;;  %2103 = vmatpush3.msra.mxu0 %v1011_v21  ;;  %v1040_v41 = vld [vmem:[%s3733_s3 + $0x138] sm:$0xff]  ;;  %v1007_v42 = vld [vmem:[%s3733_s3 + $0x30] sm:$0xff]  ;;  %v1022_v45 = vld [vmem:[%s3733_s3 + $0xa8] sm:$0xff] }
   0xe   :  { %2137 = vmatprep.subr.mxu1 %v1059_v22  ;;  %2104 = vmatprep.subr.mxu0 %v1026_v26  ;;  %v1055_v43 = vld [vmem:[%s3733_s3 + $0x1b0] sm:$0xff]  ;;  %v1006_v47 = vld [vmem:[%s3733_s3 + $0x28] sm:$0xff]  ;;  %v1021_v49 = vld [vmem:[%s3733_s3 + $0xa0] sm:$0xff] }
   0xf   :  { %2138 = vmatpush3.msra.mxu1 %v1043_v27  ;;  %2105 = vmatpush3.msra.mxu0 %v1010_v28  ;;  %v1039_v46 = vld [vmem:[%s3733_s3 + $0x130] sm:$0xff]  ;;  %v1054_v48 = vld [vmem:[%s3733_s3 + $0x1a8] sm:$0xff]  ;;  %v2670_v51 = vld [vmem:[%s3734_s0] sm:$0xff] }
  0x10   :  { %2139 = vmatprep.subr.mxu1 %v1058_v29  ;;  %2106 = vmatprep.subr.mxu0 %v1025_v30  ;;  %v1038_v50 = vld [vmem:[%s3733_s3 + $0x128] sm:$0xff]  ;;  %v1005_v53 = vld [vmem:[%s3733_s3 + $0x20] sm:$0xff]  ;;  %v40_v55 = vcombine.high %v2670_v51, %v2670_v51  ;;  %v47_v56 = vrot.slane %v2670_v51, %v2647_v44  ;;  %v243_v57 = vmul.f32 %v2670_v51, %v2670_v51  ;;  %v1020_v59 = vld [vmem:[%s3733_s3 + $0x98] sm:$0xff] }
  0x11   :  { %2140 = vmatpush3.msra.mxu1 %v1042_v31  ;;  %2107 = vmatpush3.msra.mxu0 %v1009_v32  ;;  %v1053_v54 = vld [vmem:[%s3733_s3 + $0x1a0] sm:$0xff]  ;;  %v1004_v1 = vld [vmem:[%s3733_s3 + $0x18] sm:$0xff]  ;;  %v1019_v7 = vld [vmem:[%s3733_s3 + $0x90] sm:$0xff] }
  0x12   :  { %2141 = vmatprep.subr.mxu1 %v1057_v33  ;;  %2108 = vmatprep.subr.mxu0 %v1024_v36  ;;  %v2690_v58 = vld [vmem:[%s3735_s1] sm:$0xff]  ;;  %v1052_v2 = vld [vmem:[%s3733_s3 + $0x198] sm:$0xff]  ;;  %v54_v3 = vrot.slane %v40_v55, %v2647_v44  ;;  %v55_v4 = vcombine.high %v47_v56, %v47_v56  ;;  %v123_v5 = vsel %vm122_vm0, %v47_v56, 0.0  ;;  %v251_v6 = vcombine.high %v243_v57, %v243_v57  ;;  %v1003_v13 = vld [vmem:[%s3733_s3 + $0x10] sm:$0xff] }
  0x13   :  { %2142 = vmatpush3.msra.mxu1 %v1041_v37  ;;  %2109 = vmatpush3.msra.mxu0 %v1008_v38  ;;  %v1037_v60 = vld [vmem:[%s3733_s3 + $0x120] sm:$0xff]  ;;  %v1036_v8 = vld [vmem:[%s3733_s3 + $0x118] sm:$0xff]  ;;  %v124_v9 = vrot.slane %v123_v5, 4  ;;  %v258_v10 = vrot.slane %v243_v57, %v2647_v44  ;;  %v625_v11 = vrot.slane %v2690_v58, %v2673_v52  ;;  %v1051_v14 = vld [vmem:[%s3733_s3 + $0x190] sm:$0xff] }
  0x14   :  { %2143 = vmatprep.subr.mxu1 %v1056_v39  ;;  %2110 = vmatprep.subr.mxu0 %v1023_v40  ;;  %v56_v15 = vcombine.high %v54_v3, %v54_v3  ;;  %v130_v16 = vsel %vm122_vm0, %v55_v4, 0.0  ;;  %v137_v17 = vsel %vm122_vm0, %v54_v3, 0.0  ;;  %v265_v18 = vrot.slane %v251_v6, %v2647_v44  ;;  %v1018_v19 = vld [vmem:[%s3733_s3 + $0x88] sm:$0xff]  ;;  %v1035_v20 = vld [vmem:[%s3733_s3 + $0x110] sm:$0xff]  ;;  %v1017_v31 = vld [vmem:[%s3733_s3 + $0x80] sm:$0xff] }
  0x15   :  { %2144 = vmatpush3.msra.mxu1 %v1040_v41  ;;  %2111 = vmatpush3.msra.mxu0 %v1007_v42  ;;  %v125_v21 = vadd.f32 %v124_v9, %v123_v5  ;;  %v131_v22 = vrot.slane %v130_v16, 4  ;;  %v138_v23 = vrot.slane %v137_v17, 4  ;;  %v266_v24 = vcombine.high %v258_v10, %v258_v10  ;;  %v1002_v25 = vld [vmem:[%s3733_s3 + $0x8] sm:$0xff]  ;;  %v1001_v38 = vld [vmem:[%s3733_s3] sm:$0xff]  ;;  %v1128_v57 = vld [vmem:[%s3733_s3 + $0x3f8] sm:$0xff] }
  0x16   :  { %2145 = vmatprep.subr.mxu1 %v1055_v43  ;;  %2112 = vmatprep.subr.mxu0 %v1022_v45  ;;  %v1050_v26 = vld [vmem:[%s3733_s3 + $0x188] sm:$0xff]  ;;  %v144_v27 = vsel %vm122_vm0, %v56_v15, 0.0  ;;  %v267_v28 = vcombine.high %v265_v18, %v265_v18  ;;  %v333_v29 = vsel %vm122_vm0, %v258_v10, 0.0  ;;  %v347_v30 = vsel %vm122_vm0, %v265_v18, 0.0  ;;  %v1049_v43 = vld [vmem:[%s3733_s3 + $0x180] sm:$0xff] }
  0x17   :  { %2146 = vmatpush3.msra.mxu1 %v1039_v46  ;;  %2113 = vmatpush3.msra.mxu0 %v1006_v47  ;;  %v1034_v32 = vld [vmem:[%s3733_s3 + $0x108] sm:$0xff]  ;;  %v126_v33 = vrot.slane %v125_v21, 2  ;;  %v132_v34 = vadd.f32 %v131_v22, %v130_v16  ;;  %v139_v36 = vadd.f32 %v138_v23, %v137_v17  ;;  %v145_v37 = vrot.slane %v144_v27, 4 }
  0x18   :  { %2147 = vmatprep.subr.mxu1 %v1054_v48  ;;  %2114 = vmatprep.subr.mxu0 %v1021_v49  ;;  %v334_v39 = vrot.slane %v333_v29, 4  ;;  %v340_v40 = vsel %vm122_vm0, %v266_v24, 0.0  ;;  %v348_v41 = vrot.slane %v347_v30, 4  ;;  %v354_v42 = vsel %vm122_vm0, %v267_v28, 0.0  ;;  %v1096_v49 = vld [vmem:[%s3733_s3 + $0x2f8] sm:$0xff] }
  0x19   :  { %2148 = vmatpush3.msra.mxu1 %v1038_v50  ;;  %2115 = vmatpush3.msra.mxu0 %v1005_v53  ;;  %v127_v45 = vadd.f32 %v126_v33, %v125_v21  ;;  %v133_v46 = vrot.slane %v132_v34, 2  ;;  %v140_v47 = vrot.slane %v139_v36, 2  ;;  %v146_v48 = vadd.f32 %v145_v37, %v144_v27  ;;  %v1033_v50 = vld [vmem:[%s3733_s3 + $0x100] sm:$0xff] }
  0x1a   :  { %2149 = vmatprep.subr.mxu1 %v1053_v54  ;;  %2116 = vmatprep.subr.mxu0 %v1020_v59  ;;  %v335_v53 = vadd.f32 %v334_v39, %v333_v29  ;;  %v341_v54 = vrot.slane %v340_v40, 4  ;;  %v349_v55 = vadd.f32 %v348_v41, %v347_v30  ;;  %v355_v56 = vrot.slane %v354_v42, 4 }
  0x1b   :  { %2150 = vmatpush3.msra.mxu1 %v1037_v60  ;;  %2117 = vmatpush3.msra.mxu0 %v1004_v1  ;;  %v128_v59 = vrot.slane %v127_v45, 1  ;;  %v134_v60 = vadd.f32 %v133_v46, %v132_v34  ;;  %v141_v1 = vadd.f32 %v140_v47, %v139_v36  ;;  %v629_v46 = vrot.slane %v2690_v58, %v2699_v61 }
  0x1c   :  { %2151 = vmatprep.subr.mxu1 %v1052_v2  ;;  %2118 = vmatprep.subr.mxu0 %v1019_v7  ;;  %v147_v2 = vrot.slane %v146_v48, 2  ;;  %v336_v3 = vrot.slane %v335_v53, 2  ;;  %v342_v4 = vadd.f32 %v341_v54, %v340_v40  ;;  %v350_v5 = vrot.slane %v349_v55, 2  ;;  %v2789_v54 = vld [vmem:[%s3734_s0 + $0x8] sm:$0xff] }
  0x1d   :  { %2152 = vmatpush3.msra.mxu1 %v1036_v8  ;;  %2119 = vmatpush3.msra.mxu0 %v1003_v13  ;;  %v356_v6 = vadd.f32 %v355_v56, %v354_v42  ;;  %v129_v7 = vadd.f32 %v128_v59, %v127_v45  ;;  %v135_v8 = vrot.slane %v134_v60, 1  ;;  %v142_v9 = vrot.slane %v141_v1, 1  ;;  %v2780_v42 = vld [vmem:[%s3736_s2] sm:$0xff] }
  0x1e   :  { %2153 = vmatprep.subr.mxu1 %v1051_v14  ;;  %2120 = vmatprep.subr.mxu0 %v1018_v19  ;;  %v148_v10 = vadd.f32 %v147_v2, %v146_v48  ;;  %v337_v13 = vadd.f32 %v336_v3, %v335_v53  ;;  %v343_v14 = vrot.slane %v342_v4, 2  ;;  %v351_v15 = vadd.f32 %v350_v5, %v349_v55 }
  0x1f   :  { %2154 = vmatpush3.msra.mxu1 %v1035_v20  ;;  %2121 = vmatpush3.msra.mxu0 %v1002_v25  ;;  %v357_v16 = vrot.slane %v356_v6, 2  ;;  %v136_v17 = vadd.f32 %v135_v8, %v134_v60  ;;  %v143_v18 = vadd.f32 %v142_v9, %v141_v1  ;;  %v228_v20 = vmul.f32 0.5, %v129_v7 }
  0x20   :  { %2155 = vmatprep.subr.mxu1 %v1050_v26  ;;  %2122 = vmatprep.subr.mxu0 %v1017_v31  ;;  %v149_v19 = vrot.slane %v148_v10, 1  ;;  %v338_v21 = vrot.slane %v337_v13, 1  ;;  %v344_v22 = vadd.f32 %v343_v14, %v342_v4  ;;  %v352_v23 = vrot.slane %v351_v15, 1 }
  0x21   :  { %2156 = vmatpush3.msra.mxu1 %v1034_v32  ;;  %2123 = vmatpush3.msra.mxu0 %v1001_v38  ;;  %v358_v24 = vadd.f32 %v357_v16, %v356_v6  ;;  %v229_v26 = vmul.f32 0.5, %v136_v17  ;;  %v230_v27 = vmul.f32 0.5, %v143_v18  ;;  %v453_v28 = vmul.f32 %v228_v20, %v228_v20 }
  0x22   :  { %2157 = vmatprep.subr.mxu1 %v1049_v43  ;;  %2162 = vmatprep.subr.mxu0 %v1096_v49  ;;  %v150_v25 = vadd.f32 %v149_v19, %v148_v10  ;;  %v339_v29 = vadd.f32 %v338_v21, %v337_v13  ;;  %v345_v30 = vrot.slane %v344_v22, 1  ;;  %v353_v31 = vadd.f32 %v352_v23, %v351_v15 }
  0x23   :  { %2158 = vmatpush3.msra.mxu1 %v1033_v50  ;;  %v359_v32 = vrot.slane %v358_v24, 1  ;;  %v454_v34 = vmul.f32 %v229_v26, %v229_v26  ;;  %v455_v36 = vmul.f32 %v230_v27, %v230_v27  ;;  %v513_v37 = vcombine.low %v228_v20, %v229_v26 }
  0x24   :  { %2197 = vmatprep.subr.mxu1 %v1128_v57  ;;  %v231_v33 = vmul.f32 0.5, %v150_v25  ;;  %v346_v38 = vadd.f32 %v345_v30, %v344_v22  ;;  %v438_v40 = vmul.f32 0.5, %v339_v29  ;;  %v440_v41 = vmul.f32 0.5, %v353_v31 }
  0x25   :  { %v360_v39 = vadd.f32 %v359_v32, %v358_v24  ;;  %v633_v47 = vrot.slane %v2690_v58, %v2702_v62  ;;  %v2792_v55 = vrot.slane %v513_v37, %v2647_v44  ;;  %v869_v57 = vrot.slane %v2780_v42, %v2673_v52 }
  0x26   :  { %v456_v43 = vmul.f32 %v231_v33, %v231_v33  ;;  %v514_v45 = vcombine.low %v230_v27, %v231_v33  ;;  %v439_v48 = vmul.f32 0.5, %v346_v38  ;;  %v468_v50 = vsub.f32 %v438_v40, %v453_v28 }
  0x27   :  { %v441_v49 = vmul.f32 0.5, %v360_v39  ;;  %v470_v53 = vsub.f32 %v440_v41, %v455_v36  ;;  %v873_v59 = vrot.slane %v2780_v42, %v2699_v61  ;;  %v637_v4 = vrot.slane %v2690_v58, %v2705_v63 }
  0x28   :  { %v2795_v56 = vrot.slane %v514_v45, %v2647_v44  ;;  %v469_v60 = vsub.f32 %v439_v48, %v454_v34  ;;  %v483_v2 = vmax.f32 %v468_v50, 0.0  ;;  %v877_v5 = vrot.slane %v2780_v42, %v2702_v62 }
  0x29   :  { %v471_v1 = vsub.f32 %v441_v49, %v456_v43  ;;  %v485_v3 = vmax.f32 %v470_v53, 0.0  ;;  %v881_v6 = vrot.slane %v2780_v42, %v2705_v63  ;;  %v57_v7 = vcombine.high %v2789_v54, %v2789_v54 }
  0x2a   :  { %v484_v8 = vmax.f32 %v469_v60, 0.0  ;;  %v588_v10 = vadd.f32 1e-05, %v483_v2  ;;  %v529_v14 = vcombine.low %v2792_v55, %v2795_v56  ;;  %v2811_v15 = vcombine.low %v869_v57, %v873_v59 }
  0x2b   :  { %v486_v9 = vmax.f32 %v471_v1, 0.0  ;;  %v590_v13 = vadd.f32 1e-05, %v485_v3  ;;  %v64_v16 = vrot.slane %v2789_v54, %v2647_v44  ;;  %v71_v17 = vrot.slane %v57_v7, %v2647_v44 }
  0x2c   :  { %v589_v18 = vadd.f32 1e-05, %v484_v8  ;;  %2440 = vrsqrt.f32 %v588_v10  ;;  %v244_v20 = vmul.f32 %v2789_v54, %v2789_v54  ;;  %v2818_v21 = vcombine.low %v877_v5, %v881_v6 }
  0x2d   :  { %v591_v19 = vadd.f32 1e-05, %v486_v9  ;;  %2442 = vrsqrt.f32 %v590_v13  ;;  %v72_v22 = vcombine.high %v64_v16, %v64_v16  ;;  %v73_v23 = vcombine.high %v71_v17, %v71_v17 }
  0x2e   :  { %2444 = vrsqrt.f32 %v589_v18  ;;  %v151_v24 = vsel %vm122_vm0, %v64_v16, 0.0  ;;  %v165_v25 = vsel %vm122_vm0, %v71_v17, 0.0  ;;  %v268_v26 = vcombine.high %v244_v20, %v244_v20 }
  0x2f   :  { %2446 = vrsqrt.f32 %v591_v19  ;;  %v152_v27 = vrot.slane %v151_v24, 4  ;;  %v158_v28 = vsel %vm122_vm0, %v72_v22, 0.0  ;;  %v166_v29 = vrot.slane %v165_v25, 4 }
  0x30   :  { %v159_v30 = vrot.slane %v158_v28, 4  ;;  %v172_v31 = vsel %vm122_vm0, %v73_v23, 0.0  ;;  %v275_v32 = vrot.slane %v244_v20, %v2647_v44  ;;  %v282_v33 = vrot.slane %v268_v26, %v2647_v44 }
  0x31   :  { %v934_v34 = vrot.slane %v2811_v15, %v2647_v44  ;;  %v153_v36 = vadd.f32 %v152_v27, %v151_v24  ;;  %v167_v37 = vadd.f32 %v166_v29, %v165_v25  ;;  %v173_v38 = vrot.slane %v172_v31, 4 }
  0x32   :  { %v160_v39 = vadd.f32 %v159_v30, %v158_v28  ;;  %v283_v40 = vcombine.high %v275_v32, %v275_v32  ;;  %v284_v41 = vcombine.high %v282_v33, %v282_v33  ;;  %v361_v43 = vsel %vm122_vm0, %v275_v32, 0.0 }
  0x33   :  { %v154_v45 = vrot.slane %v153_v36, 2  ;;  %v168_v48 = vrot.slane %v167_v37, 2  ;;  %v174_v49 = vadd.f32 %v173_v38, %v172_v31  ;;  %v362_v50 = vrot.slane %v361_v43, 4 }
  0x34   :  { %v161_v53 = vrot.slane %v160_v39, 2  ;;  %v368_v57 = vsel %vm122_vm0, %v283_v40, 0.0  ;;  %v375_v59 = vsel %vm122_vm0, %v282_v33, 0.0  ;;  %v382_v60 = vsel %vm122_vm0, %v284_v41, 0.0 }
  0x35   :  { %v155_v1 = vadd.f32 %v154_v45, %v153_v36  ;;  %v169_v2 = vadd.f32 %v168_v48, %v167_v37  ;;  %v175_v3 = vrot.slane %v174_v49, 2  ;;  %v363_v5 = vadd.f32 %v362_v50, %v361_v43 }
  0x36   :  { %v162_v6 = vadd.f32 %v161_v53, %v160_v39  ;;  %v369_v7 = vrot.slane %v368_v57, 4  ;;  %v376_v8 = vrot.slane %v375_v59, 4  ;;  %v383_v9 = vrot.slane %v382_v60, 4 }
  0x37   :  { %v156_v10 = vrot.slane %v155_v1, 1  ;;  %v170_v13 = vrot.slane %v169_v2, 1  ;;  %v176_v16 = vadd.f32 %v175_v3, %v174_v49  ;;  %v364_v17 = vrot.slane %v363_v5, 2 }
  0x38   :  { %v163_v18 = vrot.slane %v162_v6, 1  ;;  %v370_v19 = vadd.f32 %v369_v7, %v368_v57  ;;  %v377_v20 = vadd.f32 %v376_v8, %v375_v59  ;;  %v384_v22 = vadd.f32 %v383_v9, %v382_v60 }
  0x39   :  { %v2441_v23 = vpop.eup %2440  ;;  %v157_v24 = vadd.f32 %v156_v10, %v155_v1  ;;  %v171_v25 = vadd.f32 %v170_v13, %v169_v2  ;;  %v177_v26 = vrot.slane %v176_v16, 1  ;;  %v365_v27 = vadd.f32 %v364_v17, %v363_v5 }
  0x3a   :  { %v2443_v28 = vpop.eup %2442  ;;  %v697_v29 = vmul.f32 %v2441_v23, %v625_v11  ;;  %v164_v30 = vadd.f32 %v163_v18, %v162_v6  ;;  %v371_v31 = vrot.slane %v370_v19, 2  ;;  %v378_v32 = vrot.slane %v377_v20, 2 }
  0x3b   :  { %v2445_v33 = vpop.eup %2444  ;;  %v699_v36 = vmul.f32 %v2443_v28, %v633_v47  ;;  %v941_v37 = vrot.slane %v2818_v21, %v2647_v44  ;;  %v178_v38 = vadd.f32 %v177_v26, %v176_v16  ;;  %v232_v39 = vmul.f32 0.5, %v157_v24 }
  0x3c   :  { %v2447_v40 = vpop.eup %2446  ;;  %v698_v41 = vmul.f32 %v2445_v33, %v629_v46  ;;  %v715_v11 = vrot.slane %v697_v29, %v2673_v52  ;;  %v234_v43 = vmul.f32 0.5, %v171_v25  ;;  %v366_v45 = vrot.slane %v365_v27, 1 }
  0x3d   :  { %v700_v48 = vmul.f32 %v2447_v40, %v637_v4  ;;  %v723_v47 = vrot.slane %v699_v36, %v2673_v52  ;;  %v233_v49 = vmul.f32 0.5, %v164_v30  ;;  %v372_v50 = vadd.f32 %v371_v31, %v370_v19 }
  0x3e   :  { %v719_v21 = vrot.slane %v698_v41, %v2673_v52  ;;  %v367_v53 = vadd.f32 %v366_v45, %v365_v27  ;;  %v379_v57 = vadd.f32 %v378_v32, %v377_v20  ;;  %v385_v59 = vrot.slane %v384_v22, 2 }
  0x3f   :  { %v727_v60 = vrot.slane %v700_v48, %v2673_v52  ;;  %v235_v46 = vmul.f32 0.5, %v178_v38  ;;  %v373_v1 = vrot.slane %v372_v50, 1  ;;  %v457_v2 = vmul.f32 %v232_v39, %v232_v39 }
  0x40   :  { %v787_v3 = vcombine.low %v715_v11, %v719_v21  ;;  %v380_v5 = vrot.slane %v379_v57, 1  ;;  %v386_v6 = vadd.f32 %v385_v59, %v384_v22  ;;  %v442_v7 = vmul.f32 0.5, %v367_v53  ;;  %v2874_v11 = vld [vmem:[%s3734_s0 + $0x10] sm:$0xff] }
  0x41   :  { %v788_v8 = vcombine.low %v723_v47, %v727_v60  ;;  %v374_v4 = vadd.f32 %v373_v1, %v372_v50  ;;  %v458_v9 = vmul.f32 %v233_v49, %v233_v49  ;;  %v459_v10 = vmul.f32 %v234_v43, %v234_v43 }
  0x42   :  { %v795_v13 = vrot.slane %v787_v3, %v2647_v44  ;;  %v381_v16 = vadd.f32 %v380_v5, %v379_v57  ;;  %v387_v17 = vrot.slane %v386_v6, 1  ;;  %v472_v18 = vsub.f32 %v442_v7, %v457_v2  ;;  %v1080_v2 = vld [vmem:[%s3733_s3 + $0x278] sm:$0xff] }
  0x43   :  { %v584_v19 = vsub.f32 %v2670_v51, %v529_v14  ;;  %v802_v20 = vrot.slane %v788_v8, %v2647_v44  ;;  %v942_v22 = vcombine.low %v934_v34, %v941_v37  ;;  %v443_v23 = vmul.f32 0.5, %v374_v4  ;;  %v1095_v8 = vld [vmem:[%s3733_s3 + $0x2f0] sm:$0xff] }
  0x44   :  { %v388_v24 = vadd.f32 %v387_v17, %v386_v6  ;;  %v444_v25 = vmul.f32 0.5, %v381_v16  ;;  %v460_v26 = vmul.f32 %v235_v46, %v235_v46  ;;  %v487_v27 = vmax.f32 %v472_v18, 0.0  ;;  %v1112_v16 = vld [vmem:[%s3733_s3 + $0x378] sm:$0xff] }
  0x45   :  { %v803_v28 = vcombine.low %v795_v13, %v802_v20  ;;  %v473_v29 = vsub.f32 %v443_v23, %v458_v9  ;;  %v530_v30 = vcombine.low %v232_v39, %v233_v49  ;;  %v531_v31 = vcombine.low %v234_v43, %v235_v46  ;;  %v1079_v13 = vld [vmem:[%s3733_s3 + $0x270] sm:$0xff] }
  0x46   :  { %v445_v32 = vmul.f32 0.5, %v388_v24  ;;  %v474_v33 = vsub.f32 %v444_v25, %v459_v10  ;;  %v592_v55 = vadd.f32 1e-05, %v487_v27  ;;  %v2860_v51 = vsub.s32 6, %v2620_v35  ;;  %v1078_v27 = vld [vmem:[%s3733_s3 + $0x268] sm:$0xff] }
  0x47   :  { %v858_v56 = vmul.f32 %v803_v28, %v584_v19  ;;  %v488_v14 = vmax.f32 %v473_v29, 0.0  ;;  %v652_v15 = vsub.s32 7, %v2620_v35  ;;  %v641_v37 = vrot.slane %v2690_v58, %v2708_v0  ;;  %v1111_v28 = vld [vmem:[%s3733_s3 + $0x370] sm:$0xff] }
  0x48   :  { %v475_v34 = vsub.f32 %v445_v32, %v460_v26  ;;  %v489_v36 = vmax.f32 %v474_v33, 0.0  ;;  %2448 = vrsqrt.f32 %v592_v55  ;;  %v2866_v39 = vrot.slane %v530_v30, %v2647_v44  ;;  %v1093_v33 = vld [vmem:[%s3733_s3 + $0x2e0] sm:$0xff]  ;;  %v1126_v55 = vld [vmem:[%s3733_s3 + $0x3e8] sm:$0xff] }
  0x49   :  { %v997_v38 = vadd.f32 %v942_v22, %v858_v56  ;;  %v2869_v40 = vrot.slane %v531_v31, %v2647_v44  ;;  %v593_v41 = vadd.f32 1e-05, %v488_v14  ;;  %v645_v45 = vrot.slane %v2690_v58, %v2728_v12  ;;  %v1127_v22 = vld [vmem:[%s3733_s3 + $0x3f0] sm:$0xff] }
  0x4a   :  { %v490_v35 = vmax.f32 %v475_v34, 0.0  ;;  %v594_v43 = vadd.f32 1e-05, %v489_v36  ;;  %v649_v48 = vrot.slane %v2690_v58, %v2860_v51  ;;  %v885_v50 = vrot.slane %v2780_v42, %v2708_v0  ;;  %v1077_v36 = vld [vmem:[%s3733_s3 + $0x260] sm:$0xff] }
  0x4b   :  { %v1259_v47 = vrot.slane %v997_v38, %v2647_v44  ;;  %v1252_v49 = vcombine.high %v997_v38, %v997_v38  ;;  %2450 = vrsqrt.f32 %v593_v41  ;;  %v889_v53 = vrot.slane %v2780_v42, %v2728_v12  ;;  %v1110_v38 = vld [vmem:[%s3733_s3 + $0x368] sm:$0xff] }
  0x4c   :  { %v595_v21 = vadd.f32 1e-05, %v490_v35  ;;  %2452 = vrsqrt.f32 %v594_v43  ;;  %v74_v57 = vcombine.high %v2874_v11, %v2874_v11  ;;  %v546_v46 = vcombine.low %v2866_v39, %v2869_v40 }
  0x4d   :  { %v1267_v59 = vcombine.high %v1259_v47, %v1259_v47  ;;  %v1266_v60 = vrot.slane %v1252_v49, %v2647_v44  ;;  %v81_v1 = vrot.slane %v2874_v11, %v2647_v44  ;;  %v893_v3 = vrot.slane %v2780_v42, %v2860_v51 }
  0x4e   :  { %2454 = vrsqrt.f32 %v595_v21  ;;  %v88_v5 = vrot.slane %v74_v57, %v2647_v44  ;;  %v245_v6 = vmul.f32 %v2874_v11, %v2874_v11  ;;  %v897_v4 = vrot.slane %v2780_v42, %v652_v15  ;;  %v1094_v42 = vld [vmem:[%s3733_s3 + $0x2e8] sm:$0xff]  ;;  %v1125_v21 = vld [vmem:[%s3733_s3 + $0x3e0] sm:$0xff] }
  0x4f   :  { %1398 = vmatprep.mubr.f32.mxu0 %v1267_v59  ;;  %v1268_v7 = vcombine.high %v1266_v60, %v1266_v60  ;;  %v89_v9 = vcombine.high %v81_v1, %v81_v1  ;;  %v179_v10 = vsel %vm122_vm0, %v81_v1, 0.0  ;;  %v2911_v17 = vcombine.low %v885_v50, %v889_v53  ;;  %v1092_v50 = vld [vmem:[%s3733_s3 + $0x2d8] sm:$0xff] }
  0x50   :  { %1399 = vmatmul.mubr.f32.vlgmr.msra.gmra.mxu0 %v1259_v47  ;;  %v90_v18 = vcombine.high %v88_v5, %v88_v5  ;;  %v180_v19 = vrot.slane %v179_v10, 4  ;;  %v193_v20 = vsel %vm122_vm0, %v88_v5, 0.0  ;;  %v285_v25 = vcombine.high %v245_v6, %v245_v6  ;;  %v1076_v1 = vld [vmem:[%s3733_s3 + $0x258] sm:$0xff] }
  0x51   :  { %2163 = vmatpush3.msra.mxu0 %v1080_v2  ;;  %1468 = vmatprep.mubr.f32.mxu1 %v1268_v7  ;;  %v186_v23 = vsel %vm122_vm0, %v89_v9, 0.0  ;;  %v194_v24 = vrot.slane %v193_v20, 4  ;;  %v292_v26 = vrot.slane %v245_v6, %v2647_v44  ;;  %v2929_v29 = vrot.slane %v2690_v58, %v652_v15  ;;  %v1109_v2 = vld [vmem:[%s3733_s3 + $0x360] sm:$0xff] }
  0x52   :  { %2164 = vmatprep.subr.mxu0 %v1095_v8  ;;  %1469 = vmatmul.mubr.f32.vlgmr.msra.gmra.mxu1 %v1266_v60  ;;  %v181_v30 = vadd.f32 %v180_v19, %v179_v10  ;;  %v187_v31 = vrot.slane %v186_v23, 4  ;;  %v200_v32 = vsel %vm122_vm0, %v90_v18, 0.0  ;;  %v2938_v56 = vcombine.low %v893_v3, %v897_v4  ;;  %v1091_v8 = vld [vmem:[%s3733_s3 + $0x2d0] sm:$0xff]  ;;  %v1124_v4 = vld [vmem:[%s3733_s3 + $0x3d8] sm:$0xff] }
  0x53   :  { %2165 = vmatpush3.msra.mxu0 %v1079_v13  ;;  %2198 = vmatpush3.msra.mxu1 %v1112_v16  ;;  %v195_v14 = vadd.f32 %v194_v24, %v193_v20  ;;  %v201_v34 = vrot.slane %v200_v32, 4  ;;  %v300_v15 = vcombine.high %v292_v26, %v292_v26  ;;  %v951_v41 = vrot.slane %v2911_v17, %v2647_v44  ;;  %v1108_v19 = vld [vmem:[%s3733_s3 + $0x358] sm:$0xff] }
  0x54   :  { %2166 = vmatprep.subr.mxu0 %v1094_v42  ;;  %2199 = vmatprep.subr.mxu1 %v1127_v22  ;;  %v182_v35 = vrot.slane %v181_v30, 2  ;;  %v188_v43 = vadd.f32 %v187_v31, %v186_v23  ;;  %v389_v47 = vsel %vm122_vm0, %v292_v26, 0.0  ;;  %v2956_v59 = vrot.slane %v285_v25, %v2647_v44  ;;  %v1090_v25 = vld [vmem:[%s3733_s3 + $0x2c8] sm:$0xff]  ;;  %v1123_v26 = vld [vmem:[%s3733_s3 + $0x3d0] sm:$0xff] }
  0x55   :  { %v2449_v49 = vpop.eup %2448  ;;  %2167 = vmatpush3.msra.mxu0 %v1078_v27  ;;  %2200 = vmatpush3.msra.mxu1 %v1111_v28  ;;  %v196_v53 = vrot.slane %v195_v14, 2  ;;  %v202_v57 = vadd.f32 %v201_v34, %v200_v32  ;;  %v390_v60 = vrot.slane %v389_v47, 4  ;;  %v396_v7 = vsel %vm122_vm0, %v300_v15, 0.0  ;;  %v1074_v32 = vld [vmem:[%s3733_s3 + $0x248] sm:$0xff] }
  0x56   :  { %2168 = vmatprep.subr.mxu0 %v1093_v33  ;;  %2201 = vmatprep.subr.mxu1 %v1126_v55  ;;  %v701_v3 = vmul.f32 %v2449_v49, %v641_v37  ;;  %v183_v5 = vadd.f32 %v182_v35, %v181_v30  ;;  %v189_v6 = vrot.slane %v188_v43, 2  ;;  %v397_v16 = vrot.slane %v396_v7, 4  ;;  %v1075_v37 = vld [vmem:[%s3733_s3 + $0x250] sm:$0xff]  ;;  %v1106_v49 = vld [vmem:[%s3733_s3 + $0x348] sm:$0xff] }
  0x57   :  { %2169 = vmatpush3.msra.mxu0 %v1077_v36  ;;  %2202 = vmatpush3.msra.mxu1 %v1110_v38  ;;  %v197_v9 = vadd.f32 %v196_v53, %v195_v14  ;;  %v203_v10 = vrot.slane %v202_v57, 2  ;;  %v391_v13 = vadd.f32 %v390_v60, %v389_v47  ;;  %v958_v42 = vrot.slane %v2938_v56, %v2647_v44  ;;  %v1107_v33 = vld [vmem:[%s3733_s3 + $0x350] sm:$0xff]  ;;  %v1089_v36 = vld [vmem:[%s3733_s3 + $0x2c0] sm:$0xff]  ;;  %v1122_v38 = vld [vmem:[%s3733_s3 + $0x3c8] sm:$0xff] }
  0x58   :  { %v2451_v18 = vpop.eup %2450  ;;  %2170 = vmatprep.subr.mxu0 %v1092_v50  ;;  %2203 = vmatprep.subr.mxu1 %v1125_v21  ;;  %v731_v20 = vrot.slane %v701_v3, %v2673_v52  ;;  %v184_v22 = vrot.slane %v183_v5, 1  ;;  %v190_v23 = vadd.f32 %v189_v6, %v188_v43  ;;  %v398_v34 = vadd.f32 %v397_v16, %v396_v7  ;;  %v1073_v47 = vld [vmem:[%s3733_s3 + $0x240] sm:$0xff]  ;;  %v1102_v56 = vld [vmem:[%s3733_s3 + $0x328] sm:$0xff] }
  0x59   :  { %v2453_v24 = vpop.eup %2452  ;;  %2171 = vmatpush3.msra.mxu0 %v1076_v1  ;;  %2204 = vmatpush3.msra.mxu1 %v1109_v2  ;;  %v702_v27 = vmul.f32 %v2451_v18, %v645_v45  ;;  %v198_v28 = vrot.slane %v197_v9, 1  ;;  %v2992_v30 = vadd.f32 %v203_v10, %v202_v57  ;;  %v392_v31 = vrot.slane %v391_v13, 2  ;;  %v1088_v57 = vld [vmem:[%s3733_s3 + $0x2b8] sm:$0xff]  ;;  %v1087_v10 = vld [vmem:[%s3733_s3 + $0x2b0] sm:$0xff] }
  0x5a   :  { %2172 = vmatprep.subr.mxu0 %v1091_v8  ;;  %2205 = vmatprep.subr.mxu1 %v1124_v4  ;;  %v703_v55 = vmul.f32 %v2453_v24, %v649_v48  ;;  %v185_v14 = vadd.f32 %v184_v22, %v183_v5  ;;  %v191_v45 = vrot.slane %v190_v23, 1  ;;  %v301_v58 = vcombine.high %v2956_v59, %v2956_v59  ;;  %v1105_v5 = vld [vmem:[%s3733_s3 + $0x340] sm:$0xff] }
  0x5b   :  { %v2455_v15 = vpop.eup %2454  ;;  %2173 = vmatpush3.msra.mxu0 %v1075_v37  ;;  %2206 = vmatpush3.msra.mxu1 %v1108_v19  ;;  %v735_v35 = vrot.slane %v702_v27, %v2673_v52  ;;  %v393_v48 = vadd.f32 %v392_v31, %v391_v13  ;;  %v403_v43 = vsel %vm122_vm0, %v2956_v59, 0.0  ;;  %v1121_v59 = vld [vmem:[%s3733_s3 + $0x3c0] sm:$0xff]  ;;  %v205_v1 = vrot.slane %v2992_v30, 1  ;;  %v1120_v13 = vld [vmem:[%s3733_s3 + $0x3b8] sm:$0xff]  ;;  %v1119_v27 = vld [vmem:[%s3733_s3 + $0x3b0] sm:$0xff] }
  0x5c   :  { %2174 = vmatprep.subr.mxu0 %v1090_v25  ;;  %2207 = vmatprep.subr.mxu1 %v1123_v26  ;;  %v704_v50 = vmul.f32 %v2455_v15, %v2929_v29  ;;  %v739_v21 = vrot.slane %v703_v55, %v2673_v52  ;;  %v192_v53 = vadd.f32 %v191_v45, %v190_v23  ;;  %v3029_v2 = vmul.f32 0.5, %v185_v14  ;;  %v1072_v29 = vld [vmem:[%s3733_s3 + $0x238] sm:$0xff]  ;;  %v1086_v26 = vld [vmem:[%s3733_s3 + $0x2a8] sm:$0xff]  ;;  %v1103_v14 = vld [vmem:[%s3733_s3 + $0x330] sm:$0xff] }
  0x5d   :  { %2175 = vmatpush3.msra.mxu0 %v1074_v32  ;;  %2208 = vmatpush3.msra.mxu1 %v1107_v33  ;;  %v804_v60 = vcombine.low %v731_v20, %v735_v35  ;;  %v394_v3 = vrot.slane %v393_v48, 1  ;;  %v199_v7 = vadd.f32 %v198_v28, %v197_v9  ;;  %v399_v8 = vrot.slane %v398_v34, 2  ;;  %v1071_v9 = vld [vmem:[%s3733_s3 + $0x230] sm:$0xff]  ;;  %v1104_v20 = vld [vmem:[%s3733_s3 + $0x338] sm:$0xff]  ;;  %v1070_v55 = vld [vmem:[%s3733_s3 + $0x228] sm:$0xff] }
  0x5e   :  { %2176 = vmatprep.subr.mxu0 %v1089_v36  ;;  %2209 = vmatprep.subr.mxu1 %v1122_v38  ;;  %v743_v6 = vrot.slane %v704_v50, %v2673_v52  ;;  %v404_v4 = vrot.slane %v403_v43, 4  ;;  %v3045_v18 = vmul.f32 0.5, %v192_v53  ;;  %v410_v19 = vsel %vm122_vm0, %v301_v58, 0.0  ;;  %v1085_v45 = vld [vmem:[%s3733_s3 + $0x2a0] sm:$0xff] }
  0x5f   :  { %2177 = vmatpush3.msra.mxu0 %v1073_v47  ;;  %2210 = vmatpush3.msra.mxu1 %v1106_v49  ;;  %v812_v16 = vrot.slane %v804_v60, %v2647_v44  ;;  %v395_v37 = vadd.f32 %v394_v3, %v393_v48  ;;  %v400_v23 = vadd.f32 %v399_v8, %v398_v34  ;;  %v411_v25 = vrot.slane %v410_v19, 4  ;;  %v1118_v34 = vld [vmem:[%s3733_s3 + $0x3a8] sm:$0xff]  ;;  %v1069_v58 = vld [vmem:[%s3733_s3 + $0x220] sm:$0xff] }
  0x60   :  { %2178 = vmatprep.subr.mxu0 %v1088_v57  ;;  %2211 = vmatprep.subr.mxu1 %v1121_v59  ;;  %v805_v22 = vcombine.low %v739_v21, %v743_v6  ;;  %v405_v24 = vadd.f32 %v404_v4, %v403_v43  ;;  %v585_v28 = vsub.f32 %v2789_v54, %v546_v46  ;;  %v3091_v36 = vmul.f32 0.5, %v199_v7  ;;  %v1084_v43 = vld [vmem:[%s3733_s3 + $0x298] sm:$0xff]  ;;  %v1117_v47 = vld [vmem:[%s3733_s3 + $0x3a0] sm:$0xff] }
  0x61   :  { %2179 = vmatpush3.msra.mxu0 %v1072_v29  ;;  %2212 = vmatpush3.msra.mxu1 %v1105_v5  ;;  %v206_v31 = vadd.f32 %v205_v1, %v2992_v30  ;;  %v446_v32 = vmul.f32 0.5, %v395_v37  ;;  %v461_v33 = vmul.f32 %v3029_v2, %v3029_v2  ;;  %v401_v40 = vrot.slane %v400_v23, 1  ;;  %v3077_v30 = vld [vmem:[%s3735_s1 + $0x8] sm:$0xff]  ;;  %v1068_v57 = vld [vmem:[%s3733_s3 + $0x218] sm:$0xff]  ;;  %v1101_v59 = vld [vmem:[%s3733_s3 + $0x320] sm:$0xff] }
  0x62   :  { %2180 = vmatprep.subr.mxu0 %v1087_v10  ;;  %2213 = vmatprep.subr.mxu1 %v1120_v13  ;;  %v819_v39 = vrot.slane %v805_v22, %v2647_v44  ;;  %v406_v54 = vrot.slane %v405_v24, 2  ;;  %v412_v46 = vadd.f32 %v411_v25, %v410_v19  ;;  %v959_v15 = vcombine.low %v951_v41, %v958_v42  ;;  %v1116_v5 = vld [vmem:[%s3733_s3 + $0x398] sm:$0xff]  ;;  %v1067_v10 = vld [vmem:[%s3733_s3 + $0x210] sm:$0xff] }
  0x63   :  { %2181 = vmatpush3.msra.mxu0 %v1071_v9  ;;  %2214 = vmatpush3.msra.mxu1 %v1104_v20  ;;  %v3095_v38 = vmul.f32 %v3045_v18, %v3045_v18  ;;  %v476_v35 = vsub.f32 %v446_v32, %v461_v33  ;;  %v402_v17 = vadd.f32 %v401_v40, %v400_v23  ;;  %v239_v49 = vmul.f32 0.5, %v206_v31  ;;  %v1100_v13 = vld [vmem:[%s3733_s3 + $0x318] sm:$0xff]  ;;  %v3140_v9 = vld [vmem:[%s3736_s2 + $0x8] sm:$0xff]  ;;  %v1115_v22 = vld [vmem:[%s3733_s3 + $0x390] sm:$0xff] }
  0x64   :  { %2182 = vmatprep.subr.mxu0 %v1086_v26  ;;  %2215 = vmatprep.subr.mxu1 %v1119_v27  ;;  %v820_v48 = vcombine.low %v812_v16, %v819_v39  ;;  %v407_v41 = vadd.f32 %v406_v54, %v405_v24  ;;  %v413_v42 = vrot.slane %v412_v46, 2  ;;  %v547_v21 = vcombine.low %v3029_v2, %v3045_v18  ;;  %v1083_v2 = vld [vmem:[%s3733_s3 + $0x290] sm:$0xff]  ;;  %v1082_v20 = vld [vmem:[%s3733_s3 + $0x288] sm:$0xff] }
  0x65   :  { %2183 = vmatpush3.msra.mxu0 %v1070_v55  ;;  %2216 = vmatpush3.msra.mxu1 %v1103_v14  ;;  %v491_v50 = vmax.f32 %v476_v35, 0.0  ;;  %v657_v53 = vrot.slane %v3077_v30, %v2673_v52  ;;  %v447_v29 = vmul.f32 0.5, %v402_v17  ;;  %v463_v6 = vmul.f32 %v3091_v36, %v3091_v36  ;;  %v1066_v26 = vld [vmem:[%s3733_s3 + $0x208] sm:$0xff]  ;;  %v1099_v27 = vld [vmem:[%s3733_s3 + $0x310] sm:$0xff]  ;;  %v1081_v55 = vld [vmem:[%s3733_s3 + $0x280] sm:$0xff] }
  0x66   :  { %2184 = vmatprep.subr.mxu0 %v1085_v45  ;;  %2217 = vmatprep.subr.mxu1 %v1118_v34  ;;  %v859_v60 = vmul.f32 %v820_v48, %v585_v28  ;;  %v408_v1 = vrot.slane %v407_v41, 1  ;;  %v414_v3 = vadd.f32 %v413_v42, %v412_v46  ;;  %v548_v7 = vcombine.low %v3091_v36, %v239_v49  ;;  %v1114_v14 = vld [vmem:[%s3733_s3 + $0x388] sm:$0xff]  ;;  %v3176_v45 = vld [vmem:[%s3734_s0 + $0x18] sm:$0x3f]  ;;  %v1065_v34 = vld [vmem:[%s3733_s3 + $0x200] sm:$0xff] }
  0x67   :  { %2185 = vmatpush3.msra.mxu0 %v1069_v58  ;;  %2218 = vmatpush3.msra.mxu1 %v1102_v56  ;;  %v596_v8 = vadd.f32 1e-05, %v491_v50  ;;  %v661_v4 = vrot.slane %v3077_v30, %v2699_v61  ;;  %v477_v19 = vsub.f32 %v447_v29, %v3095_v38  ;;  %v464_v23 = vmul.f32 %v239_v49, %v239_v49  ;;  %v1098_v58 = vld [vmem:[%s3733_s3 + $0x308] sm:$0xff]  ;;  %v1113_v42 = vld [vmem:[%s3733_s3 + $0x380] sm:$0xff] }
  0x68   :  { %2186 = vmatprep.subr.mxu0 %v1084_v43  ;;  %2219 = vmatprep.subr.mxu1 %v1117_v47  ;;  %v998_v16 = vadd.f32 %v959_v15, %v859_v60  ;;  %v409_v18 = vadd.f32 %v408_v1, %v407_v41  ;;  %v415_v37 = vrot.slane %v414_v3, 1  ;;  %v3149_v24 = vrot.slane %v547_v21, %v2647_v44  ;;  %v1160_v43 = vld [vmem:[%s3733_s3 + $0x4f8] sm:$0xff] }
  0x69   :  { %2187 = vmatpush3.msra.mxu0 %v1068_v57  ;;  %2220 = vmatpush3.msra.mxu1 %v1101_v59  ;;  %2456 = vrsqrt.f32 %v596_v8  ;;  %v665_v25 = vrot.slane %v3077_v30, %v2702_v62  ;;  %v492_v39 = vmax.f32 %v477_v19, 0.0  ;;  %v3167_v40 = vrot.slane %v548_v7, %v2647_v44  ;;  %v1097_v57 = vld [vmem:[%s3733_s3 + $0x300] sm:$0xff]  ;;  %v1159_v7 = vld [vmem:[%s3733_s3 + $0x4f0] sm:$0xff]  ;;  %v1192_v8 = vld [vmem:[%s3733_s3 + $0x5f8] sm:$0xff] }
  0x6a   :  { %2188 = vmatprep.subr.mxu0 %v1083_v2  ;;  %2221 = vmatprep.subr.mxu1 %v1116_v5  ;;  %v1276_v28 = vrot.slane %v998_v16, %v2647_v44  ;;  %v1269_v31 = vcombine.high %v998_v16, %v998_v16  ;;  %v416_v32 = vadd.f32 %v415_v37, %v414_v3  ;;  %v448_v33 = vmul.f32 0.5, %v409_v18  ;;  %v1144_v3 = vld [vmem:[%s3733_s3 + $0x478] sm:$0xff]  ;;  %v1143_v37 = vld [vmem:[%s3733_s3 + $0x470] sm:$0xff] }
  0x6b   :  { %2189 = vmatpush3.msra.mxu0 %v1067_v10  ;;  %2222 = vmatpush3.msra.mxu1 %v1100_v13  ;;  %v669_v54 = vrot.slane %v3077_v30, %v2705_v63  ;;  %v901_v46 = vrot.slane %v3140_v9, %v2673_v52  ;;  %v597_v56 = vadd.f32 1e-05, %v492_v39  ;;  %v905_v48 = vrot.slane %v3140_v9, %v2699_v61  ;;  %v1176_v19 = vld [vmem:[%s3733_s3 + $0x578] sm:$0xff] }
  0x6c   :  { %2190 = vmatprep.subr.mxu0 %v1082_v20  ;;  %2223 = vmatprep.subr.mxu1 %v1115_v22  ;;  %v1284_v15 = vcombine.high %v1276_v28, %v1276_v28  ;;  %v1283_v36 = vrot.slane %v1269_v31, %v2647_v44  ;;  %v449_v38 = vmul.f32 0.5, %v416_v32  ;;  %v478_v35 = vsub.f32 %v448_v33, %v463_v6 }
  0x6d   :  { %2191 = vmatpush3.msra.mxu0 %v1066_v26  ;;  %2224 = vmatpush3.msra.mxu1 %v1099_v27  ;;  %v909_v17 = vrot.slane %v3140_v9, %v2702_v62  ;;  %v91_v41 = vcombine.high %v3176_v45, %v3176_v45  ;;  %v98_v21 = vrot.slane %v3176_v45, %v2647_v44  ;;  %2458 = vrsqrt.f32 %v597_v56  ;;  %v1158_v26 = vld [vmem:[%s3733_s3 + $0x4e8] sm:$0xff]  ;;  %v1191_v27 = vld [vmem:[%s3733_s3 + $0x5f0] sm:$0xff] }
  0x6e   :  { %2192 = vmatprep.subr.mxu0 %v1081_v55  ;;  %2225 = vmatprep.subr.mxu1 %v1114_v14  ;;  %v1285_v47 = vcombine.high %v1283_v36, %v1283_v36  ;;  %v479_v49 = vsub.f32 %v449_v38, %v464_v23  ;;  %v493_v50 = vmax.f32 %v478_v35, 0.0  ;;  %v913_v59 = vrot.slane %v3140_v9, %v2705_v63  ;;  %v1142_v55 = vld [vmem:[%s3733_s3 + $0x468] sm:$0xff]  ;;  %v1175_v14 = vld [vmem:[%s3733_s3 + $0x570] sm:$0xff] }
  0x6f   :  { %2193 = vmatpush3.msra.mxu0 %v1065_v34  ;;  %1538 = vmatprep.mubr.f32.mxu0 %v1284_v15  ;;  %v105_v60 = vrot.slane %v91_v41, %v2647_v44  ;;  %v246_v1 = vmul.f32 %v3176_v45, %v3176_v45  ;;  %v106_v5 = vcombine.high %v98_v21, %v98_v21  ;;  %v207_v6 = vsel %vm122_vm0, %v98_v21, 0.0  ;;  %v1190_v38 = vld [vmem:[%s3733_s3 + $0x5e8] sm:$0xff]  ;;  %v1156_v21 = vld [vmem:[%s3733_s3 + $0x4d8] sm:$0xff] }
  0x70   :  { %2226 = vmatpush3.msra.mxu1 %v1098_v58  ;;  %1539 = vmatmul.mubr.f32.vlgmr.msra.gmra.mxu0 %v1276_v28  ;;  %v494_v29 = vmax.f32 %v479_v49, 0.0  ;;  %v598_v2 = vadd.f32 1e-05, %v493_v50  ;;  %v208_v10 = vrot.slane %v207_v6, 4  ;;  %v3242_v39 = vcombine.low %v901_v46, %v905_v48  ;;  %v1141_v48 = vld [vmem:[%s3733_s3 + $0x460] sm:$0xff]  ;;  %v1134_v63 = vld [vmem:[%s3733_s3 + $0x428] sm:$0xff] }
  0x71   :  { %2227 = vmatprep.subr.mxu1 %v1113_v42  ;;  %2232 = vmatprep.subr.mxu0 %v1160_v43  ;;  %v221_v13 = vsel %vm122_vm0, %v105_v60, 0.0  ;;  %v302_v16 = vcombine.high %v246_v1, %v246_v1  ;;  %v309_v18 = vrot.slane %v246_v1, %v2647_v44  ;;  %v214_v22 = vsel %vm122_vm0, %v106_v5, 0.0  ;;  %v1174_v42 = vld [vmem:[%s3733_s3 + $0x568] sm:$0xff]  ;;  %v1173_v5 = vld [vmem:[%s3733_s3 + $0x560] sm:$0xff] }
  0x72   :  { %2228 = vmatpush3.msra.mxu1 %v1097_v57  ;;  %1608 = vmatprep.mubr.f32.mxu1 %v1285_v47  ;;  %v599_v20 = vadd.f32 1e-05, %v494_v29  ;;  %2460 = vrsqrt.f32 %v598_v2  ;;  %v222_v23 = vrot.slane %v221_v13, 4  ;;  %v209_v28 = vadd.f32 %v208_v10, %v207_v6  ;;  %v1189_v57 = vld [vmem:[%s3733_s3 + $0x5e0] sm:$0xff]  ;;  %v1140_v2 = vld [vmem:[%s3733_s3 + $0x458] sm:$0xff]  ;;  %v1155_v10 = vld [vmem:[%s3733_s3 + $0x4d0] sm:$0xff] }
  0x73   :  { %2233 = vmatpush3.msra.mxu0 %v1144_v3  ;;  %1609 = vmatmul.mubr.f32.vlgmr.msra.gmra.mxu1 %v1283_v36  ;;  %v215_v31 = vrot.slane %v214_v22, 4  ;;  %v316_v32 = vrot.slane %v302_v16, %v2647_v44  ;;  %v317_v33 = vcombine.high %v309_v18, %v309_v18  ;;  %v417_v15 = vsel %vm122_vm0, %v309_v18, 0.0  ;;  %v1157_v36 = vld [vmem:[%s3733_s3 + $0x4e0] sm:$0xff] }
  0x74   :  { %2234 = vmatprep.subr.mxu0 %v1159_v7  ;;  %2267 = vmatprep.subr.mxu1 %v1192_v8  ;;  %2462 = vrsqrt.f32 %v599_v20  ;;  %v223_v34 = vadd.f32 %v222_v23, %v221_v13  ;;  %v210_v35 = vrot.slane %v209_v28, 2  ;;  %v418_v56 = vrot.slane %v417_v15, 4  ;;  %v1188_v13 = vld [vmem:[%s3733_s3 + $0x5d8] sm:$0xff]  ;;  %v1139_v20 = vld [vmem:[%s3733_s3 + $0x450] sm:$0xff] }
  0x75   :  { %2235 = vmatpush3.msra.mxu0 %v1143_v37  ;;  %2268 = vmatpush3.msra.mxu1 %v1176_v19  ;;  %v216_v58 = vadd.f32 %v215_v31, %v214_v22  ;;  %v424_v41 = vsel %vm122_vm0, %v317_v33, 0.0  ;;  %v431_v49 = vsel %vm122_vm0, %v316_v32, 0.0  ;;  %v677_v50 = vrot.slane %v3077_v30, %v2728_v12  ;;  %v1172_v22 = vld [vmem:[%s3733_s3 + $0x558] sm:$0xff]  ;;  %v1154_v31 = vld [vmem:[%s3733_s3 + $0x4c8] sm:$0xff]  ;;  %v1187_v32 = vld [vmem:[%s3733_s3 + $0x5d0] sm:$0xff] }
  0x76   :  { %v2457_v46 = vpop.eup %2456  ;;  %2236 = vmatprep.subr.mxu0 %v1158_v26  ;;  %2269 = vmatprep.subr.mxu1 %v1191_v27  ;;  %v224_v43 = vrot.slane %v223_v34, 2  ;;  %v425_v47 = vrot.slane %v424_v41, 4  ;;  %v211_v1 = vadd.f32 %v210_v35, %v209_v28  ;;  %v419_v29 = vadd.f32 %v418_v56, %v417_v15 }
  0x77   :  { %2237 = vmatpush3.msra.mxu0 %v1142_v55  ;;  %2270 = vmatpush3.msra.mxu1 %v1175_v14  ;;  %v3270_v60 = vmul.f32 %v2457_v46, %v657_v53  ;;  %v217_v3 = vrot.slane %v216_v58, 2  ;;  %v432_v8 = vrot.slane %v431_v49, 4  ;;  %v681_v53 = vrot.slane %v3077_v30, %v2860_v51  ;;  %v1153_v46 = vld [vmem:[%s3733_s3 + $0x4c0] sm:$0xff] }
  0x78   :  { %2238 = vmatprep.subr.mxu0 %v1157_v36  ;;  %2271 = vmatprep.subr.mxu1 %v1190_v38  ;;  %v225_v6 = vadd.f32 %v224_v43, %v223_v34  ;;  %v426_v7 = vadd.f32 %v425_v47, %v424_v41  ;;  %v212_v18 = vrot.slane %v211_v1, 1  ;;  %v420_v19 = vrot.slane %v419_v29, 2  ;;  %v1138_v36 = vld [vmem:[%s3733_s3 + $0x448] sm:$0xff]  ;;  %v1171_v38 = vld [vmem:[%s3733_s3 + $0x550] sm:$0xff] }
  0x79   :  { %2239 = vmatpush3.msra.mxu0 %v1141_v48  ;;  %2272 = vmatpush3.msra.mxu1 %v1174_v42  ;;  %v747_v16 = vrot.slane %v3270_v60, %v2673_v52  ;;  %v218_v37 = vadd.f32 %v217_v3, %v216_v58  ;;  %v433_v27 = vadd.f32 %v432_v8, %v431_v49  ;;  %v1186_v48 = vld [vmem:[%s3733_s3 + $0x5c8] sm:$0xff] }
  0x7a   :  { %2240 = vmatprep.subr.mxu0 %v1156_v21  ;;  %2273 = vmatprep.subr.mxu1 %v1189_v57  ;;  %v226_v23 = vrot.slane %v225_v6, 1  ;;  %v427_v26 = vrot.slane %v426_v7, 2  ;;  %v917_v28 = vrot.slane %v3140_v9, %v2708_v0  ;;  %v213_v33 = vadd.f32 %v212_v18, %v211_v1  ;;  %v2459_v15 = vpop.eup %2458  ;;  %v1137_v21 = vld [vmem:[%s3733_s3 + $0x440] sm:$0xff]  ;;  %v1170_v57 = vld [vmem:[%s3733_s3 + $0x548] sm:$0xff] }
  0x7b   :  { %2241 = vmatpush3.msra.mxu0 %v1140_v2  ;;  %2274 = vmatpush3.msra.mxu1 %v1173_v5  ;;  %v219_v55 = vrot.slane %v218_v37, 1  ;;  %v421_v14 = vadd.f32 %v420_v19, %v419_v29  ;;  %v921_v34 = vrot.slane %v3140_v9, %v2728_v12  ;;  %v434_v56 = vrot.slane %v433_v27, 2  ;;  %v1152_v2 = vld [vmem:[%s3733_s3 + $0x4b8] sm:$0xff]  ;;  %v1185_v5 = vld [vmem:[%s3733_s3 + $0x5c0] sm:$0xff] }
  0x7c   :  { %2242 = vmatprep.subr.mxu0 %v1155_v10  ;;  %2275 = vmatprep.subr.mxu1 %v1188_v13  ;;  %v227_v35 = vadd.f32 %v226_v23, %v225_v6  ;;  %v428_v58 = vadd.f32 %v427_v26, %v426_v7  ;;  %v925_v41 = vrot.slane %v3140_v9, %v2860_v51  ;;  %v3321_v47 = vmul.f32 0.5, %v213_v33  ;;  %v1136_v13 = vld [vmem:[%s3733_s3 + $0x438] sm:$0xff]  ;;  %v1169_v18 = vld [vmem:[%s3733_s3 + $0x540] sm:$0xff]  ;;  %v1151_v26 = vld [vmem:[%s3733_s3 + $0x4b0] sm:$0xff] }
  0x7d   :  { %2243 = vmatpush3.msra.mxu0 %v1139_v20  ;;  %2276 = vmatpush3.msra.mxu1 %v1172_v22  ;;  %v706_v42 = vmul.f32 %v2459_v15, %v661_v4  ;;  %v220_v43 = vadd.f32 %v219_v55, %v218_v37  ;;  %v422_v49 = vrot.slane %v421_v14, 1  ;;  %v435_v29 = vadd.f32 %v434_v56, %v433_v27  ;;  %v1150_v55 = vld [vmem:[%s3733_s3 + $0x4a8] sm:$0xff]  ;;  %v1148_v9 = vld [vmem:[%s3733_s3 + $0x498] sm:$0xff]  ;;  %v1219_v51 = vld [vmem:[%s3733_s3 + $0x6d0] sm:$0xff] }
  0x7e   :  { %2244 = vmatprep.subr.mxu0 %v1154_v31  ;;  %2277 = vmatprep.subr.mxu1 %v1187_v32  ;;  %v3329_v1 = vmul.f32 0.5, %v227_v35  ;;  %v429_v3 = vrot.slane %v428_v58, 1  ;;  %v3331_v61 = vcombine.low %v917_v28, %v921_v34  ;;  %v465_v10 = vmul.f32 %v3321_v47, %v3321_v47  ;;  %v1135_v28 = vld [vmem:[%s3733_s3 + $0x430] sm:$0xff]  ;;  %v1168_v31 = vld [vmem:[%s3733_s3 + $0x538] sm:$0xff] }
  0x7f   :  { %v2461_v4 = vpop.eup %2460  ;;  %2245 = vmatpush3.msra.mxu0 %v1138_v36  ;;  %2278 = vmatpush3.msra.mxu1 %v1171_v38  ;;  %v751_v6 = vrot.slane %v706_v42, %v2673_v52  ;;  %v3340_v7 = vmul.f32 0.5, %v220_v43  ;;  %v423_v8 = vadd.f32 %v422_v49, %v421_v14  ;;  %v3359_v19 = vcombine.low %v909_v17, %v913_v59  ;;  %v1183_v14 = vld [vmem:[%s3733_s3 + $0x5b0] sm:$0xff]  ;;  %v1133_v42 = vld [vmem:[%s3733_s3 + $0x420] sm:$0xff]  ;;  %v1166_v43 = vld [vmem:[%s3733_s3 + $0x528] sm:$0xff] }
  0x80   :  { %2246 = vmatprep.subr.mxu0 %v1153_v46  ;;  %2279 = vmatprep.subr.mxu1 %v1186_v48  ;;  %v707_v37 = vmul.f32 %v2461_v4, %v665_v25  ;;  %v430_v20 = vadd.f32 %v429_v3, %v428_v58  ;;  %v436_v22 = vrot.slane %v435_v29, 1  ;;  %v1184_v25 = vld [vmem:[%s3733_s3 + $0x5b8] sm:$0xff]  ;;  %v467_v59 = vmul.f32 %v3329_v1, %v3329_v1 }
  0x81   :  { %v2463_v23 = vpop.eup %2462  ;;  %2247 = vmatpush3.msra.mxu0 %v1137_v21  ;;  %2280 = vmatpush3.msra.mxu1 %v1170_v57  ;;  %v3370_v27 = vcombine.low %v747_v16, %v751_v6  ;;  %v450_v62 = vmul.f32 0.5, %v423_v8  ;;  %v466_v17 = vmul.f32 %v3340_v7, %v3340_v7  ;;  %v563_v34 = vcombine.low %v3149_v24, %v3167_v40  ;;  %v1149_v24 = vld [vmem:[%s3733_s3 + $0x4a0] sm:$0xff]  ;;  %v1182_v40 = vld [vmem:[%s3733_s3 + $0x5a8] sm:$0xff]  ;;  %v1132_v4 = vld [vmem:[%s3733_s3 + $0x418] sm:$0xff] }
  0x82   :  { %2248 = vmatprep.subr.mxu0 %v1152_v2  ;;  %2281 = vmatprep.subr.mxu1 %v1185_v5  ;;  %v708_v60 = vmul.f32 %v2463_v23, %v669_v54  ;;  %v755_v16 = vrot.slane %v707_v37, %v2673_v52  ;;  %v437_v32 = vadd.f32 %v436_v22, %v435_v29  ;;  %v451_v33 = vmul.f32 0.5, %v430_v20  ;;  %v1167_v54 = vld [vmem:[%s3733_s3 + $0x530] sm:$0xff]  ;;  %v1165_v2 = vld [vmem:[%s3733_s3 + $0x520] sm:$0xff]  ;;  %v1164_v37 = vld [vmem:[%s3733_s3 + $0x518] sm:$0xff] }
  0x83   :  { %2249 = vmatpush3.msra.mxu0 %v1136_v13  ;;  %2282 = vmatpush3.msra.mxu1 %v1169_v18  ;;  %v480_v15 = vsub.f32 %v450_v62, %v465_v10  ;;  %v968_v38 = vrot.slane %v3242_v39, %v2647_v44  ;;  %v975_v56 = vrot.slane %v3359_v19, %v2647_v44  ;;  %v1147_v13 = vld [vmem:[%s3733_s3 + $0x490] sm:$0xff]  ;;  %v1180_v18 = vld [vmem:[%s3733_s3 + $0x598] sm:$0xff]  ;;  %v1146_v23 = vld [vmem:[%s3733_s3 + $0x488] sm:$0xff] }
  0x84   :  { %2250 = vmatprep.subr.mxu0 %v1151_v26  ;;  %2283 = vmatprep.subr.mxu1 %v1184_v25  ;;  %v759_v36 = vrot.slane %v708_v60, %v2673_v52  ;;  %v452_v35 = vmul.f32 0.5, %v437_v32  ;;  %v481_v58 = vsub.f32 %v451_v33, %v466_v17  ;;  %v984_v48 = vrot.slane %v3331_v61, %v2647_v44  ;;  %v1179_v26 = vld [vmem:[%s3733_s3 + $0x590] sm:$0xff]  ;;  %v1130_v25 = vld [vmem:[%s3733_s3 + $0x408] sm:$0xff]  ;;  %v1145_v17 = vld [vmem:[%s3733_s3 + $0x480] sm:$0xff] }
  0x85   :  { %2251 = vmatpush3.msra.mxu0 %v1135_v28  ;;  %2284 = vmatpush3.msra.mxu1 %v1168_v31  ;;  %v495_v46 = vmax.f32 %v480_v15, 0.0  ;;  %v991_v39 = vrot.slane %v925_v41, %v2647_v44  ;;  %v829_v21 = vrot.slane %v3370_v27, %v2647_v44  ;;  %v1181_v41 = vld [vmem:[%s3733_s3 + $0x5a0] sm:$0xff]  ;;  %v586_v5 = vsub.f32 %v2874_v11, %v563_v34  ;;  %v1131_v11 = vld [vmem:[%s3733_s3 + $0x410] sm:$0xff]  ;;  %v1162_v60 = vld [vmem:[%s3733_s3 + $0x508] sm:$0xff] }
  0x86   :  { %2252 = vmatprep.subr.mxu0 %v1150_v55  ;;  %2285 = vmatprep.subr.mxu1 %v1183_v14  ;;  %v822_v49 = vcombine.low %v755_v16, %v759_v36  ;;  %v482_v57 = vsub.f32 %v452_v35, %v467_v59  ;;  %v496_v3 = vmax.f32 %v481_v58, 0.0  ;;  %v976_v20 = vcombine.low %v968_v38, %v975_v56  ;;  %v1163_v27 = vld [vmem:[%s3733_s3 + $0x510] sm:$0xff]  ;;  %v1178_v59 = vld [vmem:[%s3733_s3 + $0x588] sm:$0xff]  ;;  %v1129_v28 = vld [vmem:[%s3733_s3 + $0x400] sm:$0xff] }
  0x87   :  { %2253 = vmatpush3.msra.mxu0 %v1134_v63  ;;  %2286 = vmatpush3.msra.mxu1 %v1167_v54  ;;  %v600_v29 = vadd.f32 1e-05, %v495_v46  ;;  %v3431_v61 = vcombine.low %v984_v48, %v991_v39  ;;  %v1177_v16 = vld [vmem:[%s3733_s3 + $0x580] sm:$0xff]  ;;  %v1224_v32 = vld [vmem:[%s3733_s3 + $0x6f8] sm:$0xff]  ;;  %v564_v63 = vcombine.low %v3321_v47, %v3340_v7  ;;  %v673_v36 = vrot.slane %v3077_v30, %v2708_v0  ;;  %v1223_v35 = vld [vmem:[%s3733_s3 + $0x6f0] sm:$0xff] }
  0x88   :  { %2254 = vmatprep.subr.mxu0 %v1149_v24  ;;  %2287 = vmatprep.subr.mxu1 %v1182_v40  ;;  %v836_v6 = vrot.slane %v822_v49, %v2647_v44  ;;  %v497_v8 = vmax.f32 %v482_v57, 0.0  ;;  %v601_v10 = vadd.f32 1e-05, %v496_v3  ;;  %v1161_v55 = vld [vmem:[%s3733_s3 + $0x500] sm:$0xff]  ;;  %v1208_v54 = vld [vmem:[%s3733_s3 + $0x678] sm:$0xff]  ;;  %v2475_v58 = vmov 0.0  }
  0x89   :  { %2255 = vmatpush3.msra.mxu0 %v1133_v42  ;;  %2288 = vmatpush3.msra.mxu1 %v1166_v43  ;;  %2464 = vrsqrt.f32 %v600_v29  ;;  %v1207_v47 = vld [vmem:[%s3733_s3 + $0x670] sm:$0xff]  ;;  %v1240_v7 = vld [vmem:[%s3733_s3 + $0x778] sm:$0xff]  ;;  %v1222_v0 = vld [vmem:[%s3733_s3 + $0x6e8] sm:$0xff]  ;;  %v571_v40 = vrot.slane %v564_v63, %v2647_v44  ;;  %v578_v56 = vrot.slane %v3329_v1, %v2647_v44 }
  0x8a   :  { %2256 = vmatprep.subr.mxu0 %v1148_v9  ;;  %2289 = vmatprep.subr.mxu1 %v1181_v41  ;;  %v837_v19 = vcombine.low %v829_v21, %v836_v6  ;;  %v602_v22 = vadd.f32 1e-05, %v497_v8  ;;  %2466 = vrsqrt.f32 %v601_v10  ;;  %v1206_v48 = vld [vmem:[%s3733_s3 + $0x668] sm:$0xff]  ;;  %v1239_v39 = vld [vmem:[%s3733_s3 + $0x770] sm:$0xff]  ;;  %v1221_v43 = vld [vmem:[%s3733_s3 + $0x6e0] sm:$0xff] }
  0x8b   :  { %2257 = vmatpush3.msra.mxu0 %v1132_v4  ;;  %2290 = vmatpush3.msra.mxu1 %v1165_v2  ;;  %v1205_v21 = vld [vmem:[%s3733_s3 + $0x660] sm:$0xff]  ;;  %v1238_v57 = vld [vmem:[%s3733_s3 + $0x768] sm:$0xff]  ;;  %v1220_v12 = vld [vmem:[%s3733_s3 + $0x6d8] sm:$0xff] }
  0x8c   :  { %2258 = vmatprep.subr.mxu0 %v1147_v13  ;;  %2291 = vmatprep.subr.mxu1 %v1180_v18  ;;  %v860_v62 = vmul.f32 %v837_v19, %v586_v5  ;;  %2468 = vrsqrt.f32 %v602_v22  ;;  %v1204_v29 = vld [vmem:[%s3733_s3 + $0x658] sm:$0xff]  ;;  %v1237_v4 = vld [vmem:[%s3733_s3 + $0x760] sm:$0xff]  ;;  %v1203_v2 = vld [vmem:[%s3733_s3 + $0x650] sm:$0xff] }
  0x8d   :  { %2259 = vmatpush3.msra.mxu0 %v1131_v11  ;;  %2292 = vmatpush3.msra.mxu1 %v1164_v37  ;;  %v1236_v5 = vld [vmem:[%s3733_s3 + $0x758] sm:$0xff]  ;;  %v1218_v6 = vld [vmem:[%s3733_s3 + $0x6c8] sm:$0xff]  ;;  %v1235_v18 = vld [vmem:[%s3733_s3 + $0x750] sm:$0xff] }
  0x8e   :  { %2260 = vmatprep.subr.mxu0 %v1146_v23  ;;  %2293 = vmatprep.subr.mxu1 %v1179_v26  ;;  %v999_v31 = vadd.f32 %v976_v20, %v860_v62  ;;  %v1202_v13 = vld [vmem:[%s3733_s3 + $0x648] sm:$0xff]  ;;  %v1201_v37 = vld [vmem:[%s3733_s3 + $0x640] sm:$0xff]  ;;  %v1216_v20 = vld [vmem:[%s3733_s3 + $0x6b8] sm:$0xff] }
  0x8f   :  { %2261 = vmatpush3.msra.mxu0 %v1130_v25  ;;  %2294 = vmatpush3.msra.mxu1 %v1163_v27  ;;  %v1234_v19 = vld [vmem:[%s3733_s3 + $0x748] sm:$0xff]  ;;  %v1200_v23 = vld [vmem:[%s3733_s3 + $0x638] sm:$0xff]  ;;  %v1233_v26 = vld [vmem:[%s3733_s3 + $0x740] sm:$0xff] }
  0x90   :  { %2262 = vmatprep.subr.mxu0 %v1145_v17  ;;  %2295 = vmatprep.subr.mxu1 %v1178_v59  ;;  %v1293_v33 = vrot.slane %v999_v31, %v2647_v44  ;;  %v1286_v14 = vcombine.high %v999_v31, %v999_v31  ;;  %v1215_v25 = vld [vmem:[%s3733_s3 + $0x6b0] sm:$0xff]  ;;  %v1232_v17 = vld [vmem:[%s3733_s3 + $0x738] sm:$0xff]  ;;  %v1214_v59 = vld [vmem:[%s3733_s3 + $0x6a8] sm:$0xff] }
  0x91   :  { %2263 = vmatpush3.msra.mxu0 %v1129_v28  ;;  %2296 = vmatpush3.msra.mxu1 %v1162_v60  ;;  %v1199_v62 = vld [vmem:[%s3733_s3 + $0x630] sm:$0xff]  ;;  %v1213_v31 = vld [vmem:[%s3733_s3 + $0x6a0] sm:$0xff]  ;;  %v1228_v63 = vld [vmem:[%s3733_s3 + $0x718] sm:$0xff] }
  0x92   :  { %v1301_v34 = vcombine.high %v1293_v33, %v1293_v33  ;;  %2297 = vmatprep.subr.mxu1 %v1177_v16  ;;  %2302 = vmatprep.subr.mxu0 %v1224_v32  ;;  %v1300_v15 = vrot.slane %v1286_v14, %v2647_v44  ;;  %v1231_v28 = vld [vmem:[%s3733_s3 + $0x730] sm:$0xff]  ;;  %v1197_v60 = vld [vmem:[%s3733_s3 + $0x620] sm:$0xff]  ;;  %v1230_v16 = vld [vmem:[%s3733_s3 + $0x728] sm:$0xff] }
  0x93   :  { %2298 = vmatpush3.msra.mxu1 %v1161_v55  ;;  %v1212_v32 = vld [vmem:[%s3733_s3 + $0x698] sm:$0xff]  ;;  %v1229_v14 = vld [vmem:[%s3733_s3 + $0x720] sm:$0xff] }
  0x94   :  { %1678 = vmatprep.mubr.f32.mxu0 %v1301_v34  ;;  %v1302_v38 = vcombine.high %v1300_v15, %v1300_v15  ;;  %2368 = vmatprep.subr.mxu1 %v2475_v58  ;;  %v1196_v55 = vld [vmem:[%s3733_s3 + $0x618] sm:$0xff]  ;;  %v1211_v34 = vld [vmem:[%s3733_s3 + $0x690] sm:$0xff] }
  0x95   :  { %1679 = vmatmul.mubr.f32.vlgmr.msra.gmra.mxu0 %v1293_v33 }
  0x96   :  { %v2465_v24 = vpop.eup %2464  ;;  %1748 = vmatprep.mubr.f32.mxu1 %v1302_v38  ;;  %2303 = vmatpush3.msra.mxu0 %v1208_v54  ;;  %v1210_v54 = vld [vmem:[%s3733_s3 + $0x688] sm:$0xff] }
  0x97   :  { %v2467_v46 = vpop.eup %2466  ;;  %1749 = vmatmul.mubr.f32.vlgmr.msra.gmra.mxu1 %v1300_v15  ;;  %2304 = vmatprep.subr.mxu0 %v1223_v35  ;;  %v709_v42 = vmul.f32 %v2465_v24, %v673_v36  ;;  %v1195_v15 = vld [vmem:[%s3733_s3 + $0x610] sm:$0xff]  ;;  %v1194_v38 = vld [vmem:[%s3733_s3 + $0x608] sm:$0xff]  ;;  %v1209_v35 = vld [vmem:[%s3733_s3 + $0x680] sm:$0xff] }
  0x98   :  { %2305 = vmatpush3.msra.mxu0 %v1207_v47  ;;  %2369 = vmatpush3.msra.mxu1 %v1240_v7  ;;  %v710_v1 = vmul.f32 %v2467_v46, %v677_v50  ;;  %v579_v50 = vcombine.low %v571_v40, %v578_v56  ;;  %v1227_v47 = vld [vmem:[%s3733_s3 + $0x710] sm:$0xff]  ;;  %v1193_v24 = vld [vmem:[%s3733_s3 + $0x600] sm:$0xff] }
  0x99   :  { %v2469_v49 = vpop.eup %2468  ;;  %2306 = vmatprep.subr.mxu0 %v1222_v0  ;;  %2370 = vmatprep.subr.mxu1 %v2475_v58  ;;  %v763_v3 = vrot.slane %v709_v42, %v2673_v52  ;;  %v1226_v0 = vld [vmem:[%s3733_s3 + $0x708] sm:$0xff]  ;;  %v1225_v40 = vld [vmem:[%s3733_s3 + $0x700] sm:$0xff]  ;;  %v1901_v46 = vld [vmem:[%s3737_s5 + $0x30] sm:$0xff] }
  0x9a   :  { %2307 = vmatpush3.msra.mxu0 %v1206_v48  ;;  %2371 = vmatpush3.msra.mxu1 %v1239_v39  ;;  %v711_v9 = vmul.f32 %v2469_v49, %v681_v53  ;;  %v767_v41 = vrot.slane %v710_v1, %v2673_v52  ;;  %v1900_v48 = vld [vmem:[%s3737_s5 + $0x28] sm:$0xff]  ;;  %v1899_v39 = vld [vmem:[%s3737_s5 + $0x20] sm:$0xff]  ;;  %v1898_v42 = vld [vmem:[%s3737_s5 + $0x18] sm:$0xff] }
  0x9b   :  { %2308 = vmatprep.subr.mxu0 %v1221_v43  ;;  %2372 = vmatprep.subr.mxu1 %v2475_v58  ;;  %v1897_v43 = vld [vmem:[%s3737_s5 + $0x10] sm:$0xff]  ;;  %v1896_v1 = vld [vmem:[%s3737_s5 + $0x8] sm:$0xff]  ;;  %v1895_v49 = vld [vmem:[%s3737_s5] sm:$0xff] }
  0x9c   :  { %2309 = vmatpush3.msra.mxu0 %v1205_v21  ;;  %2373 = vmatpush3.msra.mxu1 %v1238_v57  ;;  %v771_v30 = vrot.slane %v711_v9, %v2673_v52  ;;  %v838_v53 = vcombine.low %v763_v3, %v767_v41  ;;  %v587_v52 = vsub.f32 %v3176_v45, %v579_v50  ;;  %v1217_v45 = vld [vmem:[%s3733_s3 + $0x6c0] sm:$0xff]  ;;  %v1988_v21 = vld [vmem:[%s3738_s7 + $0x18] sm:$0xff] }
  0x9d   :  { %2310 = vmatprep.subr.mxu0 %v1220_v12  ;;  %2374 = vmatprep.subr.mxu1 %v2475_v58  ;;  %v2087_v41 = vld [vmem:[%s3739_s4] ss:$0 sm:$0xff] }
  0x9e   :  { %2311 = vmatpush3.msra.mxu0 %v1204_v29  ;;  %2375 = vmatpush3.msra.mxu1 %v1237_v4  ;;  %v845_v8 = vrot.slane %v838_v53, %v2647_v44  ;;  %v852_v10 = vrot.slane %v771_v30, %v2647_v44 }
  0x9f   :  { %2312 = vmatprep.subr.mxu0 %v1219_v51  ;;  %2376 = vmatprep.subr.mxu1 %v2475_v58 }
  0xa0   :  { %2313 = vmatpush3.msra.mxu0 %v1203_v2  ;;  %2377 = vmatpush3.msra.mxu1 %v1236_v5  ;;  %v853_v11 = vcombine.low %v845_v8, %v852_v10 }
  0xa1   :  { %2314 = vmatprep.subr.mxu0 %v1218_v6  ;;  %2378 = vmatprep.subr.mxu1 %v2475_v58 }
  0xa2   :  { %2315 = vmatpush3.msra.mxu0 %v1202_v13  ;;  %2379 = vmatpush3.msra.mxu1 %v1235_v18  ;;  %v861_v22 = vmul.f32 %v853_v11, %v587_v52 }
  0xa3   :  { %2316 = vmatprep.subr.mxu0 %v1217_v45  ;;  %2380 = vmatprep.subr.mxu1 %v2475_v58 }
  0xa4   :  { %2317 = vmatpush3.msra.mxu0 %v1201_v37  ;;  %2381 = vmatpush3.msra.mxu1 %v1234_v19  ;;  %v1000_v27 = vadd.f32 %v3431_v61, %v861_v22  ;;  %v1198_v61 = vld [vmem:[%s3733_s3 + $0x628] sm:$0xff] }
  0xa5   :  { %2318 = vmatprep.subr.mxu0 %v1216_v20  ;;  %2382 = vmatprep.subr.mxu1 %v2475_v58 }
  0xa6   :  { %2319 = vmatpush3.msra.mxu0 %v1200_v23  ;;  %2383 = vmatpush3.msra.mxu1 %v1233_v26  ;;  %v1310_v33 = vrot.slane %v1000_v27, %v2647_v44  ;;  %v1303_v7 = vcombine.high %v1000_v27, %v1000_v27 }
  0xa7   :  { %2320 = vmatprep.subr.mxu0 %v1215_v25  ;;  %2384 = vmatprep.subr.mxu1 %v2475_v58 }
  0xa8   :  { %2321 = vmatpush3.msra.mxu0 %v1199_v62  ;;  %2385 = vmatpush3.msra.mxu1 %v1232_v17  ;;  %v1318_v36 = vcombine.high %v1310_v33, %v1310_v33  ;;  %v1317_v56 = vrot.slane %v1303_v7, %v2647_v44  ;;  %v1902_v44 = vld [vmem:[%s3737_s5 + $0x38] sm:$0xff] }
  0xa9   :  { %2322 = vmatprep.subr.mxu0 %v1214_v59  ;;  %2386 = vmatprep.subr.mxu1 %v2475_v58 }
  0xaa   :  { %2323 = vmatpush3.msra.mxu0 %v1198_v61  ;;  %2387 = vmatpush3.msra.mxu1 %v1231_v28  ;;  %v1987_v28 = vld [vmem:[%s3738_s7 + $0x10] sm:$0xff] }
  0xab   :  { %2324 = vmatprep.subr.mxu0 %v1213_v31  ;;  %2388 = vmatprep.subr.mxu1 %v2475_v58  ;;  %v1986_v31 = vld [vmem:[%s3738_s7 + $0x8] sm:$0xff] }
  0xac   :  { %2325 = vmatpush3.msra.mxu0 %v1197_v60  ;;  %2389 = vmatpush3.msra.mxu1 %v1230_v16  ;;  %v1985_v60 = vld [vmem:[%s3738_s7] sm:$0xff] }
  0xad   :  { %2326 = vmatprep.subr.mxu0 %v1212_v32  ;;  %2390 = vmatprep.subr.mxu1 %v2475_v58  ;;  %v2088_v16 = vld [vmem:[%s3740_s6] ss:$0 sm:$0xff] }
  0xae   :  { %2327 = vmatpush3.msra.mxu0 %v1196_v55  ;;  %2391 = vmatpush3.msra.mxu1 %v1229_v14 }
  0xaf   :  { %2328 = vmatprep.subr.mxu0 %v1211_v34  ;;  %2392 = vmatprep.subr.mxu1 %v2475_v58  ;;  %v2090_v34 = vld [vmem:[%s3741_s8] ss:$0 sm:$0xff] }
  0xb0   :  { %2329 = vmatpush3.msra.mxu0 %v1195_v15  ;;  %2393 = vmatpush3.msra.mxu1 %v1228_v63 }
  0xb1   :  { %2330 = vmatprep.subr.mxu0 %v1210_v54  ;;  %2394 = vmatprep.subr.mxu1 %v2475_v58 }
  0xb2   :  { %2331 = vmatpush3.msra.mxu0 %v1194_v38  ;;  %1818 = vmatprep.mubr.f32.mxu0 %v1318_v36 }
  0xb3   :  { %2332 = vmatprep.subr.mxu0 %v1209_v35  ;;  %2395 = vmatpush3.msra.mxu1 %v1227_v47 }
  0xb4   :  { %2333 = vmatpush3.msra.mxu0 %v1193_v24  ;;  %2396 = vmatprep.subr.mxu1 %v2475_v58 }
  0xb5   :  { %1819 = vmatmul.mubr.f32.vlgmr.msra.gmra.mxu0 %v1310_v33  ;;  %2397 = vmatpush3.msra.mxu1 %v1226_v0 }
  0xb6   :  { %2398 = vmatprep.subr.mxu1 %v2475_v58  ;;  %2400 = vmatprep.mubr.msk.f32.mxu1 %vm2476_vm1, %v2475_v58 }
  0xb7   :  { %2399 = vmatpush3.msra.mxu1 %v1225_v40  ;;  %2403 = vmatprep.subr.mxu0 %v2475_v58 }
  0xb8   :  { %2401 = vmatmul.mubr.f32.vlgmr.msra.gmra.mxu1 %v1317_v56  ;;  %2419 = vmatprep.mubr.msk.f32.mxu0 %vm2476_vm1, %v2475_v58 }
  0xb9   :  { %2422 = vmatprep.subr.mxu1 %v2475_v58  ;;  %2430 = vmatprep.mubr.msk.f32.mxu1 %vm2476_vm1, %v2475_v58 }
  0xba   :  { %2404 = vmatpush3.msra.mxu0 %v1902_v44  ;;  %2423 = vmatpush3.msra.mxu1 %v1988_v21 }
  0xbb   :  { %2405 = vmatprep.subr.mxu0 %v2475_v58  ;;  %2424 = vmatprep.subr.mxu1 %v2475_v58 }
  0xbc   :  { %2406 = vmatpush3.msra.mxu0 %v1901_v46  ;;  %2425 = vmatpush3.msra.mxu1 %v1987_v28 }
  0xbd   :  { %2407 = vmatprep.subr.mxu0 %v2475_v58  ;;  %2426 = vmatprep.subr.mxu1 %v2475_v58 }
  0xbe   :  { %2408 = vmatpush3.msra.mxu0 %v1900_v48  ;;  %2427 = vmatpush3.msra.mxu1 %v1986_v31 }
  0xbf   :  { %2409 = vmatprep.subr.mxu0 %v2475_v58  ;;  %2428 = vmatprep.subr.mxu1 %v2475_v58 }
  0xc0   :  { %2410 = vmatpush3.msra.mxu0 %v1899_v39  ;;  %2429 = vmatpush3.msra.mxu1 %v1985_v60 }
  0xc1   :  { %2411 = vmatprep.subr.mxu0 %v2475_v58 }
  0xc2   :  { %2412 = vmatpush3.msra.mxu0 %v1898_v42 }
  0xc3   :  { %2413 = vmatprep.subr.mxu0 %v2475_v58 }
  0xc4   :  { %2414 = vmatpush3.msra.mxu0 %v1897_v43 }
  0xc5   :  { %2415 = vmatprep.subr.mxu0 %v2475_v58 }
  0xc6   :  { %2416 = vmatpush3.msra.mxu0 %v1896_v1 }
  0xc7   :  { %2417 = vmatprep.subr.mxu0 %v2475_v58 }
  0xc8   :  { %2418 = vmatpush3.msra.mxu0 %v1895_v49 }
 0x110   :  { %v2124_v57 = vpop.f32.mrf.mxu0 }
 0x112   :  { %v2125_v3 = vpop.f32.mrf.mxu0  ;;  %v2159_v12 = vpop.f32.mrf.mxu1 }
 0x113   :  { %v2126_v9 = vadd.f32 %v2125_v3, %v2124_v57 }
 0x114   :  { %v2160_v29 = vpop.f32.mrf.mxu1 }
 0x115   :  { %v1401_v30 = vadd.f32 %v2126_v9, %v2087_v41  ;;  %v2161_v53 = vadd.f32 %v2160_v29, %v2159_v12 }
 0x117   :  { %v1471_v52 = vadd.f32 %v2161_v53, %v1401_v30 }
 0x130   :  { %v2194_v50 = vpop.f32.mrf.mxu0 }
 0x132   :  { %v2195_v4 = vpop.f32.mrf.mxu0 }
 0x133   :  { %v2229_v51 = vpop.f32.mrf.mxu1  ;;  %v2196_v5 = vadd.f32 %v2195_v4, %v2194_v50 }
 0x135   :  { %v2230_v6 = vpop.f32.mrf.mxu1  ;;  %v1541_v13 = vadd.f32 %v2196_v5, %v1471_v52 }
 0x136   :  { %v2231_v18 = vadd.f32 %v2230_v6, %v2229_v51 }
 0x138   :  { %v1611_v37 = vadd.f32 %v2231_v18, %v1541_v13 }
 0x155   :  { %v2264_v2 = vpop.f32.mrf.mxu0 }
 0x157   :  { %v2265_v8 = vpop.f32.mrf.mxu0  ;;  %v2299_v10 = vpop.f32.mrf.mxu1 }
 0x158   :  { %v2266_v45 = vadd.f32 %v2265_v8, %v2264_v2 }
 0x159   :  { %v2300_v11 = vpop.f32.mrf.mxu1 }
 0x15a   :  { %v1681_v19 = vadd.f32 %v2266_v45, %v1611_v37  ;;  %v2301_v20 = vadd.f32 %v2300_v11, %v2299_v10 }
 0x15c   :  { %v1751_v26 = vadd.f32 %v2301_v20, %v1681_v19 }
 0x175   :  { %v2334_v22 = vpop.f32.mrf.mxu0 }
 0x177   :  { %v2335_v23 = vpop.f32.mrf.mxu0 }
 0x178   :  { %v2336_v25 = vadd.f32 %v2335_v23, %v2334_v22  ;;  %v1890_v27 = vpop.f32.mrf.mxu1 }
 0x17a   :  { %v1821_v62 = vadd.f32 %v2336_v25, %v1751_v26  ;;  %v2402_v17 = vpop.f32.mrf.mxu1 }
 0x17c   :  { %v1891_v59 = vadd.f32 %v1890_v27, %v1821_v62 }
 0x17e   :  { %v1894_v61 = vmax.f32 %v1891_v59, 0.0 }
 0x180   :  { %2420 = vmatmul.mubr.msk.f32.vlgmr.msra.gmra.mxu0 %vm1910_vm2, %v1894_v61 }
 0x240   :  { %v1980_v32 = vpop.f32.mrf.mxu0 }
 0x241   :  { %v1981_v33 = vadd.f32 %v2088_v16, %v1980_v32 }
 0x242   :  { %v2421_v55 = vpop.f32.mrf.mxu0 }
 0x243   :  { %v1984_v14 = vmax.f32 %v1981_v33, 0.0 }
 0x245   :  { %2431 = vmatmul.mubr.msk.f32.vlgmr.msra.gmra.mxu1 %vm1996_vm3, %v1984_v14 }
 0x305   :  { %v2066_v58 = vpop.f32.mrf.mxu1 }
 0x306   :  { %v2067_v15 = vadd.f32 %v2090_v34, %v2066_v58 }
 0x307   :  { %v2432_v63 = vpop.f32.mrf.mxu1 }
 0x308   :  { %v2071_v54 = vsel %vm2070_vm4, %v2067_v15, -inf }
 0x309   :  { %2072 = vmax.xlane.f32.xlu0 %v2071_v54 }
 0x392   :  { %v2073_v36 = vpop.xlane.xlu0 %2072 }
 0x393   :  { %v2074_v38 = vsub.f32 %v2067_v15, %v2073_v36 }
 0x395   :  { %v2075_v35 = vmul.f32 1.442695, %v2074_v38 }
 0x397   :  { %2470 = vpow2.f32 %v2075_v35 }
 0x3a4   :  { %v2471_v47 = vpop.eup %2470 }
 0x3a5   :  { %v2077_v7 = vsel %vm2070_vm4, %v2471_v47, 0.0 }
 0x3a6   :  { %2078 = vadd.xlane.f32.xlu0 %v2077_v7 }
 0x42f   :  { %v2079_v24 = vpop.xlane.xlu0 %2078 }
 0x430   :  { %2472 = vrcp.f32 %v2079_v24 }
 0x43d   :  { %v2473_v0 = vpop.eup %2472 }
 0x43e   :  { %v2081_v40 = vmul.f32 %v2473_v0, %v2471_v47 }
 0x440   :  { %2082 = vst.msk [vmem:[%s3742_s9] sm:$0x3] %vm2070_vm4, %v2081_v40 }

// kernel: asynch_forward.2
= control target key start
LH: loop header
LB: loop body
LE: loop exit
PB: predicated region body
PF: predicated region fallthrough
CT: control target
= control target key end

     0   :  { %15 = vsyncpa [#allocation3], 0  ;;  %s4404_s13 = smov [#allocation2]   ;;  %s8015_s0 = inlined_call_operand.vmem [shape: f32[1,960], index: 0, kind: input, shape index: {}]   ;;  %s8016_s1 = inlined_call_operand.vmem [shape: f32[16,5], index: 1, kind: input, shape index: {}]   ;;  %s8017_s2 = inlined_call_operand.vmem [shape: f32[16,1], index: 2, kind: input, shape index: {}]   ;;  %s8018_s3 = inlined_call_operand.vmem [shape: f32[16,1], index: 3, kind: input, shape index: {}]   ;;  %s8019_s4 = inlined_call_operand.vmem [shape: f32[32,80], index: 4, kind: input, shape index: {}]   ;;  %s8020_s5 = inlined_call_operand.vmem [shape: f32[32,1], index: 5, kind: input, shape index: {}]   ;;  %s8021_s6 = inlined_call_operand.vmem [shape: f32[32,1], index: 6, kind: input, shape index: {}]   ;;  %s8022_s7 = inlined_call_operand.hbm [shape: f32[64,160], index: 7, kind: input, shape index: {}]   ;;  %s8023_s8 = inlined_call_operand.vmem [shape: f32[64,1], index: 8, kind: input, shape index: {}]   ;;  %s8024_s9 = inlined_call_operand.vmem [shape: f32[64,1], index: 9, kind: input, shape index: {}]   ;;  %s8025_s10 = inlined_call_operand.vmem [shape: f32[60,64], index: 10, kind: output, shape index: {}]  }
   0x1   :  { %s35_s14 = sshll.u32 %s4404_s13, 4  ;;  %s36_s14 = int_to_ptr.vmem [resolvable:$true] %s35_s14 }
   0x2   :  { %s4390_s15 = scalar_lea.vmem %s36_s14, 2048  ;;  %p4395_p1 = scmp.lt.s32.totalorder %s36_s14, %s36_s14 }
   0x3   :  { %p4391_p0 = scmp.ne.s32.totalorder %s36_s14, %s4390_s15  ;;  %p4396_p2 = scmp.lt.s32.totalorder %s4390_s15, %s4390_s15 }
   0x5   :  { %p4397_p3 = por %p4396_p2, %p4395_p1 }
   0x7   :  { %p4398_p4 = pnand %p4397_p3, %p4391_p0 }
   0x9   :  { %4401 = shalt.err (!%p4398_p4)
}
   0xa   :  { %s4405_s16 = smov 256   ;;  %s4406_s17 = smov 16  }
   0xb   :  { %41 = dma.hbm_to_vmem [thread:$0]  %s8022_s7, 2048, %s36_s14, [#allocation3], %s4405_s16, %s4405_s16, %s4406_s17  }
   0xc   :  { %4402 = dma.done.wait [#allocation3], 2048  }
   0xd   :  { %4403 = vsyncadd [#allocation3], 4294965248  ;;  %v57_v0 = vlaneseq  ;;  %v4407_v1 = vmov 0   ;;  %v4408_v3 = vmov 2   ;;  %v50_v6 = vld [vmem:[%s8016_s1] sm:$0xff]  ;;  %s4409_s23 = smov 2  }
   0xe   :  { %4223 = vset.pattern.permute.xlu0 %v4407_v1  ;;  %4224 = vset.pattern.permute.xlu1 %v4408_v3  ;;  %v49_v7 = vld [vmem:[%s8015_s0] sm:$0xff]  ;;  %s4410_s24 = smov 1   ;;  %v4411_v12 = vmov 3   ;;  %v4412_v14 = vmov 1   ;;  %v4413_v16 = vmov 4   ;;  %s4414_s0 = smov 127  }
   0xf   :  { %v4479_v2 = vshrl.u32 %v57_v0, 7  ;;  %522 = vperm.xlu0 %4223, %v50_v6   ;;  %s4415_s25 = smov 126   ;;  %v51_v25 = vld [vmem:[%s8016_s1 + $0x8] sm:$0xff]  ;;  %v4587_v26 = vand.u32 127, %v57_v0  ;;  %vm8045_vm14 = vcmask 15360  }
  0x11   :  { %8111 = vst [vmem:[#allocation5_spill] sm:$0xff] %v4479_v2  ;;  %v4483_v4 = vsub.s32 0, %v4479_v2  ;;  %v63_v5 = vsub.s32 1, %v4479_v2  ;;  %v67_v10 = vsub.s32 2, %v4479_v2  ;;  %v71_v13 = vsub.s32 3, %v4479_v2  ;;  %8116 = vst [vmem:[#allocation10_spill] sm:$0xff] %v4587_v26 }
  0x12   :  { %v75_v17 = vsub.s32 4, %v4479_v2  ;;  %v79_v19 = vsub.s32 5, %v4479_v2  ;;  %v83_v21 = vsub.s32 6, %v4479_v2  ;;  %v87_v23 = vsub.s32 7, %v4479_v2 }
  0x13   :  { %v4493_v8 = vrot.slane %v49_v7, %v4483_v4  ;;  %v4495_v9 = vrot.slane %v49_v7, %v63_v5  ;;  %v4502_v11 = vrot.slane %v49_v7, %v67_v10  ;;  %4225 = vset.pattern.permute.xlu0 %v4411_v12  ;;  %v4513_v15 = vrot.slane %v49_v7, %v71_v13 }
  0x14   :  { %v4522_v18 = vrot.slane %v49_v7, %v75_v17  ;;  %v4535_v20 = vrot.slane %v49_v7, %v79_v19  ;;  %v4547_v22 = vrot.slane %v49_v7, %v83_v21  ;;  %v4558_v24 = vrot.slane %v49_v7, %v87_v23 }
  0x15   :  { %8112 = vst [vmem:[#allocation6_spill] sm:$0xff] %v4493_v8  ;;  %8113 = vst [vmem:[#allocation7_spill] sm:$0xff] %v4495_v9  ;;  %89 = vrot.lane.b32.xlu1 %v4493_v8, %s4409_s23  ;;  %301 = vrot.lane.b32.xlu0 %v4495_v9, %s4410_s24  ;;  %v4590_v27 = vadd.s32 128, %v4587_v26  ;;  %v4593_v28 = vmul.u32.u64.low 2290649225, %v4587_v26  ;;  %v4594_v29 = vmul.u32.u64.high 2290649225, %v4587_v26, %v4593_v28  ;;  %v125_v30 = vadd.s32 256, %v4587_v26 }
  0x16   :  { %8114 = vst [vmem:[#allocation8_spill] sm:$0xff] %v4502_v11  ;;  %8115 = vst [vmem:[#allocation9_spill] sm:$0xff] %v4513_v15  ;;  %v126_v33 = vadd.s32 384, %v4587_v26  ;;  %v127_v38 = vadd.s32 512, %v4587_v26  ;;  %v128_v46 = vadd.s32 640, %v4587_v26  ;;  %v4621_v49 = vadd.s32 768, %v4587_v26 }
  0x17   :  { %8117 = vst [vmem:[#allocation11_spill] sm:$0xff] %v4590_v27  ;;  %8118 = vst [vmem:[#allocation12_spill] sm:$0xff] %v4594_v29  ;;  %v4598_v31 = vmul.u32.u64.low 2290649225, %v4590_v27  ;;  %v4599_v32 = vmul.u32.u64.high 2290649225, %v4590_v27, %v4598_v31  ;;  %v4602_v34 = vmul.u32.u64.low 2290649225, %v125_v30  ;;  %v4603_v35 = vmul.u32.u64.high 2290649225, %v125_v30, %v4602_v34 }
  0x18   :  { %v4605_v36 = vmul.u32.u64.low 2290649225, %v126_v33  ;;  %v4606_v37 = vmul.u32.u64.high 2290649225, %v126_v33, %v4605_v36  ;;  %v137_v39 = vshrl.u32 %v4594_v29, 8  ;;  %v4625_v51 = vadd.s32 896, %v4587_v26 }
  0x19   :  { %91 = vrot.lane.b32.xlu1 %v4495_v9, %s4409_s23  ;;  %93 = vrot.lane.b32.xlu0 %v4502_v11, %s4409_s23  ;;  %8119 = vst [vmem:[#allocation13_spill] sm:$0xff] %v4599_v32  ;;  %v148_v40 = vshrl.u32 %v4599_v32, 8  ;;  %v4613_v42 = vmul.u32.u64.low 2290649225, %v127_v38  ;;  %v4614_v43 = vmul.u32.u64.high 2290649225, %v127_v38, %v4613_v42  ;;  %v159_v45 = vshrl.u32 %v4603_v35, 8 }
  0x1a   :  { %v138_v44 = vmul.u32 480, %v137_v39  ;;  %v170_v50 = vshrl.u32 %v4606_v37, 8  ;;  %v4628_v54 = vmul.u32.u64.low 2290649225, %v128_v46  ;;  %v4629_v55 = vmul.u32.u64.high 2290649225, %v128_v46, %v4628_v54 }
  0x1b   :  { %v149_v48 = vmul.u32 480, %v148_v40  ;;  %v160_v53 = vmul.u32 480, %v159_v45  ;;  %v181_v62 = vshrl.u32 %v4614_v43, 8 }
  0x1c   :  { %v139_v52 = vsub.s32 %v4587_v26, %v138_v44  ;;  %v4637_v59 = vmul.u32.u64.low 2290649225, %v4621_v49  ;;  %v4638_v60 = vmul.u32.u64.high 2290649225, %v4621_v49, %v4637_v59  ;;  %v171_v61 = vmul.u32 480, %v170_v50 }
  0x1d   :  { %299 = vrot.lane.b32.xlu1 %v4493_v8, %s4410_s24  ;;  %699 = vperm.xlu0 %4225, %v50_v6   ;;  %v150_v58 = vsub.s32 %v4590_v27, %v149_v48  ;;  %v4642_v63 = vmul.u32.u64.low 2290649225, %v4625_v51  ;;  %v4643_v0 = vmul.u32.u64.high 2290649225, %v4625_v51, %v4642_v63  ;;  %v182_v10 = vmul.u32 480, %v181_v62 }
  0x1e   :  { %vm219_vm0 = vcmp.ne.s32.totalorder %v139_v52, 0  ;;  %vm227_vm1 = vcmp.lt.s32.totalorder %v139_v52, 0  ;;  %v243_v5 = vadd.s32 480, %v139_v52  ;;  %v172_v7 = vsub.s32 %v126_v33, %v171_v61 }
  0x1f   :  { %vm220_vm2 = vcmp.ne.s32.totalorder %v150_v58, 0  ;;  %vm228_vm3 = vcmp.lt.s32.totalorder %v150_v58, 0  ;;  %vm235_vm4 = vmand %vm227_vm1, %vm219_vm0  ;;  %v192_v13 = vshrl.u32 %v4629_v55, 8  ;;  %v203_v19 = vshrl.u32 %v4638_v60, 8 }
  0x20   :  { %vm236_vm7 = vmand %vm228_vm3, %vm220_vm2  ;;  %vm222_vm9 = vcmp.ne.s32.totalorder %v172_v7, 0  ;;  %vm230_vm10 = vcmp.lt.s32.totalorder %v172_v7, 0  ;;  %v183_v23 = vsub.s32 %v127_v38, %v182_v10  ;;  %v246_v31 = vadd.s32 480, %v172_v7 }
  0x21   :  { %651 = vperm.xlu1 %4224, %v50_v6   ;;  %4226 = vset.pattern.permute.xlu0 %v4412_v14  ;;  %vm238_vm11 = vmand %vm230_vm10, %vm222_vm9  ;;  %v204_v37 = vmul.u32 480, %v203_v19 }
  0x22   :  { %579 = vperm.xlu0 %4226, %v50_v6   ;;  %vm223_vm12 = vcmp.ne.s32.totalorder %v183_v23, 0  ;;  %vm231_vm13 = vcmp.lt.s32.totalorder %v183_v23, 0  ;;  %v4677_v45 = vsel %vm238_vm11, %v246_v31, %v172_v7  ;;  %v247_v48 = vadd.s32 480, %v183_v23 }
  0x23   :  { %vm4683_vm1 = vmand %vm231_vm13, %vm223_vm12 }
  0x24   :  { %v4706_v59 = vsel %vm4683_vm1, %v247_v48, %v183_v23 }
  0x25   :  { %303 = vrot.lane.b32.xlu1 %v4502_v11, %s4410_s24  ;;  %v4843_v19 = vadd.s32 1, %v4706_v59 }
  0x26   :  { %4227 = vset.pattern.permute.xlu1 %v4413_v16  ;;  %372 = vrot.lane.b32.xlu0 %v4493_v8, %s4414_s0 }
  0x29   :  { %95 = vrot.lane.b32.xlu1 %v4513_v15, %s4409_s23 }
  0x2a   :  { %376 = vrot.lane.b32.xlu0 %v4502_v11, %s4414_s0 }
  0x2d   :  { %305 = vrot.lane.b32.xlu1 %v4513_v15, %s4410_s24 }
  0x2e   :  { %97 = vrot.lane.b32.xlu0 %v4522_v18, %s4409_s23 }
  0x31   :  { %374 = vrot.lane.b32.xlu1 %v4495_v9, %s4414_s0 }
  0x32   :  { %378 = vrot.lane.b32.xlu0 %v4513_v15, %s4414_s0 }
  0x35   :  { %771 = vperm.xlu1 %4227, %v50_v6  }
  0x36   :  { %448 = vrot.lane.b32.xlu0 %v4495_v9, %s4415_s25 }
  0x39   :  { %307 = vrot.lane.b32.xlu1 %v4522_v18, %s4410_s24 }
  0x3a   :  { %4228 = vset.pattern.permute.xlu1 %v4407_v1  ;;  %99 = vrot.lane.b32.xlu0 %v4535_v20, %s4409_s23 }
  0x3d   :  { %446 = vrot.lane.b32.xlu1 %v4493_v8, %s4415_s25 }
  0x3e   :  { %380 = vrot.lane.b32.xlu0 %v4522_v18, %s4414_s0 }
  0x41   :  { %450 = vrot.lane.b32.xlu1 %v4502_v11, %s4415_s25 }
  0x42   :  { %101 = vrot.lane.b32.xlu0 %v4547_v22, %s4409_s23 }
  0x45   :  { %309 = vrot.lane.b32.xlu1 %v4535_v20, %s4410_s24 }
  0x46   :  { %382 = vrot.lane.b32.xlu0 %v4535_v20, %s4414_s0 }
  0x49   :  { %452 = vrot.lane.b32.xlu1 %v4513_v15, %s4415_s25 }
  0x4a   :  { %103 = vrot.lane.b32.xlu0 %v4558_v24, %s4409_s23 }
  0x4d   :  { %311 = vrot.lane.b32.xlu1 %v4547_v22, %s4410_s24 }
  0x4e   :  { %384 = vrot.lane.b32.xlu0 %v4547_v22, %s4414_s0 }
  0x51   :  { %454 = vrot.lane.b32.xlu1 %v4522_v18, %s4415_s25 }
  0x52   :  { %386 = vrot.lane.b32.xlu0 %v4558_v24, %s4414_s0 }
  0x55   :  { %313 = vrot.lane.b32.xlu1 %v4558_v24, %s4410_s24 }
  0x56   :  { %460 = vrot.lane.b32.xlu0 %v4558_v24, %s4415_s25 }
  0x59   :  { %456 = vrot.lane.b32.xlu1 %v4535_v20, %s4415_s25 }
  0x5a   :  { %583 = vperm.xlu0 %4226, %v51_v25  }
  0x5d   :  { %458 = vrot.lane.b32.xlu1 %v4547_v22, %s4415_s25 }
  0x5e   :  { %4231 = vset.pattern.permute.xlu0 %v4413_v16  ;;  %v4652_v16 = vsel %vm235_vm4, %v243_v5, %v139_v52  ;;  %v4727_v5 = vadd.s32 4294967295, %v4706_v59  ;;  %v4814_v52 = vadd.s32 1, %v4677_v45 }
  0x5f   :  { %775 = vperm.xlu0 %4231, %v51_v25   ;;  %v4661_v33 = vadd.s32 4294967294, %v4652_v16  ;;  %v4664_v34 = vadd.s32 4294967295, %v4652_v16 }
  0x61   :  { %527 = vperm.xlu1 %4228, %v51_v25  }
  0x63   :  { %4233 = vset.pattern.permute.xlu0 %v4407_v1 }
  0x65   :  { %4229 = vset.pattern.permute.xlu1 %v4408_v3 }
  0x66   :  { %655 = vperm.xlu1 %4229, %v51_v25  }
  0x6a   :  { %4230 = vset.pattern.permute.xlu1 %v4411_v12  ;;  %v244_v12 = vadd.s32 480, %v150_v58 }
  0x6b   :  { %703 = vperm.xlu1 %4230, %v51_v25   ;;  %v214_v25 = vshrl.u32 %v4643_v0, 8  ;;  %v4722_v0 = vadd.s32 4294967294, %v4706_v59 }
  0x6c   :  { %v4658_v28 = vsel %vm236_vm7, %v244_v12, %v150_v58  ;;  %v4702_v58 = vadd.s32 4294967295, %v4677_v45 }
  0x6d   :  { %v260_v38 = vadd.s32 4294967294, %v4658_v28  ;;  %v215_v40 = vmul.u32 480, %v214_v25  ;;  %v4674_v42 = vadd.s32 4294967295, %v4658_v28  ;;  %v4717_v63 = vadd.s32 1, %v4658_v28 }
  0x6f   :  { %4232 = vset.pattern.permute.xlu1 %v4407_v1  ;;  %v161_v1 = vsub.s32 %v125_v30, %v160_v53  ;;  %v193_v30 = vmul.u32 480, %v192_v13  ;;  %v205_v53 = vsub.s32 %v4621_v49, %v204_v37  ;;  %vm268_vm2 = vcmp.ge.s32.totalorder %v260_v38, 0 }
  0x70   :  { %vm276_vm3 = vcmp.lt.s32.totalorder %v260_v38, 480  ;;  %v216_v55 = vsub.s32 %v4625_v51, %v215_v40  ;;  %v4699_v49 = vadd.s32 4294967294, %v4677_v45  ;;  %v4711_v51 = vadd.s32 1, %v4652_v16 }
  0x71   :  { %vm221_vm5 = vcmp.ne.s32.totalorder %v161_v1, 0  ;;  %vm229_vm6 = vcmp.lt.s32.totalorder %v161_v1, 0  ;;  %v245_v17 = vadd.s32 480, %v161_v1  ;;  %v194_v43 = vsub.s32 %v128_v46, %v193_v30 }
  0x72   :  { %vm237_vm8 = vmand %vm229_vm6, %vm221_vm5  ;;  %vm225_vm13 = vcmp.ne.s32.totalorder %v205_v53, 0  ;;  %vm233_vm7 = vcmp.lt.s32.totalorder %v205_v53, 0  ;;  %vm226_vm5 = vcmp.ne.s32.totalorder %v216_v55, 0  ;;  %vm234_vm6 = vcmp.lt.s32.totalorder %v216_v55, 0 }
  0x73   :  { %v4666_v35 = vsel %vm237_vm8, %v245_v17, %v161_v1  ;;  %vm224_vm9 = vcmp.ne.s32.totalorder %v194_v43, 0  ;;  %vm232_vm10 = vcmp.lt.s32.totalorder %v194_v43, 0  ;;  %v248_v61 = vadd.s32 480, %v194_v43  ;;  %vm4730_vm11 = vmand %vm233_vm7, %vm225_vm13 }
  0x74   :  { %v261_v44 = vadd.s32 4294967294, %v4666_v35  ;;  %v4691_v46 = vadd.s32 4294967295, %v4666_v35  ;;  %vm240_vm4 = vmand %vm232_vm10, %vm224_vm9  ;;  %vm270_vm15 = vcmp.ge.s32.totalorder %v4699_v49, 0  ;;  %v249_v1 = vadd.s32 480, %v205_v53 }
  0x75   :  { %vm278_vm0 = vcmp.lt.s32.totalorder %v4699_v49, 480  ;;  %v250_v10 = vadd.s32 480, %v216_v55  ;;  %vm351_vm9 = vcmp.lt.s32.totalorder %v4702_v58, 480  ;;  %v4738_v13 = vsel %vm240_vm4, %v248_v61, %v194_v43  ;;  %vm4745_vm8 = vmand %vm234_vm6, %vm226_vm5 }
  0x76   :  { %vm277_vm12 = vcmp.lt.s32.totalorder %v261_v44, 480  ;;  %vm350_vm1 = vcmp.lt.s32.totalorder %v4691_v46, 480  ;;  %v4741_v17 = vadd.s32 2, %v4652_v16  ;;  %vm4751_vm7 = vmand %vm268_vm2, %vm276_vm3  ;;  %v4761_v25 = vadd.s32 1, %v4666_v35 }
  0x77   :  { %v4764_v30 = vadd.s32 2, %v4658_v28  ;;  %vm8128_vm2 = vcmp.ge.s32.totalorder %v261_v44, 0  ;;  %vm279_vm6 = vcmp.lt.s32.totalorder %v4722_v0, 480  ;;  %v257_v28 = vsel %vm4730_vm11, %v249_v1, %v205_v53 }
  0x78   :  { %vm4771_vm3 = vmand %vm8128_vm2, %vm277_vm12  ;;  %vm8131_vm10 = vcmp.lt.s32.totalorder %v4661_v33, 480  ;;  %vm8132_vm4 = vcmp.ge.s32.totalorder %v4661_v33, 0  ;;  %v258_v44 = vsel %vm4745_vm8, %v250_v10, %v216_v55  ;;  %vm8135_vm11 = vcmp.lt.s32.totalorder %v4664_v34, 480 }
  0x79   :  { %vm4786_vm12 = vmand %vm8132_vm4, %vm8131_vm10  ;;  %vm8136_vm10 = vcmp.ge.s32.totalorder %v4664_v34, 0  ;;  %vm8139_vm13 = vcmask 7168   ;;  %v4817_v53 = vadd.s32 4294967295, %v4738_v13  ;;  %vm8140_vm8 = vcmp.lt.s32.totalorder %v4674_v42, 480 }
  0x7a   :  { %vm4803_vm4 = vmand %vm8136_vm10, %vm8135_vm11  ;;  %vm8141_vm11 = vcmp.ge.s32.totalorder %v4674_v42, 0  ;;  %vm8144_vm10 = vcmask 7168   ;;  %vm8105_vm2 = vcmask 1031168   ;;  %vm497_vm5 = vcmp.lt.s32.totalorder %v4764_v30, 480 }
  0x7b   :  { %v4838_v10 = vadd.s32 4294967294, %v257_v28  ;;  %v4848_v23 = vadd.s32 4294967294, %v258_v44  ;;  %v4854_v37 = vadd.s32 4294967295, %v257_v28  ;;  %v4860_v40 = vadd.s32 2, %v4677_v45 }
  0x7c   :  { %v4880_v45 = vadd.s32 1, %v257_v28  ;;  %v4920_v26 = vadd.s32 2, %v258_v44 }
  0x87   :  { %v4611_v41 = vpop.permute.xlu1 %89 }
  0x88   :  { %v121_v43 = vsel %vm8045_vm14, 0.0, %v4611_v41 }
  0x89   :  { %v291_v42 = vsel %vm4786_vm12, %v121_v43, 0.0  ;;  %vm8147_vm12 = vcmp.ge.s32.totalorder %v4691_v46, 0 }
  0x8a   :  { %v4618_v47 = vpop.permute.xlu0 %522 }
  0x8b   :  { %v4631_v56 = vpop.permute.xlu1 %91 }
  0x8c   :  { %v106_v31 = vsel %vm8045_vm14, %v4611_v41, %v4631_v56 }
  0x8d   :  { %v292_v34 = vsel %vm4751_vm7, %v106_v31, 0.0  ;;  %vm489_vm7 = vcmp.ge.s32.totalorder %v4764_v30, 0 }
  0x8e   :  { %v4633_v57 = vpop.permute.xlu0 %301 }
  0x8f   :  { %v4647_v6 = vpop.permute.xlu1 %299 }
  0x90   :  { %v331_v41 = vsel %vm8139_vm13, 0.0, %v4647_v6  ;;  %vm4825_vm13 = vmand %vm8141_vm11, %vm8140_vm8  ;;  %v316_v61 = vsel %vm8144_vm10, %v4647_v6, %v4633_v57  ;;  %v4846_v6 = vadd.s32 2, %v4666_v35  ;;  %vm424_vm8 = vcmp.lt.s32.totalorder %v4761_v25, 480 }
  0x91   :  { %v364_v31 = vsel %vm4803_vm4, %v331_v41, 0.0  ;;  %v4863_v35 = vrot.slane %v292_v34, %v4483_v4  ;;  %v365_v43 = vsel %vm4825_vm13, %v316_v61, 0.0  ;;  %vm4874_vm4 = vmand %vm8147_vm12, %vm350_vm1  ;;  %v4883_v34 = vrot.slane %v291_v42, %v4483_v4 }
  0x92   :  { %v4645_v3 = vpop.permute.xlu0 %93  ;;  %vm8151_vm11 = vmmov %vm8144_vm10  ;;  %v4902_v42 = vadd.s32 4294967295, %v258_v44  ;;  %v4926_v2 = vrot.slane %v365_v43, %v4483_v4 }
  0x93   :  { %v107_v38 = vsel %vm8045_vm14, %v4631_v56, %v4645_v3  ;;  %v4795_v56 = vadd.s32 4294967294, %v4738_v13  ;;  %8145 = vst [vmem:[#allocation14_spill] sm:$0xff] %v4863_v35  ;;  %8150 = vst [vmem:[#allocation16_spill] sm:$0xff] %v4883_v34 }
  0x94   :  { %v293_v1 = vsel %vm4771_vm3, %v107_v38, 0.0  ;;  %v4857_v38 = vadd.s32 1, %v4738_v13  ;;  %vm4892_vm13 = vmand %vm270_vm15, %vm278_vm0  ;;  %vm8155_vm15 = vcmp.ge.s32.totalorder %v4702_v58, 0  ;;  %8159 = vst [vmem:[#allocation18_spill] sm:$0xff] %v4926_v2 }
  0x95   :  { %v4868_v33 = vrot.slane %v293_v1, %v4483_v4  ;;  %v4900_v1 = vadd.s32 1, %v258_v44  ;;  %vm4911_vm0 = vmand %vm8155_vm15, %vm351_vm9  ;;  %vm8160_vm9 = vcmp.lt.s32.totalorder %v4711_v51, 480  ;;  %vm8161_vm15 = vcmp.ge.s32.totalorder %v4711_v51, 0 }
  0x96   :  { %vm8158_vm12 = vmmov %vm8144_vm10  ;;  %v4943_v44 = vadd.s32 2, %v257_v28 }
  0x97   :  { %8146 = vst [vmem:[#allocation15_spill] sm:$0xff] %v4868_v33  ;;  %vm4932_vm10 = vmand %vm8161_vm15, %vm8160_vm9  ;;  %v4947_v43 = vmul.f32 %v4868_v33, %v4618_v47  ;;  %vm8164_vm9 = vcmp.lt.s32.totalorder %v4717_v63, 480  ;;  %vm8165_vm15 = vcmp.ge.s32.totalorder %v4717_v63, 0 }
  0x98   :  { %v4650_v14 = vpop.permute.xlu0 %699  ;;  %vm4955_vm1 = vmand %vm8165_vm15, %vm8164_vm9  ;;  %vm8171_vm15 = vcmask 1039360  }
  0x9c   :  { %v4655_v21 = vpop.permute.xlu1 %651 }
  0x9d   :  { %v4668_v36 = vpop.permute.xlu0 %579  ;;  %v4992_v49 = vmul.f32 %v4655_v21, %v4502_v11  ;;  %v5052_v30 = vmul.f32 %v4655_v21, %v4522_v18 }
  0x9e   :  { %v619_v33 = vmul.f32 %v4926_v2, %v4668_v36 }
  0xa0   :  { %v4671_v39 = vpop.permute.xlu1 %303 }
  0xa1   :  { %v4681_v50 = vpop.permute.xlu0 %372  ;;  %v317_v55 = vsel %vm8151_vm11, %v4633_v57, %v4671_v39  ;;  %v4905_v57 = vrot.slane %v364_v31, %v4483_v4  ;;  %v4923_v31 = vadd.s32 2, %v4706_v59  ;;  %v4941_v59 = vadd.s32 2, %v4738_v13 }
  0xa2   :  { %v366_v51 = vsel %vm4874_vm4, %v317_v55, 0.0  ;;  %v563_v13 = vmul.f32 %v4863_v35, %v4618_v47  ;;  %vm8168_vm4 = vcmp.ge.s32.totalorder %v4722_v0, 0 }
  0xa3   :  { %8154 = vst [vmem:[#allocation17_spill] sm:$0xff] %v4905_v57  ;;  %v618_v28 = vmul.f32 %v4905_v57, %v4668_v36  ;;  %vm4974_vm9 = vmand %vm8168_vm4, %vm279_vm6  ;;  %vm8174_vm4 = vcmp.ge.s32.totalorder %v4727_v5, 0 }
  0xa4   :  { %v4693_v54 = vpop.permute.xlu1 %95  ;;  %vm8172_vm6 = vmmov %vm8171_vm15  ;;  %v635_v58 = vadd.f32 %v619_v33, %v563_v13 }
  0xa5   :  { %v4708_v60 = vpop.permute.xlu0 %376  ;;  %v108_v41 = vsel %vm8045_vm14, %v4645_v3, %v4693_v54  ;;  %v666_v3 = vmul.f32 %v4655_v21, %v4493_v8  ;;  %v5003_v8 = vrot.slane %v366_v51, %v4483_v4  ;;  %v5021_v51 = vmul.f32 %v4655_v21, %v4513_v15 }
  0xa8   :  { %v4714_v62 = vpop.permute.xlu1 %305 }
  0xa9   :  { %v4735_v12 = vpop.permute.xlu0 %97  ;;  %v318_v32 = vsel %vm8158_vm12, %v4671_v39, %v4714_v62  ;;  %v562_v39 = vmul.f32 %v4883_v34, %v4618_v47  ;;  %vm8178_vm12 = vcmp.lt.s32.totalorder %v4741_v17, 480 }
  0xaa   :  { %v367_v55 = vsel %vm4911_vm0, %v318_v32, 0.0  ;;  %v667_v32 = vmul.f32 %v4655_v21, %v4495_v9  ;;  %vm8173_vm0 = vcmp.lt.s32.totalorder %v4727_v5, 480  ;;  %v109_v9 = vsel %vm8045_vm14, %v4693_v54, %v4735_v12 }
  0xab   :  { %v294_v54 = vsel %vm4892_vm13, %v108_v41, 0.0  ;;  %vm273_vm13 = vcmp.ge.s32.totalorder %v4838_v10, 0  ;;  %v634_v46 = vadd.f32 %v618_v28, %v562_v39  ;;  %v295_v41 = vsel %vm4974_vm9, %v109_v9, 0.0 }
  0xac   :  { %v4758_v16 = vpop.permute.xlu1 %374  ;;  %v5072_v9 = vrot.slane %v294_v54, %v4483_v4  ;;  %vm8197_vm9 = vcmp.lt.s32.totalorder %v4795_v56, 480 }
  0xad   :  { %v4809_v48 = vpop.permute.xlu0 %378  ;;  %v389_v35 = vsel %vm8171_vm15, %v4681_v50, %v4758_v16  ;;  %v390_v0 = vsel %vm8172_vm6, %v4758_v16, %v4708_v60  ;;  %vm4998_vm15 = vmand %vm8174_vm4, %vm8173_vm0  ;;  %vm490_vm0 = vcmp.ge.s32.totalorder %v4846_v6, 0  ;;  %vm498_vm4 = vcmp.lt.s32.totalorder %v4846_v6, 480 }
  0xae   :  { %vm8177_vm6 = vmmov %vm8151_vm11  ;;  %vm8179_vm11 = vcmp.ge.s32.totalorder %v4741_v17, 0  ;;  %v438_v17 = vsel %vm4932_vm10, %v389_v35, 0.0  ;;  %v439_v35 = vsel %vm4955_vm1, %v390_v0, 0.0  ;;  %vm8187_vm1 = vcmask 1039360  }
  0xaf   :  { %vm5015_vm3 = vmand %vm8179_vm11, %vm8178_vm12  ;;  %vm281_vm12 = vcmp.lt.s32.totalorder %v4838_v10, 480  ;;  %v391_v27 = vsel %vm8187_vm1, %v4708_v60, %v4809_v48  ;;  %v5075_v28 = vrot.slane %v438_v17, %v4483_v4  ;;  %v620_v60 = vmul.f32 %v5003_v8, %v4668_v36 }
  0xb0   :  { %v4834_v7 = vpop.permute.xlu1 %771  ;;  %vm5040_vm11 = vmand %vm489_vm7, %vm497_vm5  ;;  %vm8184_vm5 = vcmp.ge.s32.totalorder %v4761_v25, 0  ;;  %v5088_v63 = vrot.slane %v439_v35, %v4483_v4  ;;  %v5102_v0 = vmul.f32 %v4655_v21, %v4535_v20  ;;  %v5105_v50 = vrot.slane %v295_v41, %v4483_v4 }
  0xb1   :  { %v4878_v29 = vpop.permute.xlu0 %448  ;;  %vm5060_vm7 = vmand %vm8184_vm5, %vm424_vm8  ;;  %vm491_vm8 = vcmp.ge.s32.totalorder %v4860_v40, 0  ;;  %vm8198_vm10 = vcmp.ge.s32.totalorder %v4795_v56, 0  ;;  %v565_v56 = vmul.f32 %v5072_v9, %v4618_v47 }
  0xb4   :  { %v4896_v61 = vpop.permute.xlu1 %307 }
  0xb5   :  { %v4963_v34 = vpop.permute.xlu0 %99  ;;  %v319_v16 = vsel %vm8177_vm6, %v4714_v62, %v4896_v61  ;;  %v5028_v62 = vrot.slane %v367_v55, %v4483_v4  ;;  %vm5131_vm6 = vmand %vm8198_vm10, %vm8197_vm9  ;;  %vm282_vm10 = vcmp.lt.s32.totalorder %v4848_v23, 480 }
  0xb6   :  { %v368_v39 = vsel %vm4998_vm15, %v319_v16, 0.0  ;;  %vm8188_vm15 = vcmp.lt.s32.totalorder %v4814_v52, 480  ;;  %v440_v16 = vsel %vm5060_vm7, %v391_v27, 0.0  ;;  %vm499_vm7 = vcmp.lt.s32.totalorder %v4860_v40, 480  ;;  %vm5199_vm9 = vmand %vm273_vm13, %vm281_vm12 }
  0xb7   :  { %v5110_v5 = vrot.slane %v368_v39, %v4483_v4  ;;  %v682_v27 = vadd.f32 %v666_v3, %v634_v46  ;;  %v683_v39 = vadd.f32 %v667_v32, %v635_v58  ;;  %v636_v46 = vadd.f32 %v620_v60, %v4947_v43 }
  0xb8   :  { %v447_v57 = vpop.permute.xlu1 %446  ;;  %vm8211_vm12 = vcmask 1039360  }
  0xb9   :  { %v463_v11 = vsel %vm8105_vm2, %v447_v57, %v4878_v29  ;;  %v5034_v2 = vpop.permute.xlu0 %380 }
  0xba   :  { %v512_v25 = vsel %vm5015_vm3, %v463_v11, 0.0  ;;  %vm8189_vm3 = vcmp.ge.s32.totalorder %v4814_v52, 0 }
  0xbb   :  { %vm5094_vm5 = vmand %vm8189_vm3, %vm8188_vm15  ;;  %vm8194_vm15 = vcmp.ge.s32.totalorder %v4817_v53, 0  ;;  %v5139_v35 = vrot.slane %v512_v25, %v4483_v4 }
  0xbc   :  { %v451_v57 = vpop.permute.xlu1 %450 }
  0xbd   :  { %v464_v13 = vsel %vm8105_vm2, %v4878_v29, %v451_v57  ;;  %v621_v29 = vmul.f32 %v5028_v62, %v4668_v36  ;;  %v5098_v15 = vpop.permute.xlu0 %101  ;;  %v810_v54 = vmul.f32 %v5139_v35, %v4834_v7 }
  0xbe   :  { %v513_v55 = vsel %vm5040_vm11, %v464_v13, 0.0  ;;  %vm8192_vm11 = vmmov %vm8187_vm1  ;;  %vm8193_vm1 = vcmp.lt.s32.totalorder %v4817_v53, 480  ;;  %v110_v53 = vsel %vm8045_vm14, %v4735_v12, %v4963_v34  ;;  %v738_v12 = vmul.f32 %v5075_v28, %v4650_v14 }
  0xbf   :  { %v392_v52 = vsel %vm8192_vm11, %v4809_v48, %v5034_v2  ;;  %vm5119_vm3 = vmand %vm8194_vm15, %vm8193_vm1  ;;  %v5142_v41 = vrot.slane %v513_v55, %v4483_v4  ;;  %vm8202_vm11 = vcmask 7168   ;;  %vm274_vm1 = vcmp.ge.s32.totalorder %v4848_v23, 0 }
  0xc0   :  { %v5123_v17 = vpop.permute.xlu1 %309  ;;  %vm427_vm15 = vcmp.lt.s32.totalorder %v4857_v38, 480  ;;  %v739_v13 = vmul.f32 %v5088_v63, %v4650_v14  ;;  %v441_v25 = vsel %vm5094_vm5, %v392_v52, 0.0  ;;  %v637_v58 = vadd.f32 %v621_v29, %v565_v56 }
  0xc1   :  { %8201 = vst [vmem:[#allocation19_spill] sm:$0xff] %v5142_v41  ;;  %v320_v33 = vsel %vm8202_vm11, %v4896_v61, %v5123_v17  ;;  %v5158_v61 = vrot.slane %v440_v16, %v4483_v4  ;;  %v5164_v32 = vpop.permute.xlu0 %382  ;;  %v622_v55 = vmul.f32 %v5110_v5, %v4668_v36  ;;  %v296_v16 = vsel %vm5131_vm6, %v110_v53, 0.0  ;;  %vm5185_vm11 = vmand %vm490_vm0, %vm498_vm4 }
  0xc2   :  { %v369_v3 = vsel %vm5119_vm3, %v320_v33, 0.0  ;;  %v566_v52 = vmul.f32 %v5105_v50, %v4618_v47  ;;  %v811_v43 = vmul.f32 %v5142_v41, %v4834_v7  ;;  %vm8098_vm6 = vcmask 515072  }
  0xc3   :  { %v754_v48 = vadd.f32 %v738_v12, %v682_v27  ;;  %v5193_v53 = vrot.slane %v441_v25, %v4483_v4  ;;  %v5207_v33 = vrot.slane %v369_v3, %v4483_v4  ;;  %v755_v56 = vadd.f32 %v739_v13, %v683_v39 }
  0xc4   :  { %v453_v11 = vpop.permute.xlu1 %452  ;;  %v740_v27 = vmul.f32 %v5158_v61, %v4650_v14  ;;  %v5212_v12 = vrot.slane %v296_v16, %v4483_v4  ;;  %vm8207_vm0 = vcmp.lt.s32.totalorder %v4843_v19, 480  ;;  %vm8208_vm4 = vcmp.ge.s32.totalorder %v4843_v19, 0 }
  0xc5   :  { %v465_v29 = vsel %vm8105_vm2, %v451_v57, %v453_v11  ;;  %v111_v57 = vsel %vm8045_vm14, %v4963_v34, %v5098_v15  ;;  %vm5218_vm13 = vmand %vm8208_vm4, %vm8207_vm0  ;;  %v393_v34 = vsel %vm8211_vm12, %v5034_v2, %v5164_v32  ;;  %v104_v25 = vpop.permute.xlu0 %103  ;;  %v684_v39 = vadd.f32 %v4992_v49, %v636_v46 }
  0xc6   :  { %v638_v13 = vadd.f32 %v622_v55, %v566_v52  ;;  %v514_v3 = vsel %vm5185_vm11, %v465_v29, 0.0  ;;  %v5232_v16 = vmul.f32 %v4655_v21, %v4547_v22  ;;  %vm500_vm4 = vcmp.lt.s32.totalorder %v4923_v31, 480 }
  0xc7   :  { %v5236_v2 = vadd.f32 %v810_v54, %v754_v48  ;;  %v5238_v41 = vadd.f32 %v811_v43, %v755_v56  ;;  %v297_v49 = vsel %vm5199_vm9, %v111_v57, 0.0  ;;  %vm8212_vm12 = vcmp.lt.s32.totalorder %v4854_v37, 480  ;;  %vm5272_vm9 = vmand %vm491_vm8, %vm499_vm7 }
  0xc8   :  { %v312_v19 = vpop.permute.xlu1 %311  ;;  %vm8213_vm11 = vcmp.ge.s32.totalorder %v4854_v37, 0  ;;  %vm8216_vm3 = vcmask 7168   ;;  %vm8097_vm0 = vcmask 506880   ;;  %v741_v52 = vmul.f32 %v5193_v53, %v4650_v14 }
  0xc9   :  { %vm5246_vm5 = vmand %vm8213_vm11, %vm8212_vm12  ;;  %v321_v55 = vsel %vm8216_vm3, %v5123_v17, %v312_v19  ;;  %v623_v54 = vmul.f32 %v5207_v33, %v4668_v36  ;;  %v442_v43 = vsel %vm5218_vm13, %v393_v34, 0.0  ;;  %v5260_v37 = vmul.f32 %v4655_v21, %v4558_v24  ;;  %v385_v6 = vpop.permute.xlu0 %384 }
  0xca   :  { %v756_v60 = vadd.f32 %v740_v27, %v684_v39  ;;  %v567_v29 = vmul.f32 %v5212_v12, %v4618_v47  ;;  %v685_v17 = vadd.f32 %v5021_v51, %v637_v58  ;;  %v5266_v48 = vrot.slane %v514_v3, %v4483_v4  ;;  %vm5286_vm12 = vmand %vm274_vm1, %vm282_vm10 }
  0xcb   :  { %vm493_vm3 = vcmp.ge.s32.totalorder %v4941_v59, 0  ;;  %vm501_vm13 = vcmp.lt.s32.totalorder %v4941_v59, 480  ;;  %v5279_v21 = vrot.slane %v297_v49, %v4483_v4  ;;  %v686_v51 = vadd.f32 %v5052_v30, %v638_v13 }
  0xcc   :  { %v112_v40 = vsel %vm8045_vm14, %v5098_v15, %v104_v25  ;;  %v370_v56 = vsel %vm5246_vm5, %v321_v55, 0.0  ;;  %v455_v27 = vpop.permute.xlu1 %454  ;;  %vm502_vm7 = vcmp.lt.s32.totalorder %v4943_v44, 480  ;;  %v865_v30 = vmul.f32 %v5236_v2, %v5236_v2 }
  0xcd   :  { %v866_v23 = vmul.f32 %v5238_v41, %v5238_v41  ;;  %v5301_v10 = vrot.slane %v442_v43, %v4483_v4  ;;  %vm8221_vm1 = vcmp.ge.s32.totalorder %v4857_v38, 0  ;;  %v466_v34 = vsel %vm8105_vm2, %v453_v11, %v455_v27  ;;  %v387_v55 = vpop.permute.xlu0 %386 }
  0xce   :  { %vm5307_vm10 = vmand %vm8221_vm1, %vm427_vm15  ;;  %v757_v25 = vadd.f32 %v741_v52, %v685_v17  ;;  %v639_v39 = vadd.f32 %v623_v54, %v567_v29  ;;  %vm8224_vm5 = vcmask 1039360   ;;  %v515_v3 = vsel %vm5272_vm9, %v466_v34, 0.0 }
  0xcf   :  { %v394_v13 = vsel %vm8224_vm5, %v5164_v32, %v385_v6  ;;  %vm8225_vm11 = vcmp.lt.s32.totalorder %v4880_v45, 480  ;;  %vm8226_vm14 = vcmp.ge.s32.totalorder %v4880_v45, 0  ;;  %v812_v49 = vmul.f32 %v5266_v48, %v4834_v7  ;;  %vm8233_vm1 = vmmov %vm8224_vm5 }
  0xd0   :  { %vm5320_vm8 = vmand %vm8226_vm14, %vm8225_vm11  ;;  %v298_v11 = vsel %vm5286_vm12, %v112_v40, 0.0  ;;  %v5329_v46 = vrot.slane %v370_v56, %v4483_v4  ;;  %v5332_v32 = vrot.slane %v515_v3, %v4483_v4  ;;  %vm8229_vm15 = vcmp.lt.s32.totalorder %v4900_v1, 480 }
  0xd1   :  { %vm8230_vm9 = vcmp.ge.s32.totalorder %v4900_v1, 0  ;;  %v568_v52 = vmul.f32 %v5279_v21, %v4618_v47  ;;  %v395_v54 = vsel %vm8233_vm1, %v385_v6, %v387_v55  ;;  %v405_v43 = vsel %vm8098_vm6, %v387_v55, 0.0  ;;  %v314_v1 = vpop.permute.xlu1 %313 }
  0xd2   :  { %vm5338_vm14 = vmand %vm8230_vm9, %vm8229_vm15  ;;  %vm8234_vm12 = vcmp.lt.s32.totalorder %v4902_v42, 480  ;;  %vm8235_vm5 = vcmp.ge.s32.totalorder %v4902_v42, 0  ;;  %v842_v17 = vadd.f32 %v5238_v41, %v5236_v2  ;;  %v742_v57 = vmul.f32 %v5301_v10, %v4650_v14 }
  0xd3   :  { %vm5350_vm11 = vmand %vm8235_vm5, %vm8234_vm12  ;;  %v443_v6 = vsel %vm5307_vm10, %v394_v13, 0.0  ;;  %v444_v58 = vsel %vm5320_vm8, %v395_v54, 0.0  ;;  %v881_v40 = vadd.f32 %v866_v23, %v865_v30  ;;  %v5363_v42 = vrot.slane %v298_v11, %v4483_v4  ;;  %v461_v11 = vpop.permute.xlu0 %460 }
  0xd4   :  { %v813_v56 = vmul.f32 %v5332_v32, %v4834_v7  ;;  %v445_v34 = vsel %vm5338_vm14, %v405_v43, 0.0  ;;  %vm8238_vm15 = vcmask 7168   ;;  %vm8239_vm9 = vcmp.lt.s32.totalorder %v4920_v26, 480 }
  0xd5   :  { %v322_v3 = vsel %vm8238_vm15, %v312_v19, %v314_v1  ;;  %vm8240_vm1 = vcmp.ge.s32.totalorder %v4920_v26, 0  ;;  %v5378_v30 = vadd.f32 %v812_v49, %v756_v60  ;;  %v624_v23 = vmul.f32 %v5329_v46, %v4668_v36  ;;  %v457_v49 = vpop.permute.xlu1 %456 }
  0xd6   :  { %vm5374_vm10 = vmand %vm8240_vm1, %vm8239_vm9  ;;  %v687_v13 = vadd.f32 %v5102_v0, %v639_v39  ;;  %v371_v38 = vsel %vm5350_vm11, %v322_v3, 0.0  ;;  %vm8243_vm8 = vcmp.ge.s32.totalorder %v4923_v31, 0  ;;  %v5394_v19 = vrot.slane %v443_v6, %v4483_v4 }
  0xd7   :  { %vm5389_vm14 = vmand %vm8243_vm8, %vm500_vm4  ;;  %v5397_v60 = vrot.slane %v444_v58, %v4483_v4  ;;  %v5400_v0 = vrot.slane %v371_v38, %v4483_v4  ;;  %v479_v39 = vsel %vm8097_vm0, %v461_v11, 0.0  ;;  %v758_v45 = vadd.f32 %v742_v57, %v686_v51 }
  0xd8   :  { %v5404_v55 = vrot.slane %v445_v34, %v4483_v4  ;;  %v519_v31 = vsel %vm5374_vm10, %v479_v39, 0.0  ;;  %v467_v54 = vsel %vm8105_vm2, %v455_v27, %v457_v49  ;;  %v569_v43 = vmul.f32 %v5363_v42, %v4618_v47  ;;  %vm5421_vm4 = vmand %vm493_vm3, %vm501_vm13 }
  0xd9   :  { %v5411_v29 = vadd.f32 %v813_v56, %v757_v25  ;;  %v625_v1 = vmul.f32 %v5400_v0, %v4668_v36  ;;  %v516_v6 = vsel %vm5389_vm14, %v467_v54, 0.0  ;;  %v640_v27 = vadd.f32 %v624_v23, %v568_v52  ;;  %v584_v54 = vpop.permute.xlu0 %583 }
  0xda   :  { %v5426_v57 = vrot.slane %v516_v6, %v4483_v4  ;;  %vm8248_vm12 = vcmp.ge.s32.totalorder %v4943_v44, 0  ;;  %v843_v36 = vadd.f32 %v842_v17, %v5378_v30  ;;  %v867_v59 = vmul.f32 %v5378_v30, %v5378_v30  ;;  %v459_v44 = vpop.permute.xlu1 %458 }
  0xdb   :  { %vm5432_vm5 = vmand %vm8248_vm12, %vm502_vm7  ;;  %v743_v25 = vmul.f32 %v5394_v19, %v4650_v14  ;;  %v744_v52 = vmul.f32 %v5397_v60, %v4650_v14  ;;  %v641_v58 = vadd.f32 %v625_v1, %v569_v43  ;;  %v5444_v56 = vrot.slane %v519_v31, %v4483_v4 }
  0xdc   :  { %v745_v34 = vmul.f32 %v5404_v55, %v4650_v14  ;;  %v814_v17 = vmul.f32 %v5426_v57, %v4834_v7  ;;  %v468_v3 = vsel %vm8105_vm2, %v457_v49, %v459_v44  ;;  %v469_v15 = vsel %vm8105_vm2, %v459_v44, %v461_v11 }
  0xdd   :  { %vm8096_vm3 = vcmask 523264   ;;  %v689_v23 = vadd.f32 %v5260_v37, %v641_v58  ;;  %v517_v38 = vsel %vm5421_vm4, %v468_v3, 0.0  ;;  %v518_v26 = vsel %vm5432_vm5, %v469_v15, 0.0  ;;  %v8251_v58 = vld [vmem:[#allocation17_spill] sm:$0xff] }
  0xde   :  { %v868_v39 = vmul.f32 %v5411_v29, %v5411_v29  ;;  %v688_v14 = vadd.f32 %v5232_v16, %v640_v27  ;;  %v5460_v31 = vadd.f32 %v814_v17, %v758_v45  ;;  %v5463_v49 = vrot.slane %v517_v38, %v4483_v4  ;;  %v528_v1 = vpop.permute.xlu1 %527  ;;  %v8253_v17 = vld [vmem:[#allocation18_spill] sm:$0xff] }
  0xdf   :  { %v5466_v11 = vrot.slane %v518_v26, %v4483_v4  ;;  %v759_v37 = vadd.f32 %v743_v25, %v687_v13  ;;  %v817_v43 = vmul.f32 %v5444_v56, %v4834_v7  ;;  %v761_v6 = vadd.f32 %v745_v34, %v689_v23 }
  0xe0   :  { %v882_v51 = vadd.f32 %v881_v40, %v867_v59  ;;  %v760_v47 = vadd.f32 %v744_v52, %v688_v14  ;;  %v815_v16 = vmul.f32 %v5463_v49, %v4834_v7  ;;  %v844_v27 = vadd.f32 %v843_v36, %v5411_v29 }
  0xe1   :  { %v816_v45 = vmul.f32 %v5466_v11, %v4834_v7  ;;  %v626_v44 = vmul.f32 %v8251_v58, %v584_v54  ;;  %v5476_v4 = vadd.f32 %v817_v43, %v761_v6  ;;  %v869_v13 = vmul.f32 %v5460_v31, %v5460_v31  ;;  %v8257_v6 = vld [vmem:[#allocation14_spill] sm:$0xff] }
  0xe2   :  { %v883_v25 = vadd.f32 %v882_v51, %v868_v39  ;;  %v627_v34 = vmul.f32 %v8253_v17, %v584_v54  ;;  %v5481_v40 = vadd.f32 %v815_v16, %v759_v37  ;;  %v845_v52 = vadd.f32 %v844_v27, %v5460_v31  ;;  %v656_v23 = vpop.permute.xlu1 %655  ;;  %v8256_v37 = vld [vmem:[#allocation16_spill] sm:$0xff]  ;;  %v8258_v16 = vld [vmem:[#allocation15_spill] sm:$0xff] }
  0xe3   :  { %8252 = vst [vmem:[#allocation17_spill] sm:$0xff] %v5476_v4  ;;  %v5483_v59 = vadd.f32 %v816_v45, %v760_v47  ;;  %v628_v7 = vmul.f32 %v5003_v8, %v584_v54  ;;  %v629_v36 = vmul.f32 %v5028_v62, %v584_v54  ;;  %v630_v3 = vmul.f32 %v5110_v5, %v584_v54 }
  0xe4   :  { %8254 = vst [vmem:[#allocation18_spill] sm:$0xff] %v5481_v40  ;;  %v631_v15 = vmul.f32 %v5207_v33, %v584_v54  ;;  %v846_v38 = vadd.f32 %v845_v52, %v5481_v40  ;;  %v870_v26 = vmul.f32 %v5481_v40, %v5481_v40  ;;  %v884_v39 = vadd.f32 %v883_v25, %v869_v13  ;;  %v8260_v52 = vld [vmem:[#allocation7_spill] sm:$0xff] }
  0xe5   :  { %8255 = vst [vmem:[#allocation20_spill] sm:$0xff] %v5483_v59  ;;  %v632_v14 = vmul.f32 %v5329_v46, %v584_v54  ;;  %v570_v43 = vmul.f32 %v8256_v37, %v528_v1  ;;  %v571_v51 = vmul.f32 %v8257_v6, %v528_v1  ;;  %v872_v8 = vmul.f32 %v5476_v4, %v5476_v4 }
  0xe6   :  { %v633_v62 = vmul.f32 %v5400_v0, %v584_v54  ;;  %v847_v5 = vadd.f32 %v846_v38, %v5483_v59  ;;  %v871_v33 = vmul.f32 %v5483_v59, %v5483_v59  ;;  %v885_v47 = vadd.f32 %v884_v39, %v870_v26  ;;  %v8259_v0 = vld [vmem:[#allocation6_spill] sm:$0xff]  ;;  %v704_v37 = vpop.permute.xlu1 %703 }
  0xe7   :  { %v572_v45 = vmul.f32 %v8258_v16, %v528_v1  ;;  %v849_v46 = vsel %vm8096_vm3, %v5476_v4, 0.0  ;;  %v573_v27 = vmul.f32 %v5072_v9, %v528_v1  ;;  %v574_v58 = vmul.f32 %v5105_v50, %v528_v1  ;;  %v8261_v16 = vld [vmem:[#allocation8_spill] sm:$0xff] }
  0xe8   :  { %v575_v13 = vmul.f32 %v5212_v12, %v528_v1  ;;  %v850_v25 = vadd.f32 %v849_v46, %v847_v5  ;;  %v886_v17 = vadd.f32 %v885_v47, %v871_v33  ;;  %v674_v54 = vmul.f32 %v656_v23, %v8259_v0  ;;  %v8262_v46 = vld [vmem:[#allocation9_spill] sm:$0xff] }
  0xe9   :  { %v675_v38 = vmul.f32 %v656_v23, %v8260_v52  ;;  %v887_v26 = vsel %vm8096_vm3, %v872_v8, 0.0  ;;  %v576_v39 = vmul.f32 %v5279_v21, %v528_v1  ;;  %v577_v6 = vmul.f32 %v5363_v42, %v528_v1  ;;  %v776_v42 = vpop.permute.xlu0 %775 }
  0xea   :  { %v676_v4 = vmul.f32 %v656_v23, %v8261_v16  ;;  %851 = vadd.xlane.f32.xlu1 %v850_v25  ;;  %v888_v9 = vadd.f32 %v887_v26, %v886_v17  ;;  %v642_v50 = vadd.f32 %v626_v44, %v570_v43  ;;  %v643_v59 = vadd.f32 %v627_v34, %v571_v51 }
  0xeb   :  { %v644_v12 = vadd.f32 %v628_v7, %v572_v45  ;;  %v645_v5 = vadd.f32 %v629_v36, %v573_v27  ;;  %v646_v33 = vadd.f32 %v630_v3, %v574_v58  ;;  %v647_v47 = vadd.f32 %v631_v15, %v575_v13 }
  0xec   :  { %v677_v0 = vmul.f32 %v656_v23, %v8262_v46  ;;  %889 = vadd.xlane.f32.xlu0 %v888_v9  ;;  %v678_v52 = vmul.f32 %v656_v23, %v4522_v18  ;;  %v690_v8 = vadd.f32 %v674_v54, %v642_v50  ;;  %v691_v40 = vadd.f32 %v675_v38, %v643_v59 }
  0xed   :  { %v746_v21 = vmul.f32 %v5075_v28, %v704_v37  ;;  %v692_v1 = vadd.f32 %v676_v4, %v644_v12  ;;  %v747_v25 = vmul.f32 %v5088_v63, %v704_v37  ;;  %v748_v44 = vmul.f32 %v5158_v61, %v704_v37 }
  0xee   :  { %v749_v34 = vmul.f32 %v5193_v53, %v704_v37  ;;  %v648_v7 = vadd.f32 %v632_v14, %v576_v39  ;;  %v649_v36 = vadd.f32 %v633_v62, %v577_v6  ;;  %v679_v3 = vmul.f32 %v656_v23, %v4535_v20  ;;  %v8263_v14 = vld [vmem:[#allocation19_spill] sm:$0xff] }
  0xef   :  { %v762_v15 = vadd.f32 %v746_v21, %v690_v8  ;;  %v693_v43 = vadd.f32 %v677_v0, %v645_v5  ;;  %v750_v18 = vmul.f32 %v5301_v10, %v704_v37  ;;  %v763_v51 = vadd.f32 %v747_v25, %v691_v40 }
  0xf0   :  { %v764_v59 = vadd.f32 %v748_v44, %v692_v1  ;;  %v680_v28 = vmul.f32 %v656_v23, %v4547_v22  ;;  %v681_v4 = vmul.f32 %v656_v23, %v4558_v24  ;;  %v751_v63 = vmul.f32 %v5394_v19, %v704_v37 }
  0xf1   :  { %v818_v61 = vmul.f32 %v5139_v35, %v776_v42  ;;  %v694_v45 = vadd.f32 %v678_v52, %v646_v33  ;;  %v765_v53 = vadd.f32 %v749_v34, %v693_v43  ;;  %v819_v62 = vmul.f32 %v8263_v14, %v776_v42  ;;  %v54_v43 = vld [vmem:[%s8018_s3] sm:$0xff] }
  0xf2   :  { %v820_v20 = vmul.f32 %v5266_v48, %v776_v42  ;;  %v695_v27 = vadd.f32 %v679_v3, %v647_v47  ;;  %v752_v58 = vmul.f32 %v5397_v60, %v704_v37  ;;  %v753_v10 = vmul.f32 %v5404_v55, %v704_v37 }
  0xf3   :  { %v5530_v40 = vadd.f32 %v818_v61, %v762_v15  ;;  %v766_v22 = vadd.f32 %v750_v18, %v694_v45  ;;  %v821_v24 = vmul.f32 %v5332_v32, %v776_v42  ;;  %v5533_v23 = vadd.f32 %v819_v62, %v763_v51 }
  0xf4   :  { %v5535_v19 = vadd.f32 %v820_v20, %v764_v59  ;;  %v696_v35 = vadd.f32 %v680_v28, %v648_v7  ;;  %v697_v13 = vadd.f32 %v681_v4, %v649_v36  ;;  %v767_v17 = vadd.f32 %v751_v63, %v695_v27 }
  0xf5   :  { %v873_v48 = vmul.f32 %v5530_v40, %v5530_v40  ;;  %v822_v54 = vmul.f32 %v5426_v57, %v776_v42  ;;  %v5540_v60 = vadd.f32 %v821_v24, %v765_v53  ;;  %v853_v55 = vadd.f32 %v5533_v23, %v5530_v40  ;;  %v52_v53 = vld [vmem:[%s8017_s2] sm:$0xff]  ;;  %v55_v24 = vld [vmem:[%s8018_s3 + $0x8] sm:$0xff] }
  0xf6   :  { %v874_v32 = vmul.f32 %v5533_v23, %v5533_v23  ;;  %v768_v38 = vadd.f32 %v752_v58, %v696_v35  ;;  %v769_v37 = vadd.f32 %v753_v10, %v697_v13  ;;  %v823_v26 = vmul.f32 %v5463_v49, %v776_v42 }
  0xf7   :  { %v5547_v39 = vadd.f32 %v822_v54, %v766_v22  ;;  %v854_v6 = vadd.f32 %v853_v55, %v5535_v19  ;;  %v875_v16 = vmul.f32 %v5535_v19, %v5535_v19  ;;  %v824_v9 = vmul.f32 %v5466_v11, %v776_v42 }
  0xf8   :  { %v891_v57 = vadd.f32 %v874_v32, %v873_v48  ;;  %v825_v50 = vmul.f32 %v5444_v56, %v776_v42  ;;  %v5554_v12 = vadd.f32 %v823_v26, %v767_v17  ;;  %v876_v33 = vmul.f32 %v5540_v60, %v5540_v60  ;;  %v53_v48 = vld [vmem:[%s8017_s2 + $0x8] sm:$0xff]  ;;  %v8264_v32 = vld [vmem:[#allocation11_spill] sm:$0xff]  ;;  %s4417_s2 = smov 125  }
  0xf9   :  { %v855_v5 = vadd.f32 %v854_v6, %v5540_v60  ;;  %v5561_v46 = vadd.f32 %v824_v9, %v768_v38  ;;  %v877_v52 = vmul.f32 %v5547_v39, %v5547_v39  ;;  %v5598_v38 = vmul.u32 4, %v8264_v32  ;;  %v8266_v6 = vld [vmem:[#allocation10_spill] sm:$0xff] }
  0xfa   :  { %v892_v49 = vadd.f32 %v891_v57, %v875_v16  ;;  %v5559_v47 = vadd.f32 %v825_v50, %v769_v37  ;;  %v878_v8 = vmul.f32 %v5554_v12, %v5554_v12  ;;  %v8265_v37 = vld [vmem:[#allocation5_spill] sm:$0xff]  ;;  %v5604_v16 = vmul.u32 4, %v8266_v6 }
  0xfb   :  { %v856_v0 = vadd.f32 %v855_v5, %v5547_v39  ;;  %v879_v25 = vmul.f32 %v5561_v46, %v5561_v46  ;;  %v5601_v26 = vadd.s32 120, %v8265_v37  ;;  %v5607_v57 = vadd.s32 112, %v8265_v37 }
  0xfc   :  { %v893_v11 = vadd.f32 %v892_v49, %v876_v33  ;;  %v880_v42 = vmul.f32 %v5559_v47, %v5559_v47  ;;  %v859_v34 = vsel %vm8096_vm3, %v5559_v47, 0.0  ;;  %v5610_v9 = vadd.s32 104, %v8265_v37 }
  0xfd   :  { %v857_v56 = vadd.f32 %v856_v0, %v5554_v12  ;;  %v1305_v50 = vadd.s32 376, %v8265_v37  ;;  %vm1411_vm13 = vcmp.eq.s32.totalorder %v5601_v26, %v5598_v38  ;;  %vm8095_vm7 = vcmp.eq.s32.totalorder %v5601_v26, %v5604_v16 }
  0xfe   :  { %v894_v21 = vadd.f32 %v893_v11, %v877_v52  ;;  %v897_v3 = vsel %vm8096_vm3, %v880_v42, 0.0  ;;  %vm1409_vm11 = vcmp.eq.s32.totalorder %v5607_v57, %v5598_v38  ;;  %v5620_v5 = vadd.s32 96, %v8265_v37 }
  0xff   :  { %v858_v1 = vadd.f32 %v857_v56, %v5561_v46  ;;  %v8080_v33 = vmov 1.0   ;;  %vm8094_vm15 = vcmp.eq.s32.totalorder %v5607_v57, %v5604_v16  ;;  %vm1407_vm9 = vcmp.eq.s32.totalorder %v5610_v9, %v5598_v38 }
 0x100   :  { %v895_v44 = vadd.f32 %v894_v21, %v878_v8  ;;  %3872 = vmatprep.subr.msk.mxu0 %vm1411_vm13, %v8080_v33  ;;  %vm1475_vm1 = vcmp.eq.s32.totalorder %v1305_v50, %v5598_v38  ;;  %v5633_v49 = vadd.s32 88, %v8265_v37  ;;  %vm1474_vm10 = vcmp.eq.s32.totalorder %v1305_v50, %v5604_v16 }
 0x101   :  { %v860_v7 = vadd.f32 %v859_v34, %v858_v1  ;;  %3873 = vmatpush1.msk.msra.mxu0 %vm8095_vm7, %v8080_v33  ;;  %vm8049_vm8 = vcmp.eq.s32.totalorder %v5610_v9, %v5604_v16  ;;  %3936 = vmatprep.subr.msk.mxu1 %vm1475_vm1, %v8080_v33  ;;  %v1304_v0 = vadd.s32 368, %v8265_v37  ;;  %v1303_v52 = vadd.s32 360, %v8265_v37 }
 0x102   :  { %v896_v36 = vadd.f32 %v895_v44, %v879_v25  ;;  %3874 = vmatprep.subr.msk.mxu0 %vm1409_vm11, %v8080_v33  ;;  %vm1405_vm14 = vcmp.eq.s32.totalorder %v5620_v5, %v5598_v38  ;;  %3937 = vmatpush1.msk.msra.mxu1 %vm1474_vm10, %v8080_v33  ;;  %v5650_v11 = vadd.s32 80, %v8265_v37  ;;  %v1302_v56 = vadd.s32 352, %v8265_v37 }
 0x103   :  { %861 = vadd.xlane.f32.xlu1 %v860_v7  ;;  %3875 = vmatpush1.msk.msra.mxu0 %vm8094_vm15, %v8080_v33  ;;  %vm8050_vm4 = vcmp.eq.s32.totalorder %v5620_v5, %v5604_v16  ;;  %vm1473_vm12 = vcmp.eq.s32.totalorder %v1304_v0, %v5598_v38  ;;  %vm1472_vm5 = vcmp.eq.s32.totalorder %v1304_v0, %v5604_v16  ;;  %v1301_v8 = vadd.s32 344, %v8265_v37 }
 0x104   :  { %v898_v15 = vadd.f32 %v897_v3, %v896_v36  ;;  %3876 = vmatprep.subr.msk.mxu0 %vm1407_vm9, %v8080_v33  ;;  %vm1403_vm13 = vcmp.eq.s32.totalorder %v5633_v49, %v5598_v38  ;;  %3938 = vmatprep.subr.msk.mxu1 %vm1473_vm12, %v8080_v33  ;;  %vm1471_vm11 = vcmp.eq.s32.totalorder %v1303_v52, %v5598_v38  ;;  %v5668_v21 = vadd.s32 72, %v8265_v37 }
 0x105   :  { %3877 = vmatpush1.msk.msra.mxu0 %vm8049_vm8, %v8080_v33  ;;  %vm1470_vm9 = vcmp.eq.s32.totalorder %v1303_v52, %v5604_v16  ;;  %vm8051_vm1 = vcmp.eq.s32.totalorder %v5633_v49, %v5604_v16  ;;  %3939 = vmatpush1.msk.msra.mxu1 %vm1472_vm5, %v8080_v33  ;;  %vm1469_vm10 = vcmp.eq.s32.totalorder %v1302_v56, %v5598_v38  ;;  %v1300_v42 = vadd.s32 336, %v8265_v37 }
 0x106   :  { %899 = vadd.xlane.f32.xlu0 %v898_v15  ;;  %3878 = vmatprep.subr.msk.mxu0 %vm1405_vm14, %v8080_v33  ;;  %vm1401_vm12 = vcmp.eq.s32.totalorder %v5650_v11, %v5598_v38  ;;  %v5685_v1 = vadd.s32 64, %v8265_v37  ;;  %vm1468_vm14 = vcmp.eq.s32.totalorder %v1302_v56, %v5604_v16  ;;  %vm8052_vm5 = vcmp.eq.s32.totalorder %v5650_v11, %v5604_v16 }
 0x107   :  { %3879 = vmatpush1.msk.msra.mxu0 %vm8050_vm4, %v8080_v33  ;;  %3940 = vmatprep.subr.msk.mxu1 %vm1471_vm11, %v8080_v33  ;;  %vm1467_vm8 = vcmp.eq.s32.totalorder %v1301_v8, %v5598_v38  ;;  %v1299_v25 = vadd.s32 328, %v8265_v37  ;;  %vm1399_vm11 = vcmp.eq.s32.totalorder %v5668_v21, %v5598_v38  ;;  %v5702_v44 = vadd.s32 56, %v8265_v37 }
 0x108   :  { %3880 = vmatprep.subr.msk.mxu0 %vm1403_vm13, %v8080_v33  ;;  %3941 = vmatpush1.msk.msra.mxu1 %vm1470_vm9, %v8080_v33  ;;  %vm1466_vm13 = vcmp.eq.s32.totalorder %v1301_v8, %v5604_v16  ;;  %vm8053_vm9 = vcmp.eq.s32.totalorder %v5668_v21, %v5604_v16  ;;  %vm1465_vm4 = vcmp.eq.s32.totalorder %v1300_v42, %v5598_v38  ;;  %v1298_v34 = vadd.s32 320, %v8265_v37 }
 0x109   :  { %3881 = vmatpush1.msk.msra.mxu0 %vm8051_vm1, %v8080_v33  ;;  %3942 = vmatprep.subr.msk.mxu1 %vm1469_vm10, %v8080_v33  ;;  %vm1397_vm10 = vcmp.eq.s32.totalorder %v5685_v1, %v5598_v38  ;;  %v5719_v7 = vadd.s32 48, %v8265_v37  ;;  %vm1463_vm1 = vcmp.eq.s32.totalorder %v1299_v25, %v5598_v38  ;;  %v1297_v36 = vadd.s32 312, %v8265_v37 }
 0x10a   :  { %3882 = vmatprep.subr.msk.mxu0 %vm1401_vm12, %v8080_v33  ;;  %3943 = vmatpush1.msk.msra.mxu1 %vm1468_vm14, %v8080_v33  ;;  %vm1464_vm12 = vcmp.eq.s32.totalorder %v1300_v42, %v5604_v16  ;;  %vm8054_vm14 = vcmp.eq.s32.totalorder %v5685_v1, %v5604_v16  ;;  %v5736_v3 = vadd.s32 40, %v8265_v37  ;;  %v1296_v15 = vadd.s32 304, %v8265_v37 }
 0x10b   :  { %3883 = vmatpush1.msk.msra.mxu0 %vm8052_vm5, %v8080_v33  ;;  %3944 = vmatprep.subr.msk.mxu1 %vm1467_vm8, %v8080_v33  ;;  %vm1395_vm8 = vcmp.eq.s32.totalorder %v5702_v44, %v5598_v38  ;;  %vm1461_vm5 = vcmp.eq.s32.totalorder %v1298_v34, %v5598_v38  ;;  %vm8287_vm7 = vcmask 1039360  }
 0x10c   :  { %3884 = vmatprep.subr.msk.mxu0 %vm1399_vm11, %v8080_v33  ;;  %3945 = vmatpush1.msk.msra.mxu1 %vm1466_vm13, %v8080_v33  ;;  %vm1462_vm11 = vcmp.eq.s32.totalorder %v1299_v25, %v5604_v16  ;;  %vm8055_vm13 = vcmp.eq.s32.totalorder %v5702_v44, %v5604_v16 }
 0x10d   :  { %3885 = vmatpush1.msk.msra.mxu0 %vm8053_vm9, %v8080_v33  ;;  %3946 = vmatprep.subr.msk.mxu1 %vm1465_vm4, %v8080_v33  ;;  %vm1393_vm4 = vcmp.eq.s32.totalorder %v5719_v7, %v5598_v38  ;;  %vm1459_vm9 = vcmp.eq.s32.totalorder %v1297_v36, %v5598_v38 }
 0x10e   :  { %3886 = vmatprep.subr.msk.mxu0 %vm1397_vm10, %v8080_v33  ;;  %3947 = vmatpush1.msk.msra.mxu1 %vm1464_vm12, %v8080_v33  ;;  %vm1460_vm10 = vcmp.eq.s32.totalorder %v1298_v34, %v5604_v16  ;;  %vm8056_vm12 = vcmp.eq.s32.totalorder %v5719_v7, %v5604_v16 }
 0x10f   :  { %3887 = vmatpush1.msk.msra.mxu0 %vm8054_vm14, %v8080_v33  ;;  %3948 = vmatprep.subr.msk.mxu1 %vm1463_vm1, %v8080_v33  ;;  %vm1391_vm1 = vcmp.eq.s32.totalorder %v5736_v3, %v5598_v38  ;;  %vm1457_vm14 = vcmp.eq.s32.totalorder %v1296_v15, %v5598_v38 }
 0x110   :  { %3888 = vmatprep.subr.msk.mxu0 %vm1395_vm8, %v8080_v33  ;;  %3949 = vmatpush1.msk.msra.mxu1 %vm1462_vm11, %v8080_v33  ;;  %vm1458_vm8 = vcmp.eq.s32.totalorder %v1297_v36, %v5604_v16  ;;  %vm8057_vm11 = vcmp.eq.s32.totalorder %v5736_v3, %v5604_v16 }
 0x111   :  { %3889 = vmatpush1.msk.msra.mxu0 %vm8055_vm13, %v8080_v33  ;;  %3950 = vmatprep.subr.msk.mxu1 %vm1461_vm5, %v8080_v33 }
 0x112   :  { %3890 = vmatprep.subr.msk.mxu0 %vm1393_vm4, %v8080_v33  ;;  %3951 = vmatpush1.msk.msra.mxu1 %vm1460_vm10, %v8080_v33  ;;  %vm1456_vm4 = vcmp.eq.s32.totalorder %v1296_v15, %v5604_v16 }
 0x113   :  { %3891 = vmatpush1.msk.msra.mxu0 %vm8056_vm12, %v8080_v33  ;;  %3952 = vmatprep.subr.msk.mxu1 %vm1459_vm9, %v8080_v33 }
 0x114   :  { %3892 = vmatprep.subr.msk.mxu0 %vm1391_vm1, %v8080_v33  ;;  %3953 = vmatpush1.msk.msra.mxu1 %vm1458_vm8, %v8080_v33 }
 0x115   :  { %3893 = vmatpush1.msk.msra.mxu0 %vm8057_vm11, %v8080_v33  ;;  %3954 = vmatprep.subr.msk.mxu1 %vm1457_vm14, %v8080_v33 }
 0x116   :  { %3955 = vmatpush1.msk.msra.mxu1 %vm1456_vm4, %v8080_v33 }
 0x11c   :  { %959 = vperm.xlu0 %4233, %v54_v43   ;;  %v5753_v43 = vadd.s32 32, %v8265_v37 }
 0x11e   :  { %vm1389_vm5 = vcmp.eq.s32.totalorder %v5753_v43, %v5598_v38  ;;  %vm8058_vm10 = vcmp.eq.s32.totalorder %v5753_v43, %v5604_v16 }
 0x11f   :  { %3894 = vmatprep.subr.msk.mxu0 %vm1389_vm5, %v8080_v33 }
 0x120   :  { %3895 = vmatpush1.msk.msra.mxu0 %vm8058_vm10, %v8080_v33 }
 0x173   :  { %v852_v18 = vpop.xlane.xlu1 %851 }
 0x174   :  { %v5580_v51 = vmul.f32 0.0010416667, %v852_v18  ;;  %v1295_v18 = vadd.s32 296, %v8265_v37 }
 0x175   :  { %v890_v59 = vpop.xlane.xlu0 %889 }
 0x176   :  { %v901_v28 = vmul.f32 0.0010416667, %v890_v59  ;;  %v903_v4 = vmul.f32 %v5580_v51, %v5580_v51  ;;  %v5770_v59 = vadd.s32 24, %v8265_v37  ;;  %vm1455_vm13 = vcmp.eq.s32.totalorder %v1295_v18, %v5598_v38 }
 0x177   :  { %vm1454_vm1 = vcmp.eq.s32.totalorder %v1295_v18, %v5604_v16  ;;  %3956 = vmatprep.subr.msk.mxu1 %vm1455_vm13, %v8080_v33 }
 0x178   :  { %v905_v63 = vsub.f32 %v901_v28, %v903_v4  ;;  %v1294_v28 = vadd.s32 288, %v8265_v37  ;;  %v5787_v4 = vadd.s32 16, %v8265_v37  ;;  %vm1387_vm9 = vcmp.eq.s32.totalorder %v5770_v59, %v5598_v38  ;;  %3957 = vmatpush1.msk.msra.mxu1 %vm1454_vm1, %v8080_v33 }
 0x179   :  { %vm8059_vm8 = vcmp.eq.s32.totalorder %v5770_v59, %v5604_v16  ;;  %3896 = vmatprep.subr.msk.mxu0 %vm1387_vm9, %v8080_v33 }
 0x17a   :  { %v907_v61 = vmax.f32 %v905_v63, 0.0  ;;  %v1293_v63 = vadd.s32 280, %v8265_v37  ;;  %vm1453_vm12 = vcmp.eq.s32.totalorder %v1294_v28, %v5598_v38  ;;  %vm1385_vm14 = vcmp.eq.s32.totalorder %v5787_v4, %v5598_v38  ;;  %3897 = vmatpush1.msk.msra.mxu0 %vm8059_vm8, %v8080_v33 }
 0x17b   :  { %vm1452_vm5 = vcmp.eq.s32.totalorder %v1294_v28, %v5604_v16  ;;  %vm8060_vm4 = vcmp.eq.s32.totalorder %v5787_v4, %v5604_v16  ;;  %3958 = vmatprep.subr.msk.mxu1 %vm1453_vm12, %v8080_v33  ;;  %3898 = vmatprep.subr.msk.mxu0 %vm1385_vm14, %v8080_v33  ;;  %vm1381_vm12 = vcmp.eq.s32.totalorder %v8265_v37, %v5598_v38 }
 0x17c   :  { %v909_v45 = vadd.f32 1e-05, %v907_v61  ;;  %v5804_v61 = vadd.s32 8, %v8265_v37  ;;  %vm1451_vm11 = vcmp.eq.s32.totalorder %v1293_v63, %v5598_v38  ;;  %vm1450_vm9 = vcmp.eq.s32.totalorder %v1293_v63, %v5604_v16  ;;  %3959 = vmatpush1.msk.msra.mxu1 %vm1452_vm5, %v8080_v33  ;;  %3899 = vmatpush1.msk.msra.mxu0 %vm8060_vm4, %v8080_v33 }
 0x17d   :  { %3960 = vmatprep.subr.msk.mxu1 %vm1451_vm11, %v8080_v33  ;;  %vm8062_vm5 = vcmp.eq.s32.totalorder %v8265_v37, %v5604_v16 }
 0x17e   :  { %4354 = vrsqrt.f32 %v909_v45  ;;  %v1292_v45 = vadd.s32 272, %v8265_v37  ;;  %vm1383_vm13 = vcmp.eq.s32.totalorder %v5804_v61, %v5598_v38  ;;  %vm8061_vm1 = vcmp.eq.s32.totalorder %v5804_v61, %v5604_v16  ;;  %3961 = vmatpush1.msk.msra.mxu1 %vm1450_vm9, %v8080_v33 }
 0x17f   :  { %3900 = vmatprep.subr.msk.mxu0 %vm1383_vm13, %v8080_v33 }
 0x180   :  { %vm1449_vm10 = vcmp.eq.s32.totalorder %v1292_v45, %v5598_v38  ;;  %vm1448_vm14 = vcmp.eq.s32.totalorder %v1292_v45, %v5604_v16  ;;  %3901 = vmatpush1.msk.msra.mxu0 %vm8061_vm1, %v8080_v33  ;;  %v5990_v45 = vadd.s32 200, %v8265_v37 }
 0x181   :  { %3962 = vmatprep.subr.msk.mxu1 %vm1449_vm10, %v8080_v33  ;;  %3902 = vmatprep.subr.msk.mxu0 %vm1381_vm12, %v8080_v33 }
 0x182   :  { %3963 = vmatpush1.msk.msra.mxu1 %vm1448_vm14, %v8080_v33  ;;  %3903 = vmatpush1.msk.msra.mxu0 %vm8062_vm5, %v8080_v33  ;;  %8270 = vst [vmem:[#allocation6_spill] sm:$0xff] %v5990_v45 }
 0x18b   :  { %v4355_v14 = vpop.eup %4354 }
 0x18c   :  { %v862_v62 = vpop.xlane.xlu1 %861  ;;  %v913_v20 = vmul.f32 %v4355_v14, %v52_v53  ;;  %v1291_v53 = vadd.s32 264, %v8265_v37  ;;  %v1289_v14 = vadd.s32 248, %v8265_v37 }
 0x18d   :  { %v5587_v27 = vmul.f32 0.0010416667, %v862_v62  ;;  %v1290_v62 = vadd.s32 256, %v8265_v37 }
 0x18e   :  { %933 = vperm.xlu1 %4232, %v913_v20   ;;  %v1288_v20 = vadd.s32 240, %v8265_v37  ;;  %vm1447_vm8 = vcmp.eq.s32.totalorder %v1291_v53, %v5598_v38  ;;  %vm1443_vm11 = vcmp.eq.s32.totalorder %v1289_v14, %v5598_v38  ;;  %vm1446_vm13 = vcmp.eq.s32.totalorder %v1291_v53, %v5604_v16 }
 0x18f   :  { %v900_v58 = vpop.xlane.xlu0 %899  ;;  %v904_v22 = vmul.f32 %v5587_v27, %v5587_v27  ;;  %vm1442_vm9 = vcmp.eq.s32.totalorder %v1289_v14, %v5604_v16  ;;  %vm1445_vm4 = vcmp.eq.s32.totalorder %v1290_v62, %v5598_v38  ;;  %3964 = vmatprep.subr.msk.mxu1 %vm1447_vm8, %v8080_v33  ;;  %vm1444_vm12 = vcmp.eq.s32.totalorder %v1290_v62, %v5604_v16 }
 0x190   :  { %v902_v10 = vmul.f32 0.0010416667, %v900_v58  ;;  %v1321_v58 = vadd.s32 504, %v8265_v37  ;;  %vm1441_vm10 = vcmp.eq.s32.totalorder %v1288_v20, %v5598_v38  ;;  %3904 = vmatprep.subr.msk.mxu0 %vm1443_vm11, %v8080_v33  ;;  %vm1440_vm14 = vcmp.eq.s32.totalorder %v1288_v20, %v5604_v16  ;;  %3965 = vmatpush1.msk.msra.mxu1 %vm1446_vm13, %v8080_v33 }
 0x191   :  { %3905 = vmatpush2.msk.msra.mxu0 %vm1442_vm9, %v8080_v33  ;;  %3966 = vmatprep.subr.msk.mxu1 %vm1445_vm4, %v8080_v33  ;;  %v1318_v53 = vadd.s32 480, %v8265_v37  ;;  %v5995_v14 = vadd.s32 192, %v8265_v37  ;;  %v1317_v62 = vadd.s32 472, %v8265_v37  ;;  %v6000_v20 = vadd.s32 184, %v8265_v37 }
 0x192   :  { %v906_v35 = vsub.f32 %v902_v10, %v904_v22  ;;  %964 = vperm.xlu1 %4232, %v55_v24   ;;  %v5864_v10 = vadd.s32 232, %v8265_v37  ;;  %v5878_v22 = vadd.s32 224, %v8265_v37  ;;  %vm1507_vm1 = vcmp.eq.s32.totalorder %v1321_v58, %v5598_v38  ;;  %3906 = vmatprep.subr.msk.mxu0 %vm1441_vm10, %v8080_v33 }
 0x193   :  { %3967 = vmatpush1.msk.msra.mxu1 %vm1444_vm12, %v8080_v33  ;;  %3907 = vmatpush2.msk.msra.mxu0 %vm1440_vm14, %v8080_v33  ;;  %v5910_v24 = vadd.s32 216, %v8265_v37  ;;  %vm1506_vm4 = vcmp.eq.s32.totalorder %v1321_v58, %v5604_v16  ;;  %8271 = vst [vmem:[#allocation7_spill] sm:$0xff] %v5995_v14  ;;  %8272 = vst [vmem:[#allocation8_spill] sm:$0xff] %v6000_v20  ;;  %v1316_v58 = vadd.s32 464, %v8265_v37 }
 0x194   :  { %v908_v13 = vmax.f32 %v906_v35, 0.0  ;;  %8267 = vst [vmem:[#allocation16_spill] sm:$0xff] %v5878_v22  ;;  %vm1439_vm5 = vcmp.eq.s32.totalorder %v5864_v10, %v5598_v38  ;;  %vm8093_vm8 = vcmp.eq.s32.totalorder %v5864_v10, %v5604_v16  ;;  %vm1437_vm11 = vcmp.eq.s32.totalorder %v5878_v22, %v5598_v38  ;;  %3968 = vmatprep.subr.msk.mxu1 %vm1507_vm1, %v8080_v33 }
 0x195   :  { %3908 = vmatprep.subr.msk.mxu0 %vm1439_vm5, %v8080_v33  ;;  %vm8066_vm13 = vcmp.eq.s32.totalorder %v5878_v22, %v5604_v16  ;;  %8268 = vst [vmem:[#allocation14_spill] sm:$0xff] %v5910_v24  ;;  %v1320_v35 = vadd.s32 496, %v8265_v37  ;;  %3969 = vmatpush2.msk.msra.mxu1 %vm1506_vm4, %v8080_v33  ;;  %vm1435_vm1 = vcmp.eq.s32.totalorder %v5910_v24, %v5598_v38 }
 0x196   :  { %v910_v17 = vadd.f32 1e-05, %v908_v13  ;;  %3909 = vmatpush2.msk.msra.mxu0 %vm8093_vm8, %v8080_v33  ;;  %v5915_v13 = vadd.s32 208, %v8265_v37  ;;  %vm8064_vm5 = vcmp.eq.s32.totalorder %v5910_v24, %v5604_v16 }
 0x197   :  { %3910 = vmatprep.subr.msk.mxu0 %vm1437_vm11, %v8080_v33  ;;  %vm1505_vm9 = vcmp.eq.s32.totalorder %v1320_v35, %v5598_v38  ;;  %vm1504_vm12 = vcmp.eq.s32.totalorder %v1320_v35, %v5604_v16  ;;  %v6004_v35 = vadd.s32 176, %v8265_v37 }
 0x198   :  { %4356 = vrsqrt.f32 %v910_v17  ;;  %3911 = vmatpush2.msk.msra.mxu0 %vm8066_vm13, %v8080_v33  ;;  %8269 = vst [vmem:[#allocation15_spill] sm:$0xff] %v5915_v13  ;;  %v916_v17 = vsub.f32 %v5238_v41, %v5580_v51  ;;  %vm1433_vm10 = vcmp.eq.s32.totalorder %v5915_v13, %v5598_v38  ;;  %v918_v41 = vsub.f32 %v5411_v29, %v5580_v51 }
 0x199   :  { %3912 = vmatprep.subr.msk.mxu0 %vm1435_vm1, %v8080_v33  ;;  %3970 = vmatprep.subr.msk.mxu1 %vm1505_vm9, %v8080_v33  ;;  %vm8063_vm14 = vcmp.eq.s32.totalorder %v5915_v13, %v5604_v16  ;;  %8273 = vst [vmem:[#allocation9_spill] sm:$0xff] %v6004_v35  ;;  %vm1431_vm1 = vcmp.eq.s32.totalorder %v5990_v45, %v5598_v38  ;;  %v6477_v13 = vadd.s32 568, %v8265_v37 }
 0x19a   :  { %3913 = vmatpush2.msk.msra.mxu0 %vm8064_vm5, %v8080_v33  ;;  %3971 = vmatpush2.msk.msra.mxu1 %vm1504_vm12, %v8080_v33  ;;  %vm8065_vm9 = vcmp.eq.s32.totalorder %v5990_v45, %v5604_v16  ;;  %vm1429_vm12 = vcmp.eq.s32.totalorder %v5995_v14, %v5598_v38  ;;  %vm8067_vm5 = vcmp.eq.s32.totalorder %v6000_v20, %v5604_v16 }
 0x19b   :  { %3914 = vmatprep.subr.msk.mxu0 %vm1433_vm10, %v8080_v33  ;;  %vm1501_vm10 = vcmp.eq.s32.totalorder %v1318_v53, %v5598_v38  ;;  %vm1425_vm13 = vcmp.eq.s32.totalorder %v6004_v35, %v5598_v38 }
 0x19c   :  { %3915 = vmatpush2.msk.msra.mxu0 %vm8063_vm14, %v8080_v33  ;;  %vm1499_vm14 = vcmp.eq.s32.totalorder %v1317_v62, %v5598_v38 }
 0x19d   :  { %3916 = vmatprep.subr.msk.mxu0 %vm1431_vm1, %v8080_v33  ;;  %vm1427_vm1 = vcmp.eq.s32.totalorder %v6000_v20, %v5598_v38 }
 0x19e   :  { %3917 = vmatpush2.msk.msra.mxu0 %vm8065_vm9, %v8080_v33  ;;  %vm1497_vm9 = vcmp.eq.s32.totalorder %v1316_v58, %v5598_v38 }
 0x19f   :  { %3918 = vmatprep.subr.msk.mxu0 %vm1429_vm12, %v8080_v33  ;;  %vm1496_vm12 = vcmp.eq.s32.totalorder %v1316_v58, %v5604_v16 }
 0x1a5   :  { %v4357_v54 = vpop.eup %4356 }
 0x1a6   :  { %v914_v55 = vmul.f32 %v4357_v54, %v53_v48  ;;  %v917_v48 = vsub.f32 %v5378_v30, %v5580_v51  ;;  %v915_v54 = vsub.f32 %v5236_v2, %v5580_v51  ;;  %v5941_v30 = vpop.permute.xlu0 %959 }
 0x1a8   :  { %938 = vperm.xlu1 %4232, %v914_v55   ;;  %v1319_v55 = vadd.s32 488, %v8265_v37 }
 0x1aa   :  { %vm1503_vm11 = vcmp.eq.s32.totalorder %v1319_v55, %v5598_v38  ;;  %vm1502_vm4 = vcmp.eq.s32.totalorder %v1319_v55, %v5604_v16  ;;  %v919_v55 = vsub.f32 %v5460_v31, %v5580_v51  ;;  %v1313_v31 = vadd.s32 440, %v8265_v37 }
 0x1ab   :  { %3972 = vmatprep.subr.msk.mxu1 %vm1503_vm11, %v8080_v33  ;;  %vm1500_vm11 = vcmp.eq.s32.totalorder %v1318_v53, %v5604_v16 }
 0x1ac   :  { %3973 = vmatpush2.msk.msra.mxu1 %vm1502_vm4, %v8080_v33  ;;  %vm8092_vm4 = vcmp.eq.s32.totalorder %v5995_v14, %v5604_v16 }
 0x1ad   :  { %3974 = vmatprep.subr.msk.mxu1 %vm1501_vm10, %v8080_v33  ;;  %vm1498_vm10 = vcmp.eq.s32.totalorder %v1317_v62, %v5604_v16  ;;  %3919 = vmatpush2.msk.msra.mxu0 %vm8092_vm4, %v8080_v33  ;;  %v6080_v62 = vadd.s32 152, %v8265_v37 }
 0x1ae   :  { %3975 = vmatpush2.msk.msra.mxu1 %vm1500_vm11, %v8080_v33  ;;  %3920 = vmatprep.subr.msk.mxu0 %vm1427_vm1, %v8080_v33  ;;  %vm8068_vm11 = vcmp.eq.s32.totalorder %v6004_v35, %v5604_v16 }
 0x1af   :  { %3976 = vmatprep.subr.msk.mxu1 %vm1499_vm14, %v8080_v33  ;;  %3921 = vmatpush2.msk.msra.mxu0 %vm8067_vm5, %v8080_v33 }
 0x1b0   :  { %3977 = vmatpush2.msk.msra.mxu1 %vm1498_vm10, %v8080_v33  ;;  %3922 = vmatprep.subr.msk.mxu0 %vm1425_vm13, %v8080_v33 }
 0x1b1   :  { %3978 = vmatprep.subr.msk.mxu1 %vm1497_vm9, %v8080_v33  ;;  %3923 = vmatpush2.msk.msra.mxu0 %vm8068_vm11, %v8080_v33 }
 0x1b2   :  { %3979 = vmatpush2.msk.msra.mxu1 %vm1496_vm12, %v8080_v33 }
 0x209   :  { %v5939_v2 = vpop.permute.xlu1 %933 }
 0x20a   :  { %v942_v29 = vmul.f32 %v5939_v2, %v916_v17  ;;  %v943_v50 = vmul.f32 %v5939_v2, %v917_v48  ;;  %v941_v0 = vmul.f32 %v5939_v2, %v915_v54  ;;  %v944_v52 = vmul.f32 %v5939_v2, %v918_v41 }
 0x20b   :  { %v1315_v17 = vadd.s32 456, %v8265_v37  ;;  %v6030_v48 = vadd.s32 168, %v8265_v37  ;;  %v1314_v54 = vadd.s32 448, %v8265_v37  ;;  %v6053_v41 = vadd.s32 160, %v8265_v37 }
 0x20c   :  { %v5959_v56 = vadd.f32 %v5941_v30, %v942_v29  ;;  %v5962_v8 = vadd.f32 %v5941_v30, %v943_v50  ;;  %v5965_v42 = vadd.f32 %v5941_v30, %v941_v0  ;;  %v5968_v25 = vadd.f32 %v5941_v30, %v944_v52  ;;  %v8276_v29 = vld [vmem:[#allocation18_spill] sm:$0xff]  ;;  %v8277_v52 = vld [vmem:[#allocation20_spill] sm:$0xff] }
 0x20d   :  { %8274 = vst [vmem:[#allocation19_spill] sm:$0xff] %v6030_v48  ;;  %8275 = vst [vmem:[#allocation5_spill] sm:$0xff] %v6053_v41  ;;  %v920_v50 = vsub.f32 %v8276_v29, %v5580_v51  ;;  %vm1495_vm14 = vcmp.eq.s32.totalorder %v1315_v17, %v5598_v38  ;;  %vm1423_vm1 = vcmp.eq.s32.totalorder %v6030_v48, %v5598_v38  ;;  %v6097_v58 = vpop.permute.xlu1 %964 }
 0x20e   :  { %v8072_v34 = vmax.f32 %v5959_v56, 0.0  ;;  %v8069_v36 = vmax.f32 %v5962_v8, 0.0  ;;  %v8071_v15 = vmax.f32 %v5965_v42, 0.0  ;;  %v8070_v18 = vmax.f32 %v5968_v25, 0.0  ;;  %8278 = vst [vmem:[#allocation18_spill] sm:$0xff] %v6080_v62  ;;  %3980 = vmatprep.subr.msk.mxu1 %vm1495_vm14, %v8080_v33  ;;  %3924 = vmatprep.subr.msk.mxu0 %vm1423_vm1, %v8080_v33 }
 0x20f   :  { %v924_v0 = vsub.f32 %v5533_v23, %v5587_v27  ;;  %v921_v53 = vsub.f32 %v8277_v52, %v5580_v51  ;;  %vm1494_vm10 = vcmp.eq.s32.totalorder %v1315_v17, %v5604_v16  ;;  %vm8076_vm9 = vcmp.eq.s32.totalorder %v6030_v48, %v5604_v16 }
 0x210   :  { %v5979_v28 = vpack.i.bf16 %v8069_v36, %v8072_v34  ;;  %v5985_v63 = vpack.i.bf16 %v8070_v18, %v8071_v15  ;;  %vm1493_vm5 = vcmp.eq.s32.totalorder %v1314_v54, %v5598_v38  ;;  %v926_v23 = vsub.f32 %v5540_v60, %v5587_v27  ;;  %3981 = vmatpush2.msk.msra.mxu1 %vm1494_vm10, %v8080_v33 }
 0x211   :  { %vm1421_vm13 = vcmp.eq.s32.totalorder %v6053_v41, %v5598_v38  ;;  %vm1492_vm12 = vcmp.eq.s32.totalorder %v1314_v54, %v5604_v16  ;;  %v945_v17 = vmul.f32 %v5939_v2, %v919_v55  ;;  %vm8074_vm11 = vcmp.eq.s32.totalorder %v6053_v41, %v5604_v16  ;;  %3925 = vmatpush2.msk.msra.mxu0 %vm8076_vm9, %v8080_v33 }
 0x212   :  { %4235 = vrot.lane.b32.xlu1 %v5979_v28, %s4414_s0  ;;  %vm1491_vm14 = vcmp.eq.s32.totalorder %v1313_v31, %v5598_v38  ;;  %v1312_v60 = vadd.s32 432, %v8265_v37  ;;  %v927_v29 = vsub.f32 %v5547_v39, %v5587_v27  ;;  %v923_v52 = vsub.f32 %v5530_v40, %v5587_v27  ;;  %3982 = vmatprep.subr.msk.mxu1 %vm1493_vm5, %v8080_v33 }
 0x213   :  { %vm1419_vm1 = vcmp.eq.s32.totalorder %v6080_v62, %v5598_v38  ;;  %v6121_v55 = vadd.s32 144, %v8265_v37  ;;  %v925_v39 = vsub.f32 %v5535_v19, %v5587_v27  ;;  %3926 = vmatprep.subr.msk.mxu0 %vm1421_vm13, %v8080_v33  ;;  %3983 = vmatpush2.msk.msra.mxu1 %vm1492_vm12, %v8080_v33  ;;  %vm1490_vm5 = vcmp.eq.s32.totalorder %v1313_v31, %v5604_v16 }
 0x214   :  { %v946_v40 = vmul.f32 %v5939_v2, %v920_v50  ;;  %v947_v36 = vmul.f32 %v5939_v2, %v921_v53  ;;  %3927 = vmatpush2.msk.msra.mxu0 %vm8074_vm11, %v8080_v33  ;;  %3984 = vmatprep.subr.msk.mxu1 %vm1491_vm14, %v8080_v33  ;;  %vm8073_vm10 = vcmp.eq.s32.totalorder %v6080_v62, %v5604_v16  ;;  %v1311_v19 = vadd.s32 424, %v8265_v37 }
 0x215   :  { %8279 = vst [vmem:[#allocation20_spill] sm:$0xff] %v6121_v55  ;;  %v971_v50 = vadd.f32 %v5941_v30, %v945_v17  ;;  %3928 = vmatprep.subr.msk.mxu0 %vm1419_vm1, %v8080_v33  ;;  %vm1489_vm13 = vcmp.eq.s32.totalorder %v1312_v60, %v5598_v38  ;;  %v6154_v53 = vadd.s32 136, %v8265_v37  ;;  %3985 = vmatpush2.msk.msra.mxu1 %vm1490_vm5, %v8080_v33  ;;  %v1336_v41 = vadd.s32 624, %v8265_v37 }
 0x216   :  { %4240 = vrot.lane.b32.xlu1 %v5985_v63, %s4414_s0  ;;  %vm1417_vm12 = vcmp.eq.s32.totalorder %v6121_v55, %v5598_v38  ;;  %vm1488_vm14 = vcmp.eq.s32.totalorder %v1312_v60, %v5604_v16  ;;  %3929 = vmatpush2.msk.msra.mxu0 %vm8073_vm10, %v8080_v33  ;;  %vm8075_vm1 = vcmp.eq.s32.totalorder %v6121_v55, %v5604_v16  ;;  %v6210_v60 = vadd.s32 632, %v8265_v37 }
 0x217   :  { %8280 = vst [vmem:[#allocation21_spill] sm:$0xff] %v6154_v53  ;;  %3986 = vmatprep.subr.msk.mxu1 %vm1489_vm13, %v8080_v33  ;;  %vm1487_vm5 = vcmp.eq.s32.totalorder %v1311_v19, %v5598_v38  ;;  %vm1415_vm10 = vcmp.eq.s32.totalorder %v6154_v53, %v5598_v38  ;;  %3930 = vmatprep.subr.msk.mxu0 %vm1417_vm12, %v8080_v33  ;;  %v1335_v48 = vadd.s32 616, %v8265_v37 }
 0x218   :  { %3987 = vmatpush2.msk.msra.mxu1 %vm1488_vm14, %v8080_v33  ;;  %vm1486_vm13 = vcmp.eq.s32.totalorder %v1311_v19, %v5604_v16  ;;  %vm8091_vm11 = vcmp.eq.s32.totalorder %v6154_v53, %v5604_v16  ;;  %3931 = vmatpush2.msk.msra.mxu0 %vm8075_vm1, %v8080_v33 }
 0x219   :  { %3988 = vmatprep.subr.msk.mxu1 %vm1487_vm5, %v8080_v33  ;;  %3932 = vmatprep.subr.msk.mxu0 %vm1415_vm10, %v8080_v33 }
 0x21a   :  { %4245 = vrot.lane.b32.xlu1 %v5979_v28, %s4415_s25  ;;  %3989 = vmatpush2.msk.msra.mxu1 %vm1486_vm13, %v8080_v33  ;;  %vm1539_vm13 = vcmp.eq.s32.totalorder %v6210_v60, %v5598_v38 }
 0x21b   :  { %3933 = vmatpush2.msk.msra.mxu0 %vm8091_vm11, %v8080_v33 }
 0x21e   :  { %4250 = vrot.lane.b32.xlu1 %v5985_v63, %s4415_s25 }
 0x222   :  { %4255 = vrot.lane.b32.xlu1 %v5979_v28, %s4417_s2 }
 0x223   :  { %v6143_v54 = vpop.permute.xlu1 %938 }
 0x224   :  { %v950_v18 = vmul.f32 %v6143_v54, %v924_v0  ;;  %v949_v15 = vmul.f32 %v6143_v54, %v923_v52  ;;  %v952_v28 = vmul.f32 %v6143_v54, %v926_v23  ;;  %v953_v17 = vmul.f32 %v6143_v54, %v927_v29 }
 0x225   :  { %v951_v34 = vmul.f32 %v6143_v54, %v925_v39  ;;  %v1310_v0 = vadd.s32 416, %v8265_v37  ;;  %v6180_v23 = vmax.f32 %v971_v50, 0.0 }
 0x226   :  { %v976_v31 = vadd.f32 %v6097_v58, %v950_v18  ;;  %v975_v52 = vadd.f32 %v6097_v58, %v949_v15  ;;  %4260 = vrot.lane.b32.xlu1 %v5985_v63, %s4417_s2  ;;  %v6186_v18 = vadd.s32 128, %v8265_v37  ;;  %v978_v63 = vadd.f32 %v6097_v58, %v952_v28 }
 0x227   :  { %v977_v29 = vadd.f32 %v6097_v58, %v951_v34  ;;  %v1309_v34 = vadd.s32 408, %v8265_v37  ;;  %v979_v39 = vadd.f32 %v6097_v58, %v953_v17  ;;  %vm1485_vm12 = vcmp.eq.s32.totalorder %v1310_v0, %v5598_v38 }
 0x228   :  { %8281 = vst [vmem:[#allocation22_spill] sm:$0xff] %v6186_v18  ;;  %v6188_v15 = vmax.f32 %v976_v31, 0.0  ;;  %v6214_v50 = vmax.f32 %v975_v52, 0.0  ;;  %vm1413_vm14 = vcmp.eq.s32.totalorder %v6186_v18, %v5598_v38  ;;  %vm1484_vm5 = vcmp.eq.s32.totalorder %v1310_v0, %v5604_v16  ;;  %3990 = vmatprep.subr.msk.mxu1 %vm1485_vm12, %v8080_v33 }
 0x229   :  { %v6216_v28 = vmax.f32 %v977_v29, 0.0  ;;  %v1308_v17 = vadd.s32 400, %v8265_v37  ;;  %vm8090_vm1 = vcmp.eq.s32.totalorder %v6186_v18, %v5604_v16  ;;  %vm1483_vm9 = vcmp.eq.s32.totalorder %v1309_v34, %v5598_v38  ;;  %3934 = vmatprep.subr.msk.mxu0 %vm1413_vm14, %v8080_v33  ;;  %3991 = vmatpush2.msk.msra.mxu1 %vm1484_vm5, %v8080_v33 }
 0x22a   :  { %v4264_v19 = vpack.i.bf16 %v6188_v15, %v6180_v23  ;;  %v6232_v31 = vmax.f32 %v978_v63, 0.0  ;;  %v972_v52 = vadd.f32 %v5941_v30, %v946_v40  ;;  %v973_v29 = vadd.f32 %v5941_v30, %v947_v36  ;;  %3935 = vmatpush2.msk.msra.mxu0 %vm8090_vm1, %v8080_v33  ;;  %3992 = vmatprep.subr.msk.mxu1 %vm1483_vm9, %v8080_v33 }
 0x22b   :  { %vm1482_vm10 = vcmp.eq.s32.totalorder %v1309_v34, %v5604_v16  ;;  %v4274_v63 = vpack.i.bf16 %v6214_v50, %v6216_v28  ;;  %v1307_v36 = vadd.s32 392, %v8265_v37  ;;  %vm1481_vm12 = vcmp.eq.s32.totalorder %v1308_v17, %v5598_v38  ;;  %4000 = vmatprep.subr.msk.mxu0 %vm1539_vm13, %v8080_v33 }
 0x22c   :  { %4265 = vrot.lane.b32.xlu0 %v4264_v19, %s4414_s0  ;;  %4270 = vrot.lane.b32.xlu1 %v4264_v19, %s4415_s25  ;;  %v6244_v19 = vmax.f32 %v979_v39, 0.0  ;;  %vm1480_vm14 = vcmp.eq.s32.totalorder %v1308_v17, %v5604_v16  ;;  %v1306_v40 = vadd.s32 384, %v8265_v37  ;;  %v6264_v0 = vmax.f32 %v972_v52, 0.0  ;;  %v8282_v17 = vld [vmem:[#allocation17_spill] sm:$0xff] }
 0x22d   :  { %v6266_v39 = vmax.f32 %v973_v29, 0.0  ;;  %3993 = vmatpush2.msk.msra.mxu1 %vm1482_vm10, %v8080_v33  ;;  %vm1479_vm9 = vcmp.eq.s32.totalorder %v1307_v36, %v5598_v38  ;;  %v922_v32 = vsub.f32 %v8282_v17, %v5580_v51  ;;  %vm1478_vm5 = vcmp.eq.s32.totalorder %v1307_v36, %v5604_v16 }
 0x22e   :  { %v4279_v6 = vpack.i.bf16 %v6244_v19, %v6232_v31  ;;  %3994 = vmatprep.subr.msk.mxu1 %vm1481_vm12, %v8080_v33  ;;  %v6281_v52 = vadd.s32 888, %v8265_v37  ;;  %v928_v34 = vsub.f32 %v5554_v12, %v5587_v27  ;;  %v929_v29 = vsub.f32 %v5561_v46, %v5587_v27 }
 0x22f   :  { %3995 = vmatpush2.msk.msra.mxu1 %vm1480_vm14, %v8080_v33  ;;  %vm1477_vm10 = vcmp.eq.s32.totalorder %v1306_v40, %v5598_v38  ;;  %v4289_v51 = vpack.i.bf16 %v6266_v39, %v6264_v0  ;;  %v948_v36 = vmul.f32 %v5939_v2, %v922_v32  ;;  %vm1476_vm13 = vcmp.eq.s32.totalorder %v1306_v40, %v5604_v16 }
 0x230   :  { %1183 = vrot.lane.b32.xlu0 %v6180_v23, %s4417_s2  ;;  %4275 = vrot.lane.b32.xlu1 %v4274_v63, %s4414_s0  ;;  %v954_v17 = vmul.f32 %v6143_v54, %v928_v34  ;;  %v955_v18 = vmul.f32 %v6143_v54, %v929_v29  ;;  %vm1603_vm12 = vcmp.eq.s32.totalorder %v6281_v52, %v5598_v38  ;;  %vm8283_vm14 = vcmask 1039360  }
 0x231   :  { %3996 = vmatprep.subr.msk.mxu1 %vm1479_vm9, %v8080_v33  ;;  %v974_v12 = vadd.f32 %v5941_v30, %v948_v36  ;;  %v4299_v46 = vpack.i.bf16 %v6216_v28, %v6188_v15  ;;  %v4304_v32 = vpack.i.bf16 %v6232_v31, %v6214_v50  ;;  %v4314_v34 = vpack.i.bf16 %v6264_v0, %v6244_v19 }
 0x232   :  { %3997 = vmatpush2.msk.msra.mxu1 %vm1478_vm5, %v8080_v33  ;;  %v6310_v2 = vadd.f32 %v6097_v58, %v954_v17  ;;  %vm8106_vm9 = vcmask 1022976   ;;  %vm8285_vm5 = vmmov %vm8283_vm14  ;;  %vm1602_vm8 = vcmp.eq.s32.totalorder %v6281_v52, %v5604_v16 }
 0x233   :  { %3998 = vmatprep.subr.msk.mxu1 %vm1477_vm10, %v8080_v33  ;;  %vm1538_vm10 = vcmp.eq.s32.totalorder %v6210_v60, %v5604_v16 }
 0x234   :  { %4280 = vrot.lane.b32.xlu0 %v4279_v6, %s4414_s0  ;;  %4285 = vrot.lane.b32.xlu1 %v4274_v63, %s4415_s25  ;;  %v6313_v63 = vadd.f32 %v6097_v58, %v955_v18  ;;  %v8078_v30 = vmax.f32 %v6310_v2, 0.0  ;;  %v930_v18 = vsub.f32 %v5559_v47, %v5587_v27 }
 0x235   :  { %3999 = vmatpush2.msk.msra.mxu1 %vm1476_vm13, %v8080_v33  ;;  %vm1537_vm13 = vcmp.eq.s32.totalorder %v1336_v41, %v5598_v38 }
 0x236   :  { %4064 = vmatprep.subr.msk.mxu1 %vm1603_vm12, %v8080_v33  ;;  %v8079_v40 = vmax.f32 %v6313_v63, 0.0  ;;  %v956_v36 = vmul.f32 %v6143_v54, %v930_v18  ;;  %vm1536_vm12 = vcmp.eq.s32.totalorder %v1336_v41, %v5604_v16 }
 0x238   :  { %4290 = vrot.lane.b32.xlu0 %v4289_v51, %s4414_s0  ;;  %4295 = vrot.lane.b32.xlu1 %v4279_v6, %s4415_s25  ;;  %v6318_v6 = vmax.f32 %v974_v12, 0.0  ;;  %v4319_v29 = vpack.i.bf16 %v8079_v40, %v8078_v30  ;;  %v982_v17 = vadd.f32 %v6097_v58, %v956_v36 }
 0x23a   :  { %v6341_v47 = vmax.f32 %v982_v17, 0.0 }
 0x23c   :  { %4300 = vrot.lane.b32.xlu0 %v4299_v46, %s4417_s2  ;;  %4305 = vrot.lane.b32.xlu1 %v4304_v32, %s4417_s2 }
 0x240   :  { %1029 = vrot.lane.b32.xlu0 %v6318_v6, %s4414_s0  ;;  %4310 = vrot.lane.b32.xlu1 %v4289_v51, %s4415_s25 }
 0x244   :  { %4315 = vrot.lane.b32.xlu0 %v4314_v34, %s4417_s2  ;;  %4320 = vrot.lane.b32.xlu1 %v4319_v29, %s4414_s0 }
 0x248   :  { %1109 = vrot.lane.b32.xlu0 %v6318_v6, %s4415_s25  ;;  %1187 = vrot.lane.b32.xlu1 %v6266_v39, %s4417_s2 }
 0x24c   :  { %1045 = vrot.lane.b32.xlu0 %v6341_v47, %s4414_s0  ;;  %4325 = vrot.lane.b32.xlu1 %v4319_v29, %s4415_s25 }
 0x250   :  { %1189 = vrot.lane.b32.xlu0 %v6318_v6, %s4417_s2  ;;  %1125 = vrot.lane.b32.xlu1 %v6341_v47, %s4415_s25 }
 0x254   :  { %4330 = vrot.lane.b32.xlu0 %v4319_v29, %s4417_s2  ;;  %1205 = vrot.lane.b32.xlu1 %v6341_v47, %s4417_s2 }
 0x284   :  { %v4236_v27 = vpop.permute.xlu1 %4235 }
 0x285   :  { %v4238_v51 = vunpack.i.h.bf16 %v4236_v27  ;;  %v4237_v12 = vunpack.i.l.bf16 %v4236_v27  ;;  %v8284_v27 = vmax.f32 %v5959_v56, 0.0 }
 0x287   :  { %v1048_v29 = vsel %vm8283_vm14, %v4237_v12, %v4238_v51  ;;  %vm1535_vm14 = vcmp.eq.s32.totalorder %v1335_v48, %v5598_v38 }
 0x288   :  { %v6353_v58 = vpop.permute.xlu1 %4240  ;;  %v1080_v40 = vmax.f32 %v8284_v27, %v1048_v29  ;;  %v6385_v27 = vadd.s32 608, %v8265_v37 }
 0x289   :  { %v4242_v34 = vunpack.i.l.bf16 %v6353_v58 }
 0x28a   :  { %vm1533_vm1 = vcmp.eq.s32.totalorder %v6385_v27, %v5598_v38  ;;  %vm1532_vm11 = vcmp.eq.s32.totalorder %v6385_v27, %v5604_v16  ;;  %v6551_v27 = vadd.s32 832, %v8265_v37 }
 0x28b   :  { %v1047_v33 = vsel %vm8285_vm5, %v4242_v34, %v4237_v12  ;;  %v8286_v12 = vmax.f32 %v5965_v42, 0.0  ;;  %vm1534_vm5 = vcmp.eq.s32.totalorder %v1335_v48, %v5604_v16 }
 0x28c   :  { %v6355_v54 = vpop.permute.xlu1 %4245 }
 0x28d   :  { %v8087_v46 = vunpack.i.h.bf16 %v6355_v54  ;;  %v4247_v32 = vunpack.i.l.bf16 %v6355_v54  ;;  %v1079_v34 = vmax.f32 %v8286_v12, %v1047_v33  ;;  %v4243_v33 = vunpack.i.h.bf16 %v6353_v58 }
 0x28f   :  { %v1128_v17 = vsel %vm8105_vm2, %v4247_v32, %v8087_v46 }
 0x290   :  { %v6359_v18 = vpop.permute.xlu1 %4250  ;;  %v1160_v62 = vmax.f32 %v1080_v40, %v1128_v17  ;;  %v6391_v17 = vadd.s32 600, %v8265_v37 }
 0x291   :  { %v4252_v36 = vunpack.i.l.bf16 %v6359_v18 }
 0x292   :  { %vm1531_vm4 = vcmp.eq.s32.totalorder %v6391_v17, %v5598_v38  ;;  %vm1530_vm15 = vcmp.eq.s32.totalorder %v6391_v17, %v5604_v16 }
 0x293   :  { %v1127_v35 = vsel %vm8105_vm2, %v4252_v36, %v4247_v32  ;;  %v6417_v36 = vadd.s32 872, %v8265_v37 }
 0x294   :  { %v6367_v30 = vpop.permute.xlu1 %4255 }
 0x295   :  { %v8089_v53 = vunpack.i.h.bf16 %v6367_v30  ;;  %v4257_v55 = vunpack.i.l.bf16 %v6367_v30 }
 0x297   :  { %v1209_v46 = vsel %vm8106_vm9, %v4257_v55, %v8089_v53  ;;  %v1159_v53 = vmax.f32 %v1079_v34, %v1127_v35  ;;  %v4253_v35 = vunpack.i.h.bf16 %v6359_v18  ;;  %v6429_v18 = vadd.s32 576, %v8265_v37 }
 0x298   :  { %v6380_v56 = vpop.permute.xlu1 %4260  ;;  %v1242_v29 = vmax.f32 %v1160_v62, %v1209_v46  ;;  %v6399_v62 = vadd.s32 880, %v8265_v37  ;;  %v6402_v46 = vadd.s32 592, %v8265_v37  ;;  %v1049_v34 = vsel %vm8287_vm7, %v4238_v51, %v4243_v33 }
 0x299   :  { %v4262_v40 = vunpack.i.l.bf16 %v6380_v56 }
 0x29a   :  { %2170 = vmatprep.mubr.f32.mxu0 %v1242_v29  ;;  %vm1601_vm3 = vcmp.eq.s32.totalorder %v6399_v62, %v5598_v38  ;;  %vm1529_vm0 = vcmp.eq.s32.totalorder %v6402_v46, %v5598_v38  ;;  %vm1528_vm6 = vcmp.eq.s32.totalorder %v6402_v46, %v5604_v16 }
 0x29b   :  { %v1208_v42 = vsel %vm8106_vm9, %v4262_v40, %v4257_v55  ;;  %v4263_v40 = vunpack.i.h.bf16 %v6380_v56  ;;  %v6458_v56 = vadd.s32 856, %v8265_v37 }
 0x29c   :  { %v1241_v32 = vmax.f32 %v1159_v53, %v1208_v42  ;;  %v6420_v53 = vadd.s32 584, %v8265_v37  ;;  %v8288_v42 = vmov 1.0  }
 0x29e   :  { %v6410_v58 = vpop.permute.xlu0 %4265  ;;  %v6412_v55 = vpop.permute.xlu1 %4270  ;;  %2171 = vmatmul.mubr.f32.vlgmr.msra.gmra.mxu0 %v1241_v32  ;;  %v6442_v32 = vadd.s32 864, %v8265_v37 }
 0x29f   :  { %v8102_v29 = vunpack.i.l.bf16 %v6410_v58  ;;  %v8101_v12 = vunpack.i.l.bf16 %v6412_v55  ;;  %4001 = vmatpush1.msk.msra.mxu0 %vm1538_vm10, %v8288_v42  ;;  %vm1600_vm10 = vcmp.eq.s32.totalorder %v6399_v62, %v5604_v16  ;;  %v4273_v52 = vunpack.i.h.bf16 %v6412_v55 }
 0x2a0   :  { %4002 = vmatprep.subr.msk.mxu0 %vm1537_vm13, %v8288_v42  ;;  %vm1525_vm13 = vcmp.eq.s32.totalorder %v6429_v18, %v5598_v38 }
 0x2a1   :  { %v1050_v51 = vsel %vm8287_vm7, %v4243_v33, %v8102_v29  ;;  %v1130_v60 = vsel %vm8105_vm2, %v4253_v35, %v8101_v12  ;;  %4003 = vmatpush1.msk.msra.mxu0 %vm1536_vm12, %v8288_v42  ;;  %v8289_v33 = vmax.f32 %v5968_v25, 0.0  ;;  %v8290_v29 = vunpack.i.h.bf16 %v6355_v54 }
 0x2a2   :  { %v6460_v20 = vpop.permute.xlu0 %1183  ;;  %v6462_v14 = vpop.permute.xlu1 %4275  ;;  %vm1527_vm7 = vcmp.eq.s32.totalorder %v6420_v53, %v5598_v38  ;;  %4004 = vmatprep.subr.msk.mxu0 %vm1535_vm14, %v8288_v42  ;;  %v8291_v25 = vmax.f32 %v5962_v8, 0.0  ;;  %vm1598_vm12 = vcmp.eq.s32.totalorder %v6417_v36, %v5604_v16  ;;  %v6499_v8 = vadd.s32 848, %v8265_v37 }
 0x2a3   :  { %v1082_v12 = vmax.f32 %v8289_v33, %v1050_v51  ;;  %v1129_v45 = vsel %vm8105_vm2, %v8290_v29, %v4253_v35  ;;  %vm1526_vm2 = vcmp.eq.s32.totalorder %v6420_v53, %v5604_v16  ;;  %4005 = vmatpush1.msk.msra.mxu0 %vm1534_vm5, %v8288_v42  ;;  %v8292_v35 = vunpack.i.h.bf16 %v6367_v30 }
 0x2a4   :  { %v1081_v41 = vmax.f32 %v8291_v25, %v1049_v34  ;;  %v6502_v34 = vadd.s32 560, %v8265_v37  ;;  %4006 = vmatprep.subr.msk.mxu0 %vm1533_vm1, %v8288_v42  ;;  %v1211_v48 = vsel %vm8106_vm9, %v4263_v40, %v6460_v20  ;;  %vm1524_vm14 = vcmp.eq.s32.totalorder %v6429_v18, %v5604_v16 }
 0x2a5   :  { %v1162_v54 = vmax.f32 %v1082_v12, %v1130_v60  ;;  %v1210_v29 = vsel %vm8106_vm9, %v8292_v35, %v4263_v40  ;;  %4007 = vmatpush1.msk.msra.mxu0 %vm1532_vm11, %v8288_v42  ;;  %v6530_v40 = vadd.s32 552, %v8265_v37  ;;  %v4278_v33 = vunpack.i.h.bf16 %v6462_v14 }
 0x2a6   :  { %v1161_v30 = vmax.f32 %v1081_v41, %v1129_v45  ;;  %v6514_v12 = vpop.permute.xlu0 %4280  ;;  %v6516_v51 = vpop.permute.xlu1 %4285  ;;  %v6527_v45 = vadd.s32 840, %v8265_v37  ;;  %v8107_v25 = vunpack.i.l.bf16 %v6462_v14  ;;  %4008 = vmatprep.subr.msk.mxu0 %vm1531_vm4, %v8288_v42  ;;  %vm1594_vm11 = vcmp.eq.s32.totalorder %v6458_v56, %v5604_v16 }
 0x2a7   :  { %v1244_v60 = vmax.f32 %v1162_v54, %v1211_v48  ;;  %vm1522_vm1 = vcmp.eq.s32.totalorder %v6477_v13, %v5604_v16  ;;  %4009 = vmatpush1.msk.msra.mxu0 %vm1530_vm15, %v8288_v42  ;;  %vm1521_vm9 = vcmp.eq.s32.totalorder %v6502_v34, %v5598_v38  ;;  %v6554_v54 = vadd.s32 544, %v8265_v37 }
 0x2a8   :  { %v1243_v41 = vmax.f32 %v1161_v30, %v1210_v29  ;;  %v4268_v35 = vunpack.i.h.bf16 %v6410_v58  ;;  %v4288_v29 = vunpack.i.h.bf16 %v6516_v51  ;;  %4010 = vmatprep.subr.msk.mxu0 %vm1529_vm0, %v8288_v42  ;;  %vm1520_vm4 = vcmp.eq.s32.totalorder %v6502_v34, %v5604_v16 }
 0x2a9   :  { %2247 = vmatprep.mubr.f32.mxu1 %v1244_v60  ;;  %4011 = vmatpush1.msk.msra.mxu0 %vm1528_vm6, %v8288_v42  ;;  %vm1591_vm0 = vcmp.eq.s32.totalorder %v6527_v45, %v5598_v38  ;;  %vm1519_vm15 = vcmp.eq.s32.totalorder %v6530_v40, %v5598_v38  ;;  %v6584_v60 = vadd.s32 824, %v8265_v37  ;;  %vm1590_vm6 = vcmp.eq.s32.totalorder %v6527_v45, %v5604_v16 }
 0x2aa   :  { %2248 = vmatmul.mubr.f32.vlgmr.msra.gmra.mxu1 %v1243_v41  ;;  %v6567_v17 = vpop.permute.xlu0 %4290  ;;  %v6573_v30 = vpop.permute.xlu1 %4295  ;;  %v6587_v41 = vadd.s32 536, %v8265_v37  ;;  %4012 = vmatprep.subr.msk.mxu0 %vm1527_vm7, %v8288_v42  ;;  %v8296_v62 = vunpack.i.l.bf16 %v6516_v51  ;;  %vm1516_vm7 = vcmp.eq.s32.totalorder %v6554_v54, %v5604_v16  ;;  %v6736_v34 = vadd.s32 520, %v8265_v37 }
 0x2ab   :  { %4065 = vmatpush1.msk.msra.mxu1 %vm1602_vm8, %v8288_v42  ;;  %vm8293_vm8 = vcmask 1039360   ;;  %4013 = vmatpush1.msk.msra.mxu0 %vm1526_vm2, %v8288_v42  ;;  %vm8297_vm2 = vcmask 1031168   ;;  %v6768_v45 = vadd.s32 800, %v8265_v37 }
 0x2ac   :  { %v1054_v48 = vsel %vm8293_vm8, %v4278_v33, %v4268_v35  ;;  %vm8294_vm5 = vmmov %vm8293_vm8  ;;  %4066 = vmatprep.subr.msk.mxu1 %vm1601_vm3, %v8288_v42  ;;  %vm1518_vm3 = vcmp.eq.s32.totalorder %v6530_v40, %v5604_v16  ;;  %vm8295_vm8 = vcmp.eq.s32.totalorder %v6417_v36, %v5598_v38  ;;  %4014 = vmatprep.subr.msk.mxu0 %vm1525_vm13, %v8288_v42  ;;  %v6653_v36 = vadd.s32 816, %v8265_v37 }
 0x2ad   :  { %v1055_v46 = vsel %vm8294_vm5, %v4268_v35, %v8107_v25  ;;  %4067 = vmatpush1.msk.msra.mxu1 %vm1600_vm10, %v8288_v42  ;;  %v1135_v53 = vsel %vm8297_vm2, %v4273_v52, %v8296_v62  ;;  %vm8298_vm10 = vmmov %vm8297_vm2  ;;  %vm1588_vm5 = vcmp.eq.s32.totalorder %v6551_v27, %v5604_v16  ;;  %4015 = vmatpush1.msk.msra.mxu0 %vm1524_vm14, %v8288_v42 }
 0x2ae   :  { %4068 = vmatprep.subr.msk.mxu1 %vm8295_vm8, %v8288_v42  ;;  %v1134_v33 = vsel %vm8298_vm10, %v4288_v29, %v4273_v52  ;;  %v6634_v35 = vpop.permute.xlu0 %4300  ;;  %v6640_v25 = vpop.permute.xlu1 %4305  ;;  %v1088_v29 = vmax.f32 %v6188_v15, %v1055_v46  ;;  %v1087_v52 = vmax.f32 %v6214_v50, %v1054_v48  ;;  %vm1587_vm13 = vcmp.eq.s32.totalorder %v6584_v60, %v5598_v38 }
 0x2af   :  { %4069 = vmatpush1.msk.msra.mxu1 %vm1598_vm12, %v8288_v42  ;;  %vm1515_vm8 = vcmp.eq.s32.totalorder %v6587_v41, %v5598_v38  ;;  %v4302_v24 = vunpack.i.l.bf16 %v6634_v35  ;;  %vm8299_vm12 = vcmp.eq.s32.totalorder %v6442_v32, %v5598_v38  ;;  %v4307_v15 = vunpack.i.l.bf16 %v6640_v25 }
 0x2b0   :  { %4070 = vmatprep.subr.msk.mxu1 %vm8299_vm12, %v8288_v42  ;;  %vm8300_vm14 = vcmp.eq.s32.totalorder %v6477_v13, %v5598_v38  ;;  %v6667_v50 = vadd.s32 528, %v8265_v37  ;;  %v4282_v48 = vunpack.i.l.bf16 %v6514_v12  ;;  %vm8301_vm2 = vcmp.eq.s32.totalorder %v6442_v32, %v5604_v16 }
 0x2b1   :  { %4016 = vmatprep.subr.msk.mxu0 %vm8300_vm14, %v8288_v42  ;;  %4071 = vmatpush1.msk.msra.mxu1 %vm8301_vm2, %v8288_v42  ;;  %v1168_v46 = vmax.f32 %v1088_v29, %v1135_v53  ;;  %v1167_v62 = vmax.f32 %v1087_v52, %v1134_v33  ;;  %vm8302_vm10 = vcmp.eq.s32.totalorder %v6458_v56, %v5598_v38  ;;  %v8303_v18 = vunpack.i.h.bf16 %v6634_v35 }
 0x2b2   :  { %4017 = vmatpush1.msk.msra.mxu0 %vm1522_vm1, %v8288_v42  ;;  %4072 = vmatprep.subr.msk.mxu1 %vm8302_vm10, %v8288_v42  ;;  %vm8304_vm12 = vcmask 1022976   ;;  %vm1586_vm1 = vcmp.eq.s32.totalorder %v6584_v60, %v5604_v16  ;;  %v6694_v13 = vadd.s32 808, %v8265_v37  ;;  %v4297_v33 = vunpack.i.l.bf16 %v6573_v30  ;;  %v6698_v29 = vpop.permute.xlu0 %1029 }
 0x2b3   :  { %v1216_v22 = vsel %vm8304_vm12, %v4302_v24, %v8303_v18  ;;  %4018 = vmatprep.subr.msk.mxu0 %vm1521_vm9, %v8288_v42  ;;  %vm8305_vm14 = vmmov %vm8304_vm12  ;;  %4073 = vmatpush1.msk.msra.mxu1 %vm1594_vm11, %v8288_v42  ;;  %v6704_v18 = vpop.permute.xlu1 %4310  ;;  %v8110_v53 = vunpack.i.l.bf16 %v6567_v17  ;;  %vm8306_vm9 = vcmp.eq.s32.totalorder %v6499_v8, %v5598_v38  ;;  %vm1514_vm11 = vcmp.eq.s32.totalorder %v6587_v41, %v5604_v16 }
 0x2b4   :  { %v1215_v32 = vsel %vm8305_vm14, %v4307_v15, %v4302_v24  ;;  %v1250_v52 = vmax.f32 %v1168_v46, %v1216_v22  ;;  %4019 = vmatpush1.msk.msra.mxu0 %vm1520_vm4, %v8288_v42  ;;  %v4293_v15 = vunpack.i.h.bf16 %v6567_v17  ;;  %4074 = vmatprep.subr.msk.mxu1 %vm8306_vm9, %v8288_v42  ;;  %vm1585_vm4 = vcmp.eq.s32.totalorder %v6653_v36, %v5598_v38 }
 0x2b5   :  { %v1249_v24 = vmax.f32 %v1167_v62, %v1215_v32  ;;  %4020 = vmatprep.subr.msk.mxu0 %vm1519_vm15, %v8288_v42  ;;  %v8307_v22 = vunpack.i.h.bf16 %v6514_v12  ;;  %vm8308_vm2 = vcmask 1039360   ;;  %vm8309_vm10 = vcmp.eq.s32.totalorder %v6499_v8, %v5604_v16 }
 0x2b6   :  { %2176 = vmatprep.mubr.f32.mxu0 %v1250_v52  ;;  %4075 = vmatpush1.msk.msra.mxu1 %vm8309_vm10, %v8288_v42  ;;  %vm1513_vm12 = vcmp.eq.s32.totalorder %v6667_v50, %v5598_v38  ;;  %vm1584_vm15 = vcmp.eq.s32.totalorder %v6653_v36, %v5604_v16  ;;  %v8310_v62 = vunpack.i.l.bf16 %v6462_v14  ;;  %vm8311_vm14 = vmmov %vm8308_vm2  ;;  %v4308_v32 = vunpack.i.h.bf16 %v6640_v25 }
 0x2b7   :  { %v1057_v56 = vsel %vm8308_vm2, %v4282_v48, %v8307_v22  ;;  %v4313_v52 = vunpack.i.h.bf16 %v6704_v18  ;;  %4076 = vmatprep.subr.msk.mxu1 %vm1591_vm0, %v8288_v42  ;;  %2177 = vmatmul.mubr.f32.gmra.mxu0 %v1249_v24  ;;  %v6748_v22 = vpop.permute.xlu0 %4315  ;;  %v6758_v14 = vpop.permute.xlu1 %4320  ;;  %v8312_v25 = vunpack.i.h.bf16 %v6573_v30  ;;  %vm8313_vm9 = vcmask 1031168  }
 0x2b8   :  { %v1056_v46 = vsel %vm8311_vm14, %v8310_v62, %v4282_v48  ;;  %4077 = vmatpush1.msk.msra.mxu1 %vm1590_vm6, %v8288_v42  ;;  %4021 = vmatpush1.msk.msra.mxu0 %vm1518_vm3, %v8288_v42  ;;  %vm1512_vm0 = vcmp.eq.s32.totalorder %v6667_v50, %v5604_v16  ;;  %vm1583_vm2 = vcmp.eq.s32.totalorder %v6694_v13, %v5598_v38  ;;  %vm8314_vm6 = vmmov %vm8311_vm14  ;;  %v4317_v24 = vunpack.i.l.bf16 %v6748_v22 }
 0x2b9   :  { %v1137_v48 = vsel %vm8313_vm9, %v4297_v33, %v8312_v25  ;;  %v1052_v40 = vsel %vm8314_vm6, %v8110_v53, %v4293_v15  ;;  %vm8315_vm3 = vcmp.eq.s32.totalorder %v6551_v27, %v5598_v38  ;;  %vm8316_vm10 = vcmp.eq.s32.totalorder %v6554_v54, %v5598_v38  ;;  %vm8318_vm14 = vmmov %vm8313_vm9 }
 0x2ba   :  { %4078 = vmatprep.subr.msk.mxu1 %vm8315_vm3, %v8288_v42  ;;  %4022 = vmatprep.subr.msk.mxu0 %vm8316_vm10, %v8288_v42  ;;  %v1090_v62 = vmax.f32 %v6232_v31, %v1057_v56  ;;  %v8317_v25 = vunpack.i.l.bf16 %v6516_v51  ;;  %v1089_v53 = vmax.f32 %v6216_v28, %v1056_v46  ;;  %vm1511_vm9 = vcmp.eq.s32.totalorder %v6736_v34, %v5598_v38 }
 0x2bb   :  { %4079 = vmatpush1.msk.msra.mxu1 %vm1588_vm5, %v8288_v42  ;;  %4023 = vmatpush1.msk.msra.mxu0 %vm1516_vm7, %v8288_v42  ;;  %vm1582_vm6 = vcmp.eq.s32.totalorder %v6694_v13, %v5604_v16  ;;  %v1322_v31 = vadd.s32 512, %v8265_v37  ;;  %v4318_v51 = vunpack.i.h.bf16 %v6748_v22  ;;  %v8319_v27 = vunpack.i.h.bf16 %v6634_v35  ;;  %vm8322_vm7 = vmmov %vm8318_vm14  ;;  %v6819_v46 = vpop.permute.xlu0 %1109 }
 0x2bc   :  { %v1136_v8 = vsel %vm8318_vm14, %v8317_v25, %v4297_v33  ;;  %4080 = vmatprep.subr.msk.mxu1 %vm1587_vm13, %v8288_v42  ;;  %4024 = vmatprep.subr.msk.mxu0 %vm1515_vm8, %v8288_v42  ;;  %v1170_v28 = vmax.f32 %v1090_v62, %v1137_v48  ;;  %vm8320_vm5 = vcmask 1022976   ;;  %v8321_v33 = vunpack.i.l.bf16 %v6704_v18  ;;  %v6832_v62 = vpop.permute.xlu1 %1187 }
 0x2bd   :  { %v1217_v54 = vsel %vm8320_vm5, %v8319_v27, %v4308_v32  ;;  %4081 = vmatpush1.msk.msra.mxu1 %vm1586_vm1, %v8288_v42  ;;  %vm8323_vm13 = vmmov %vm8320_vm5  ;;  %4025 = vmatpush1.msk.msra.mxu0 %vm1514_vm11, %v8288_v42  ;;  %v1169_v35 = vmax.f32 %v1089_v53, %v1136_v8  ;;  %v1084_v25 = vmax.f32 %v6264_v0, %v1052_v40  ;;  %v1357_v0 = vadd.s32 792, %v8265_v37 }
 0x2be   :  { %v1132_v56 = vsel %vm8322_vm7, %v8321_v33, %v4313_v52  ;;  %v1218_v48 = vsel %vm8323_vm13, %v4308_v32, %v4317_v24  ;;  %4082 = vmatprep.subr.msk.mxu1 %vm1585_vm4, %v8288_v42  ;;  %4026 = vmatprep.subr.msk.mxu0 %vm1513_vm12, %v8288_v42  ;;  %vm8324_vm8 = vmmov %vm8320_vm5  ;;  %vm1510_vm1 = vcmp.eq.s32.totalorder %v6736_v34, %v5604_v16  ;;  %v1353_v32 = vadd.s32 760, %v8265_v37 }
 0x2bf   :  { %v1252_v27 = vmax.f32 %v1170_v28, %v1218_v48  ;;  %v1213_v60 = vsel %vm8324_vm8, %v4318_v51, %v6832_v62  ;;  %v1251_v41 = vmax.f32 %v1169_v35, %v1217_v54  ;;  %4083 = vmatpush1.msk.msra.mxu1 %vm1584_vm15, %v8288_v42  ;;  %4027 = vmatpush1.msk.msra.mxu0 %vm1512_vm0, %v8288_v42  ;;  %vm8325_vm4 = vcmask 515072   ;;  %v6870_v40 = vpop.permute.xlu0 %1045 }
 0x2c0   :  { %vm1581_vm11 = vcmp.eq.s32.totalorder %v6768_v45, %v5598_v38  ;;  %v1164_v53 = vmax.f32 %v1084_v25, %v1132_v56  ;;  %v1077_v8 = vsel %vm8325_vm4, %v6698_v29, 0.0  ;;  %4084 = vmatprep.subr.msk.mxu1 %vm1583_vm2, %v8288_v42  ;;  %vm1509_vm12 = vcmp.eq.s32.totalorder %v1322_v31, %v5598_v38  ;;  %4028 = vmatprep.subr.msk.mxu0 %vm1511_vm9, %v8288_v42 }
 0x2c1   :  { %2253 = vmatprep.mubr.f32.mxu1 %v1252_v27  ;;  %v1356_v36 = vadd.s32 784, %v8265_v37  ;;  %v1352_v50 = vadd.s32 752, %v8265_v37  ;;  %vm1580_vm15 = vcmp.eq.s32.totalorder %v6768_v45, %v5604_v16  ;;  %vm1508_vm0 = vcmp.eq.s32.totalorder %v1322_v31, %v5604_v16  ;;  %4085 = vmatpush1.msk.msra.mxu1 %vm1582_vm6, %v8288_v42 }
 0x2c2   :  { %2254 = vmatmul.mubr.f32.gmra.mxu1 %v1251_v41  ;;  %v1246_v28 = vmax.f32 %v1164_v53, %v1213_v60  ;;  %vm8326_vm2 = vcmask 506880   ;;  %4029 = vmatpush1.msk.msra.mxu0 %vm1510_vm1, %v8288_v42  ;;  %vm1238_vm3 = vcmask 498688   ;;  %vm1579_vm10 = vcmp.eq.s32.totalorder %v1357_v0, %v5598_v38 }
 0x2c3   :  { %v1157_v54 = vsel %vm8326_vm2, %v6819_v46, 0.0  ;;  %v1355_v33 = vadd.s32 776, %v8265_v37  ;;  %v1086_v56 = vmax.f32 %v6318_v6, %v1077_v8  ;;  %4086 = vmatprep.subr.msk.mxu1 %vm1581_vm11, %v8288_v42  ;;  %4030 = vmatprep.subr.msk.mxu0 %vm1509_vm12, %v8288_v42  ;;  %vm1571_vm14 = vcmp.eq.s32.totalorder %v1353_v32, %v5598_v38  ;;  %v6907_v34 = vpop.permute.xlu0 %1189 }
 0x2c4   :  { %vm1578_vm9 = vcmp.eq.s32.totalorder %v1357_v0, %v5604_v16  ;;  %v1351_v13 = vadd.s32 744, %v8265_v37  ;;  %4087 = vmatpush1.msk.msra.mxu1 %vm1580_vm15, %v8288_v42  ;;  %4031 = vmatpush1.msk.msra.mxu0 %vm1508_vm0, %v8288_v42  ;;  %vm1570_vm6 = vcmp.eq.s32.totalorder %v1353_v32, %v5604_v16  ;;  %vm1577_vm5 = vcmp.eq.s32.totalorder %v1356_v36, %v5598_v38  ;;  %v6952_v32 = vpop.permute.xlu1 %4325 }
 0x2c5   :  { %vm1569_vm7 = vcmp.eq.s32.totalorder %v1352_v50, %v5598_v38  ;;  %v1166_v6 = vmax.f32 %v1086_v56, %v1157_v54  ;;  %2324 = vmatprep.mubr.f32.mxu0 %v1246_v28  ;;  %4088 = vmatprep.subr.msk.mxu1 %vm1579_vm10, %v8288_v42  ;;  %vm1576_vm13 = vcmp.eq.s32.totalorder %v1356_v36, %v5604_v16  ;;  %v1354_v45 = vadd.s32 768, %v8265_v37 }
 0x2c6   :  { %v1350_v31 = vadd.s32 736, %v8265_v37  ;;  %v1239_v48 = vsel %vm1238_vm3, %v6907_v34, 0.0  ;;  %4032 = vmatprep.subr.msk.mxu0 %vm1571_vm14, %v8288_v42  ;;  %4089 = vmatpush1.msk.msra.mxu1 %vm1578_vm9, %v8288_v42  ;;  %vm1568_vm8 = vcmp.eq.s32.totalorder %v1352_v50, %v5604_v16  ;;  %vm1575_vm1 = vcmp.eq.s32.totalorder %v1355_v33, %v5598_v38 }
 0x2c7   :  { %v1248_v35 = vmax.f32 %v1166_v6, %v1239_v48  ;;  %4033 = vmatpush2.msk.msra.mxu0 %vm1570_vm6, %v8288_v42  ;;  %4090 = vmatprep.subr.msk.mxu1 %vm1577_vm5, %v8288_v42  ;;  %vm1567_vm11 = vcmp.eq.s32.totalorder %v1351_v13, %v5598_v38  ;;  %v1377_v25 = vadd.s32 952, %v8265_v37  ;;  %v1349_v27 = vadd.s32 728, %v8265_v37 }
 0x2c8   :  { %4034 = vmatprep.subr.msk.mxu0 %vm1569_vm7, %v8288_v42  ;;  %4091 = vmatpush1.msk.msra.mxu1 %vm1576_vm13, %v8288_v42  ;;  %vm1574_vm4 = vcmp.eq.s32.totalorder %v1355_v33, %v5604_v16  ;;  %vm1566_vm12 = vcmp.eq.s32.totalorder %v1351_v13, %v5604_v16  ;;  %v1376_v60 = vadd.s32 944, %v8265_v37  ;;  %v1348_v0 = vadd.s32 720, %v8265_v37  ;;  %v7009_v6 = vpop.permute.xlu1 %1125 }
 0x2c9   :  { %4035 = vmatpush2.msk.msra.mxu0 %vm1568_vm8, %v8288_v42  ;;  %4092 = vmatprep.subr.msk.mxu1 %vm1575_vm1, %v8288_v42  ;;  %vm1573_vm15 = vcmp.eq.s32.totalorder %v1354_v45, %v5598_v38  ;;  %vm1565_vm0 = vcmp.eq.s32.totalorder %v1350_v31, %v5598_v38  ;;  %vm8327_vm2 = vcmask 523264   ;;  %vm1572_vm10 = vcmp.eq.s32.totalorder %v1354_v45, %v5604_v16 }
 0x2ca   :  { %4112 = vmatprep.mubr.msk.f32.mxu1 %vm8327_vm2, %v1248_v35  ;;  %4036 = vmatprep.subr.msk.mxu0 %vm1567_vm11, %v8288_v42  ;;  %vm1564_vm14 = vcmp.eq.s32.totalorder %v1350_v31, %v5604_v16  ;;  %v1375_v41 = vadd.s32 936, %v8265_v37  ;;  %v1347_v53 = vadd.s32 712, %v8265_v37  ;;  %vm1619_vm9 = vcmp.eq.s32.totalorder %v1377_v25, %v5598_v38 }
 0x2cb   :  { %4093 = vmatpush1.msk.msra.mxu1 %vm1574_vm4, %v8288_v42  ;;  %4037 = vmatpush2.msk.msra.mxu0 %vm1566_vm12, %v8288_v42  ;;  %vm1563_vm6 = vcmp.eq.s32.totalorder %v1349_v27, %v5598_v38  ;;  %vm1618_vm5 = vcmp.eq.s32.totalorder %v1377_v25, %v5604_v16  ;;  %v1374_v8 = vadd.s32 928, %v8265_v37  ;;  %vm1562_vm7 = vcmp.eq.s32.totalorder %v1349_v27, %v5604_v16 }
 0x2cc   :  { %4094 = vmatprep.subr.msk.mxu1 %vm1573_vm15, %v8288_v42  ;;  %4038 = vmatprep.subr.msk.mxu0 %vm1565_vm0, %v8288_v42  ;;  %vm1617_vm13 = vcmp.eq.s32.totalorder %v1376_v60, %v5598_v38  ;;  %vm1561_vm8 = vcmp.eq.s32.totalorder %v1348_v0, %v5598_v38  ;;  %v1346_v36 = vadd.s32 704, %v8265_v37  ;;  %vm1616_vm1 = vcmp.eq.s32.totalorder %v1376_v60, %v5604_v16  ;;  %v1206_v60 = vpop.permute.xlu1 %1205 }
 0x2cd   :  { %4095 = vmatpush1.msk.msra.mxu1 %vm1572_vm10, %v8288_v42  ;;  %4039 = vmatpush2.msk.msra.mxu0 %vm1564_vm14, %v8288_v42  ;;  %vm1560_vm11 = vcmp.eq.s32.totalorder %v1348_v0, %v5604_v16  ;;  %v1373_v50 = vadd.s32 920, %v8265_v37  ;;  %v1345_v28 = vadd.s32 696, %v8265_v37  ;;  %vm1615_vm4 = vcmp.eq.s32.totalorder %v1375_v41, %v5598_v38 }
 0x2ce   :  { %4096 = vmatprep.subr.msk.mxu1 %vm1619_vm9, %v8288_v42  ;;  %4040 = vmatprep.subr.msk.mxu0 %vm1563_vm6, %v8288_v42  ;;  %vm1559_vm12 = vcmp.eq.s32.totalorder %v1347_v53, %v5598_v38  ;;  %vm1614_vm15 = vcmp.eq.s32.totalorder %v1375_v41, %v5604_v16  ;;  %vm1558_vm0 = vcmp.eq.s32.totalorder %v1347_v53, %v5604_v16  ;;  %v1372_v54 = vadd.s32 912, %v8265_v37 }
 0x2cf   :  { %4097 = vmatpush2.msk.msra.mxu1 %vm1618_vm5, %v8288_v42  ;;  %4041 = vmatpush2.msk.msra.mxu0 %vm1562_vm7, %v8288_v42  ;;  %vm1613_vm2 = vcmp.eq.s32.totalorder %v1374_v8, %v5598_v38  ;;  %v1344_v33 = vadd.s32 688, %v8265_v37  ;;  %vm1557_vm10 = vcmp.eq.s32.totalorder %v1346_v36, %v5598_v38  ;;  %vm1612_vm14 = vcmp.eq.s32.totalorder %v1374_v8, %v5604_v16 }
 0x2d0   :  { %4098 = vmatprep.subr.msk.mxu1 %vm1617_vm13, %v8288_v42  ;;  %4042 = vmatprep.subr.msk.mxu0 %vm1561_vm8, %v8288_v42  ;;  %v7004_v56 = vadd.s32 904, %v8265_v37  ;;  %v7007_v13 = vadd.s32 680, %v8265_v37  ;;  %vm1556_vm9 = vcmp.eq.s32.totalorder %v1346_v36, %v5604_v16  ;;  %vm1611_vm6 = vcmp.eq.s32.totalorder %v1373_v50, %v5598_v38 }
 0x2d1   :  { %4099 = vmatpush2.msk.msra.mxu1 %vm1616_vm1, %v8288_v42  ;;  %4043 = vmatpush2.msk.msra.mxu0 %vm1560_vm11, %v8288_v42  ;;  %vm1555_vm5 = vcmp.eq.s32.totalorder %v1345_v28, %v5598_v38  ;;  %vm1610_vm7 = vcmp.eq.s32.totalorder %v1373_v50, %v5604_v16  ;;  %vm1554_vm13 = vcmp.eq.s32.totalorder %v1345_v28, %v5604_v16  ;;  %v7029_v45 = vadd.s32 896, %v8265_v37 }
 0x2d2   :  { %4100 = vmatprep.subr.msk.mxu1 %vm1615_vm4, %v8288_v42  ;;  %4044 = vmatprep.subr.msk.mxu0 %vm1559_vm12, %v8288_v42  ;;  %v7032_v31 = vadd.s32 672, %v8265_v37  ;;  %vm1609_vm8 = vcmp.eq.s32.totalorder %v1372_v54, %v5598_v38  ;;  %vm1553_vm1 = vcmp.eq.s32.totalorder %v1344_v33, %v5598_v38  ;;  %vm1608_vm11 = vcmp.eq.s32.totalorder %v1372_v54, %v5604_v16 }
 0x2d3   :  { %4101 = vmatpush2.msk.msra.mxu1 %vm1614_vm15, %v8288_v42  ;;  %4045 = vmatpush2.msk.msra.mxu0 %vm1558_vm0, %v8288_v42  ;;  %v7044_v48 = vadd.s32 664, %v8265_v37  ;;  %vm1552_vm4 = vcmp.eq.s32.totalorder %v1344_v33, %v5604_v16  ;;  %vm1607_vm12 = vcmp.eq.s32.totalorder %v7004_v56, %v5598_v38  ;;  %v7058_v35 = vadd.s32 656, %v8265_v37 }
 0x2d4   :  { %4102 = vmatprep.subr.msk.mxu1 %vm1613_vm2, %v8288_v42  ;;  %4046 = vmatprep.subr.msk.mxu0 %vm1557_vm10, %v8288_v42  ;;  %vm8328_vm0 = vcmask 1039360   ;;  %vm1606_vm2 = vcmp.eq.s32.totalorder %v7004_v56, %v5604_v16  ;;  %vm1550_vm10 = vcmp.eq.s32.totalorder %v7007_v13, %v5604_v16  ;;  %vm8329_vm15 = vcmask 515072  }
 0x2d5   :  { %v1053_v25 = vsel %vm8328_vm0, %v4293_v15, %v6698_v29  ;;  %4103 = vmatpush2.msk.msra.mxu1 %vm1612_vm14, %v8288_v42  ;;  %4047 = vmatpush2.msk.msra.mxu0 %vm1556_vm9, %v8288_v42  ;;  %v1078_v27 = vsel %vm8329_vm15, %v6870_v40, 0.0  ;;  %vm1605_vm14 = vcmp.eq.s32.totalorder %v7029_v45, %v5598_v38  ;;  %vm1549_vm9 = vcmp.eq.s32.totalorder %v7032_v31, %v5598_v38 }
 0x2d6   :  { %4104 = vmatprep.subr.msk.mxu1 %vm1611_vm6, %v8288_v42  ;;  %4048 = vmatprep.subr.msk.mxu0 %vm1555_vm5, %v8288_v42  ;;  %vm1604_vm0 = vcmp.eq.s32.totalorder %v7029_v45, %v5604_v16  ;;  %vm8330_vm15 = vcmask 1031168   ;;  %v4323_v15 = vunpack.i.h.bf16 %v6758_v14  ;;  %vm1548_vm6 = vcmp.eq.s32.totalorder %v7032_v31, %v5604_v16 }
 0x2d7   :  { %v1133_v29 = vsel %vm8330_vm15, %v4313_v52, %v6819_v46  ;;  %4105 = vmatpush2.msk.msra.mxu1 %vm1610_vm7, %v8288_v42  ;;  %4049 = vmatpush2.msk.msra.mxu0 %vm1554_vm13, %v8288_v42  ;;  %v1085_v0 = vmax.f32 %v6266_v39, %v1053_v25  ;;  %v7104_v52 = vpop.permute.xlu0 %4330  ;;  %vm8331_vm15 = vcmask 506880   ;;  %vm1546_vm7 = vcmp.eq.s32.totalorder %v7044_v48, %v5604_v16 }
 0x2d8   :  { %v1158_v46 = vsel %vm8331_vm15, %v7009_v6, 0.0  ;;  %4106 = vmatprep.subr.msk.mxu1 %vm1609_vm8, %v8288_v42  ;;  %4050 = vmatprep.subr.msk.mxu0 %vm1553_vm1, %v8288_v42  ;;  %vm1545_vm13 = vcmp.eq.s32.totalorder %v7058_v35, %v5598_v38  ;;  %vm8332_vm5 = vcmask 1039360   ;;  %v1094_v41 = vmax.f32 %v6341_v47, %v1078_v27 }
 0x2d9   :  { %v1060_v39 = vsel %vm8332_vm5, %v4323_v15, %v6870_v40  ;;  %vm8333_vm15 = vcmask 1022976   ;;  %v4328_v8 = vunpack.i.h.bf16 %v6952_v32  ;;  %4107 = vmatpush2.msk.msra.mxu1 %vm1608_vm11, %v8288_v42  ;;  %4051 = vmatpush2.msk.msra.mxu0 %vm1552_vm4, %v8288_v42  ;;  %v1165_v36 = vmax.f32 %v1085_v0, %v1133_v29  ;;  %vm8337_vm1 = vmmov %vm8332_vm5 }
 0x2da   :  { %v1214_v53 = vsel %vm8333_vm15, %v6832_v62, %v6907_v34  ;;  %v4322_v50 = vunpack.i.l.bf16 %v6758_v14  ;;  %v1240_v40 = vsel %vm1238_vm3, %v1206_v60, 0.0  ;;  %4108 = vmatprep.subr.msk.mxu1 %vm1607_vm12, %v8288_v42  ;;  %vm8334_vm8 = vcmp.eq.s32.totalorder %v7007_v13, %v5598_v38  ;;  %vm8343_vm12 = vmmov %vm8333_vm15 }
 0x2db   :  { %4052 = vmatprep.subr.msk.mxu0 %vm8334_vm8, %v8288_v42  ;;  %v1339_v47 = vadd.s32 648, %v8265_v37  ;;  %v8335_v62 = vunpack.i.l.bf16 %v6567_v17  ;;  %v8336_v34 = vunpack.i.l.bf16 %v6410_v58  ;;  %v4333_v28 = vunpack.i.h.bf16 %v7104_v52  ;;  %4109 = vmatpush2.msk.msra.mxu1 %vm1606_vm2, %v8288_v42  ;;  %vm8344_vm2 = vmmov %vm8337_vm1 }
 0x2dc   :  { %vm8338_vm3 = vcmask 1031168   ;;  %v1174_v33 = vmax.f32 %v1094_v41, %v1158_v46  ;;  %4053 = vmatpush2.msk.msra.mxu0 %vm1550_vm10, %v8288_v42  ;;  %v8339_v58 = vmax.f32 %v6313_v63, 0.0  ;;  %v1247_v25 = vmax.f32 %v1165_v36, %v1214_v53  ;;  %4110 = vmatprep.subr.msk.mxu1 %vm1605_vm14, %v8288_v42  ;;  %vm8349_vm5 = vmmov %vm8337_vm1 }
 0x2dd   :  { %v1051_v14 = vsel %vm8337_vm1, %v8336_v34, %v8335_v62  ;;  %v1140_v54 = vsel %vm8338_vm3, %v4328_v8, %v7009_v6  ;;  %v4327_v27 = vunpack.i.l.bf16 %v6952_v32  ;;  %4054 = vmatprep.subr.msk.mxu0 %vm1549_vm9, %v8288_v42  ;;  %vm1544_vm11 = vcmp.eq.s32.totalorder %v7058_v35, %v5604_v16  ;;  %vm8342_vm4 = vmmov %vm8338_vm3  ;;  %4111 = vmatpush2.msk.msra.mxu1 %vm1604_vm0, %v8288_v42 }
 0x2de   :  { %v1093_v17 = vmax.f32 %v8339_v58, %v1060_v39  ;;  %v8340_v56 = vunpack.i.l.bf16 %v6704_v18  ;;  %v8341_v63 = vunpack.i.l.bf16 %v6412_v55  ;;  %v1221_v32 = vsel %vm8343_vm12, %v4333_v28, %v1206_v60  ;;  %4055 = vmatpush2.msk.msra.mxu0 %vm1548_vm6, %v8288_v42  ;;  %2402 = vmatmul.mubr.f32.vlgmr.msra.gmra.mxu1 %v1247_v25  ;;  %vm8347_vm6 = vmmov %vm8338_vm3 }
 0x2df   :  { %v1256_v6 = vmax.f32 %v1174_v33, %v1240_v40  ;;  %v1338_v29 = vadd.s32 640, %v8265_v37  ;;  %v1083_v18 = vmax.f32 %v6180_v23, %v1051_v14  ;;  %v1059_v55 = vsel %vm8344_vm2, %v4322_v50, %v4323_v15  ;;  %vm8351_vm15 = vmmov %vm8343_vm12 }
 0x2e0   :  { %v1131_v13 = vsel %vm8342_vm4, %v8341_v63, %v8340_v56  ;;  %v4332_v0 = vunpack.i.l.bf16 %v7104_v52  ;;  %v1173_v60 = vmax.f32 %v1093_v17, %v1140_v54  ;;  %vm8345_vm10 = vcmp.eq.s32.totalorder %v7044_v48, %v5598_v38  ;;  %vm8352_vm8 = vmmov %vm8343_vm12 }
 0x2e1   :  { %4056 = vmatprep.subr.msk.mxu0 %vm8345_vm10, %v8288_v42  ;;  %vm8346_vm14 = vcmask 523264   ;;  %vm1543_vm9 = vcmp.eq.s32.totalorder %v1339_v47, %v5598_v38  ;;  %v1163_v23 = vmax.f32 %v1083_v18, %v1131_v13  ;;  %vm1542_vm0 = vcmp.eq.s32.totalorder %v1339_v47, %v5604_v16  ;;  %vm8354_vm1 = vmmov %vm8338_vm3 }
 0x2e2   :  { %4113 = vmatprep.mubr.msk.f32.mxu1 %vm8346_vm14, %v1256_v6  ;;  %4057 = vmatpush2.msk.msra.mxu0 %vm1546_vm7, %v8288_v42  ;;  %v1255_v45 = vmax.f32 %v1173_v60, %v1221_v32  ;;  %v1139_v31 = vsel %vm8347_vm6, %v4327_v27, %v4328_v8  ;;  %v8348_v15 = vunpack.i.h.bf16 %v6514_v12  ;;  %vm1541_vm7 = vcmp.eq.s32.totalorder %v1338_v29, %v5598_v38  ;;  %vm8355_vm3 = vmmov %vm8352_vm8 }
 0x2e3   :  { %4058 = vmatprep.subr.msk.mxu0 %vm1545_vm13, %v8288_v42  ;;  %v8350_v48 = vmax.f32 %v6310_v2, 0.0  ;;  %vm1540_vm13 = vcmp.eq.s32.totalorder %v1338_v29, %v5604_v16  ;;  %v1220_v39 = vsel %vm8351_vm15, %v4332_v0, %v4333_v28  ;;  %v1212_v12 = vsel %vm8352_vm8, %v6460_v20, %v4318_v51 }
 0x2e4   :  { %v1058_v52 = vsel %vm8349_vm5, %v8348_v15, %v4322_v50  ;;  %4059 = vmatpush2.msk.msra.mxu0 %vm1544_vm11, %v8288_v42  ;;  %2408 = vmatmul.mubr.f32.gmra.mxu1 %v1255_v45  ;;  %v8353_v38 = vunpack.i.h.bf16 %v6573_v30  ;;  %v1245_v41 = vmax.f32 %v1163_v23, %v1212_v12  ;;  %v1219_v36 = vsel %vm8355_vm3, %v4317_v24, %v4332_v0 }
 0x2e5   :  { %v1092_v46 = vmax.f32 %v8350_v48, %v1059_v55  ;;  %4060 = vmatprep.subr.msk.mxu0 %vm1543_vm9, %v8288_v42  ;;  %v1091_v53 = vmax.f32 %v6244_v19, %v1058_v52  ;;  %v4418_v45 = vmov 0.0   ;;  %vm8356_vm11 = vcmp.eq.s32.totalorder %v5601_v26, %v5604_v16  ;;  %v8373_v26 = vld [vmem:[#allocation16_spill] sm:$0xff]  ;;  %v8401_v52 = vld [vmem:[#allocation11_spill] sm:$0xff] }
 0x2e6   :  { %4061 = vmatpush2.msk.msra.mxu0 %vm1542_vm0, %v8288_v42  ;;  %v1138_v2 = vsel %vm8354_vm1, %v8353_v38, %v4327_v27  ;;  %2669 = vmatprep.mubr.f32.mxu1 %v4418_v45  ;;  %vm8357_vm4 = vcmp.eq.s32.totalorder %v5607_v57, %v5604_v16  ;;  %vm8358_vm12 = vcmp.eq.s32.totalorder %v5610_v9, %v5604_v16  ;;  %v8375_v57 = vld [vmem:[#allocation14_spill] sm:$0xff] }
 0x2e7   :  { %v1172_v35 = vmax.f32 %v1092_v46, %v1139_v31  ;;  %4062 = vmatprep.subr.msk.mxu0 %vm1541_vm7, %v8288_v42  ;;  %v1171_v20 = vmax.f32 %v1091_v53, %v1138_v2  ;;  %vm8359_vm2 = vcmp.eq.s32.totalorder %v5620_v5, %v5604_v16  ;;  %vm8360_vm10 = vcmp.eq.s32.totalorder %v5633_v49, %v5604_v16  ;;  %v8379_v9 = vld [vmem:[#allocation6_spill] sm:$0xff]  ;;  %v8381_v5 = vld [vmem:[#allocation7_spill] sm:$0xff]  ;;  %v8383_v49 = vld [vmem:[#allocation8_spill] sm:$0xff] }
 0x2e8   :  { %4063 = vmatpush2.msk.msra.mxu0 %vm1540_vm13, %v8288_v42  ;;  %vm8361_vm14 = vcmp.eq.s32.totalorder %v5650_v11, %v5604_v16  ;;  %vm8362_vm9 = vcmp.eq.s32.totalorder %v5668_v21, %v5604_v16  ;;  %vm8363_vm0 = vcmp.eq.s32.totalorder %v5685_v1, %v5604_v16  ;;  %vm8364_vm6 = vcmp.eq.s32.totalorder %v5702_v44, %v5604_v16  ;;  %v8385_v11 = vld [vmem:[#allocation9_spill] sm:$0xff]  ;;  %v8387_v21 = vld [vmem:[#allocation19_spill] sm:$0xff]  ;;  %v8391_v44 = vld [vmem:[#allocation18_spill] sm:$0xff] }
 0x2e9   :  { %v1254_v8 = vmax.f32 %v1172_v35, %v1220_v39  ;;  %2325 = vmatmul.mubr.f32.vlgmr.msra.gmra.mxu0 %v1245_v41  ;;  %v1253_v51 = vmax.f32 %v1171_v20, %v1219_v36  ;;  %2980 = vmatprep.subr.mxu0 %v4418_v45  ;;  %vm8365_vm5 = vcmp.eq.s32.totalorder %v5719_v7, %v5604_v16  ;;  %v8389_v1 = vld [vmem:[#allocation5_spill] sm:$0xff]  ;;  %v8393_v7 = vld [vmem:[#allocation20_spill] sm:$0xff]  ;;  %v8402_v46 = vld [vmem:[#allocation10_spill] sm:$0xff] }
 0x2ea   :  { %4134 = vmatpush1.msk.msra.mxu0 %vm8356_vm11, %v8288_v42  ;;  %vm8366_vm7 = vcmp.eq.s32.totalorder %v5736_v3, %v5604_v16  ;;  %vm8367_vm13 = vcmp.eq.s32.totalorder %v5753_v43, %v5604_v16  ;;  %vm8368_vm15 = vcmp.eq.s32.totalorder %v5770_v59, %v5604_v16  ;;  %vm8369_vm8 = vcmp.eq.s32.totalorder %v5787_v4, %v5604_v16  ;;  %v8395_v3 = vld [vmem:[#allocation21_spill] sm:$0xff]  ;;  %v8397_v43 = vld [vmem:[#allocation22_spill] sm:$0xff] }
 0x2eb   :  { %2330 = vmatprep.mubr.f32.mxu0 %v1254_v8  ;;  %2982 = vmatprep.subr.mxu0 %v4418_v45  ;;  %vm8370_vm1 = vcmp.eq.s32.totalorder %v5804_v61, %v5604_v16  ;;  %vm8371_vm3 = vcmp.eq.s32.totalorder %v8265_v37, %v5604_v16  ;;  %vm8372_vm11 = vcmp.eq.s32.totalorder %v5864_v10, %v5604_v16  ;;  %v8377_v37 = vld [vmem:[#allocation15_spill] sm:$0xff]  ;;  %v8399_v59 = vld [vmem:[#allocation13_spill] sm:$0xff]  ;;  %v8400_v61 = vld [vmem:[#allocation12_spill] sm:$0xff] }
 0x2ec   :  { %4135 = vmatpush1.msk.msra.mxu0 %vm8357_vm4, %v8288_v42  ;;  %vm8374_vm4 = vcmp.eq.s32.totalorder %v8373_v26, %v5604_v16  ;;  %v2463_v4 = vshrl.u32 %v8399_v59, 6  ;;  %v2452_v10 = vshrl.u32 %v8400_v61, 6  ;;  %v2416_v59 = vld [vmem:[%s8019_s4 + $0x10] sm:$0xff] }
 0x2ed   :  { %2331 = vmatmul.mubr.f32.gmra.mxu0 %v1253_v51  ;;  %2984 = vmatprep.subr.mxu0 %v4418_v45 }
 0x2ee   :  { %4136 = vmatpush1.msk.msra.mxu0 %vm8358_vm12, %v8288_v42  ;;  %vm8376_vm12 = vcmp.eq.s32.totalorder %v8375_v57, %v5604_v16  ;;  %v2464_v31 = vmul.u32 120, %v2463_v4  ;;  %v2453_v15 = vmul.u32 120, %v2452_v10  ;;  %v2417_v4 = vld [vmem:[%s8019_s4 + $0x18] sm:$0xff] }
 0x2ef   :  { %2986 = vmatprep.subr.mxu0 %v4418_v45 }
 0x2f0   :  { %4137 = vmatpush1.msk.msra.mxu0 %vm8359_vm2, %v8288_v42  ;;  %vm8378_vm2 = vcmp.eq.s32.totalorder %v8377_v37, %v5604_v16  ;;  %v2465_v48 = vsub.s32 %v8401_v52, %v2464_v31  ;;  %v2454_v39 = vsub.s32 %v8402_v46, %v2453_v15 }
 0x2f1   :  { %2988 = vmatprep.subr.mxu0 %v4418_v45 }
 0x2f2   :  { %4138 = vmatpush1.msk.msra.mxu0 %vm8360_vm10, %v8288_v42  ;;  %vm8380_vm10 = vcmp.eq.s32.totalorder %v8379_v9, %v5604_v16  ;;  %v2475_v12 = vadd.s32 120, %v2465_v48  ;;  %v2474_v35 = vadd.s32 120, %v2454_v39 }
 0x2f3   :  { %2990 = vmatprep.subr.mxu0 %v4418_v45 }
 0x2f4   :  { %4139 = vmatpush1.msk.msra.mxu0 %vm8361_vm14, %v8288_v42  ;;  %vm8382_vm14 = vcmp.eq.s32.totalorder %v8381_v5, %v5604_v16 }
 0x2f5   :  { %2992 = vmatprep.subr.mxu0 %v4418_v45 }
 0x2f6   :  { %4140 = vmatpush1.msk.msra.mxu0 %vm8362_vm9, %v8288_v42  ;;  %vm8384_vm9 = vcmp.eq.s32.totalorder %v8383_v49, %v5604_v16 }
 0x2f7   :  { %2994 = vmatprep.subr.mxu0 %v4418_v45 }
 0x2f8   :  { %4141 = vmatpush1.msk.msra.mxu0 %vm8363_vm0, %v8288_v42  ;;  %vm8386_vm0 = vcmp.eq.s32.totalorder %v8385_v11, %v5604_v16 }
 0x2f9   :  { %2996 = vmatprep.subr.mxu0 %v4418_v45 }
 0x2fa   :  { %4142 = vmatpush1.msk.msra.mxu0 %vm8364_vm6, %v8288_v42  ;;  %vm8388_vm6 = vcmp.eq.s32.totalorder %v8387_v21, %v5604_v16 }
 0x2fb   :  { %2998 = vmatprep.subr.mxu0 %v4418_v45 }
 0x2fc   :  { %4143 = vmatpush1.msk.msra.mxu0 %vm8365_vm5, %v8288_v42  ;;  %vm8390_vm5 = vcmp.eq.s32.totalorder %v8389_v1, %v5604_v16 }
 0x2fd   :  { %3000 = vmatprep.subr.mxu0 %v4418_v45 }
 0x2fe   :  { %4144 = vmatpush1.msk.msra.mxu0 %vm8366_vm7, %v8288_v42  ;;  %vm8392_vm7 = vcmp.eq.s32.totalorder %v8391_v44, %v5604_v16 }
 0x2ff   :  { %3002 = vmatprep.subr.mxu0 %v4418_v45 }
 0x300   :  { %4145 = vmatpush1.msk.msra.mxu0 %vm8367_vm13, %v8288_v42  ;;  %vm8394_vm13 = vcmp.eq.s32.totalorder %v8393_v7, %v5604_v16 }
 0x301   :  { %3004 = vmatprep.subr.mxu0 %v4418_v45 }
 0x302   :  { %4146 = vmatpush1.msk.msra.mxu0 %vm8368_vm15, %v8288_v42  ;;  %vm8396_vm15 = vcmp.eq.s32.totalorder %v8395_v3, %v5604_v16  ;;  %v2414_v3 = vld [vmem:[%s8019_s4] sm:$0xff] }
 0x303   :  { %3006 = vmatprep.subr.mxu0 %v4418_v45 }
 0x304   :  { %4147 = vmatpush1.msk.msra.mxu0 %vm8369_vm8, %v8288_v42  ;;  %vm8398_vm8 = vcmp.eq.s32.totalorder %v8397_v43, %v5604_v16  ;;  %v2415_v43 = vld [vmem:[%s8019_s4 + $0x8] sm:$0xff] }
 0x305   :  { %3008 = vmatprep.subr.mxu0 %v4418_v45 }
 0x306   :  { %4148 = vmatpush1.msk.msra.mxu0 %vm8370_vm1, %v8288_v42  ;;  %vm2469_vm1 = vcmp.ne.s32.totalorder %v2465_v48, 0 }
 0x307   :  { %3010 = vmatprep.subr.mxu0 %v4418_v45 }
 0x308   :  { %4149 = vmatpush1.msk.msra.mxu0 %vm8371_vm3, %v8288_v42  ;;  %vm2471_vm3 = vcmp.lt.s32.totalorder %v2465_v48, 0 }
 0x309   :  { %3016 = vmatprep.subr.mxu0 %v4418_v45 }
 0x30a   :  { %4150 = vmatpush2.msk.msra.mxu0 %vm8372_vm11, %v8288_v42  ;;  %vm2468_vm11 = vcmp.ne.s32.totalorder %v2454_v39, 0 }
 0x30b   :  { %3018 = vmatprep.subr.mxu0 %v4418_v45 }
 0x30c   :  { %4151 = vmatpush2.msk.msra.mxu0 %vm8374_vm4, %v8288_v42  ;;  %vm2470_vm4 = vcmp.lt.s32.totalorder %v2454_v39, 0 }
 0x30d   :  { %3020 = vmatprep.subr.mxu0 %v4418_v45 }
 0x30e   :  { %4152 = vmatpush2.msk.msra.mxu0 %vm8376_vm12, %v8288_v42  ;;  %vm2473_vm12 = vmand %vm2471_vm3, %vm2469_vm1 }
 0x30f   :  { %3022 = vmatprep.subr.mxu0 %v4418_v45  ;;  %v2477_v16 = vsel %vm2473_vm12, %v2475_v12, %v2465_v48  ;;  %vm2540_vm12 = vcmask 908288  }
 0x310   :  { %4153 = vmatpush2.msk.msra.mxu0 %vm8378_vm2, %v8288_v42  ;;  %vm2472_vm2 = vmand %vm2470_vm4, %vm2468_vm11  ;;  %v2577_v41 = vadd.s32 2, %v2477_v16  ;;  %v2544_v20 = vadd.s32 1, %v2477_v16 }
 0x311   :  { %3024 = vmatprep.subr.mxu0 %v4418_v45  ;;  %v2476_v38 = vsel %vm2472_vm2, %v2474_v35, %v2454_v39 }
 0x312   :  { %4154 = vmatpush2.msk.msra.mxu0 %vm8380_vm10, %v8288_v42  ;;  %v2576_v53 = vadd.s32 2, %v2476_v38  ;;  %vm2579_vm10 = vcmp.ge.s32.totalorder %v2577_v41, 0  ;;  %v2543_v51 = vadd.s32 1, %v2476_v38 }
 0x313   :  { %3026 = vmatprep.subr.mxu0 %v4418_v45 }
 0x314   :  { %4155 = vmatpush2.msk.msra.mxu0 %vm8382_vm14, %v8288_v42  ;;  %vm2581_vm14 = vcmp.lt.s32.totalorder %v2577_v41, 120  ;;  %vm2545_vm1 = vcmp.ge.s32.totalorder %v2543_v51, 0  ;;  %vm2547_vm3 = vcmp.lt.s32.totalorder %v2543_v51, 120 }
 0x315   :  { %3028 = vmatprep.subr.mxu0 %v4418_v45  ;;  %vm7449_vm2 = vmand %vm2545_vm1, %vm2547_vm3  ;;  %vm8419_vm3 = vcmask 7168  }
 0x316   :  { %4156 = vmatpush2.msk.msra.mxu0 %vm8384_vm9, %v8288_v42  ;;  %vm2578_vm9 = vcmp.ge.s32.totalorder %v2576_v53, 0 }
 0x317   :  { %3030 = vmatprep.subr.mxu0 %v4418_v45 }
 0x318   :  { %4157 = vmatpush2.msk.msra.mxu0 %vm8386_vm0, %v8288_v42  ;;  %vm2580_vm0 = vcmp.lt.s32.totalorder %v2576_v53, 120 }
 0x319   :  { %3032 = vmatprep.subr.mxu0 %v4418_v45 }
 0x31a   :  { %4158 = vmatpush2.msk.msra.mxu0 %vm8388_vm6, %v8288_v42  ;;  %vm7427_vm6 = vmand %vm2579_vm10, %vm2581_vm14  ;;  %vm8413_vm10 = vcmask 1039360  }
 0x31b   :  { %3034 = vmatprep.subr.mxu0 %v4418_v45  ;;  %vm8414_vm14 = vmmov %vm8413_vm10 }
 0x31c   :  { %4159 = vmatpush2.msk.msra.mxu0 %vm8390_vm5, %v8288_v42  ;;  %vm2573_vm5 = vcmask 900096  }
 0x31d   :  { %3036 = vmatprep.subr.mxu0 %v4418_v45 }
 0x31e   :  { %4160 = vmatpush2.msk.msra.mxu0 %vm8392_vm7, %v8288_v42  ;;  %vm7431_vm7 = vmand %vm2578_vm9, %vm2580_vm0 }
 0x31f   :  { %3038 = vmatprep.subr.mxu0 %v4418_v45 }
 0x320   :  { %4161 = vmatpush2.msk.msra.mxu0 %vm8394_vm13, %v8288_v42  ;;  %vm2546_vm13 = vcmp.ge.s32.totalorder %v2544_v20, 0 }
 0x321   :  { %3040 = vmatprep.subr.mxu0 %v4418_v45 }
 0x322   :  { %4162 = vmatpush2.msk.msra.mxu0 %vm8396_vm15, %v8288_v42  ;;  %vm2548_vm15 = vcmp.lt.s32.totalorder %v2544_v20, 120 }
 0x323   :  { %3042 = vmatprep.subr.mxu0 %v4418_v45  ;;  %vm7442_vm11 = vmand %vm2546_vm13, %vm2548_vm15 }
 0x324   :  { %4163 = vmatpush2.msk.msra.mxu0 %vm8398_vm8, %v8288_v42  ;;  %vm8407_vm8 = vcmask 1031168  }
 0x325   :  { %vm8410_vm4 = vmmov %vm8407_vm8 }
 0x35e   :  { %v2172_v30 = vpop.f32.mrf.mxu0 }
 0x360   :  { %v2174_v40 = vpop.f32.mrf.mxu0 }
 0x36a   :  { %v2249_v50 = vpop.f32.mrf.mxu1 }
 0x36b   :  { %v2250_v28 = vadd.f32 %v2249_v50, %v2172_v30 }
 0x36c   :  { %v2251_v47 = vpop.f32.mrf.mxu1 }
 0x36d   :  { %v2252_v58 = vadd.f32 %v2251_v47, %v2174_v40 }
 0x377   :  { %v2178_v62 = vpop.f32.mrf.mxu0 }
 0x379   :  { %v2180_v14 = vpop.f32.mrf.mxu0 }
 0x382   :  { %v2255_v34 = vpop.f32.mrf.mxu1 }
 0x383   :  { %v2256_v63 = vadd.f32 %v2255_v34, %v2178_v62 }
 0x384   :  { %v2257_v19 = vpop.f32.mrf.mxu1 }
 0x385   :  { %v2258_v6 = vadd.f32 %v2257_v19, %v2180_v14 }
 0x39e   :  { %v2403_v54 = vpop.f32.mrf.mxu1 }
 0x3a0   :  { %v2405_v27 = vpop.f32.mrf.mxu1 }
 0x3a4   :  { %v2409_v18 = vpop.f32.mrf.mxu1 }
 0x3a6   :  { %v2411_v60 = vpop.f32.mrf.mxu1 }
 0x3a9   :  { %v2326_v33 = vpop.f32.mrf.mxu0 }
 0x3aa   :  { %v2327_v22 = vadd.f32 %v2326_v33, %v2250_v28 }
 0x3ab   :  { %v2328_v17 = vpop.f32.mrf.mxu0 }
 0x3ac   :  { %v7232_v24 = vadd.f32 %v2403_v54, %v2327_v22  ;;  %v2329_v25 = vadd.f32 %v2328_v17, %v2252_v58  ;;  %v2511_v22 = vadd.s32 4294967295, %v2477_v16 }
 0x3ad   :  { %v2332_v56 = vpop.f32.mrf.mxu0 }
 0x3ae   :  { %v7234_v13 = vadd.f32 %v2405_v27, %v2329_v25  ;;  %2559 = vrot.lane.b32.xlu1 %v7232_v24, %s4415_s25  ;;  %v2333_v29 = vadd.f32 %v2332_v56, %v2256_v63  ;;  %v2510_v27 = vadd.s32 4294967295, %v2476_v38  ;;  %vm2513_vm9 = vcmp.ge.s32.totalorder %v2511_v22, 0 }
 0x3af   :  { %v2334_v32 = vpop.f32.mrf.mxu0  ;;  %vm2515_vm0 = vcmp.lt.s32.totalorder %v2511_v22, 120 }
 0x3b0   :  { %2561 = vrot.lane.b32.xlu0 %v7234_v13, %s4415_s25  ;;  %v2335_v55 = vadd.f32 %v2334_v32, %v2258_v6  ;;  %v7242_v0 = vadd.f32 %v2409_v18, %v2333_v29  ;;  %v2479_v29 = vadd.s32 4294967294, %v2477_v16  ;;  %v2478_v18 = vadd.s32 4294967294, %v2476_v38  ;;  %vm7469_vm13 = vmand %vm2513_vm9, %vm2515_vm0 }
 0x3b2   :  { %2526 = vrot.lane.b32.xlu1 %v7232_v24, %s4414_s0  ;;  %v7246_v23 = vadd.f32 %v2411_v60, %v2335_v55  ;;  %vm2483_vm1 = vcmp.lt.s32.totalorder %v2479_v29, 120 }
 0x3b4   :  { %2528 = vrot.lane.b32.xlu0 %v7234_v13, %s4414_s0 }
 0x3b6   :  { %2563 = vrot.lane.b32.xlu1 %v7242_v0, %s4415_s25 }
 0x3b8   :  { %2565 = vrot.lane.b32.xlu0 %v7246_v23, %s4415_s25 }
 0x3ba   :  { %2530 = vrot.lane.b32.xlu1 %v7242_v0, %s4414_s0 }
 0x3bc   :  { %2532 = vrot.lane.b32.xlu0 %v7246_v23, %s4414_s0 }
 0x3be   :  { %2496 = vrot.lane.b32.xlu1 %v7234_v13, %s4410_s24 }
 0x3c0   :  { %2498 = vrot.lane.b32.xlu0 %v7242_v0, %s4410_s24 }
 0x3c2   :  { %2500 = vrot.lane.b32.xlu1 %v7246_v23, %s4410_s24 }
 0x3c4   :  { %2494 = vrot.lane.b32.xlu0 %v7232_v24, %s4410_s24 }
 0x3c6   :  { %2436 = vrot.lane.b32.xlu1 %v7246_v23, %s4409_s23 }
 0x3c8   :  { %2434 = vrot.lane.b32.xlu0 %v7242_v0, %s4409_s23 }
 0x3ca   :  { %2432 = vrot.lane.b32.xlu1 %v7234_v13, %s4409_s23 }
 0x3cc   :  { %2430 = vrot.lane.b32.xlu0 %v7232_v24, %s4409_s23 }
 0x420   :  { %v2560_v42 = vpop.permute.xlu1 %2559 }
 0x422   :  { %v2562_v2 = vpop.permute.xlu0 %2561 }
 0x423   :  { %v2574_v19 = vsel %vm2573_vm5, %v2562_v2, 0.0  ;;  %v2567_v54 = vsel %vm8410_vm4, %v2560_v42, %v2562_v2  ;;  %vm2482_vm4 = vcmp.lt.s32.totalorder %v2478_v18, 120 }
 0x424   :  { %v2527_v8 = vpop.permute.xlu1 %2526 }
 0x426   :  { %v2529_v36 = vpop.permute.xlu0 %2528 }
 0x427   :  { %v2541_v63 = vsel %vm2540_vm12, %v2529_v36, 0.0  ;;  %v2534_v32 = vsel %vm8414_vm14, %v2527_v8, %v2529_v36 }
 0x428   :  { %v2564_v30 = vpop.permute.xlu1 %2563 }
 0x42a   :  { %v2566_v40 = vpop.permute.xlu0 %2565 }
 0x42b   :  { %v2568_v62 = vsel %vm8407_vm8, %v2564_v30, %v2566_v40  ;;  %v2575_v34 = vsel %vm2573_vm5, %v2566_v40, 0.0  ;;  %vm2481_vm8 = vcmp.ge.s32.totalorder %v2479_v29, 0 }
 0x42c   :  { %v2531_v14 = vpop.permute.xlu1 %2530  ;;  %4114 = vmatprep.subr.msk.mxu1 %vm7427_vm6, %v2575_v34  ;;  %vm7486_vm14 = vmand %vm2481_vm8, %vm2483_vm1 }
 0x42d   :  { %4115 = vmatpush1.msk.msra.mxu1 %vm7431_vm7, %v2568_v62 }
 0x42e   :  { %4116 = vmatprep.subr.msk.mxu1 %vm7427_vm6, %v2574_v19  ;;  %v2533_v33 = vpop.permute.xlu0 %2532  ;;  %vm2512_vm6 = vcmp.ge.s32.totalorder %v2510_v27, 0 }
 0x42f   :  { %v2535_v17 = vsel %vm8413_vm10, %v2531_v14, %v2533_v33  ;;  %v2542_v25 = vsel %vm2540_vm12, %v2533_v33, 0.0  ;;  %4117 = vmatpush1.msk.msra.mxu1 %vm7431_vm7, %v2567_v54  ;;  %vm2514_vm7 = vcmp.lt.s32.totalorder %v2510_v27, 120 }
 0x430   :  { %v2497_v56 = vpop.permute.xlu1 %2496  ;;  %4118 = vmatprep.subr.msk.mxu1 %vm7442_vm11, %v2542_v25  ;;  %vm7474_vm15 = vmand %vm2512_vm6, %vm2514_vm7  ;;  %vm8425_vm6 = vcmask 15360   ;;  %v2422_v25 = vld [vmem:[%s8021_s6] sm:$0xff] }
 0x431   :  { %4119 = vmatpush1.msk.msra.mxu1 %vm7449_vm2, %v2535_v17  ;;  %vm8426_vm7 = vmmov %vm8425_vm6 }
 0x432   :  { %4120 = vmatprep.subr.msk.mxu1 %vm7442_vm11, %v2541_v63  ;;  %v2499_v6 = vpop.permute.xlu0 %2498  ;;  %vm2480_vm11 = vcmp.ge.s32.totalorder %v2478_v18, 0  ;;  %vm8427_vm8 = vmmov %vm8425_vm6 }
 0x433   :  { %4121 = vmatpush1.msk.msra.mxu1 %vm7449_vm2, %v2534_v32  ;;  %vm8420_vm2 = vmmov %vm8419_vm3 }
 0x434   :  { %v2501_v55 = vpop.permute.xlu1 %2500  ;;  %2625 = vmatprep.subr.mxu1 %v7246_v23  ;;  %vm8421_vm10 = vmmov %vm8420_vm2 }
 0x435   :  { %2626 = vmatpush1.msra.mxu1 %v7242_v0  ;;  %v2503_v37 = vsel %vm8419_vm3, %v2499_v6, %v2501_v55  ;;  %v2509_v0 = vsel %vm8420_vm2, 0.0, %v2499_v6  ;;  %vm8424_vm9 = vmmov %vm8420_vm2  ;;  %vm2955_vm3 = vcmask 891904  }
 0x436   :  { %2627 = vmatprep.subr.mxu1 %v7234_v13  ;;  %v2495_v26 = vpop.permute.xlu0 %2494  ;;  %vm2484_vm0 = vmand %vm2480_vm11, %vm2482_vm4  ;;  %vm8429_vm11 = vcmask 1039360   ;;  %vm8430_vm4 = vcmask 1031168  }
 0x437   :  { %2628 = vmatpush1.msra.mxu1 %v7232_v24  ;;  %v2502_v13 = vsel %vm8421_vm10, %v2495_v26, %v2497_v56  ;;  %v2508_v5 = vsel %vm8424_vm9, 0.0, %v2495_v26  ;;  %vm8428_vm1 = vmmov %vm8425_vm6  ;;  %vm8432_vm10 = vcmask 1022976  }
 0x438   :  { %v2437_v23 = vpop.permute.xlu1 %2436  ;;  %4122 = vmatprep.subr.msk.mxu1 %vm7469_vm13, %v2503_v37  ;;  %vm8431_vm2 = vmmov %vm8429_vm11 }
 0x439   :  { %4123 = vmatpush1.msk.msra.mxu1 %vm7474_vm15, %v2509_v0  ;;  %vm8434_vm9 = vmmov %vm8432_vm10 }
 0x43a   :  { %4124 = vmatprep.subr.msk.mxu1 %vm7469_vm13, %v2502_v13  ;;  %v2435_v24 = vpop.permute.xlu0 %2434  ;;  %vm2592_vm13 = vcmask 654336  }
 0x43b   :  { %v2439_v49 = vsel %vm8425_vm6, %v2435_v24, %v2437_v23  ;;  %v2445_v11 = vsel %vm8426_vm7, 0.0, %v2435_v24  ;;  %4125 = vmatpush1.msk.msra.mxu1 %vm7474_vm15, %v2508_v5  ;;  %vm2694_vm15 = vcmask 916480   ;;  %vm8436_vm6 = vmmov %vm8430_vm4 }
 0x43c   :  { %4126 = vmatprep.subr.msk.mxu1 %vm7486_vm14, %v2439_v49  ;;  %v2433_v21 = vpop.permute.xlu1 %2432  ;;  %vm8437_vm7 = vmmov %vm8434_vm9 }
 0x43d   :  { %4127 = vmatpush1.msk.msra.mxu1 %vm2484_vm0, %v2445_v11 }
 0x43e   :  { %v2431_v1 = vpop.permute.xlu0 %2430 }
 0x43f   :  { %v2438_v44 = vsel %vm8427_vm8, %v2431_v1, %v2433_v21  ;;  %v2444_v7 = vsel %vm8428_vm1, 0.0, %v2431_v1  ;;  %vm8439_vm1 = vmmov %vm8430_vm4 }
 0x440   :  { %4128 = vmatprep.subr.msk.mxu1 %vm7486_vm14, %v2438_v44  ;;  %vm8433_vm14 = vmmov %vm8430_vm4 }
 0x441   :  { %4129 = vmatpush1.msk.msra.mxu1 %vm2484_vm0, %v2444_v7  ;;  %vm8435_vm0 = vmmov %vm8431_vm2 }
 0x442   :  { %4130 = vmatmul.mubr.msk.f32.vlgmr.msra.gmra.mxu1 %vm2592_vm13, %v2414_v3  ;;  %3248 = vmatprep.subr.mxu1 %v4418_v45  ;;  %vm8438_vm8 = vmmov %vm8435_vm0 }
 0x443   :  { %2675 = vmatprep.mubr.f32.mxu1 %v4418_v45 }
 0x446   :  { %4131 = vmatmul.mubr.msk.f32.gmra.mxu1 %vm2592_vm13, %v2415_v43 }
 0x447   :  { %2681 = vmatprep.mubr.f32.mxu1 %v4418_v45 }
 0x44a   :  { %4132 = vmatmul.mubr.msk.f32.gmra.mxu1 %vm2592_vm13, %v2416_v59 }
 0x44b   :  { %2687 = vmatprep.mubr.f32.mxu1 %v4418_v45 }
 0x44e   :  { %4133 = vmatmul.mubr.msk.f32.gmra.mxu1 %vm2592_vm13, %v2417_v4 }
 0x502   :  { %v7519_v10 = vpop.f32.mrf.mxu1 }
 0x503   :  { %v2715_v48 = vmul.f32 %v7519_v10, %v7519_v10 }
 0x504   :  { %v7521_v31 = vpop.f32.mrf.mxu1 }
 0x505   :  { %v2716_v15 = vmul.f32 %v7521_v31, %v7521_v31  ;;  %v2695_v52 = vsel %vm2694_vm15, %v7521_v31, 0.0 }
 0x506   :  { %v7529_v39 = vpop.f32.mrf.mxu1  ;;  %v2696_v12 = vadd.f32 %v2695_v52, %v7519_v10 }
 0x507   :  { %v2723_v35 = vsel %vm2694_vm15, %v2716_v15, 0.0  ;;  %v2717_v20 = vmul.f32 %v7529_v39, %v7529_v39 }
 0x508   :  { %2697 = vadd.xlane.f32.xlu0 %v2696_v12  ;;  %v7533_v16 = vpop.f32.mrf.mxu1  ;;  %v2724_v42 = vadd.f32 %v2723_v35, %v2715_v48  ;;  %v2418_v12 = vld [vmem:[%s8020_s5] sm:$0xff] }
 0x509   :  { %v2718_v38 = vmul.f32 %v7533_v16, %v7533_v16  ;;  %v2699_v2 = vsel %vm2694_vm15, %v7533_v16, 0.0 }
 0x50a   :  { %2725 = vadd.xlane.f32.xlu1 %v2724_v42  ;;  %v7539_v41 = vpop.f32.mrf.mxu1  ;;  %v2700_v53 = vadd.f32 %v2699_v2, %v7529_v39  ;;  %v2419_v2 = vld [vmem:[%s8020_s5 + $0x8] sm:$0xff] }
 0x50b   :  { %v2727_v8 = vsel %vm2694_vm15, %v2718_v38, 0.0  ;;  %v2719_v51 = vmul.f32 %v7539_v41, %v7539_v41 }
 0x50c   :  { %2701 = vadd.xlane.f32.xlu0 %v2700_v53  ;;  %v7543_v36 = vpop.f32.mrf.mxu1  ;;  %v2728_v47 = vadd.f32 %v2727_v8, %v2717_v20  ;;  %v2420_v20 = vld [vmem:[%s8020_s5 + $0x10] sm:$0xff] }
 0x50d   :  { %v2703_v30 = vsel %vm2694_vm15, %v7543_v36, 0.0  ;;  %v2720_v50 = vmul.f32 %v7543_v36, %v7543_v36 }
 0x50e   :  { %v7553_v40 = vpop.f32.mrf.mxu1  ;;  %v2704_v62 = vadd.f32 %v2703_v30, %v7539_v41  ;;  %v2423_v30 = vld [vmem:[%s8021_s6 + $0x8] sm:$0xff] }
 0x50f   :  { %v2731_v34 = vsel %vm2694_vm15, %v2720_v50, 0.0  ;;  %v2721_v28 = vmul.f32 %v7553_v40, %v7553_v40 }
 0x510   :  { %2729 = vadd.xlane.f32.xlu0 %v2728_v47  ;;  %2705 = vadd.xlane.f32.xlu1 %v2704_v62  ;;  %v7557_v14 = vpop.f32.mrf.mxu1  ;;  %v2732_v19 = vadd.f32 %v2731_v34, %v2719_v51  ;;  %v2421_v47 = vld [vmem:[%s8020_s5 + $0x18] sm:$0xff]  ;;  %v2424_v34 = vld [vmem:[%s8021_s6 + $0x10] sm:$0xff] }
 0x511   :  { %v2707_v54 = vsel %vm2694_vm15, %v7557_v14, 0.0  ;;  %v2722_v33 = vmul.f32 %v7557_v14, %v7557_v14 }
 0x512   :  { %v2708_v58 = vadd.f32 %v2707_v54, %v7553_v40 }
 0x513   :  { %v2735_v22 = vsel %vm2694_vm15, %v2722_v33, 0.0 }
 0x514   :  { %2733 = vadd.xlane.f32.xlu0 %v2732_v19  ;;  %2709 = vadd.xlane.f32.xlu1 %v2708_v58  ;;  %v2736_v17 = vadd.f32 %v2735_v22, %v2721_v28  ;;  %v2425_v28 = vld [vmem:[%s8021_s6 + $0x18] sm:$0xff] }
 0x518   :  { %2737 = vadd.xlane.f32.xlu0 %v2736_v17 }
 0x52e   :  { %2805 = vperm.xlu0 %4233, %v2422_v25  }
 0x591   :  { %v2698_v27 = vpop.xlane.xlu0 %2697 }
 0x592   :  { %v7570_v56 = vmul.f32 0.004166667, %v2698_v27 }
 0x593   :  { %v2726_v63 = vpop.xlane.xlu1 %2725 }
 0x594   :  { %v2739_v32 = vmul.f32 0.004166667, %v2726_v63  ;;  %v2743_v6 = vmul.f32 %v7570_v56, %v7570_v56  ;;  %v2768_v54 = vsub.f32 %v7521_v31, %v7570_v56  ;;  %v2767_v25 = vsub.f32 %v7519_v10, %v7570_v56 }
 0x595   :  { %v2702_v29 = vpop.xlane.xlu0 %2701 }
 0x596   :  { %v2747_v18 = vsub.f32 %v2739_v32, %v2743_v6  ;;  %v7574_v55 = vmul.f32 0.004166667, %v2702_v29 }
 0x598   :  { %v2751_v60 = vmax.f32 %v2747_v18, 0.0  ;;  %v2744_v0 = vmul.f32 %v7574_v55, %v7574_v55  ;;  %v2769_v6 = vsub.f32 %v7529_v39, %v7574_v55  ;;  %v2770_v29 = vsub.f32 %v7533_v16, %v7574_v55 }
 0x599   :  { %v2730_v26 = vpop.xlane.xlu0 %2729  ;;  %v2706_v57 = vpop.xlane.xlu1 %2705 }
 0x59a   :  { %v2755_v37 = vadd.f32 1e-05, %v2751_v60  ;;  %v2740_v23 = vmul.f32 0.004166667, %v2730_v26  ;;  %v7578_v13 = vmul.f32 0.004166667, %v2706_v57 }
 0x59c   :  { %4358 = vrsqrt.f32 %v2755_v37  ;;  %v2748_v9 = vsub.f32 %v2740_v23, %v2744_v0  ;;  %v2745_v5 = vmul.f32 %v7578_v13, %v7578_v13  ;;  %v2772_v16 = vsub.f32 %v7543_v36, %v7578_v13 }
 0x59d   :  { %v2734_v24 = vpop.xlane.xlu0 %2733  ;;  %v2710_v49 = vpop.xlane.xlu1 %2709 }
 0x59e   :  { %v2752_v11 = vmax.f32 %v2748_v9, 0.0  ;;  %v2741_v21 = vmul.f32 0.004166667, %v2734_v24  ;;  %v7582_v1 = vmul.f32 0.004166667, %v2710_v49 }
 0x5a0   :  { %v2756_v44 = vadd.f32 1e-05, %v2752_v11  ;;  %v2749_v7 = vsub.f32 %v2741_v21, %v2745_v5  ;;  %v2746_v3 = vmul.f32 %v7582_v1, %v7582_v1  ;;  %v2771_v5 = vsub.f32 %v7539_v41, %v7578_v13 }
 0x5a1   :  { %v2738_v43 = vpop.xlane.xlu0 %2737  ;;  %v2773_v11 = vsub.f32 %v7553_v40, %v7582_v1  ;;  %v2774_v40 = vsub.f32 %v7557_v14, %v7582_v1 }
 0x5a2   :  { %4360 = vrsqrt.f32 %v2756_v44  ;;  %v2753_v59 = vmax.f32 %v2749_v7, 0.0  ;;  %v2742_v4 = vmul.f32 0.004166667, %v2738_v43 }
 0x5a4   :  { %v2757_v15 = vadd.f32 1e-05, %v2753_v59  ;;  %v2750_v52 = vsub.f32 %v2742_v4, %v2746_v3 }
 0x5a6   :  { %4362 = vrsqrt.f32 %v2757_v15  ;;  %v2754_v48 = vmax.f32 %v2750_v52, 0.0 }
 0x5a8   :  { %v2758_v35 = vadd.f32 1e-05, %v2754_v48 }
 0x5a9   :  { %v4359_v42 = vpop.eup %4358  ;;  %v2806_v22 = vpop.permute.xlu0 %2805 }
 0x5aa   :  { %4364 = vrsqrt.f32 %v2758_v35  ;;  %v2763_v38 = vmul.f32 %v4359_v42, %v2418_v12 }
 0x5ac   :  { %2777 = vperm.xlu1 %4232, %v2763_v38  }
 0x5af   :  { %v4361_v53 = vpop.eup %4360 }
 0x5b0   :  { %v2764_v8 = vmul.f32 %v4361_v53, %v2419_v2 }
 0x5b2   :  { %2782 = vperm.xlu1 %4232, %v2764_v8  }
 0x5b3   :  { %v4363_v51 = vpop.eup %4362 }
 0x5b4   :  { %v2765_v50 = vmul.f32 %v4363_v51, %v2420_v20 }
 0x5b6   :  { %2787 = vperm.xlu0 %4233, %v2765_v50   ;;  %2810 = vperm.xlu1 %4232, %v2423_v30  }
 0x5b7   :  { %v4365_v62 = vpop.eup %4364 }
 0x5b8   :  { %v2766_v19 = vmul.f32 %v4365_v62, %v2421_v47 }
 0x5ba   :  { %2815 = vperm.xlu1 %4232, %v2424_v34   ;;  %2792 = vperm.xlu0 %4233, %v2766_v19  }
 0x5be   :  { %2820 = vperm.xlu1 %4232, %v2425_v28  }
 0x627   :  { %v2778_v33 = vpop.permute.xlu1 %2777 }
 0x628   :  { %v2796_v58 = vmul.f32 %v2778_v33, %v2768_v54  ;;  %v2795_v63 = vmul.f32 %v2778_v33, %v2767_v25 }
 0x62a   :  { %v2824_v17 = vadd.f32 %v2806_v22, %v2796_v58  ;;  %v7621_v60 = vadd.f32 %v2806_v22, %v2795_v63 }
 0x62c   :  { %v7611_v27 = vmax.f32 %v2824_v17, 0.0  ;;  %v2831_v37 = vmax.f32 %v7621_v60, 0.0 }
 0x62d   :  { %v2783_v32 = vpop.permute.xlu1 %2782 }
 0x62e   :  { %2929 = vrot.lane.b32.xlu1 %v7611_v27, %s4417_s2  ;;  %2849 = vrot.lane.b32.xlu0 %v7611_v27, %s4414_s0  ;;  %v2797_v31 = vmul.f32 %v2783_v32, %v2769_v6  ;;  %v2798_v18 = vmul.f32 %v2783_v32, %v2770_v29 }
 0x631   :  { %v2811_v10 = vpop.permute.xlu1 %2810  ;;  %v2788_v39 = vpop.permute.xlu0 %2787 }
 0x632   :  { %v7623_v56 = vadd.f32 %v2811_v10, %v2797_v31  ;;  %v2826_v26 = vadd.f32 %v2811_v10, %v2798_v18  ;;  %2889 = vrot.lane.b32.xlu0 %v7611_v27, %s4415_s25  ;;  %v2800_v23 = vmul.f32 %v2788_v39, %v2772_v16  ;;  %v2799_v36 = vmul.f32 %v2788_v39, %v2771_v5 }
 0x634   :  { %v2833_v55 = vmax.f32 %v7623_v56, 0.0  ;;  %v7630_v57 = vmax.f32 %v2826_v26, 0.0 }
 0x635   :  { %v2816_v0 = vpop.permute.xlu1 %2815  ;;  %v2793_v49 = vpop.permute.xlu0 %2792 }
 0x636   :  { %2853 = vrot.lane.b32.xlu0 %v7630_v57, %s4414_s0  ;;  %v4334_v9 = vpack.i.bf16 %v2833_v55, %v2831_v37  ;;  %v2828_v24 = vadd.f32 %v2816_v0, %v2800_v23  ;;  %v2827_v21 = vadd.f32 %v2816_v0, %v2799_v36  ;;  %v2801_v3 = vmul.f32 %v2793_v49, %v2773_v11 }
 0x637   :  { %v2802_v59 = vmul.f32 %v2793_v49, %v2774_v40 }
 0x638   :  { %4335 = vrot.lane.b32.xlu1 %v4334_v9, %s4414_s0  ;;  %v7643_v44 = vmax.f32 %v2828_v24, 0.0  ;;  %v7648_v41 = vmax.f32 %v2827_v21, 0.0 }
 0x639   :  { %v2821_v7 = vpop.permute.xlu1 %2820 }
 0x63a   :  { %4345 = vrot.lane.b32.xlu0 %v4334_v9, %s4417_s2  ;;  %v2829_v13 = vadd.f32 %v2821_v7, %v2801_v3  ;;  %v2830_v4 = vadd.f32 %v2821_v7, %v2802_v59 }
 0x63c   :  { %4340 = vrot.lane.b32.xlu1 %v4334_v9, %s4415_s25  ;;  %v7656_v43 = vmax.f32 %v2829_v13, 0.0  ;;  %v7667_v52 = vmax.f32 %v2830_v4, 0.0 }
 0x63e   :  { %2857 = vrot.lane.b32.xlu0 %v7643_v44, %s4414_s0  ;;  %v4349_v15 = vpack.i.bf16 %v7656_v43, %v7648_v41 }
 0x640   :  { %2893 = vrot.lane.b32.xlu1 %v7630_v57, %s4415_s25 }
 0x642   :  { %2895 = vrot.lane.b32.xlu0 %v7648_v41, %s4415_s25 }
 0x644   :  { %2933 = vrot.lane.b32.xlu1 %v7630_v57, %s4417_s2 }
 0x646   :  { %2937 = vrot.lane.b32.xlu0 %v7643_v44, %s4417_s2 }
 0x648   :  { %2897 = vrot.lane.b32.xlu1 %v7643_v44, %s4415_s25 }
 0x64a   :  { %4350 = vrot.lane.b32.xlu0 %v4349_v15, %s4414_s0 }
 0x64c   :  { %2935 = vrot.lane.b32.xlu1 %v7648_v41, %s4417_s2 }
 0x64e   :  { %2901 = vrot.lane.b32.xlu0 %v7667_v52, %s4415_s25 }
 0x650   :  { %2861 = vrot.lane.b32.xlu1 %v7667_v52, %s4414_s0 }
 0x652   :  { %2941 = vrot.lane.b32.xlu0 %v7667_v52, %s4417_s2 }
 0x654   :  { %2899 = vrot.lane.b32.xlu1 %v7656_v43, %s4415_s25 }
 0x658   :  { %2939 = vrot.lane.b32.xlu1 %v7656_v43, %s4417_s2 }
 0x6a0   :  { %v2850_v14 = vpop.permute.xlu0 %2849  ;;  %v2930_v12 = vpop.permute.xlu1 %2929 }
 0x6a1   :  { %v2875_v1 = vsel %vm2540_vm12, %v2850_v14, 0.0  ;;  %v2956_v2 = vsel %vm2955_vm3, %v2930_v12, 0.0 }
 0x6a2   :  { %v2880_v48 = vmax.f32 %v7611_v27, %v2875_v1 }
 0x6a4   :  { %v2890_v35 = vpop.permute.xlu0 %2889 }
 0x6a5   :  { %v2915_v42 = vsel %vm2573_vm5, %v2890_v35, 0.0 }
 0x6a6   :  { %v2920_v38 = vmax.f32 %v2880_v48, %v2915_v42 }
 0x6a8   :  { %v2961_v53 = vmax.f32 %v2920_v38, %v2956_v2  ;;  %v2854_v8 = vpop.permute.xlu0 %2853 }
 0x6a9   :  { %v2876_v33 = vsel %vm2540_vm12, %v2854_v8, 0.0 }
 0x6aa   :  { %4164 = vmatprep.mubr.msk.f32.mxu0 %vm2694_vm15, %v2961_v53  ;;  %v4336_v20 = vpop.permute.xlu1 %4335  ;;  %v2882_v31 = vmax.f32 %v7630_v57, %v2876_v33 }
 0x6ab   :  { %v4337_v51 = vunpack.i.l.bf16 %v4336_v20  ;;  %v4338_v50 = vunpack.i.h.bf16 %v4336_v20 }
 0x6ac   :  { %v4346_v30 = vpop.permute.xlu0 %4345 }
 0x6ad   :  { %v2863_v47 = vsel %vm8429_vm11, %v4337_v51, %v2850_v14  ;;  %v4347_v34 = vunpack.i.l.bf16 %v4346_v30  ;;  %v2864_v17 = vsel %vm8431_vm2, %v4338_v50, %v2854_v8  ;;  %v4348_v10 = vunpack.i.h.bf16 %v4346_v30 }
 0x6ae   :  { %v4341_v62 = vpop.permute.xlu1 %4340  ;;  %v2879_v54 = vmax.f32 %v2831_v37, %v2863_v47  ;;  %v2881_v60 = vmax.f32 %v2833_v55, %v2864_v17  ;;  %v3066_v17 = vld [vmem:[#allocation2 + $0x8] sm:$0xff] }
 0x6af   :  { %v4342_v19 = vunpack.i.l.bf16 %v4341_v62  ;;  %v4343_v58 = vunpack.i.h.bf16 %v4341_v62  ;;  %v2943_v63 = vsel %vm8432_vm10, %v4347_v34, %v2930_v12  ;;  %vm3181_vm10 = vcmask 482304  }
 0x6b0   :  { %v2858_v28 = vpop.permute.xlu0 %2857 }
 0x6b1   :  { %v2903_v22 = vsel %vm8430_vm4, %v4342_v19, %v2890_v35  ;;  %v2877_v37 = vsel %vm2540_vm12, %v2858_v28, 0.0 }
 0x6b2   :  { %v2919_v25 = vmax.f32 %v2879_v54, %v2903_v22  ;;  %v2894_v27 = vpop.permute.xlu1 %2893  ;;  %v2884_v57 = vmax.f32 %v7643_v44, %v2877_v37 }
 0x6b3   :  { %v2904_v32 = vsel %vm8433_vm14, %v4343_v58, %v2894_v27  ;;  %v2916_v6 = vsel %vm2573_vm5, %v2894_v27, 0.0 }
 0x6b4   :  { %v2896_v29 = vpop.permute.xlu0 %2895  ;;  %v2960_v18 = vmax.f32 %v2919_v25, %v2943_v63  ;;  %v2921_v26 = vmax.f32 %v2881_v60, %v2904_v32  ;;  %v2922_v39 = vmax.f32 %v2882_v31, %v2916_v6  ;;  %v3123_v25 = vshrl.u32 %v8400_v61, 4 }
 0x6b6   :  { %v2934_v16 = vpop.permute.xlu1 %2933  ;;  %3045 = vmatmul.mubr.f32.vlgmr.msra.gmra.mxu0 %v2960_v18  ;;  %v3124_v27 = vmul.u32 30, %v3123_v25 }
 0x6b7   :  { %v2944_v0 = vsel %vm8434_vm9, %v4348_v10, %v2934_v16  ;;  %v2957_v23 = vsel %vm2955_vm3, %v2934_v16, 0.0 }
 0x6b8   :  { %v2938_v9 = vpop.permute.xlu0 %2937  ;;  %v2962_v5 = vmax.f32 %v2921_v26, %v2944_v0  ;;  %v2963_v24 = vmax.f32 %v2922_v39, %v2957_v23  ;;  %v3125_v63 = vsub.s32 %v8402_v46, %v3124_v27 }
 0x6b9   :  { %v2958_v21 = vsel %vm2955_vm3, %v2938_v9, 0.0 }
 0x6ba   :  { %v2898_v36 = vpop.permute.xlu1 %2897  ;;  %4165 = vmatprep.mubr.msk.f32.mxu0 %vm2694_vm15, %v2963_v24  ;;  %vm3128_vm13 = vcmp.ne.s32.totalorder %v3125_v63, 0  ;;  %v3131_v32 = vadd.s32 30, %v3125_v63 }
 0x6bb   :  { %v2917_v56 = vsel %vm2573_vm5, %v2898_v36, 0.0  ;;  %3050 = vmatmul.mubr.f32.gmra.mxu0 %v2962_v5  ;;  %v2905_v44 = vsel %vm8436_vm6, %v2896_v29, %v2898_v36  ;;  %vm8445_vm6 = vcmask 7168  }
 0x6bc   :  { %v4351_v55 = vpop.permute.xlu0 %4350  ;;  %v2924_v49 = vmax.f32 %v2884_v57, %v2917_v56 }
 0x6bd   :  { %v4352_v11 = vunpack.i.l.bf16 %v4351_v55  ;;  %v4353_v1 = vunpack.i.h.bf16 %v4351_v55 }
 0x6be   :  { %v2965_v7 = vmax.f32 %v2924_v49, %v2958_v21  ;;  %v2936_v13 = vpop.permute.xlu1 %2935 }
 0x6bf   :  { %v2865_v3 = vsel %vm8435_vm0, %v4352_v11, %v2858_v28  ;;  %v2945_v15 = vsel %vm8437_vm7, %v2936_v13, %v2938_v9 }
 0x6c0   :  { %v2883_v40 = vmax.f32 %v7648_v41, %v2865_v3  ;;  %v2902_v59 = vpop.permute.xlu0 %2901  ;;  %4166 = vmatprep.mubr.msk.f32.mxu0 %vm2694_vm15, %v2965_v7 }
 0x6c1   :  { %v2918_v38 = vsel %vm2573_vm5, %v2902_v59, 0.0  ;;  %vm3223_vm5 = vcmask 261120  }
 0x6c2   :  { %v2923_v4 = vmax.f32 %v2883_v40, %v2905_v44  ;;  %v2862_v14 = vpop.permute.xlu1 %2861  ;;  %4184 = vmatprep.mubr.msk.f32.mxu1 %vm3223_vm5, %v3066_v17 }
 0x6c3   :  { %v2878_v12 = vsel %vm2540_vm12, %v2862_v14, 0.0  ;;  %v2866_v41 = vsel %vm8438_vm8, %v4353_v1, %v2862_v14  ;;  %vm8440_vm12 = vmmov %vm8437_vm7 }
 0x6c4   :  { %v2964_v48 = vmax.f32 %v2923_v4, %v2945_v15  ;;  %v2886_v35 = vmax.f32 %v7667_v52, %v2878_v12  ;;  %v2942_v42 = vpop.permute.xlu0 %2941  ;;  %v2885_v51 = vmax.f32 %v7656_v43, %v2866_v41  ;;  %vm8446_vm7 = vmmov %vm8445_vm6 }
 0x6c5   :  { %v2959_v8 = vsel %vm2955_vm3, %v2942_v42, 0.0 }
 0x6c6   :  { %3055 = vmatmul.mubr.f32.gmra.mxu0 %v2964_v48  ;;  %v2926_v2 = vmax.f32 %v2886_v35, %v2918_v38  ;;  %v2900_v53 = vpop.permute.xlu1 %2899  ;;  %v3091_v48 = vld [vmem:[%s8024_s9 + $0x10] sm:$0xff] }
 0x6c7   :  { %v2906_v20 = vsel %vm8439_vm1, %v2900_v53, %v2902_v59 }
 0x6c8   :  { %v2967_v30 = vmax.f32 %v2926_v2, %v2959_v8  ;;  %v2925_v50 = vmax.f32 %v2885_v51, %v2906_v20  ;;  %v3065_v2 = vld [vmem:[#allocation2] sm:$0xff]  ;;  %v3068_v8 = vld [vmem:[#allocation2 + $0x18] sm:$0xff]  ;;  %v3067_v20 = vld [vmem:[#allocation2 + $0x10] sm:$0xff] }
 0x6c9   :  { %v3070_v51 = vld [vmem:[#allocation2 + $0x28] sm:$0xff] }
 0x6ca   :  { %v2940_v47 = vpop.permute.xlu1 %2939  ;;  %4167 = vmatprep.mubr.msk.f32.mxu0 %vm2694_vm15, %v2967_v30  ;;  %vm3129_vm15 = vcmp.lt.s32.totalorder %v3125_v63, 0  ;;  %v3069_v30 = vld [vmem:[#allocation2 + $0x20] sm:$0xff] }
 0x6cb   :  { %v2946_v52 = vsel %vm8440_vm12, %v2940_v47, %v2942_v42  ;;  %vm3130_vm3 = vmand %vm3129_vm15, %vm3128_vm13  ;;  %v3071_v47 = vld [vmem:[#allocation2 + $0x30] sm:$0xff] }
 0x6cc   :  { %v2966_v62 = vmax.f32 %v2925_v50, %v2946_v52  ;;  %v3132_v6 = vsel %vm3130_vm3, %v3131_v32, %v3125_v63  ;;  %vm8447_vm12 = vmmov %vm8445_vm6  ;;  %vm8451_vm3 = vcmask 15360   ;;  %v3072_v50 = vld [vmem:[#allocation2 + $0x38] sm:$0xff]  ;;  %v3074_v52 = vld [vmem:[#allocation2 + $0x48] sm:$0xff] }
 0x6cd   :  { %v3186_v29 = vadd.s32 1, %v3132_v6  ;;  %v3159_v23 = vadd.s32 4294967295, %v3132_v6  ;;  %v3133_v36 = vadd.s32 4294967294, %v3132_v6  ;;  %vm8448_vm13 = vmmov %vm8445_vm6  ;;  %v3213_v40 = vadd.s32 2, %v3132_v6 }
 0x6ce   :  { %3060 = vmatmul.mubr.f32.gmra.mxu0 %v2966_v62  ;;  %v3076_v62 = vld [vmem:[#allocation2 + $0x58] sm:$0xff] }
 0x6cf   :  { %vm3187_vm11 = vcmp.ge.s32.totalorder %v3186_v29, 0  ;;  %vm3188_vm4 = vcmp.lt.s32.totalorder %v3186_v29, 30  ;;  %vm3160_vm14 = vcmp.ge.s32.totalorder %v3159_v23, 0  ;;  %vm3161_vm9 = vcmp.lt.s32.totalorder %v3159_v23, 30 }
 0x6d0   :  { %vm7748_vm2 = vmand %vm3187_vm11, %vm3188_vm4  ;;  %vm3134_vm8 = vcmp.ge.s32.totalorder %v3133_v36, 0  ;;  %vm3135_vm1 = vcmp.lt.s32.totalorder %v3133_v36, 30  ;;  %vm3214_vm4 = vcmp.ge.s32.totalorder %v3213_v40, 0 }
 0x6d1   :  { %vm7768_vm0 = vmand %vm3160_vm14, %vm3161_vm9 }
 0x6d2   :  { %vm7787_vm15 = vmand %vm3134_vm8, %vm3135_vm1 }
 0x6d3   :  { %vm8452_vm11 = vmmov %vm8451_vm3 }
 0x6d4   :  { %vm8454_vm14 = vmmov %vm8451_vm3 }
 0x776   :  { %v7717_v34 = vpop.f32.mrf.mxu0 }
 0x778   :  { %v3048_v19 = vpop.f32.mrf.mxu0 }
 0x779   :  { %v3078_v19 = vld [vmem:[#allocation2 + $0x68] sm:$0xff] }
 0x77b   :  { %v7719_v28 = vpop.f32.mrf.mxu0 }
 0x77d   :  { %v3053_v54 = vpop.f32.mrf.mxu0 }
 0x77e   :  { %v3080_v54 = vld [vmem:[#allocation2 + $0x78] sm:$0xff] }
 0x786   :  { %v3056_v33 = vpop.f32.mrf.mxu0 }
 0x787   :  { %3173 = vrot.lane.b32.xlu1 %v3056_v33, %s4414_s0 }
 0x788   :  { %v3058_v58 = vpop.f32.mrf.mxu0 }
 0x78b   :  { %3169 = vrot.lane.b32.xlu1 %v7717_v34, %s4414_s0 }
 0x78e   :  { %v3061_v43 = vpop.f32.mrf.mxu0 }
 0x78f   :  { %3147 = vrot.lane.b32.xlu1 %v3056_v33, %s4410_s24  ;;  %3175 = vrot.lane.b32.xlu0 %v3061_v43, %s4414_s0 }
 0x790   :  { %v3063_v22 = vpop.f32.mrf.mxu0 }
 0x793   :  { %3143 = vrot.lane.b32.xlu1 %v7717_v34, %s4410_s24  ;;  %3171 = vrot.lane.b32.xlu0 %v7719_v28, %s4414_s0 }
 0x797   :  { %3105 = vrot.lane.b32.xlu1 %v3056_v33, %s4409_s23  ;;  %3149 = vrot.lane.b32.xlu0 %v3061_v43, %s4410_s24 }
 0x79b   :  { %3101 = vrot.lane.b32.xlu1 %v7717_v34, %s4409_s23  ;;  %3145 = vrot.lane.b32.xlu0 %v7719_v28, %s4410_s24 }
 0x79f   :  { %3200 = vrot.lane.b32.xlu1 %v3056_v33, %s4415_s25  ;;  %3107 = vrot.lane.b32.xlu0 %v3061_v43, %s4409_s23 }
 0x7a3   :  { %3196 = vrot.lane.b32.xlu1 %v7717_v34, %s4415_s25  ;;  %3103 = vrot.lane.b32.xlu0 %v7719_v28, %s4409_s23 }
 0x7a7   :  { %3202 = vrot.lane.b32.xlu0 %v3061_v43, %s4415_s25 }
 0x7ab   :  { %3198 = vrot.lane.b32.xlu0 %v7719_v28, %s4415_s25 }
 0x7f9   :  { %v3174_v31 = vpop.permute.xlu1 %3173 }
 0x7fa   :  { %v3184_v46 = vsel %vm3181_vm10, %v3174_v31, 0.0 }
 0x7fd   :  { %v3170_v60 = vpop.permute.xlu1 %3169 }
 0x7fe   :  { %v3182_v37 = vsel %vm3181_vm10, %v3170_v60, 0.0 }
 0x801   :  { %v3176_v10 = vpop.permute.xlu0 %3175  ;;  %v3148_v16 = vpop.permute.xlu1 %3147 }
 0x802   :  { %v3185_v61 = vsel %vm3181_vm10, %v3176_v10, 0.0  ;;  %v3157_v49 = vsel %vm8446_vm7, 0.0, %v3148_v16 }
 0x803   :  { %4168 = vmatpush1.msk.msra.mxu1 %vm7748_vm2, %v3185_v61 }
 0x804   :  { %3250 = vmatprep.subr.mxu1 %v4418_v45 }
 0x805   :  { %4169 = vmatpush1.msk.msra.mxu1 %vm7748_vm2, %v3184_v46  ;;  %v3172_v26 = vpop.permute.xlu0 %3171  ;;  %v3144_v9 = vpop.permute.xlu1 %3143 }
 0x806   :  { %v3183_v39 = vsel %vm3181_vm10, %v3172_v26, 0.0  ;;  %3252 = vmatprep.subr.mxu1 %v4418_v45  ;;  %v3155_v7 = vsel %vm8448_vm13, 0.0, %v3144_v9  ;;  %vm8453_vm10 = vmmov %vm8451_vm3 }
 0x807   :  { %4170 = vmatpush1.msk.msra.mxu1 %vm7748_vm2, %v3183_v39 }
 0x808   :  { %3254 = vmatprep.subr.mxu1 %v4418_v45 }
 0x809   :  { %4171 = vmatpush1.msk.msra.mxu1 %vm7748_vm2, %v3182_v37  ;;  %v3150_v0 = vpop.permute.xlu0 %3149  ;;  %v3106_v55 = vpop.permute.xlu1 %3105  ;;  %vm3215_vm2 = vcmp.lt.s32.totalorder %v3213_v40, 30 }
 0x80a   :  { %3256 = vmatprep.subr.mxu1 %v4418_v45  ;;  %v3158_v56 = vsel %vm8445_vm6, 0.0, %v3150_v0  ;;  %v3115_v44 = vsel %vm8452_vm11, 0.0, %v3106_v55  ;;  %vm7807_vm9 = vmand %vm3214_vm4, %vm3215_vm2  ;;  %vm3353_vm6 = vcmask 490496  }
 0x80b   :  { %3257 = vmatpush1.msra.mxu1 %v3061_v43 }
 0x80c   :  { %3258 = vmatprep.subr.mxu1 %v4418_v45 }
 0x80d   :  { %3259 = vmatpush1.msra.mxu1 %v3056_v33  ;;  %v3146_v5 = vpop.permute.xlu0 %3145  ;;  %v3102_v13 = vpop.permute.xlu1 %3101  ;;  %v3079_v33 = vld [vmem:[#allocation2 + $0x70] sm:$0xff] }
 0x80e   :  { %3260 = vmatprep.subr.mxu1 %v4418_v45  ;;  %v3156_v11 = vsel %vm8447_vm12, 0.0, %v3146_v5  ;;  %v3113_v1 = vsel %vm8454_vm14, 0.0, %v3102_v13 }
 0x80f   :  { %3261 = vmatpush1.msra.mxu1 %v7719_v28  ;;  %v3077_v28 = vld [vmem:[#allocation2 + $0x60] sm:$0xff] }
 0x810   :  { %3262 = vmatprep.subr.mxu1 %v4418_v45 }
 0x811   :  { %3263 = vmatpush1.msra.mxu1 %v7717_v34  ;;  %v3108_v57 = vpop.permute.xlu0 %3107  ;;  %v3201_v14 = vpop.permute.xlu1 %3200  ;;  %v3075_v34 = vld [vmem:[#allocation2 + $0x50] sm:$0xff] }
 0x812   :  { %3264 = vmatprep.subr.mxu1 %v4418_v45  ;;  %v3116_v59 = vsel %vm8451_vm3, 0.0, %v3108_v57  ;;  %vm3625_vm3 = vcmask 519168  }
 0x813   :  { %4172 = vmatpush1.msk.msra.mxu1 %vm7768_vm0, %v3158_v56 }
 0x814   :  { %3266 = vmatprep.subr.mxu1 %v4418_v45 }
 0x815   :  { %4173 = vmatpush1.msk.msra.mxu1 %vm7768_vm0, %v3157_v49  ;;  %v3104_v21 = vpop.permute.xlu0 %3103  ;;  %v3197_v38 = vpop.permute.xlu1 %3196 }
 0x816   :  { %3268 = vmatprep.subr.mxu1 %v4418_v45  ;;  %v3114_v15 = vsel %vm8453_vm10, 0.0, %v3104_v21 }
 0x817   :  { %4174 = vmatpush1.msk.msra.mxu1 %vm7768_vm0, %v3156_v11 }
 0x818   :  { %3270 = vmatprep.subr.mxu1 %v4418_v45 }
 0x819   :  { %4175 = vmatpush1.msk.msra.mxu1 %vm7768_vm0, %v3155_v7  ;;  %v3203_v4 = vpop.permute.xlu0 %3202  ;;  %vm3208_vm0 = vcmask 474112  }
 0x81a   :  { %3272 = vmatprep.subr.mxu1 %v4418_v45  ;;  %v3212_v12 = vsel %vm3208_vm0, %v3203_v4, 0.0  ;;  %v3211_v42 = vsel %vm3208_vm0, %v3201_v14, 0.0  ;;  %v3209_v53 = vsel %vm3208_vm0, %v3197_v38, 0.0  ;;  %v3089_v14 = vld [vmem:[%s8024_s9] sm:$0xff] }
 0x81b   :  { %4176 = vmatpush1.msk.msra.mxu1 %vm7787_vm15, %v3116_v59 }
 0x81c   :  { %3274 = vmatprep.subr.mxu1 %v4418_v45 }
 0x81d   :  { %4177 = vmatpush1.msk.msra.mxu1 %vm7787_vm15, %v3115_v44  ;;  %v3199_v35 = vpop.permute.xlu0 %3198 }
 0x81e   :  { %3276 = vmatprep.subr.mxu1 %v4418_v45  ;;  %v3210_v41 = vsel %vm3208_vm0, %v3199_v35, 0.0 }
 0x81f   :  { %4178 = vmatpush1.msk.msra.mxu1 %vm7787_vm15, %v3114_v15 }
 0x820   :  { %3278 = vmatprep.subr.mxu1 %v4418_v45 }
 0x821   :  { %4179 = vmatpush1.msk.msra.mxu1 %vm7787_vm15, %v3113_v1  ;;  %v3090_v1 = vld [vmem:[%s8024_s9 + $0x8] sm:$0xff] }
 0x822   :  { %3304 = vmatprep.subr.mxu1 %v4418_v45 }
 0x823   :  { %4180 = vmatpush2.msk.msra.mxu1 %vm7807_vm9, %v3212_v12  ;;  %v3092_v12 = vld [vmem:[%s8024_s9 + $0x18] sm:$0xff] }
 0x824   :  { %3306 = vmatprep.subr.mxu1 %v4418_v45 }
 0x825   :  { %4181 = vmatpush2.msk.msra.mxu1 %vm7807_vm9, %v3211_v42 }
 0x826   :  { %3308 = vmatprep.subr.mxu1 %v4418_v45 }
 0x827   :  { %4182 = vmatpush2.msk.msra.mxu1 %vm7807_vm9, %v3210_v41 }
 0x828   :  { %3310 = vmatprep.subr.mxu1 %v4418_v45  ;;  %v3073_v45 = vld [vmem:[#allocation2 + $0x40] sm:$0xff] }
 0x829   :  { %4183 = vmatpush2.msk.msra.mxu1 %vm7807_vm9, %v3209_v53 }
 0x82a   :  { %3313 = vmatmul.mubr.f32.vlgmr.msra.gmra.mxu1 %v3065_v2 }
 0x82b   :  { %4185 = vmatprep.mubr.msk.f32.mxu1 %vm3223_vm5, %v3068_v8 }
 0x82e   :  { %3318 = vmatmul.mubr.f32.gmra.mxu1 %v3067_v20 }
 0x82f   :  { %4186 = vmatprep.mubr.msk.f32.mxu1 %vm3223_vm5, %v3070_v51 }
 0x832   :  { %3323 = vmatmul.mubr.f32.gmra.mxu1 %v3069_v30 }
 0x833   :  { %4187 = vmatprep.mubr.msk.f32.mxu1 %vm3223_vm5, %v3072_v50 }
 0x836   :  { %3328 = vmatmul.mubr.f32.gmra.mxu1 %v3071_v47 }
 0x837   :  { %4188 = vmatprep.mubr.msk.f32.mxu1 %vm3223_vm5, %v3074_v52 }
 0x83a   :  { %3333 = vmatmul.mubr.f32.gmra.mxu1 %v3073_v45 }
 0x83b   :  { %4189 = vmatprep.mubr.msk.f32.mxu1 %vm3223_vm5, %v3076_v62 }
 0x83e   :  { %3338 = vmatmul.mubr.f32.gmra.mxu1 %v3075_v34 }
 0x83f   :  { %4190 = vmatprep.mubr.msk.f32.mxu1 %vm3223_vm5, %v3078_v19 }
 0x842   :  { %3343 = vmatmul.mubr.f32.gmra.mxu1 %v3077_v28 }
 0x843   :  { %4191 = vmatprep.mubr.msk.f32.mxu1 %vm3223_vm5, %v3080_v54  ;;  %vm8457_vm5 = vcmask 523264  }
 0x844   :  { %vm8458_vm7 = vmmov %vm8457_vm5 }
 0x845   :  { %vm8459_vm8 = vmmov %vm8457_vm5 }
 0x846   :  { %3348 = vmatmul.mubr.f32.gmra.mxu1 %v3079_v33  ;;  %vm8460_vm1 = vmmov %vm8457_vm5 }
 0x847   :  { %vm8461_vm12 = vmmov %vm8460_vm1 }
 0x848   :  { %vm8462_vm13 = vmmov %vm8460_vm1 }
 0x849   :  { %vm8463_vm15 = vmmov %vm8460_vm1 }
 0x8ea   :  { %v7832_v58 = vpop.f32.mrf.mxu1 }
 0x8eb   :  { %v3386_v43 = vmul.f32 %v7832_v58, %v7832_v58  ;;  %v3354_v22 = vsel %vm3353_vm6, %v7832_v58, 0.0 }
 0x8ec   :  { %3355 = vadd.xlane.f32.xlu0 %v3354_v22  ;;  %v3316_v17 = vpop.f32.mrf.mxu1 }
 0x8ed   :  { %v3394_v63 = vsel %vm3353_vm6, %v3386_v43, 0.0 }
 0x8ee   :  { %v7838_v25 = vpop.f32.mrf.mxu1 }
 0x8ef   :  { %v3387_v27 = vmul.f32 %v7838_v25, %v7838_v25  ;;  %v3357_v32 = vsel %vm3353_vm6, %v7838_v25, 0.0 }
 0x8f0   :  { %3395 = vadd.xlane.f32.xlu0 %v3394_v63  ;;  %3358 = vadd.xlane.f32.xlu1 %v3357_v32  ;;  %v3321_v6 = vpop.f32.mrf.mxu1 }
 0x8f1   :  { %v3397_v18 = vsel %vm3353_vm6, %v3387_v27, 0.0 }
 0x8f2   :  { %v7845_v29 = vpop.f32.mrf.mxu1 }
 0x8f3   :  { %v3388_v31 = vmul.f32 %v7845_v29, %v7845_v29  ;;  %v3360_v60 = vsel %vm3353_vm6, %v7845_v29, 0.0 }
 0x8f4   :  { %3398 = vadd.xlane.f32.xlu1 %v3397_v18  ;;  %3361 = vadd.xlane.f32.xlu0 %v3360_v60  ;;  %v3326_v10 = vpop.f32.mrf.mxu1 }
 0x8f5   :  { %v3400_v26 = vsel %vm3353_vm6, %v3388_v31, 0.0 }
 0x8f6   :  { %v7852_v61 = vpop.f32.mrf.mxu1 }
 0x8f7   :  { %v3389_v46 = vmul.f32 %v7852_v61, %v7852_v61  ;;  %v3363_v39 = vsel %vm3353_vm6, %v7852_v61, 0.0 }
 0x8f8   :  { %3401 = vadd.xlane.f32.xlu1 %v3400_v26  ;;  %3364 = vadd.xlane.f32.xlu0 %v3363_v39  ;;  %v3331_v16 = vpop.f32.mrf.mxu1 }
 0x8f9   :  { %v3403_v23 = vsel %vm3353_vm6, %v3389_v46, 0.0 }
 0x8fa   :  { %v7859_v37 = vpop.f32.mrf.mxu1 }
 0x8fb   :  { %v3390_v0 = vmul.f32 %v7859_v37, %v7859_v37  ;;  %v3366_v9 = vsel %vm3353_vm6, %v7859_v37, 0.0 }
 0x8fc   :  { %3404 = vadd.xlane.f32.xlu1 %v3403_v23  ;;  %3367 = vadd.xlane.f32.xlu0 %v3366_v9  ;;  %v3336_v5 = vpop.f32.mrf.mxu1 }
 0x8fd   :  { %v3406_v36 = vsel %vm3353_vm6, %v3390_v0, 0.0 }
 0x8fe   :  { %v7866_v24 = vpop.f32.mrf.mxu1 }
 0x8ff   :  { %v3391_v57 = vmul.f32 %v7866_v24, %v7866_v24  ;;  %v3369_v56 = vsel %vm3353_vm6, %v7866_v24, 0.0 }
 0x900   :  { %3407 = vadd.xlane.f32.xlu1 %v3406_v36  ;;  %3370 = vadd.xlane.f32.xlu0 %v3369_v56  ;;  %v3341_v55 = vpop.f32.mrf.mxu1 }
 0x901   :  { %v3409_v21 = vsel %vm3353_vm6, %v3391_v57, 0.0 }
 0x902   :  { %v7873_v49 = vpop.f32.mrf.mxu1 }
 0x903   :  { %v3392_v11 = vmul.f32 %v7873_v49, %v7873_v49  ;;  %v3372_v7 = vsel %vm3353_vm6, %v7873_v49, 0.0 }
 0x904   :  { %3410 = vadd.xlane.f32.xlu1 %v3409_v21  ;;  %3373 = vadd.xlane.f32.xlu0 %v3372_v7  ;;  %v3346_v3 = vpop.f32.mrf.mxu1 }
 0x905   :  { %v3412_v59 = vsel %vm3353_vm6, %v3392_v11, 0.0  ;;  %v3081_v11 = vld [vmem:[%s8023_s8] sm:$0xff] }
 0x906   :  { %v7880_v13 = vpop.f32.mrf.mxu1 }
 0x907   :  { %v3393_v40 = vmul.f32 %v7880_v13, %v7880_v13  ;;  %v3375_v44 = vsel %vm3353_vm6, %v7880_v13, 0.0 }
 0x908   :  { %3413 = vadd.xlane.f32.xlu1 %v3412_v59  ;;  %3376 = vadd.xlane.f32.xlu0 %v3375_v44  ;;  %v3351_v4 = vpop.f32.mrf.mxu1 }
 0x909   :  { %v3415_v15 = vsel %vm3353_vm6, %v3393_v40, 0.0 }
 0x90c   :  { %3416 = vadd.xlane.f32.xlu0 %v3415_v15 }
 0x919   :  { %3532 = vperm.xlu1 %4232, %v3089_v14  }
 0x922   :  { %3537 = vperm.xlu0 %4233, %v3090_v1  }
 0x926   :  { %3542 = vperm.xlu0 %4233, %v3091_v48   ;;  %v3082_v48 = vld [vmem:[%s8023_s8 + $0x8] sm:$0xff] }
 0x92a   :  { %3547 = vperm.xlu0 %4233, %v3092_v12  }
 0x975   :  { %v3356_v35 = vpop.xlane.xlu0 %3355 }
 0x976   :  { %v7900_v42 = vmul.f32 0.016666668, %v3356_v35 }
 0x978   :  { %v3426_v2 = vmul.f32 %v7900_v42, %v7900_v42 }
 0x979   :  { %v3396_v38 = vpop.xlane.xlu0 %3395  ;;  %v3359_v41 = vpop.xlane.xlu1 %3358 }
 0x97a   :  { %v3418_v53 = vmul.f32 0.016666668, %v3396_v38  ;;  %v7904_v8 = vmul.f32 0.016666668, %v3359_v41 }
 0x97c   :  { %v3434_v20 = vsub.f32 %v3418_v53, %v3426_v2  ;;  %v3427_v47 = vmul.f32 %v7904_v8, %v7904_v8 }
 0x97d   :  { %v3399_v51 = vpop.xlane.xlu1 %3398  ;;  %v3362_v30 = vpop.xlane.xlu0 %3361 }
 0x97e   :  { %v3442_v50 = vmax.f32 %v3434_v20, 0.0  ;;  %v3419_v52 = vmul.f32 0.016666668, %v3399_v51  ;;  %v7908_v45 = vmul.f32 0.016666668, %v3362_v30  ;;  %v3083_v30 = vld [vmem:[%s8023_s8 + $0x10] sm:$0xff] }
 0x980   :  { %v3450_v62 = vadd.f32 1e-05, %v3442_v50  ;;  %v3435_v34 = vsub.f32 %v3419_v52, %v3427_v47  ;;  %v3428_v19 = vmul.f32 %v7908_v45, %v7908_v45 }
 0x981   :  { %v3402_v28 = vpop.xlane.xlu1 %3401  ;;  %v3365_v54 = vpop.xlane.xlu0 %3364 }
 0x982   :  { %4366 = vrsqrt.f32 %v3450_v62  ;;  %v3443_v33 = vmax.f32 %v3435_v34, 0.0  ;;  %v3420_v43 = vmul.f32 0.016666668, %v3402_v28  ;;  %v7912_v22 = vmul.f32 0.016666668, %v3365_v54  ;;  %v3093_v34 = vld [vmem:[%s8024_s9 + $0x20] sm:$0xff] }
 0x984   :  { %v3451_v17 = vadd.f32 1e-05, %v3443_v33  ;;  %v3436_v27 = vsub.f32 %v3420_v43, %v3428_v19  ;;  %v3429_v63 = vmul.f32 %v7912_v22, %v7912_v22  ;;  %v3084_v33 = vld [vmem:[%s8023_s8 + $0x18] sm:$0xff] }
 0x985   :  { %v3405_v32 = vpop.xlane.xlu1 %3404  ;;  %v3368_v6 = vpop.xlane.xlu0 %3367 }
 0x986   :  { %4368 = vrsqrt.f32 %v3451_v17  ;;  %v3444_v31 = vmax.f32 %v3436_v27, 0.0  ;;  %v3421_v18 = vmul.f32 0.016666668, %v3405_v32  ;;  %v7916_v60 = vmul.f32 0.016666668, %v3368_v6  ;;  %v3094_v27 = vld [vmem:[%s8024_s9 + $0x28] sm:$0xff] }
 0x987   :  { %v3085_v6 = vld [vmem:[%s8023_s8 + $0x20] sm:$0xff] }
 0x988   :  { %v3452_v10 = vadd.f32 1e-05, %v3444_v31  ;;  %v3437_v46 = vsub.f32 %v3421_v18, %v3429_v63  ;;  %v3430_v26 = vmul.f32 %v7916_v60, %v7916_v60  ;;  %v3095_v18 = vld [vmem:[%s8024_s9 + $0x30] sm:$0xff] }
 0x989   :  { %v3408_v39 = vpop.xlane.xlu1 %3407  ;;  %v3371_v16 = vpop.xlane.xlu0 %3370 }
 0x98a   :  { %4370 = vrsqrt.f32 %v3452_v10  ;;  %v3445_v0 = vmax.f32 %v3437_v46, 0.0  ;;  %v3422_v23 = vmul.f32 0.016666668, %v3408_v39  ;;  %v7920_v9 = vmul.f32 0.016666668, %v3371_v16  ;;  %v3086_v46 = vld [vmem:[%s8023_s8 + $0x28] sm:$0xff] }
 0x98b   :  { %v3087_v16 = vld [vmem:[%s8023_s8 + $0x30] sm:$0xff] }
 0x98c   :  { %v3453_v5 = vadd.f32 1e-05, %v3445_v0  ;;  %v3438_v57 = vsub.f32 %v3422_v23, %v3430_v26  ;;  %v3431_v36 = vmul.f32 %v7920_v9, %v7920_v9 }
 0x98d   :  { %v3411_v56 = vpop.xlane.xlu1 %3410  ;;  %v3374_v55 = vpop.xlane.xlu0 %3373 }
 0x98e   :  { %4372 = vrsqrt.f32 %v3453_v5  ;;  %v3446_v21 = vmax.f32 %v3438_v57, 0.0  ;;  %v3423_v7 = vmul.f32 0.016666668, %v3411_v56  ;;  %v7927_v3 = vmul.f32 0.016666668, %v3374_v55  ;;  %v3088_v5 = vld [vmem:[%s8023_s8 + $0x38] sm:$0xff] }
 0x98f   :  { %v4367_v40 = vpop.eup %4366  ;;  %v3096_v56 = vld [vmem:[%s8024_s9 + $0x38] sm:$0xff] }
 0x990   :  { %v3454_v59 = vadd.f32 1e-05, %v3446_v21  ;;  %v3439_v44 = vsub.f32 %v3423_v7, %v3431_v36  ;;  %v3466_v4 = vmul.f32 %v4367_v40, %v3081_v11  ;;  %v3432_v15 = vmul.f32 %v7927_v3, %v7927_v3 }
 0x991   :  { %v3414_v14 = vpop.xlane.xlu1 %3413  ;;  %v3377_v1 = vpop.xlane.xlu0 %3376  ;;  %v3474_v7 = vsub.f32 %v7832_v58, %v7900_v42  ;;  %v3477_v58 = vsub.f32 %v7852_v61, %v7912_v22 }
 0x992   :  { %4374 = vrsqrt.f32 %v3454_v59  ;;  %v3447_v12 = vmax.f32 %v3439_v44, 0.0  ;;  %v3424_v35 = vmul.f32 0.016666668, %v3414_v14  ;;  %v7934_v38 = vmul.f32 0.016666668, %v3377_v1  ;;  %3484 = vperm.xlu1 %4232, %v3466_v4  }
 0x993   :  { %v4369_v41 = vpop.eup %4368 }
 0x994   :  { %v3455_v2 = vadd.f32 1e-05, %v3447_v12  ;;  %v3440_v53 = vsub.f32 %v3424_v35, %v3432_v15  ;;  %v3467_v20 = vmul.f32 %v4369_v41, %v3082_v48  ;;  %v3433_v47 = vmul.f32 %v7934_v38, %v7934_v38 }
 0x995   :  { %v3417_v51 = vpop.xlane.xlu0 %3416  ;;  %v3533_v21 = vpop.permute.xlu1 %3532  ;;  %v3475_v15 = vsub.f32 %v7838_v25, %v7904_v8  ;;  %v3476_v35 = vsub.f32 %v7845_v29, %v7908_v45 }
 0x996   :  { %4376 = vrsqrt.f32 %v3455_v2  ;;  %v3448_v50 = vmax.f32 %v3440_v53, 0.0  ;;  %v3425_v52 = vmul.f32 0.016666668, %v3417_v51  ;;  %3489 = vperm.xlu0 %4233, %v3467_v20  }
 0x997   :  { %v4371_v62 = vpop.eup %4370 }
 0x998   :  { %v3456_v19 = vadd.f32 1e-05, %v3448_v50  ;;  %v3441_v28 = vsub.f32 %v3425_v52, %v3433_v47  ;;  %v3468_v54 = vmul.f32 %v4371_v62, %v3083_v30  ;;  %v3478_v50 = vsub.f32 %v7859_v37, %v7916_v60 }
 0x999   :  { %v3479_v62 = vsub.f32 %v7866_v24, %v7920_v9  ;;  %v3481_v24 = vsub.f32 %v7880_v13, %v7934_v38 }
 0x99a   :  { %4378 = vrsqrt.f32 %v3456_v19  ;;  %v3449_v43 = vmax.f32 %v3441_v28, 0.0  ;;  %3494 = vperm.xlu1 %4232, %v3468_v54   ;;  %3552 = vperm.xlu0 %4233, %v3093_v34   ;;  %v3480_v54 = vsub.f32 %v7873_v49, %v7927_v3 }
 0x99b   :  { %v4373_v17 = vpop.eup %4372 }
 0x99c   :  { %v3457_v63 = vadd.f32 1e-05, %v3449_v43  ;;  %v3469_v32 = vmul.f32 %v4373_v17, %v3084_v33 }
 0x99d   :  { %v3538_v55 = vpop.permute.xlu0 %3537 }
 0x99e   :  { %4380 = vrsqrt.f32 %v3457_v63  ;;  %3499 = vperm.xlu1 %4232, %v3469_v32   ;;  %3557 = vperm.xlu0 %4233, %v3094_v27  }
 0x99f   :  { %v4375_v31 = vpop.eup %4374 }
 0x9a0   :  { %v3470_v10 = vmul.f32 %v4375_v31, %v3085_v6 }
 0x9a1   :  { %v3543_v11 = vpop.permute.xlu0 %3542 }
 0x9a2   :  { %3504 = vperm.xlu1 %4232, %v3470_v10   ;;  %3562 = vperm.xlu0 %4233, %v3095_v18  }
 0x9a3   :  { %v4377_v26 = vpop.eup %4376 }
 0x9a4   :  { %v3471_v39 = vmul.f32 %v4377_v26, %v3086_v46 }
 0x9a5   :  { %v3548_v40 = vpop.permute.xlu0 %3547 }
 0x9a6   :  { %3509 = vperm.xlu1 %4232, %v3471_v39  }
 0x9a7   :  { %v4379_v0 = vpop.eup %4378 }
 0x9a8   :  { %v3472_v23 = vmul.f32 %v4379_v0, %v3087_v16 }
 0x9aa   :  { %3514 = vperm.xlu1 %4232, %v3472_v23  }
 0x9ab   :  { %v4381_v57 = vpop.eup %4380 }
 0x9ac   :  { %v3473_v36 = vmul.f32 %v4381_v57, %v3088_v5 }
 0x9ae   :  { %3519 = vperm.xlu1 %4232, %v3473_v36  }
 0x9b2   :  { %3567 = vperm.xlu1 %4232, %v3096_v56  }
 0xa0d   :  { %v3485_v59 = vpop.permute.xlu1 %3484 }
 0xa0e   :  { %v3522_v44 = vmul.f32 %v3485_v59, %v3474_v7 }
 0xa10   :  { %v3570_v4 = vadd.f32 %v3533_v21, %v3522_v44 }
 0xa11   :  { %v3490_v14 = vpop.permute.xlu0 %3489 }
 0xa12   :  { %v3578_v1 = vmax.f32 %v3570_v4, 0.0  ;;  %v3523_v48 = vmul.f32 %v3490_v14, %v3475_v15 }
 0xa14   :  { %v3571_v12 = vadd.f32 %v3538_v55, %v3523_v48  ;;  %3586 = vxpose.xlu0.b32.start [1/8] (short) (narrow) %v3578_v1, 64 }
 0xa15   :  { %v3495_v41 = vpop.permute.xlu1 %3494  ;;  %v3553_v25 = vpop.permute.xlu0 %3552 }
 0xa16   :  { %v3579_v2 = vmax.f32 %v3571_v12, 0.0  ;;  %v3524_v53 = vmul.f32 %v3495_v41, %v3476_v35 }
 0xa18   :  { %v3572_v20 = vadd.f32 %v3543_v11, %v3524_v53  ;;  %3587 = vxpose.xlu0.b32.cont [2/8] (short) (narrow) %v3579_v2, 64 }
 0xa19   :  { %v3500_v42 = vpop.permute.xlu1 %3499  ;;  %v3558_v34 = vpop.permute.xlu0 %3557 }
 0xa1a   :  { %v3580_v51 = vmax.f32 %v3572_v20, 0.0  ;;  %v3525_v30 = vmul.f32 %v3500_v42, %v3477_v58 }
 0xa1c   :  { %v3573_v8 = vadd.f32 %v3548_v40, %v3525_v30  ;;  %3588 = vxpose.xlu0.b32.cont [3/8] (short) (narrow) %v3580_v51, 64 }
 0xa1d   :  { %v3505_v47 = vpop.permute.xlu1 %3504  ;;  %v3563_v60 = vpop.permute.xlu0 %3562 }
 0xa1e   :  { %v3581_v52 = vmax.f32 %v3573_v8, 0.0  ;;  %v3526_v29 = vmul.f32 %v3505_v47, %v3478_v50 }
 0xa20   :  { %v3574_v45 = vadd.f32 %v3553_v25, %v3526_v29  ;;  %3589 = vxpose.xlu0.b32.cont [4/8] (short) (narrow) %v3581_v52, 64 }
 0xa21   :  { %v3510_v19 = vpop.permute.xlu1 %3509 }
 0xa22   :  { %v3582_v61 = vmax.f32 %v3574_v45, 0.0  ;;  %v3527_v22 = vmul.f32 %v3510_v19, %v3479_v62 }
 0xa24   :  { %v3575_v28 = vadd.f32 %v3558_v34, %v3527_v22  ;;  %3590 = vxpose.xlu0.b32.cont [5/8] (short) (narrow) %v3582_v61, 64 }
 0xa25   :  { %v3515_v33 = vpop.permute.xlu1 %3514 }
 0xa26   :  { %v3583_v43 = vmax.f32 %v3575_v28, 0.0  ;;  %v3528_v37 = vmul.f32 %v3515_v33, %v3480_v54 }
 0xa28   :  { %v3576_v17 = vadd.f32 %v3563_v60, %v3528_v37  ;;  %3591 = vxpose.xlu0.b32.cont [6/8] (short) (narrow) %v3583_v43, 64 }
 0xa29   :  { %v3520_v27 = vpop.permute.xlu1 %3519 }
 0xa2a   :  { %v3584_v63 = vmax.f32 %v3576_v17, 0.0  ;;  %v3529_v9 = vmul.f32 %v3520_v27, %v3481_v24 }
 0xa2c   :  { %3592 = vxpose.xlu0.b32.cont [7/8] (short) (narrow) %v3584_v63, 64 }
 0xa2d   :  { %v3568_v32 = vpop.permute.xlu1 %3567 }
 0xa2e   :  { %v3577_v6 = vadd.f32 %v3568_v32, %v3529_v9 }
 0xa30   :  { %v3585_v31 = vmax.f32 %v3577_v6, 0.0 }
 0xa32   :  { %3593 = vxpose.xlu0.b32.end [8/8] (short) (narrow) %v3585_v31, 64 }
 0xa92   :  { %v3602_v18 = vpop.trf.xlu0 }
 0xa93   :  { %3618 = vst.msk [vmem:[%s8025_s10] sm:$0xff] %vm8457_vm5, %v3602_v18 }
 0xa96   :  { %v3603_v49 = vpop.trf.xlu0 }
 0xa97   :  { %3619 = vst.msk [vmem:[%s8025_s10 + $0x8] sm:$0xff] %vm8458_vm7, %v3603_v49 }
 0xa9a   :  { %v3604_v3 = vpop.trf.xlu0 }
 0xa9b   :  { %3620 = vst.msk [vmem:[%s8025_s10 + $0x10] sm:$0xff] %vm8459_vm8, %v3604_v3 }
 0xa9e   :  { %v3605_v13 = vpop.trf.xlu0 }
 0xa9f   :  { %3621 = vst.msk [vmem:[%s8025_s10 + $0x18] sm:$0xff] %vm8460_vm1, %v3605_v13 }
 0xaa2   :  { %v3606_v38 = vpop.trf.xlu0 }
 0xaa3   :  { %3622 = vst.msk [vmem:[%s8025_s10 + $0x20] sm:$0xff] %vm8461_vm12, %v3606_v38 }
 0xaa6   :  { %v3607_v10 = vpop.trf.xlu0 }
 0xaa7   :  { %3623 = vst.msk [vmem:[%s8025_s10 + $0x28] sm:$0xff] %vm8462_vm13, %v3607_v10 }
 0xaaa   :  { %v3608_v46 = vpop.trf.xlu0 }
 0xaab   :  { %3624 = vst.msk [vmem:[%s8025_s10 + $0x30] sm:$0xff] %vm8463_vm15, %v3608_v46 }
 0xaae   :  { %v3609_v26 = vpop.trf.xlu0 }
 0xaaf   :  { %3626 = vst.msk [vmem:[%s8025_s10 + $0x38] sm:$0xf] %vm3625_vm3, %v3609_v26 }
 0xab0   :  { %3631 = vsyncpa [#allocation3], 1 }

</bundles_post_ra>
